<compile_context>
chip_gen: v6e
topology: v6e:2x2x1
jax: 0.10.0
libtpu: 0.0.40
codegen_flags: <defaults>
</compile_context>

<pallas_src>
import functools

import jax
import jax.numpy as jnp
from jax.experimental import pallas as pl
from jax.experimental.pallas import tpu as pltpu

BN_EPS = 1e-5


def _pick_band_rows(H, W, target_rows=512):
    """Largest divisor bh of H with bh * W <= target_rows (at least 1)."""
    bh = 1
    for d in range(1, H + 1):
        if H % d == 0 and d * W <= target_rows:
            bh = d
    return bh


def _basic_block_kernel(x_ref, w1_ref, b1_ref, w2_ref, b2_ref, out_ref,
                        pad_ref, col_ref, *, H, W, C, BH):
    """Fused BasicBlock for one batch element (channels already lane-padded).

    x_ref  : (H, W, C)      f32   input block (also the residual)
    w1_ref : (9*C, C)       bf16  conv1 weights, im2col layout, BN1 scale folded
    b1_ref : (1, C)         f32   BN1 bias
    w2_ref : (9*C, C)       bf16  conv2 weights, im2col layout, BN2 scale folded
    b2_ref : (1, C)         f32   BN2 bias
    out_ref: (H, W, C)      f32
    pad_ref: (H+2, W+2, C)  bf16  VMEM scratch: zero-padded activation
    col_ref: (H*W, 9*C)     bf16  VMEM scratch: im2col matrix
    """
    cdt = pad_ref.dtype  # bf16 compute dtype for the MXU path

    # ---- zero only the halo strips (interior is fully overwritten below) ---
    pad_ref[0:1, :, :] = jnp.zeros((1, W + 2, C), cdt)
    pad_ref[H + 1:H + 2, :, :] = jnp.zeros((1, W + 2, C), cdt)
    pad_ref[:, 0:1, :] = jnp.zeros((H + 2, 1, C), cdt)
    pad_ref[:, W + 1:W + 2, :] = jnp.zeros((H + 2, 1, C), cdt)

    def im2col():
        # col[:, t*C:(t+1)*C] = pad[dy:dy+H, dx:dx+W, :]   (t = dy*3 + dx)
        # Plain sliced copies; lane offsets t*C are multiples of 128.
        for dy in range(3):
            for dx in range(3):
                t = dy * 3 + dx
                col_ref[:, t * C:(t + 1) * C] = (
                    pad_ref[dy:dy + H, dx:dx + W, :].reshape(H * W, C))

    n_bands = H // BH

    # ---- conv1 (BN1 scale pre-folded) + bias + relu -------------------------
    pad_ref[1:H + 1, 1:W + 1, :] = x_ref[...].astype(cdt)
    im2col()
    for b in range(n_bands):
        r0 = b * BH * W
        acc = jnp.dot(col_ref[r0:r0 + BH * W, :], w1_ref[...],
                      preferred_element_type=jnp.float32)       # (BH*W, C) f32
        acc = jnp.maximum(acc + b1_ref[...], 0.0)
        # Intermediate activation stays in VMEM (halo still zero).
        pad_ref[1 + b * BH:1 + (b + 1) * BH, 1:W + 1, :] = (
            acc.reshape(BH, W, C).astype(cdt))

    # ---- conv2 (BN2 scale pre-folded) + bias + residual + relu --------------
    im2col()
    for b in range(n_bands):
        r0 = b * BH * W
        acc = jnp.dot(col_ref[r0:r0 + BH * W, :], w2_ref[...],
                      preferred_element_type=jnp.float32)       # (BH*W, C) f32
        res = x_ref[b * BH:(b + 1) * BH, :, :].astype(jnp.float32)
        acc = acc + b2_ref[...] + res.reshape(BH * W, C)
        acc = jnp.maximum(acc, 0.0)
        out_ref[b * BH:(b + 1) * BH, :, :] = (
            acc.reshape(BH, W, C).astype(out_ref.dtype))


def basic_block_forward(x_nchw, params):
    """BasicBlock forward (stride=1, downsample=None), PyTorch-equivalent.

    Eval-mode BatchNorm: running stats folded into the conv weights (scale)
    and a per-channel f32 bias.
    """
    N, Cin, H, W = x_nchw.shape
    planes, inplanes = params["conv1_w"].shape[:2]
    assert inplanes == Cin and planes == Cin, (
        "stride=1 / downsample=None BasicBlock requires inplanes == planes")
    C = Cin
    dtype = x_nchw.dtype
    Cp = ((C + 127) // 128) * 128          # lane-pad channels to >= 128

    x_nhwc = jnp.transpose(x_nchw, (0, 2, 3, 1))              # NCHW -> NHWC
    if Cp != C:
        x_nhwc = jnp.pad(x_nhwc, ((0, 0), (0, 0), (0, 0), (0, Cp - C)))

    # Fold eval-mode BN into the conv weights (scale) and a per-channel bias.
    s1 = params["bn1_gamma"] * jax.lax.rsqrt(params["bn1_var"] + BN_EPS)
    b1 = params["bn1_beta"] - params["bn1_mean"] * s1
    s2 = params["bn2_gamma"] * jax.lax.rsqrt(params["bn2_var"] + BN_EPS)
    b2 = params["bn2_beta"] - params["bn2_mean"] * s2

    def prep_w(w_oihw, scale):
        # OIHW -> HWIO, fold BN scale, zero-pad channels, im2col (9*Cp, Cp).
        w = jnp.transpose(w_oihw, (2, 3, 1, 0)) * scale[None, None, None, :]
        w = jnp.pad(w, ((0, 0), (0, 0), (0, Cp - C), (0, Cp - C)))
        return w.reshape(9 * Cp, Cp).astype(jnp.bfloat16)

    w1 = prep_w(params["conv1_w"], s1)
    w2 = prep_w(params["conv2_w"], s2)
    b1 = jnp.pad(b1, (0, Cp - C)).reshape(1, Cp).astype(jnp.float32)
    b2 = jnp.pad(b2, (0, Cp - C)).reshape(1, Cp).astype(jnp.float32)

    BH = _pick_band_rows(H, W)
    kernel = functools.partial(_basic_block_kernel, H=H, W=W, C=Cp, BH=BH)

    # VMEM budget: double-buffered in/out blocks + weights + bf16 scratch.
    blk = H * W * Cp * 4
    wb = 9 * Cp * Cp * 2
    scratch = (H + 2) * (W + 2) * Cp * 2 + H * W * 9 * Cp * 2
    need = 2 * (2 * blk) + 2 * (2 * wb) + scratch + 4 * Cp * 4
    # Clamp to [32 MiB, 64 MiB]: plenty for the demo and safe on v7x's 64 MiB
    # physical VMEM (raise toward 96+ MiB on v5e/v6e for much larger blocks).
    vmem_limit = int(min(max(2 * need, 32 * 1024 * 1024), 64 * 1024 * 1024))

    out = pl.pallas_call(
        kernel,
        out_shape=jax.ShapeDtypeStruct((N, H, W, Cp), dtype),
        grid_spec=pltpu.PrefetchScalarGridSpec(
            num_scalar_prefetch=0,
            grid=(N,),
            in_specs=[
                pl.BlockSpec((None, H, W, Cp), lambda n: (n, 0, 0, 0)),
                pl.BlockSpec((9 * Cp, Cp), lambda n: (0, 0)),
                pl.BlockSpec((1, Cp), lambda n: (0, 0)),
                pl.BlockSpec((9 * Cp, Cp), lambda n: (0, 0)),
                pl.BlockSpec((1, Cp), lambda n: (0, 0)),
            ],
            out_specs=pl.BlockSpec((None, H, W, Cp), lambda n: (n, 0, 0, 0)),
            scratch_shapes=[
                pltpu.VMEM((H + 2, W + 2, Cp), jnp.bfloat16),   # padded act.
                pltpu.VMEM((H * W, 9 * Cp), jnp.bfloat16),      # im2col matrix
            ],
        ),
        compiler_params=pltpu.CompilerParams(
            dimension_semantics=("parallel",),
            vmem_limit_bytes=vmem_limit),
    )(x_nhwc, w1, b1, w2, b2)

    out = out[..., :C]                                        # drop lane pad
    return jnp.transpose(out, (0, 3, 1, 2))                   # NHWC -> NCHW


def init_basic_block_params(key, inplanes, planes):
    ks = jax.random.split(key, 10)
    return {
        "conv1_w": 0.1 * jax.random.normal(ks[0], (planes, inplanes, 3, 3),
                                           jnp.float32),      # OIHW
        "conv2_w": 0.1 * jax.random.normal(ks[1], (planes, planes, 3, 3),
                                           jnp.float32),      # OIHW
        "bn1_gamma": 1.0 + 0.1 * jax.random.normal(ks[2], (planes,), jnp.float32),
        "bn1_beta": 0.1 * jax.random.normal(ks[3], (planes,), jnp.float32),
        "bn1_mean": 0.1 * jax.random.normal(ks[4], (planes,), jnp.float32),
        "bn1_var": jax.random.uniform(ks[5], (planes,), jnp.float32, 0.5, 1.5),
        "bn2_gamma": 1.0 + 0.1 * jax.random.normal(ks[6], (planes,), jnp.float32),
        "bn2_beta": 0.1 * jax.random.normal(ks[7], (planes,), jnp.float32),
        "bn2_mean": 0.1 * jax.random.normal(ks[8], (planes,), jnp.float32),
        "bn2_var": jax.random.uniform(ks[9], (planes,), jnp.float32, 0.5, 1.5),
    }


def basic_block_reference(x_nchw, params):
    """Pure-JAX f32 reference (mirrors the PyTorch forward, eval-mode BN)."""
    def conv(x, w):
        return jax.lax.conv_general_dilated(
            x, w, window_strides=(1, 1), padding=((1, 1), (1, 1)),
            dimension_numbers=("NCHW", "OIHW", "NCHW"))

    def bn(x, g, b, m, v):
        g, b, m, v = (a[None, :, None, None] for a in (g, b, m, v))
        return (x - m) / jnp.sqrt(v + BN_EPS) * g + b

    out = conv(x_nchw, params["conv1_w"])
    out = bn(out, params["bn1_gamma"], params["bn1_beta"],
             params["bn1_mean"], params["bn1_var"])
    out = jnp.maximum(out, 0.0)
    out = conv(out, params["conv2_w"])
    out = bn(out, params["bn2_gamma"], params["bn2_beta"],
             params["bn2_mean"], params["bn2_var"])
    out = out + x_nchw
    return jnp.maximum(out, 0.0)


if __name__ == "__main__":
    # BasicBlock(inplanes=8, planes=8, stride=1, downsample=None)
    N, C, H, W = 2, 8, 16, 16
    key = jax.random.PRNGKey(0)
    kx, kp = jax.random.split(key)
    x = jax.random.normal(kx, (N, C, H, W), jnp.float32)
    params = init_basic_block_params(kp, inplanes=C, planes=C)

    out = jax.block_until_ready(basic_block_forward(x, params))
    ref = jax.block_until_ready(basic_block_reference(x, params))

    assert out.shape == (N, C, H, W)
    max_err = float(jnp.max(jnp.abs(out - ref)))
    # bf16 MXU operands + bf16 inter-conv activation -> loosened tolerance.
    assert jnp.allclose(out, ref, rtol=3e-2, atol=3e-2), max_err

    print("KERNEL_OK")
</pallas_src>

<mosaic_0001>
module attributes {stable_mosaic.version = 11 : i64} {
  func.func @_basic_block_kernel(%arg0: i32, %arg1: memref<1x16x16x128xf32, #tpu.memory_space<vmem>>, %arg2: memref<1152x128xbf16, #tpu.memory_space<vmem>>, %arg3: memref<1x128xf32, #tpu.memory_space<vmem>>, %arg4: memref<1152x128xbf16, #tpu.memory_space<vmem>>, %arg5: memref<1x128xf32, #tpu.memory_space<vmem>>, %arg6: memref<1x16x16x128xf32, #tpu.memory_space<vmem>>, %arg7: memref<18x18x128xbf16, #tpu.memory_space<vmem>>, %arg8: memref<256x1152xbf16, #tpu.memory_space<vmem>>) attributes {dimension_semantics = [#tpu.dimension_semantics<parallel>], iteration_bounds = array<i64: 2>, scalar_prefetch = 0 : i64, scratch_operands = 2 : i64, tpu.core_type = #tpu.core_type<tc>, window_params = [{transform_indices = @transform_0, window_bounds = array<i64: 1, 16, 16, 128>}, {pipeline_mode = #tpu.pipeline_mode<synchronous>, transform_indices = @transform_1, window_bounds = array<i64: 1152, 128>}, {pipeline_mode = #tpu.pipeline_mode<synchronous>, transform_indices = @transform_2, window_bounds = array<i64: 1, 128>}, {pipeline_mode = #tpu.pipeline_mode<synchronous>, transform_indices = @transform_3, window_bounds = array<i64: 1152, 128>}, {pipeline_mode = #tpu.pipeline_mode<synchronous>, transform_indices = @transform_4, window_bounds = array<i64: 1, 128>}, {transform_indices = @transform_5, window_bounds = array<i64: 1, 16, 16, 128>}]} {
    %cst = arith.constant 0.000000e+00 : bf16
    %0 = vector.broadcast %cst : bf16 to vector<1x18x128xbf16>
    %c0 = arith.constant 0 : index
    %c0_0 = arith.constant 0 : index
    %c0_1 = arith.constant 0 : index
    %1 = vector.load %arg7[%c0, %c0_0, %c0_1] : memref<18x18x128xbf16, #tpu.memory_space<vmem>>, vector<1x18x128xbf16>
    tpu.vector_store %arg7[%c0, %c0_0, %c0_1], %0 {strides = array<i32>} : memref<18x18x128xbf16, #tpu.memory_space<vmem>>, vector<1x18x128xbf16>,
    %cst_2 = arith.constant 0.000000e+00 : bf16
    %2 = vector.broadcast %cst_2 : bf16 to vector<1x18x128xbf16>
    %c17 = arith.constant 17 : index
    %c0_3 = arith.constant 0 : index
    %c0_4 = arith.constant 0 : index
    %3 = vector.load %arg7[%c17, %c0_3, %c0_4] : memref<18x18x128xbf16, #tpu.memory_space<vmem>>, vector<1x18x128xbf16>
    tpu.vector_store %arg7[%c17, %c0_3, %c0_4], %2 {strides = array<i32>} : memref<18x18x128xbf16, #tpu.memory_space<vmem>>, vector<1x18x128xbf16>,
    %cst_5 = arith.constant 0.000000e+00 : bf16
    %4 = vector.broadcast %cst_5 : bf16 to vector<18x1x128xbf16>
    %c0_6 = arith.constant 0 : index
    %c0_7 = arith.constant 0 : index
    %c0_8 = arith.constant 0 : index
    %5 = vector.load %arg7[%c0_6, %c0_7, %c0_8] : memref<18x18x128xbf16, #tpu.memory_space<vmem>>, vector<18x1x128xbf16>
    tpu.vector_store %arg7[%c0_6, %c0_7, %c0_8], %4 {strides = array<i32>} : memref<18x18x128xbf16, #tpu.memory_space<vmem>>, vector<18x1x128xbf16>,
    %cst_9 = arith.constant 0.000000e+00 : bf16
    %6 = vector.broadcast %cst_9 : bf16 to vector<18x1x128xbf16>
    %c0_10 = arith.constant 0 : index
    %c17_11 = arith.constant 17 : index
    %c0_12 = arith.constant 0 : index
    %7 = vector.load %arg7[%c0_10, %c17_11, %c0_12] : memref<18x18x128xbf16, #tpu.memory_space<vmem>>, vector<18x1x128xbf16>
    tpu.vector_store %arg7[%c0_10, %c17_11, %c0_12], %6 {strides = array<i32>} : memref<18x18x128xbf16, #tpu.memory_space<vmem>>, vector<18x1x128xbf16>,
    %c0_13 = arith.constant 0 : index
    %c0_14 = arith.constant 0 : index
    %c0_15 = arith.constant 0 : index
    %c0_16 = arith.constant 0 : index
    %8 = vector.load %arg1[%c0_13, %c0_14, %c0_15, %c0_16] : memref<1x16x16x128xf32, #tpu.memory_space<vmem>>, vector<1x16x16x128xf32>
    %9 = vector.shape_cast %8 : vector<1x16x16x128xf32> to vector<16x16x128xf32>
    %10 = arith.truncf %9 : vector<16x16x128xf32> to vector<16x16x128xbf16>
    %c1 = arith.constant 1 : index
    %c1_17 = arith.constant 1 : index
    %c0_18 = arith.constant 0 : index
    %11 = vector.load %arg7[%c1, %c1_17, %c0_18] : memref<18x18x128xbf16, #tpu.memory_space<vmem>>, vector<16x16x128xbf16>
    tpu.vector_store %arg7[%c1, %c1_17, %c0_18], %10 {strides = array<i32>} : memref<18x18x128xbf16, #tpu.memory_space<vmem>>, vector<16x16x128xbf16>,
    %c0_19 = arith.constant 0 : index
    %c0_20 = arith.constant 0 : index
    %c0_21 = arith.constant 0 : index
    %12 = vector.load %arg7[%c0_19, %c0_20, %c0_21] : memref<18x18x128xbf16, #tpu.memory_space<vmem>>, vector<16x16x128xbf16>
    %13 = vector.shape_cast %12 : vector<16x16x128xbf16> to vector<256x128xbf16>
    %c0_22 = arith.constant 0 : index
    %c0_23 = arith.constant 0 : index
    %14 = vector.load %arg8[%c0_22, %c0_23] : memref<256x1152xbf16, #tpu.memory_space<vmem>>, vector<256x128xbf16>
    tpu.vector_store %arg8[%c0_22, %c0_23], %13 {strides = array<i32>} : memref<256x1152xbf16, #tpu.memory_space<vmem>>, vector<256x128xbf16>,
    %c0_24 = arith.constant 0 : index
    %c1_25 = arith.constant 1 : index
    %c0_26 = arith.constant 0 : index
    %15 = vector.load %arg7[%c0_24, %c1_25, %c0_26] : memref<18x18x128xbf16, #tpu.memory_space<vmem>>, vector<16x16x128xbf16>
    %16 = vector.shape_cast %15 : vector<16x16x128xbf16> to vector<256x128xbf16>
    %c0_27 = arith.constant 0 : index
    %c128 = arith.constant 128 : index
    %17 = vector.load %arg8[%c0_27, %c128] : memref<256x1152xbf16, #tpu.memory_space<vmem>>, vector<256x128xbf16>
    tpu.vector_store %arg8[%c0_27, %c128], %16 {strides = array<i32>} : memref<256x1152xbf16, #tpu.memory_space<vmem>>, vector<256x128xbf16>,
    %c0_28 = arith.constant 0 : index
    %c2 = arith.constant 2 : index
    %c0_29 = arith.constant 0 : index
    %18 = vector.load %arg7[%c0_28, %c2, %c0_29] : memref<18x18x128xbf16, #tpu.memory_space<vmem>>, vector<16x16x128xbf16>
    %19 = vector.shape_cast %18 : vector<16x16x128xbf16> to vector<256x128xbf16>
    %c0_30 = arith.constant 0 : index
    %c256 = arith.constant 256 : index
    %20 = vector.load %arg8[%c0_30, %c256] : memref<256x1152xbf16, #tpu.memory_space<vmem>>, vector<256x128xbf16>
    tpu.vector_store %arg8[%c0_30, %c256], %19 {strides = array<i32>} : memref<256x1152xbf16, #tpu.memory_space<vmem>>, vector<256x128xbf16>,
    %c1_31 = arith.constant 1 : index
    %c0_32 = arith.constant 0 : index
    %c0_33 = arith.constant 0 : index
    %21 = vector.load %arg7[%c1_31, %c0_32, %c0_33] : memref<18x18x128xbf16, #tpu.memory_space<vmem>>, vector<16x16x128xbf16>
    %22 = vector.shape_cast %21 : vector<16x16x128xbf16> to vector<256x128xbf16>
    %c0_34 = arith.constant 0 : index
    %c384 = arith.constant 384 : index
    %23 = vector.load %arg8[%c0_34, %c384] : memref<256x1152xbf16, #tpu.memory_space<vmem>>, vector<256x128xbf16>
    tpu.vector_store %arg8[%c0_34, %c384], %22 {strides = array<i32>} : memref<256x1152xbf16, #tpu.memory_space<vmem>>, vector<256x128xbf16>,
    %c1_35 = arith.constant 1 : index
    %c1_36 = arith.constant 1 : index
    %c0_37 = arith.constant 0 : index
    %24 = vector.load %arg7[%c1_35, %c1_36, %c0_37] : memref<18x18x128xbf16, #tpu.memory_space<vmem>>, vector<16x16x128xbf16>
    %25 = vector.shape_cast %24 : vector<16x16x128xbf16> to vector<256x128xbf16>
    %c0_38 = arith.constant 0 : index
    %c512 = arith.constant 512 : index
    %26 = vector.load %arg8[%c0_38, %c512] : memref<256x1152xbf16, #tpu.memory_space<vmem>>, vector<256x128xbf16>
    tpu.vector_store %arg8[%c0_38, %c512], %25 {strides = array<i32>} : memref<256x1152xbf16, #tpu.memory_space<vmem>>, vector<256x128xbf16>,
    %c1_39 = arith.constant 1 : index
    %c2_40 = arith.constant 2 : index
    %c0_41 = arith.constant 0 : index
    %27 = vector.load %arg7[%c1_39, %c2_40, %c0_41] : memref<18x18x128xbf16, #tpu.memory_space<vmem>>, vector<16x16x128xbf16>
    %28 = vector.shape_cast %27 : vector<16x16x128xbf16> to vector<256x128xbf16>
    %c0_42 = arith.constant 0 : index
    %c640 = arith.constant 640 : index
    %29 = vector.load %arg8[%c0_42, %c640] : memref<256x1152xbf16, #tpu.memory_space<vmem>>, vector<256x128xbf16>
    tpu.vector_store %arg8[%c0_42, %c640], %28 {strides = array<i32>} : memref<256x1152xbf16, #tpu.memory_space<vmem>>, vector<256x128xbf16>,
    %c2_43 = arith.constant 2 : index
    %c0_44 = arith.constant 0 : index
    %c0_45 = arith.constant 0 : index
    %30 = vector.load %arg7[%c2_43, %c0_44, %c0_45] : memref<18x18x128xbf16, #tpu.memory_space<vmem>>, vector<16x16x128xbf16>
    %31 = vector.shape_cast %30 : vector<16x16x128xbf16> to vector<256x128xbf16>
    %c0_46 = arith.constant 0 : index
    %c768 = arith.constant 768 : index
    %32 = vector.load %arg8[%c0_46, %c768] : memref<256x1152xbf16, #tpu.memory_space<vmem>>, vector<256x128xbf16>
    tpu.vector_store %arg8[%c0_46, %c768], %31 {strides = array<i32>} : memref<256x1152xbf16, #tpu.memory_space<vmem>>, vector<256x128xbf16>,
    %c2_47 = arith.constant 2 : index
    %c1_48 = arith.constant 1 : index
    %c0_49 = arith.constant 0 : index
    %33 = vector.load %arg7[%c2_47, %c1_48, %c0_49] : memref<18x18x128xbf16, #tpu.memory_space<vmem>>, vector<16x16x128xbf16>
    %34 = vector.shape_cast %33 : vector<16x16x128xbf16> to vector<256x128xbf16>
    %c0_50 = arith.constant 0 : index
    %c896 = arith.constant 896 : index
    %35 = vector.load %arg8[%c0_50, %c896] : memref<256x1152xbf16, #tpu.memory_space<vmem>>, vector<256x128xbf16>
    tpu.vector_store %arg8[%c0_50, %c896], %34 {strides = array<i32>} : memref<256x1152xbf16, #tpu.memory_space<vmem>>, vector<256x128xbf16>,
    %c2_51 = arith.constant 2 : index
    %c2_52 = arith.constant 2 : index
    %c0_53 = arith.constant 0 : index
    %36 = vector.load %arg7[%c2_51, %c2_52, %c0_53] : memref<18x18x128xbf16, #tpu.memory_space<vmem>>, vector<16x16x128xbf16>
    %37 = vector.shape_cast %36 : vector<16x16x128xbf16> to vector<256x128xbf16>
    %c0_54 = arith.constant 0 : index
    %c1024 = arith.constant 1024 : index
    %38 = vector.load %arg8[%c0_54, %c1024] : memref<256x1152xbf16, #tpu.memory_space<vmem>>, vector<256x128xbf16>
    tpu.vector_store %arg8[%c0_54, %c1024], %37 {strides = array<i32>} : memref<256x1152xbf16, #tpu.memory_space<vmem>>, vector<256x128xbf16>,
    %c0_55 = arith.constant 0 : index
    %c0_56 = arith.constant 0 : index
    %39 = vector.load %arg8[%c0_55, %c0_56] : memref<256x1152xbf16, #tpu.memory_space<vmem>>, vector<256x1152xbf16>
    %c0_57 = arith.constant 0 : index
    %c0_58 = arith.constant 0 : index
    %40 = vector.load %arg2[%c0_57, %c0_58] : memref<1152x128xbf16, #tpu.memory_space<vmem>>, vector<1152x128xbf16>
    %cst_59 = arith.constant dense<0.000000e+00> : vector<256x128xf32>
    %41 = tpu.matmul %39, %40, %cst_59 {dimension_numbers = #tpu.dot_dimension_numbers<[1], [0], [0], [1], [0, 0, 1, 1], [], []>} : vector<256x1152xbf16>, vector<1152x128xbf16>, vector<256x128xf32> -> vector<256x128xf32>
    %c0_60 = arith.constant 0 : index
    %c0_61 = arith.constant 0 : index
    %42 = vector.load %arg3[%c0_60, %c0_61] : memref<1x128xf32, #tpu.memory_space<vmem>>, vector<1x128xf32>
    %43 = vector.broadcast %42 : vector<1x128xf32> to vector<256x128xf32>
    %44 = arith.addf %41, %43 : vector<256x128xf32>
    %cst_62 = arith.constant 0.000000e+00 : f32
    %45 = vector.broadcast %cst_62 : f32 to vector<256x128xf32>
    %46 = arith.maximumf %44, %45 : vector<256x128xf32>
    %47 = vector.shape_cast %46 : vector<256x128xf32> to vector<16x16x128xf32>
    %48 = arith.truncf %47 : vector<16x16x128xf32> to vector<16x16x128xbf16>
    %c1_63 = arith.constant 1 : index
    %c1_64 = arith.constant 1 : index
    %c0_65 = arith.constant 0 : index
    %49 = vector.load %arg7[%c1_63, %c1_64, %c0_65] : memref<18x18x128xbf16, #tpu.memory_space<vmem>>, vector<16x16x128xbf16>
    tpu.vector_store %arg7[%c1_63, %c1_64, %c0_65], %48 {strides = array<i32>} : memref<18x18x128xbf16, #tpu.memory_space<vmem>>, vector<16x16x128xbf16>,
    %c0_66 = arith.constant 0 : index
    %c0_67 = arith.constant 0 : index
    %c0_68 = arith.constant 0 : index
    %50 = vector.load %arg7[%c0_66, %c0_67, %c0_68] : memref<18x18x128xbf16, #tpu.memory_space<vmem>>, vector<16x16x128xbf16>
    %51 = vector.shape_cast %50 : vector<16x16x128xbf16> to vector<256x128xbf16>
    %c0_69 = arith.constant 0 : index
    %c0_70 = arith.constant 0 : index
    %52 = vector.load %arg8[%c0_69, %c0_70] : memref<256x1152xbf16, #tpu.memory_space<vmem>>, vector<256x128xbf16>
    tpu.vector_store %arg8[%c0_69, %c0_70], %51 {strides = array<i32>} : memref<256x1152xbf16, #tpu.memory_space<vmem>>, vector<256x128xbf16>,
    %c0_71 = arith.constant 0 : index
    %c1_72 = arith.constant 1 : index
    %c0_73 = arith.constant 0 : index
    %53 = vector.load %arg7[%c0_71, %c1_72, %c0_73] : memref<18x18x128xbf16, #tpu.memory_space<vmem>>, vector<16x16x128xbf16>
    %54 = vector.shape_cast %53 : vector<16x16x128xbf16> to vector<256x128xbf16>
    %c0_74 = arith.constant 0 : index
    %c128_75 = arith.constant 128 : index
    %55 = vector.load %arg8[%c0_74, %c128_75] : memref<256x1152xbf16, #tpu.memory_space<vmem>>, vector<256x128xbf16>
    tpu.vector_store %arg8[%c0_74, %c128_75], %54 {strides = array<i32>} : memref<256x1152xbf16, #tpu.memory_space<vmem>>, vector<256x128xbf16>,
    %c0_76 = arith.constant 0 : index
    %c2_77 = arith.constant 2 : index
    %c0_78 = arith.constant 0 : index
    %56 = vector.load %arg7[%c0_76, %c2_77, %c0_78] : memref<18x18x128xbf16, #tpu.memory_space<vmem>>, vector<16x16x128xbf16>
    %57 = vector.shape_cast %56 : vector<16x16x128xbf16> to vector<256x128xbf16>
    %c0_79 = arith.constant 0 : index
    %c256_80 = arith.constant 256 : index
    %58 = vector.load %arg8[%c0_79, %c256_80] : memref<256x1152xbf16, #tpu.memory_space<vmem>>, vector<256x128xbf16>
    tpu.vector_store %arg8[%c0_79, %c256_80], %57 {strides = array<i32>} : memref<256x1152xbf16, #tpu.memory_space<vmem>>, vector<256x128xbf16>,
    %c1_81 = arith.constant 1 : index
    %c0_82 = arith.constant 0 : index
    %c0_83 = arith.constant 0 : index
    %59 = vector.load %arg7[%c1_81, %c0_82, %c0_83] : memref<18x18x128xbf16, #tpu.memory_space<vmem>>, vector<16x16x128xbf16>
    %60 = vector.shape_cast %59 : vector<16x16x128xbf16> to vector<256x128xbf16>
    %c0_84 = arith.constant 0 : index
    %c384_85 = arith.constant 384 : index
    %61 = vector.load %arg8[%c0_84, %c384_85] : memref<256x1152xbf16, #tpu.memory_space<vmem>>, vector<256x128xbf16>
    tpu.vector_store %arg8[%c0_84, %c384_85], %60 {strides = array<i32>} : memref<256x1152xbf16, #tpu.memory_space<vmem>>, vector<256x128xbf16>,
    %c1_86 = arith.constant 1 : index
    %c1_87 = arith.constant 1 : index
    %c0_88 = arith.constant 0 : index
    %62 = vector.load %arg7[%c1_86, %c1_87, %c0_88] : memref<18x18x128xbf16, #tpu.memory_space<vmem>>, vector<16x16x128xbf16>
    %63 = vector.shape_cast %62 : vector<16x16x128xbf16> to vector<256x128xbf16>
    %c0_89 = arith.constant 0 : index
    %c512_90 = arith.constant 512 : index
    %64 = vector.load %arg8[%c0_89, %c512_90] : memref<256x1152xbf16, #tpu.memory_space<vmem>>, vector<256x128xbf16>
    tpu.vector_store %arg8[%c0_89, %c512_90], %63 {strides = array<i32>} : memref<256x1152xbf16, #tpu.memory_space<vmem>>, vector<256x128xbf16>,
    %c1_91 = arith.constant 1 : index
    %c2_92 = arith.constant 2 : index
    %c0_93 = arith.constant 0 : index
    %65 = vector.load %arg7[%c1_91, %c2_92, %c0_93] : memref<18x18x128xbf16, #tpu.memory_space<vmem>>, vector<16x16x128xbf16>
    %66 = vector.shape_cast %65 : vector<16x16x128xbf16> to vector<256x128xbf16>
    %c0_94 = arith.constant 0 : index
    %c640_95 = arith.constant 640 : index
    %67 = vector.load %arg8[%c0_94, %c640_95] : memref<256x1152xbf16, #tpu.memory_space<vmem>>, vector<256x128xbf16>
    tpu.vector_store %arg8[%c0_94, %c640_95], %66 {strides = array<i32>} : memref<256x1152xbf16, #tpu.memory_space<vmem>>, vector<256x128xbf16>,
    %c2_96 = arith.constant 2 : index
    %c0_97 = arith.constant 0 : index
    %c0_98 = arith.constant 0 : index
    %68 = vector.load %arg7[%c2_96, %c0_97, %c0_98] : memref<18x18x128xbf16, #tpu.memory_space<vmem>>, vector<16x16x128xbf16>
    %69 = vector.shape_cast %68 : vector<16x16x128xbf16> to vector<256x128xbf16>
    %c0_99 = arith.constant 0 : index
    %c768_100 = arith.constant 768 : index
    %70 = vector.load %arg8[%c0_99, %c768_100] : memref<256x1152xbf16, #tpu.memory_space<vmem>>, vector<256x128xbf16>
    tpu.vector_store %arg8[%c0_99, %c768_100], %69 {strides = array<i32>} : memref<256x1152xbf16, #tpu.memory_space<vmem>>, vector<256x128xbf16>,
    %c2_101 = arith.constant 2 : index
    %c1_102 = arith.constant 1 : index
    %c0_103 = arith.constant 0 : index
    %71 = vector.load %arg7[%c2_101, %c1_102, %c0_103] : memref<18x18x128xbf16, #tpu.memory_space<vmem>>, vector<16x16x128xbf16>
    %72 = vector.shape_cast %71 : vector<16x16x128xbf16> to vector<256x128xbf16>
    %c0_104 = arith.constant 0 : index
    %c896_105 = arith.constant 896 : index
    %73 = vector.load %arg8[%c0_104, %c896_105] : memref<256x1152xbf16, #tpu.memory_space<vmem>>, vector<256x128xbf16>
    tpu.vector_store %arg8[%c0_104, %c896_105], %72 {strides = array<i32>} : memref<256x1152xbf16, #tpu.memory_space<vmem>>, vector<256x128xbf16>,
    %c2_106 = arith.constant 2 : index
    %c2_107 = arith.constant 2 : index
    %c0_108 = arith.constant 0 : index
    %74 = vector.load %arg7[%c2_106, %c2_107, %c0_108] : memref<18x18x128xbf16, #tpu.memory_space<vmem>>, vector<16x16x128xbf16>
    %75 = vector.shape_cast %74 : vector<16x16x128xbf16> to vector<256x128xbf16>
    %c0_109 = arith.constant 0 : index
    %c1024_110 = arith.constant 1024 : index
    %76 = vector.load %arg8[%c0_109, %c1024_110] : memref<256x1152xbf16, #tpu.memory_space<vmem>>, vector<256x128xbf16>
    tpu.vector_store %arg8[%c0_109, %c1024_110], %75 {strides = array<i32>} : memref<256x1152xbf16, #tpu.memory_space<vmem>>, vector<256x128xbf16>,
    %c0_111 = arith.constant 0 : index
    %c0_112 = arith.constant 0 : index
    %77 = vector.load %arg8[%c0_111, %c0_112] : memref<256x1152xbf16, #tpu.memory_space<vmem>>, vector<256x1152xbf16>
    %c0_113 = arith.constant 0 : index
    %c0_114 = arith.constant 0 : index
    %78 = vector.load %arg4[%c0_113, %c0_114] : memref<1152x128xbf16, #tpu.memory_space<vmem>>, vector<1152x128xbf16>
    %cst_115 = arith.constant dense<0.000000e+00> : vector<256x128xf32>
    %79 = tpu.matmul %77, %78, %cst_115 {dimension_numbers = #tpu.dot_dimension_numbers<[1], [0], [0], [1], [0, 0, 1, 1], [], []>} : vector<256x1152xbf16>, vector<1152x128xbf16>, vector<256x128xf32> -> vector<256x128xf32>
    %c0_116 = arith.constant 0 : index
    %c0_117 = arith.constant 0 : index
    %c0_118 = arith.constant 0 : index
    %c0_119 = arith.constant 0 : index
    %80 = vector.load %arg1[%c0_116, %c0_117, %c0_118, %c0_119] : memref<1x16x16x128xf32, #tpu.memory_space<vmem>>, vector<1x16x16x128xf32>
    %81 = vector.shape_cast %80 : vector<1x16x16x128xf32> to vector<16x16x128xf32>
    %c0_120 = arith.constant 0 : index
    %c0_121 = arith.constant 0 : index
    %82 = vector.load %arg5[%c0_120, %c0_121] : memref<1x128xf32, #tpu.memory_space<vmem>>, vector<1x128xf32>
    %83 = vector.broadcast %82 : vector<1x128xf32> to vector<256x128xf32>
    %84 = arith.addf %79, %83 : vector<256x128xf32>
    %85 = vector.shape_cast %81 : vector<16x16x128xf32> to vector<256x128xf32>
    %86 = arith.addf %84, %85 : vector<256x128xf32>
    %cst_122 = arith.constant 0.000000e+00 : f32
    %87 = vector.broadcast %cst_122 : f32 to vector<256x128xf32>
    %88 = arith.maximumf %86, %87 : vector<256x128xf32>
    %89 = vector.shape_cast %88 : vector<256x128xf32> to vector<16x16x128xf32>
    %c0_123 = arith.constant 0 : index
    %c0_124 = arith.constant 0 : index
    %c0_125 = arith.constant 0 : index
    %c0_126 = arith.constant 0 : index
    %90 = vector.load %arg6[%c0_123, %c0_124, %c0_125, %c0_126] : memref<1x16x16x128xf32, #tpu.memory_space<vmem>>, vector<1x16x16x128xf32>
    %91 = vector.shape_cast %90 : vector<1x16x16x128xf32> to vector<16x16x128xf32>
    %92 = vector.shape_cast %89 : vector<16x16x128xf32> to vector<1x16x16x128xf32>
    tpu.vector_store %arg6[%c0_123, %c0_124, %c0_125, %c0_126], %92 {strides = array<i32>} : memref<1x16x16x128xf32, #tpu.memory_space<vmem>>, vector<1x16x16x128xf32>,
    return
  }
  func.func @transform_0(%arg0: i32) -> (i32, i32, i32, i32) {
    %c0_i32 = arith.constant 0 : i32
    %c0_i32_0 = arith.constant 0 : i32
    %c0_i32_1 = arith.constant 0 : i32
    %c0_i32_2 = arith.constant 0 : i32
    return %arg0, %c0_i32, %c0_i32_0, %c0_i32_1 : i32, i32, i32, i32
  }
  func.func @transform_1(%arg0: i32) -> (i32, i32) {
    %c0_i32 = arith.constant 0 : i32
    %c0_i32_0 = arith.constant 0 : i32
    %c0_i32_1 = arith.constant 0 : i32
    return %c0_i32, %c0_i32_0 : i32, i32
  }
  func.func @transform_2(%arg0: i32) -> (i32, i32) {
    %c0_i32 = arith.constant 0 : i32
    %c0_i32_0 = arith.constant 0 : i32
    %c0_i32_1 = arith.constant 0 : i32
    return %c0_i32, %c0_i32_0 : i32, i32
  }
  func.func @transform_3(%arg0: i32) -> (i32, i32) {
    %c0_i32 = arith.constant 0 : i32
    %c0_i32_0 = arith.constant 0 : i32
    %c0_i32_1 = arith.constant 0 : i32
    return %c0_i32, %c0_i32_0 : i32, i32
  }
  func.func @transform_4(%arg0: i32) -> (i32, i32) {
    %c0_i32 = arith.constant 0 : i32
    %c0_i32_0 = arith.constant 0 : i32
    %c0_i32_1 = arith.constant 0 : i32
    return %c0_i32, %c0_i32_0 : i32, i32
  }
  func.func @transform_5(%arg0: i32) -> (i32, i32, i32, i32) {
    %c0_i32 = arith.constant 0 : i32
    %c0_i32_0 = arith.constant 0 : i32
    %c0_i32_1 = arith.constant 0 : i32
    %c0_i32_2 = arith.constant 0 : i32
    return %arg0, %c0_i32, %c0_i32_0, %c0_i32_1 : i32, i32, i32, i32
  }
}

</mosaic_0001>

<bundles_post_ra>
// kernel: tpu_custom_call.1
= control target key start
LH: loop header
LB: loop body
LE: loop exit
PB: predicated region body
PF: predicated region fallthrough
CT: control target
= control target key end

     0   :  { %10 = vsyncpa [#allocation5], 0  ;;  %s17032_s0 = inlined_call_operand.hbm [shape: f32[2,16,16,128], index: 0, kind: input, shape index: {}]   ;;  %s17033_s1 = inlined_call_operand.hbm [shape: bf16[1152,128], index: 1, kind: input, shape index: {}]   ;;  %s17034_s2 = inlined_call_operand.vmem [shape: f32[1,128], index: 2, kind: input, shape index: {}]   ;;  %s17035_s3 = inlined_call_operand.hbm [shape: bf16[1152,128], index: 3, kind: input, shape index: {}]   ;;  %s17036_s4 = inlined_call_operand.vmem [shape: f32[1,128], index: 4, kind: input, shape index: {}]   ;;  %s17037_s5 = inlined_call_operand.hbm [shape: f32[2,16,16,128], index: 5, kind: output, shape index: {}]  }
   0x1   :  { %12 = vsyncpa [#allocation5 + $0x1], 0 }
   0x2   :  { %13 = vsyncpa [#allocation8], 0 }
   0x3   :  { %14 = vsyncpa [#allocation6], 0 }
   0x4   :  { %16 = vsyncpa [#allocation6 + $0x1], 0  ;;  %s13862_s18 = smov 0   ;;  %s13864_s19 = smov 0  }
   0x5   :  { %s13866_s20 = smov 0   ;;  %s13868_s21 = smov 0  }
   0x6 LB: > { %s13883_s22 = sadd.s32 4294967295, %s13819_s21   ;;  %s11319_s23 = sadd.s32 4294967294, %s13819_s21   ;;  %s13819_s21 = sphi %s13868_s21, %s17256_s21   ;;  %s13815_s20 = sphi %s13866_s20, %s17255_s20   ;;  %s13811_s19 = sphi %s13864_s19, %s17254_s19   ;;  %s13807_s18 = sphi %s13862_s18, %s17253_s18  }
   0x7   : > { %p42_p0 = scmp.ne.s32.totalorder %s13811_s19, %s13807_s18  ;;  %p17038_p1 = scmp.eq.s32.totalorder %s13883_s22, 0 }
   0x8   : > { %p156_p3 = scmp.eq.s32.totalorder %s11319_s23, 1  ;;  %p11320_p5 = scmp.ge.s32.totalorder %s13819_s21, 1 }
   0x9   : > { %p13892_p4 = por %p17038_p1, %p42_p0  ;;  %p163_p7 = scmp.lt.s32.totalorder %s13819_s21, 3 }
   0xa   : > { %p13897_p6 = por %p156_p3, %p42_p0  ;;  %s13821_s27 = smov [#allocation7]  }
   0xb   : > { %s17054_s24 = scalar_select %p13892_p4, 1, 0 }
   0xc   : > { %s17055_s25 = scalar_select %p13897_p6, 1, 0 }
   0xd   : > { %p13902_p8 = pnand %p11320_p5, %p163_p7  ;;  %s175_s28 = sshll.u32 %s13821_s27, 4  ;;  %s176_s28 = int_to_ptr.vmem [resolvable:$true] %s175_s28 }
   0xe   : > { %s13822_s30 = smov [#allocation9]   ;;  %s13682_s7 = scalar_lea.vmem %s176_s28, 9216 }
   0xf   : > { %s17056_s26 = scalar_select %p13902_p8, 1, 0 }
  0x10   : > { %p13049_p9 = pneg %p13902_p8  ;;  %s191_s6 = sshll.u32 %s13822_s30, 4  ;;  %s192_s6 = int_to_ptr.vmem [resolvable:$true] %s191_s6 }
  0x11   : > { %p13683_p13 = scmp.ne.s32.totalorder %s176_s28, %s13682_s7  ;;  %p13690_p5 = scmp.lt.s32.totalorder %s176_s28, %s176_s28 }
  0x12   : > { %p13911_p11 = pnand %p13049_p9, %p17038_p1  ;;  %p13691_p7 = scmp.lt.s32.totalorder %s13682_s7, %s13682_s7 }
  0x14   : > { %p13673_p12 = pneg %p13911_p11  ;;  %p13692_p10 = por %p13691_p7, %p13690_p5 }
  0x16   : > { %p13685_p0 = pnand %p13683_p13, %p13673_p12 }
  0x18   : > { %p13686_p3 = pneg %p13685_p0 }
  0x1a   : > { %p13693_p9 = pnand %p13692_p10, %p13686_p3 }
  0x1c   : > { %13696 = shalt.err (!%p13693_p9)
}
  0x1d   : > { %s13823_s8 = smov 64   ;;  %s13824_s9 = smov 4  }
  0x1e   : > { %13052 = dma.hbm_to_vmem [thread:$0]  (!%p13911_p11), %s17033_s1, 9216, %s176_s28, [#allocation8], %s13823_s8, %s13823_s8, %s13824_s9  }
  0x1f   : > { %s13708_s12 = scalar_lea.vmem %s192_s6, 9216  ;;  %p13716_p2 = scmp.lt.s32.totalorder %s192_s6, %s192_s6 }
  0x20   : > { %p13709_p1 = scmp.ne.s32.totalorder %s192_s6, %s13708_s12  ;;  %p13717_p6 = scmp.lt.s32.totalorder %s13708_s12, %s13708_s12 }
  0x22   : > { %p13711_p13 = pnand %p13709_p1, %p13673_p12  ;;  %p13718_p5 = por %p13717_p6, %p13716_p2 }
  0x24   : > { %p13712_p0 = pneg %p13711_p13 }
  0x26   : > { %p13719_p10 = pnand %p13718_p5, %p13712_p0 }
  0x28   : > { %13722 = shalt.err (!%p13719_p10)
}
  0x29   : > { %13055 = dma.hbm_to_vmem [thread:$0]  (!%p13911_p11), %s17035_s3, 9216, %s192_s6, [#allocation8], %s13823_s8, %s13823_s8, %s13824_s9  }
  0x2a   : > { %s13934_s15 = sadd.s32 1, %s13819_s21   ;;  %s29_s16 = sadd.s32 1, %s13815_s20 }
  0x2b   : > { %s26_s17 = ssub.s32 %s13819_s21, %s13934_s15  ;;  %p36_p1 = scmp.ne.s32.totalorder %s13815_s20, %s13811_s19 }
  0x2c   : > { %p27_p2 = scmp.eq.s32.totalorder %s26_s17, 0  ;;  %p37_p6 = scmp.eq.s32.totalorder %s13819_s21, 0 }
  0x2d   : > { %p17058_p12 = scmp.eq.s32.totalorder %s13883_s22, 1  ;;  %p13066_p7 = scmp.lt.s32.totalorder %s13819_s21, 2 }
  0x2e   : > { %s13950_s27 = scalar_select %p27_p2, %s13815_s20, %s29_s16  }
  0x2f   : > { %p13944_p3 = por %p17058_p12, %p36_p1  ;;  %p38_p9 = por %p37_p6, %p36_p1 }
  0x30   : > { %s208_s28 = sand.u32 1, %s13815_s20   ;;  %s11931_s30 = sshll.u32 %s13819_s21, 12 }
  0x31   : > { %s17059_s23 = scalar_select %p13944_p3, 1, 0 }
  0x32   : > { %s11324_s29 = sshll.u32 %s208_s28, 8  ;;  %s13957_s8 = scalar_lea.hbm %s17032_s0, %s11931_s30 }
  0x33   : > { %s212_s9 = scalar_lea.vmem [#allocation4], %s11324_s29  ;;  %p13961_p11 = pnand %p13066_p7, %p38_p9 }
  0x34   : > { %s219_s10 = sshll.u32 %s212_s9, 4  ;;  %s13965_s12 = scalar_lea.sflag [#allocation5], %s208_s28  ;;  %s13959_s10 = int_to_ptr.vmem [resolvable:$true] %s219_s10 }
  0x35   : > { %s13723_s13 = scalar_lea.hbm %s13957_s8, 4096  ;;  %p13725_p0 = pneg %p13961_p11 }
  0x36   : > { %p13724_p13 = scmp.ne.s32.totalorder %s13957_s8, %s13723_s13  ;;  %s13728_s17 = scalar_lea.hbm %s17032_s0, 8192 }
  0x37   : > { %p13729_p1 = scmp.lt.s32.totalorder %s13957_s8, %s17032_s0  ;;  %p13730_p2 = scmp.lt.s32.totalorder %s13728_s17, %s13723_s13 }
  0x38   : > { %p13726_p5 = pnand %p13725_p0, %p13724_p13 }
  0x39   : > { %p13731_p6 = por %p13730_p2, %p13729_p1 }
  0x3a   : > { %p13727_p10 = pneg %p13726_p5 }
  0x3c   : > { %p13732_p12 = pnand %p13731_p6, %p13727_p10 }
  0x3e   : > { %13735 = shalt.err (!%p13732_p12)
}
  0x3f   : > { %s13736_s28 = scalar_lea.vmem %s13959_s10, 4096  ;;  %s13825_s6 = smov [#allocation4]  }
  0x40   : > { %p13737_p7 = scmp.ne.s32.totalorder %s13959_s10, %s13736_s28  ;;  %s13741_s7 = sshll.u32 %s13825_s6, 4  ;;  %s13742_s7 = int_to_ptr.vmem [resolvable:$false] %s13741_s7 }
  0x41   : > { %s13743_s9 = scalar_lea.vmem %s13742_s7, 8192  ;;  %p13744_p5 = scmp.lt.s32.totalorder %s13959_s10, %s13742_s7 }
  0x42   : > { %p13739_p9 = pnand %p13737_p7, %p13725_p0  ;;  %p13745_p3 = scmp.lt.s32.totalorder %s13743_s9, %s13736_s28 }
  0x44   : > { %p13740_p13 = pneg %p13739_p9  ;;  %p13746_p4 = por %p13745_p3, %p13744_p5 }
  0x46   : > { %p13747_p8 = pnand %p13746_p4, %p13740_p13 }
  0x48   : > { %13750 = shalt.err (!%p13747_p8)
}
  0x49   : > { %s13826_s13 = smov 128   ;;  %s13827_s14 = smov 8  }
  0x4a   : > { %13059 = dma.hbm_to_vmem [thread:$0]  (!%p13961_p11), %s13957_s8, 4096, %s13959_s10, %s13965_s12, %s13826_s13, %s13826_s13, %s13827_s14  }
  0x4b   : > { %p17061_p0 = scmp.ne.s32.totalorder %s17056_s26, 0 }
  0x4d   : > { %231 = sbr.rel (%p17061_p0) target bundleno = 1508 (0x5e4), region = 40 }
  0x52   : > { %s13989_s16 = sand.u32 1, %s13811_s19   ;;  %p17062_p4 = scmp.ne.s32.totalorder %s17054_s24, 0 }
  0x53   : > { %s11328_s17 = sshll.u32 %s13989_s16, 8  ;;  %s234_s29 = scalar_lea.sflag [#allocation5], %s13989_s16 }
  0x54   : > { %s13995_s30 = scalar_lea.vmem [#allocation4], %s11328_s17 }
  0x55   : > { %13794 = dma.done.wait (%p17062_p4), %s234_s29, 4096  }
  0x56   : > { %13796 = vsyncadd (%p17062_p4), %s234_s29, 4294963200  ;;  %p17063_p8 = scmp.eq.s32.totalorder %s13883_s22, 0 }
  0x58   : > { %13798 = dma.done.wait (%p17063_p8), [#allocation8], 18432   ;;  %p17064_p3 = pmov %p17063_p8 }
  0x59   : > { %v13828_v0 = vmov 0   ;;  %v13111_v1 = vld [vmem:[#allocation7 + $0x78] sm:$0xff]   ;;  %v13115_v5 = vld [vmem:[#allocation7 + $0x70] sm:$0xff]   ;;  %v13119_v9 = vld [vmem:[#allocation7 + $0x68] sm:$0xff]   ;;  %vm281_vm0 = vsmask.f32 256 }
  0x5a   : > { %13800 = vsyncadd (%p17064_p3), [#allocation8], 4294948864  ;;  %273 = vst [vmem:[#allocation2] sm:$0xf] %v13828_v0  ;;  %v13112_v2 = vld [vmem:[#allocation7 + $0x38] sm:$0xff]   ;;  %11997 = vmatprep.subr.bf16.mxu0 %v13111_v1  ;;  %v13116_v6 = vld [vmem:[#allocation7 + $0x30] sm:$0xff]  }
  0x5b   : > { %274 = vst [vmem:[#allocation2 + $0x4] sm:$0xf] %v13828_v0  ;;  %275 = vst [vmem:[#allocation2 + $0x8] sm:$0x1] %v13828_v0  ;;  %v13113_v3 = vld [vmem:[#allocation7 + $0xf8] sm:$0xff]   ;;  %11998 = vmatpush3.bf16.msra.mxu0 %v13112_v2  ;;  %v13117_v7 = vld [vmem:[#allocation7 + $0xf0] sm:$0xff]  }
  0x5c   : > { %277 = vst [vmem:[#allocation2 + $0xcc] sm:$0xf] %v13828_v0  ;;  %278 = vst [vmem:[#allocation2 + $0xd0] sm:$0xf] %v13828_v0  ;;  %v13114_v4 = vld [vmem:[#allocation7 + $0xb8] sm:$0xff]   ;;  %12109 = vmatprep.subr.bf16.mxu1 %v13113_v3  ;;  %11999 = vmatprep.subr.bf16.mxu0 %v13115_v5  ;;  %v13118_v8 = vld [vmem:[#allocation7 + $0xb0] sm:$0xff]  }
  0x5d   : > { %279 = vst [vmem:[#allocation2 + $0xd4] sm:$0x1] %v13828_v0  ;;  %12110 = vmatpush3.bf16.msra.mxu1 %v13114_v4  ;;  %v13120_v10 = vld [vmem:[#allocation7 + $0x28] sm:$0xff]   ;;  %vm337_vm1 = vsmask.f32 7938  ;;  %v13123_v13 = vld [vmem:[#allocation7 + $0x60] sm:$0xff]  }
  0x5e   : > { %12111 = vmatprep.subr.bf16.mxu1 %v13117_v7  ;;  %v13121_v11 = vld [vmem:[#allocation7 + $0xe8] sm:$0xff]   ;;  %v13124_v14 = vld [vmem:[#allocation7 + $0x20] sm:$0xff]   ;;  %v13127_v17 = vld [vmem:[#allocation7 + $0x58] sm:$0xff]   ;;  %vm280_vm2 = vcmask 1040384   ;;  %v17065_v23 = vmov 0  ;;  %vm1617_vm7 = vcmask 1042432  }
  0x5f   : > { %12000 = vmatpush3.bf16.msra.mxu0 %v13116_v6  ;;  %v13122_v12 = vld [vmem:[#allocation7 + $0xa8] sm:$0xff]   ;;  %v13125_v15 = vld [vmem:[#allocation7 + $0xe0] sm:$0xff]   ;;  %v13128_v18 = vld [vmem:[#allocation7 + $0x18] sm:$0xff]   ;;  %vm1070_vm5 = vsmask.f32 3328  ;;  %vm1618_vm8 = vcmask 1046532  }
  0x60   : > { %12001 = vmatprep.subr.bf16.mxu0 %v13119_v9  ;;  %v13126_v16 = vld [vmem:[#allocation7 + $0xa0] sm:$0xff]   ;;  %v13129_v19 = vld [vmem:[#allocation7 + $0xd8] sm:$0xff]   ;;  %v13131_v21 = vld [vmem:[#allocation7 + $0x50] sm:$0xff]   ;;  %vm1071_vm6 = vsmask.f32 7440  ;;  %vm844_vm9 = vcmask 1043456  }
  0x61   : > { %12112 = vmatpush3.bf16.msra.mxu1 %v13118_v8  ;;  %v13130_v20 = vld [vmem:[#allocation7 + $0x98] sm:$0xff]   ;;  %v13132_v22 = vld [vmem:[#allocation7 + $0x10] sm:$0xff]   ;;  %vm14006_vm3 = vmand %vm280_vm2, %vm281_vm0  ;;  %vm521_vm10 = vsmask.f32 4368  ;;  %v17070_v1 = vmov 0  ;;  %s16823_s7 = scalar_lea.vmem [#allocation10], %s11328_s17 }
  0x62   : > { %12113 = vmatprep.subr.bf16.mxu1 %v13121_v11  ;;  %v17066_v23 = vsel %vm14006_vm3, 4294967295, %v17065_v23  ;;  %vm14011_vm4 = vmand %vm280_vm2, %vm337_vm1  ;;  %v13133_v25 = vld [vmem:[#allocation7 + $0xd0] sm:$0xff]   ;;  %v13135_v27 = vld [vmem:[#allocation7 + $0x48] sm:$0xff]   ;;  %s11996_s9 = sshll.u32 %s13883_s22, 12  ;;  %s11227_s13 = sshll.u32 %s16823_s7, 4  ;;  %s16987_s13 = int_to_ptr.vmem [resolvable:$true] %s11227_s13 }
  0x63   : > { %12002 = vmatpush3.bf16.msra.mxu0 %v13120_v10  ;;  %17067 = vst [vmem:[#allocation14_spill] sm:$0xff] %v17066_v23  ;;  %v13134_v26 = vld [vmem:[#allocation7 + $0x90] sm:$0xff]   ;;  %v13136_v28 = vld [vmem:[#allocation7 + $0x8] sm:$0xff]   ;;  %v13139_v31 = vld [vmem:[#allocation7 + $0x40] sm:$0xff]   ;;  %s16985_s29 = scalar_lea.hbm %s17037_s5, %s11996_s9  ;;  %s13751_s24 = scalar_lea.vmem %s16987_s13, 4096 }
  0x64   : > { %12003 = vmatprep.subr.bf16.mxu0 %v13123_v13  ;;  %v13137_v29 = vld [vmem:[#allocation7 + $0xc8] sm:$0xff]   ;;  %v13140_v32 = vld [vmem:[#allocation7] sm:$0xff]   ;;  %v339_v35 = vld [vmem:[#allocation2 + $0x8] sm:$0x1]  ;;  %p13752_p11 = scmp.ne.s32.totalorder %s16987_s13, %s13751_s24  ;;  %p17250_p10 = scmp.ne.s32.totalorder %s17059_s23, 0 }
  0x65   : > { %12114 = vmatpush3.bf16.msra.mxu1 %v13122_v12  ;;  %v13138_v30 = vld [vmem:[#allocation7 + $0x88] sm:$0xff]   ;;  %v13141_v33 = vld [vmem:[#allocation7 + $0xc0] sm:$0xff]   ;;  %v340_v38 = vsel %vm14011_vm4, 0, %v339_v35  ;;  %v13145_v46 = vld [vmem:[#allocation7 + $0x178] sm:$0xff]   ;;  %v17073_v12 = vmov 0  ;;  %s13829_s22 = smov [#allocation10]  }
  0x66   : > { %12115 = vmatprep.subr.bf16.mxu1 %v13125_v15  ;;  %v283_v34 = vld [vmem:[#allocation2] sm:$0x1]  ;;  %v959_v36 = vld [vmem:[#allocation2 + $0x4] sm:$0xf]  ;;  %341 = vst [vmem:[#allocation2 + $0x8] sm:$0x1] %v340_v38  ;;  %vm14035_vm11 = vmor %vm1617_vm7, %vm1618_vm8  ;;  %p13753_p1 = pnand %p13752_p11, %p17250_p10 }
  0x67   : > { %12004 = vmatpush3.bf16.msra.mxu0 %v13124_v14  ;;  %v284_v37 = vsel %vm14006_vm3, 0, %v283_v34  ;;  %991 = vst [vmem:[#allocation3 + $0x24] sm:$0xf] %v959_v36  ;;  %v1023_v39 = vld [vmem:[#allocation2 + $0x4] sm:$0xf]  ;;  %v13144_v45 = vld [vmem:[#allocation7 + $0x80] sm:$0xff]   ;;  %vm14044_vm12 = vmor %vm1070_vm5, %vm1071_vm6 }
  0x68   : > { %12005 = vmatprep.subr.bf16.mxu0 %v13127_v17  ;;  %285 = vst [vmem:[#allocation2] sm:$0x1] %v284_v37  ;;  %v1083_v40 = vshll.u32 %v1023_v39, 16  ;;  %v1087_v41 = vshrl.u32 %v1023_v39, 16  ;;  %v6370_v42 = vld [vmem:[#allocation2 + $0x4] sm:$0xf]  ;;  %vm14053_vm13 = vmand %vm844_vm9, %vm337_vm1  ;;  %p13754_p2 = pneg %p13753_p1 }
  0x69   : > { %12116 = vmatpush3.bf16.msra.mxu1 %v13126_v16  ;;  %v6427_v43 = vshll.u32 %v6370_v42, 16  ;;  %v6431_v44 = vshrl.u32 %v6370_v42, 16  ;;  %v286_v51 = vld [vmem:[#allocation2 + $0xc] sm:$0x1]  ;;  %v342_v52 = vld [vmem:[#allocation2 + $0x14] sm:$0x1]  ;;  %vm14065_vm14 = vmor %vm281_vm0, %vm521_vm10 }
  0x6a   : > { %12117 = vmatprep.subr.bf16.mxu1 %v13129_v19  ;;  %v14019_v47 = vrot.slane %v1083_v40, 5  ;;  %v1089_v48 = vrot.slane %v1087_v41, 4  ;;  %v287_v54 = vsel %vm14006_vm3, 0, %v286_v51  ;;  %v343_v55 = vsel %vm14011_vm4, 0, %v342_v52  ;;  %v393_v56 = vld [vmem:[%s13995_s30] sm:$0xff]  ;;  %v394_v57 = vld [vmem:[%s13995_s30 + $0x8] sm:$0xff] }
  0x6b   : > { %12006 = vmatpush3.bf16.msra.mxu0 %v13128_v18  ;;  %v14021_v49 = vrot.slane %v6427_v43, 5  ;;  %v6433_v50 = vrot.slane %v6431_v44, 4  ;;  %v1521_v58 = vld [vmem:[#allocation2] sm:$0xe]  ;;  %288 = vst [vmem:[#allocation2 + $0xc] sm:$0x1] %v287_v54  ;;  %v11932_v60 = vpack.c.bf16 %v393_v56, %v393_v56  ;;  %v11933_v7 = vpack.c.bf16 %v394_v57, %v394_v57 }
  0x6c   : > { %12007 = vmatprep.subr.bf16.mxu0 %v13131_v21  ;;  %v1090_v53 = vor.u32 %v1089_v48, %v14019_v47  ;;  %344 = vst [vmem:[#allocation2 + $0x14] sm:$0x1] %v343_v55  ;;  %v1522_v61 = vld [vmem:[#allocation2 + $0x4] sm:$0xf]  ;;  %v11364_v62 = vrot.slane %v1521_v58, 9  ;;  %v17071_v1 = vsel %vm14035_vm11, 4294967295, %v17070_v1 }
  0x6d   : > { %12118 = vmatpush3.bf16.msra.mxu1 %v13130_v20  ;;  %v6434_v59 = vor.u32 %v6433_v50, %v14021_v49  ;;  %v14031_v63 = vld [vmem:[#allocation2] sm:$0xe]  ;;  %17072 = vst [vmem:[#allocation15_spill] sm:$0xff] %v17071_v1  ;;  %v1622_v2 = vrot.slane %v1522_v61, 5  ;;  %v1024_v6 = vld [vmem:[#allocation2 + $0x8] sm:$0x1] }
  0x6e   : > { %12119 = vmatprep.subr.bf16.mxu1 %v13133_v25  ;;  %v1091_v0 = vrot.slane %v1090_v53, 4  ;;  %v11661_v3 = vrot.slane %v14031_v63, 9  ;;  %v1093_v10 = vshll.u32 %v1024_v6, 16  ;;  %v17074_v12 = vsel %vm14044_vm12, 4294967295, %v17073_v12  ;;  %v6371_v14 = vld [vmem:[#allocation2 + $0x8] sm:$0x1] }
  0x6f   : > { %12008 = vmatpush3.bf16.msra.mxu0 %v13132_v22  ;;  %v958_v4 = vld [vmem:[#allocation2] sm:$0xf]  ;;  %v14040_v11 = vrot.slane %v6434_v59, 4  ;;  %17075 = vst [vmem:[#allocation16_spill] sm:$0xff] %v17074_v12  ;;  %v524_v15 = vshrl.u32 %v11932_v60, 16  ;;  %v527_v16 = vshll.u32 %v11932_v60, 16  ;;  %v1623_v17 = vsel %vm14035_vm11, %v11364_v62, %v1622_v2 }
  0x70   : > { %12009 = vmatprep.subr.bf16.mxu0 %v13135_v27  ;;  %v1022_v5 = vld [vmem:[#allocation2] sm:$0xf]  ;;  %990 = vst [vmem:[#allocation3] sm:$0xf] %v958_v4  ;;  %v1095_v20 = vrot.slane %v1093_v10, 5  ;;  %v395_v22 = vld [vmem:[%s13995_s30 + $0x10] sm:$0xff] }
  0x71   : > { %12120 = vmatpush3.bf16.msra.mxu1 %v13134_v26  ;;  %v1074_v8 = vshrl.u32 %v1022_v5, 16  ;;  %v1077_v9 = vshll.u32 %v1022_v5, 16  ;;  %v6369_v13 = vld [vmem:[#allocation2] sm:$0xf]  ;;  %1764 = vst [vmem:[#allocation3 + $0x8] sm:$0xf] %v1623_v17  ;;  %v11934_v41 = vpack.c.bf16 %v395_v22, %v395_v22 }
  0x72   : > { %12121 = vmatprep.subr.bf16.mxu1 %v13137_v29  ;;  %v6418_v21 = vshrl.u32 %v6369_v13, 16  ;;  %v6421_v25 = vshll.u32 %v6369_v13, 16  ;;  %v6437_v26 = vshll.u32 %v6371_v14, 16  ;;  %v526_v27 = vrot.slane %v524_v15, 7  ;;  %v1523_v29 = vld [vmem:[#allocation2 + $0x8] sm:$0x1] }
  0x73   : > { %12010 = vmatpush3.bf16.msra.mxu0 %v13136_v28  ;;  %v1076_v18 = vrot.slane %v1074_v8, 4  ;;  %v1079_v19 = vrot.slane %v1077_v9, 5  ;;  %v532_v28 = vshrl.u32 %v11933_v7, 16  ;;  %v535_v34 = vshll.u32 %v11933_v7, 16  ;;  %v846_v35 = vld [vmem:[#allocation2 + $0xc] sm:$0xf] }
  0x74   : > { %12011 = vmatprep.subr.bf16.mxu0 %v13139_v31  ;;  %v14059_v36 = vld [vmem:[#allocation2 + $0x4] sm:$0xf]  ;;  %v6423_v37 = vrot.slane %v6421_v25, 5  ;;  %v529_v38 = vor.u32 %v527_v16, %v526_v27  ;;  %v530_v39 = vrot.slane %v526_v27, 4  ;;  %v850_v40 = vld [vmem:[#allocation2 + $0x14] sm:$0x1] }
  0x75   : > { %12122 = vmatpush3.bf16.msra.mxu1 %v13138_v30  ;;  %v17076_v30 = vmov 0  ;;  %v1080_v31 = vor.u32 %v1079_v19, %v1076_v18  ;;  %v534_v43 = vrot.slane %v532_v28, 7  ;;  %v1624_v44 = vrot.slane %v1622_v2, 4  ;;  %v289_v53 = vld [vmem:[#allocation2 + $0x18] sm:$0x1]  ;;  %v396_v54 = vld [vmem:[%s13995_s30 + $0x18] sm:$0xff] }
  0x76   : > { %12123 = vmatprep.subr.bf16.mxu1 %v13141_v33  ;;  %v17077_v30 = vsel %vm14053_vm13, 4294967295, %v17076_v30  ;;  %v6420_v33 = vrot.slane %v6418_v21, 4  ;;  %v14061_v48 = vrot.slane %v6437_v26, 5  ;;  %v17079_v50 = vmov 0  ;;  %v14078_v59 = vld [vmem:[#allocation2 + $0x8] sm:$0x1] }
  0x77   : > { %12012 = vmatpush3.bf16.msra.mxu0 %v13140_v32  ;;  %17078 = vst [vmem:[#allocation17_spill] sm:$0xff] %v17077_v30  ;;  %v1096_v32 = vsel %vm14044_vm12, %v1091_v0, %v1095_v20  ;;  %v1081_v42 = vrot.slane %v1080_v31, 4  ;;  %v17080_v50 = vsel %vm14065_vm14, 4294967295, %v17079_v50  ;;  %v847_v51 = vsel %vm14053_vm13, %v529_v38, %v846_v35  ;;  %v345_v62 = vld [vmem:[#allocation2 + $0x20] sm:$0x1]  ;;  %v397_v6 = vld [vmem:[%s13995_s30 + $0x20] sm:$0xff] }
  0x78   : > { %12221 = vmatprep.subr.bf16.mxu0 %v13145_v46  ;;  %1490 = vst [vmem:[#allocation3 + $0x28] sm:$0xf] %v1096_v32  ;;  %v6424_v46 = vor.u32 %v6423_v37, %v6420_v33  ;;  %17081 = vst [vmem:[#allocation18_spill] sm:$0xff] %v17080_v50  ;;  %v6963_v52 = vrot.slane %v14059_v36, 5  ;;  %v537_v56 = vor.u32 %v535_v34, %v534_v43  ;;  %v539_v57 = vrot.slane %v534_v43, 4  ;;  %v398_v22 = vld [vmem:[%s13995_s30 + $0x28] sm:$0xff] }
  0x79   : > { %12124 = vmatpush3.bf16.msra.mxu1 %v13144_v45  ;;  %v1625_v45 = vrot.slane %v1523_v29, 5  ;;  %v1086_v55 = vsel %vm14044_vm12, %v1081_v42, %v14019_v47  ;;  %848 = vst [vmem:[#allocation2 + $0xc] sm:$0xf] %v847_v51  ;;  %v292_v0 = vld [vmem:[#allocation2 + $0x24] sm:$0x1]  ;;  %v290_v4 = vsel %vm14006_vm3, 0, %v289_v53  ;;  %v11935_v5 = vpack.c.bf16 %v396_v54, %v396_v54 }
  0x7a   : > { %1489 = vst [vmem:[#allocation3 + $0x4] sm:$0xf] %v1086_v55  ;;  %v6425_v60 = vrot.slane %v6424_v46, 4  ;;  %v14082_v61 = vrot.slane %v6963_v52, 4  ;;  %v538_v47 = vsel %vm14065_vm14, %v530_v39, %v537_v56  ;;  %v851_v2 = vsel %vm14006_vm3, %v539_v57, %v850_v40  ;;  %291 = vst [vmem:[#allocation2 + $0x18] sm:$0x1] %v290_v4 }
  0x7b   : > { %v1626_v58 = vsel %vm14035_vm11, %v1624_v44, %v1625_v45  ;;  %849 = vst [vmem:[#allocation2 + $0x10] sm:$0xf] %v538_v47  ;;  %852 = vst [vmem:[#allocation2 + $0x14] sm:$0x1] %v851_v2  ;;  %v541_v7 = vshrl.u32 %v11934_v41, 16  ;;  %v544_v8 = vshll.u32 %v11934_v41, 16  ;;  %v14097_v25 = vpack.c.bf16 %v397_v6, %v397_v6 }
  0x7c   : > { %1765 = vst [vmem:[#allocation3 + $0x2c] sm:$0xf] %v1626_v58  ;;  %v348_v9 = vld [vmem:[#allocation2 + $0x2c] sm:$0x1]  ;;  %v295_v10 = vld [vmem:[#allocation2 + $0x30] sm:$0x1]  ;;  %v6430_v27 = vsel %vm14044_vm12, %v6425_v60, %v14021_v49  ;;  %v6440_v28 = vsel %vm14044_vm12, %v14040_v11, %v14061_v48  ;;  %v6964_v54 = vsel %vm14035_vm11, %v11661_v3, %v6963_v52  ;;  %v14125_v58 = vpack.c.bf16 %v398_v22, %v398_v22 }
  0x7d   : > { %v6305_v13 = vld [vmem:[#allocation2] sm:$0xf]  ;;  %v6306_v14 = vld [vmem:[#allocation2 + $0x4] sm:$0xf]  ;;  %v549_v15 = vshrl.u32 %v11935_v5, 16  ;;  %v552_v16 = vshll.u32 %v11935_v5, 16 }
  0x7e   : > { %v346_v17 = vsel %vm14011_vm4, 0, %v345_v62  ;;  %v293_v18 = vsel %vm14006_vm3, 0, %v292_v0  ;;  %v6966_v20 = vrot.slane %v14078_v59, 5  ;;  %v543_v21 = vrot.slane %v541_v7, 7  ;;  %v13148_v29 = vld [vmem:[#allocation7 + $0x138] sm:$0xff]   ;;  %v13158_v38 = vld [vmem:[#allocation7 + $0x170] sm:$0xff]  }
  0x7f   : > { %v3466_v19 = vld [vmem:[#allocation3 + $0x24] sm:$0xff]  ;;  %347 = vst [vmem:[#allocation2 + $0x20] sm:$0x1] %v346_v17  ;;  %294 = vst [vmem:[#allocation2 + $0x24] sm:$0x1] %v293_v18  ;;  %v349_v26 = vsel %vm14011_vm4, 0, %v348_v9 }
  0x80   : > { %v14108_v31 = vrot.slane %v549_v15, 7  ;;  %350 = vst [vmem:[#allocation2 + $0x2c] sm:$0x1] %v349_v26  ;;  %v296_v32 = vsel %vm14006_vm3, 0, %v295_v10  ;;  %v1796_v33 = vld [vmem:[#allocation2 + $0xc] sm:$0xf]  ;;  %v546_v37 = vor.u32 %v544_v8, %v543_v21  ;;  %v6967_v3 = vsel %vm14035_vm11, %v14082_v61, %v6966_v20 }
  0x81   : > { %v960_v34 = vld [vmem:[#allocation2 + $0xc] sm:$0xf]  ;;  %297 = vst [vmem:[#allocation2 + $0x30] sm:$0x1] %v296_v32  ;;  %v3461_v39 = vld [vmem:[#allocation3] sm:$0xff]  ;;  %v547_v41 = vrot.slane %v543_v21, 4 }
  0x82   : > { %v1025_v35 = vld [vmem:[#allocation2 + $0xc] sm:$0xf]  ;;  %v13142_v49 = vld [vmem:[#allocation3 + $0x4] ss:$36 sps:$4 sm:$0xff]   ;;  %1828 = vst [vmem:[#allocation3 + $0xc] sm:$0xf] %v1796_v33  ;;  %v554_v42 = vor.u32 %v552_v16, %v14108_v31  ;;  %v11413_v43 = vcombine.low %v3461_v39, %v3466_v19 }
  0x83   : > { %992 = vst [vmem:[#allocation3 + $0x48] sm:$0xf] %v960_v34  ;;  %v1098_v40 = vshrl.u32 %v1025_v35, 16  ;;  %v1101_v11 = vshll.u32 %v1025_v35, 16  ;;  %6337 = vst [vmem:[#allocation3] sm:$0xf] %v6305_v13  ;;  %4972 = vmatprep.mubr.bf16.mxu0 %v13142_v49 }
  0x84   : > { %6338 = vst [vmem:[#allocation3 + $0x24] sm:$0xf] %v6306_v14  ;;  %6833 = vst [vmem:[#allocation3 + $0x4] sm:$0xf] %v6430_v27  ;;  %v556_v44 = vrot.slane %v14108_v31, 4  ;;  %v558_v46 = vshrl.u32 %v14097_v25, 16  ;;  %v555_v57 = vsel %vm14065_vm14, %v547_v41, %v554_v42  ;;  %4973 = vmatmul.mubr.bf16.vlgmr.msra.gmra.mxu0 %v11413_v43 }
  0x85   : > { %6834 = vst [vmem:[#allocation3 + $0x28] sm:$0xf] %v6440_v28  ;;  %v1524_v45 = vld [vmem:[#allocation2 + $0xc] sm:$0xe]  ;;  %v561_v48 = vshll.u32 %v14097_v25, 16  ;;  %v1100_v62 = vrot.slane %v1098_v40, 4  ;;  %12222 = vmatpush3.bf16.msra.mxu0 %v13148_v29 }
  0x86   : > { %v399_v51 = vld [vmem:[%s13995_s30 + $0x30] sm:$0xff]  ;;  %v1797_v53 = vld [vmem:[#allocation2 + $0x10] sm:$0xf]  ;;  %v1027_v60 = vld [vmem:[#allocation2 + $0x14] sm:$0x1]  ;;  %v1103_v0 = vrot.slane %v1101_v11, 5  ;;  %12223 = vmatprep.subr.bf16.mxu0 %v13158_v38 }
  0x87   : > { %v961_v55 = vld [vmem:[#allocation2 + $0x10] sm:$0xf]  ;;  %v13161_v59 = vld [vmem:[#allocation7 + $0x130] sm:$0xff]   ;;  %1829 = vst [vmem:[#allocation3 + $0x30] sm:$0xf] %v1797_v53  ;;  %v13172_v63 = vld [vmem:[#allocation7 + $0x168] sm:$0xff]   ;;  %v14130_v6 = vpack.c.bf16 %v399_v51, %v399_v51 }
  0x88   : > { %v1026_v56 = vld [vmem:[#allocation2 + $0x10] sm:$0xf]  ;;  %993 = vst [vmem:[#allocation3 + $0x6c] sm:$0xf] %v961_v55  ;;  %856 = vst [vmem:[#allocation2 + $0x1c] sm:$0xf] %v555_v57  ;;  %v1104_v7 = vor.u32 %v1103_v0, %v1100_v62 }
  0x89   : > { %v1107_v36 = vshll.u32 %v1026_v56, 16  ;;  %v1111_v47 = vshrl.u32 %v1026_v56, 16  ;;  %v1117_v52 = vshll.u32 %v1027_v60, 16  ;;  %v853_v2 = vld [vmem:[#allocation2 + $0x18] sm:$0xf]  ;;  %v11365_v5 = vrot.slane %v1524_v45, 9  ;;  %12224 = vmatpush3.bf16.msra.mxu0 %v13161_v59 }
  0x8a   : > { %v1525_v4 = vld [vmem:[#allocation2 + $0x10] sm:$0xf]  ;;  %v854_v10 = vsel %vm14053_vm13, %v546_v37, %v853_v2  ;;  %v1526_v13 = vld [vmem:[#allocation2 + $0x14] sm:$0x1]  ;;  %v857_v14 = vld [vmem:[#allocation2 + $0x20] sm:$0x1]  ;;  %12225 = vmatprep.subr.bf16.mxu0 %v13172_v63 }
  0x8b   : > { %v1109_v8 = vrot.slane %v1107_v36, 5  ;;  %v1113_v9 = vrot.slane %v1111_v47, 4  ;;  %v1119_v15 = vrot.slane %v1117_v52, 5  ;;  %855 = vst [vmem:[#allocation2 + $0x18] sm:$0xf] %v854_v10  ;;  %v1629_v16 = vrot.slane %v1525_v4, 5 }
  0x8c   : > { %v1632_v61 = vrot.slane %v1526_v13, 5  ;;  %v858_v17 = vsel %vm14006_vm3, %v556_v44, %v857_v14  ;;  %v1105_v18 = vrot.slane %v1104_v7, 4  ;;  %v560_v20 = vrot.slane %v558_v46, 7  ;;  %v860_v22 = vld [vmem:[#allocation2 + $0x24] sm:$0xf]  ;;  %v400_v37 = vld [vmem:[%s13995_s30 + $0x38] sm:$0xff] }
  0x8d   : > { %v1114_v19 = vor.u32 %v1113_v9, %v1109_v8  ;;  %859 = vst [vmem:[#allocation2 + $0x20] sm:$0x1] %v858_v17  ;;  %v566_v21 = vshrl.u32 %v14125_v58, 16  ;;  %v3462_v25 = vld [vmem:[#allocation3 + $0x8] sm:$0xff]  ;;  %v1630_v26 = vsel %vm14035_vm11, %v11365_v5, %v1629_v16  ;;  %v1631_v27 = vrot.slane %v1629_v16, 4  ;;  %v13186_v17 = vld [vmem:[#allocation7 + $0x160] sm:$0xff]  }
  0x8e   : > { %v569_v28 = vshll.u32 %v14125_v58, 16  ;;  %v575_v29 = vshrl.u32 %v14130_v6, 16  ;;  %v13175_v31 = vld [vmem:[#allocation7 + $0x128] sm:$0xff]   ;;  %v1110_v32 = vsel %vm14044_vm12, %v1105_v18, %v1109_v8  ;;  %1766 = vst [vmem:[#allocation3 + $0x50] sm:$0xf] %v1630_v26  ;;  %v563_v34 = vor.u32 %v561_v48, %v560_v20  ;;  %s13755_s26 = sshll.u32 %s13829_s22, 4  ;;  %s13756_s26 = int_to_ptr.vmem [resolvable:$false] %s13755_s26 }
  0x8f   : > { %v1115_v33 = vrot.slane %v1114_v19, 4  ;;  %v564_v35 = vrot.slane %v560_v20, 4  ;;  %v3467_v38 = vld [vmem:[#allocation3 + $0x2c] sm:$0xff]  ;;  %1491 = vst [vmem:[#allocation3 + $0x4c] sm:$0xf] %v1110_v32  ;;  %v1633_v49 = vsel %vm14035_vm11, %v1631_v27, %v1632_v61  ;;  %v568_v11 = vrot.slane %v566_v21, 7  ;;  %12226 = vmatpush3.bf16.msra.mxu0 %v13175_v31  ;;  %p13758_p6 = scmp.lt.s32.totalorder %s16987_s13, %s13756_s26 }
  0x90   : > { %v13146_v39 = vld [vmem:[#allocation3 + $0xc] ss:$36 sps:$4 sm:$0xff]   ;;  %v1799_v40 = vld [vmem:[#allocation2 + $0x1c] sm:$0xf]  ;;  %v864_v41 = vld [vmem:[#allocation2 + $0x2c] sm:$0x1]  ;;  %v11415_v42 = vcombine.low %v3462_v25, %v3467_v38  ;;  %v861_v46 = vsel %vm14053_vm13, %v563_v34, %v860_v22  ;;  %v14150_v59 = vpack.c.bf16 %v400_v37, %v400_v37  ;;  %12227 = vmatprep.subr.bf16.mxu0 %v13186_v17 }
  0x91   : > { %7105 = vst [vmem:[#allocation3 + $0x8] sm:$0xf] %v6964_v54  ;;  %7106 = vst [vmem:[#allocation3 + $0x2c] sm:$0xf] %v6967_v3  ;;  %v1120_v43 = vsel %vm14044_vm12, %v1115_v33, %v1119_v15  ;;  %v963_v44 = vld [vmem:[#allocation2 + $0x1c] sm:$0xf]  ;;  %5133 = vmatprep.mubr.bf16.mxu1 %v13146_v39  ;;  %v571_v55 = vor.u32 %v569_v28, %v568_v11 }
  0x92   : > { %1767 = vst [vmem:[#allocation3 + $0x74] sm:$0xf] %v1633_v49  ;;  %1831 = vst [vmem:[#allocation3 + $0x78] sm:$0xf] %v1799_v40  ;;  %v1029_v45 = vld [vmem:[#allocation2 + $0x1c] sm:$0xf]  ;;  %5134 = vmatmul.mubr.bf16.vlgmr.msra.gmra.mxu1 %v11415_v42 }
  0x93   : > { %v1528_v48 = vld [vmem:[#allocation2 + $0x1c] sm:$0xf]  ;;  %1492 = vst [vmem:[#allocation3 + $0x70] sm:$0xf] %v1120_v43  ;;  %995 = vst [vmem:[#allocation3 + $0xb4] sm:$0xf] %v963_v44  ;;  %v572_v3 = vsel %vm14065_vm14, %v564_v35, %v571_v55 }
  0x94   : > { %v1131_v51 = vshll.u32 %v1029_v45, 16  ;;  %v1135_v53 = vshrl.u32 %v1029_v45, 16  ;;  %v573_v54 = vrot.slane %v568_v11, 4  ;;  %862 = vst [vmem:[#allocation2 + $0x24] sm:$0xf] %v861_v46  ;;  %v1636_v4 = vrot.slane %v1528_v48, 5 }
  0x95   : > { %v1798_v56 = vld [vmem:[#allocation2 + $0x18] sm:$0xf]  ;;  %v1030_v60 = vld [vmem:[#allocation2 + $0x20] sm:$0x1]  ;;  %863 = vst [vmem:[#allocation2 + $0x28] sm:$0xf] %v572_v3 }
  0x96   : > { %v962_v57 = vld [vmem:[#allocation2 + $0x18] sm:$0xf]  ;;  %1830 = vst [vmem:[#allocation3 + $0x54] sm:$0xf] %v1798_v56  ;;  %v1133_v36 = vrot.slane %v1131_v51, 5  ;;  %v1137_v47 = vrot.slane %v1135_v53, 4  ;;  %v865_v5 = vsel %vm14006_vm3, %v573_v54, %v864_v41 }
  0x97   : > { %v1028_v58 = vld [vmem:[#allocation2 + $0x18] sm:$0xf]  ;;  %994 = vst [vmem:[#allocation3 + $0x90] sm:$0xf] %v962_v57  ;;  %v1141_v63 = vshll.u32 %v1030_v60, 16  ;;  %v1638_v14 = vrot.slane %v1636_v4, 4 }
  0x98   : > { %v1122_v62 = vshrl.u32 %v1028_v58, 16  ;;  %v1125_v0 = vshll.u32 %v1028_v58, 16  ;;  %v1527_v52 = vld [vmem:[#allocation2 + $0x18] sm:$0xe]  ;;  %v1529_v2 = vld [vmem:[#allocation2 + $0x20] sm:$0x1]  ;;  %v1138_v9 = vor.u32 %v1137_v47, %v1133_v36 }
  0x99   : > { %v11366_v10 = vrot.slane %v1527_v52, 9  ;;  %866 = vst [vmem:[#allocation2 + $0x2c] sm:$0x1] %v865_v5  ;;  %v1143_v13 = vrot.slane %v1141_v63, 5  ;;  %v1639_v15 = vrot.slane %v1529_v2, 5  ;;  %v14156_v16 = vrot.slane %v575_v29, 7 }
  0x9a   : > { %v1124_v7 = vrot.slane %v1122_v62, 4  ;;  %v1127_v8 = vrot.slane %v1125_v0, 5  ;;  %v351_v61 = vld [vmem:[#allocation2 + $0x38] sm:$0x1]  ;;  %v1139_v19 = vrot.slane %v1138_v9, 4  ;;  %v578_v21 = vshll.u32 %v14130_v6, 16 }
  0x9b   : > { %v1637_v20 = vsel %vm14035_vm11, %v11366_v10, %v1636_v4  ;;  %v867_v22 = vld [vmem:[#allocation2 + $0x30] sm:$0xf]  ;;  %v401_v25 = vld [vmem:[%s13995_s30 + $0x40] sm:$0xff]  ;;  %v13149_v26 = vld [vmem:[#allocation3 + $0x4c] ss:$36 sps:$4 sm:$0xff]   ;;  %v1640_v28 = vsel %vm14035_vm11, %v1638_v14, %v1639_v15  ;;  %v581_v29 = vrot.slane %v14156_v16, 4 }
  0x9c   : > { %v1128_v18 = vor.u32 %v1127_v8, %v1124_v7  ;;  %v13151_v27 = vld [vmem:[#allocation3 + $0x48] ss:$36 sps:$4 sm:$0xff]   ;;  %1768 = vst [vmem:[#allocation3 + $0x98] sm:$0xf] %v1637_v20  ;;  %v1144_v32 = vsel %vm14044_vm12, %v1139_v19, %v1143_v13  ;;  %1769 = vst [vmem:[#allocation3 + $0xbc] sm:$0xf] %v1640_v28  ;;  %v580_v6 = vor.u32 %v578_v21, %v14156_v16  ;;  %4980 = vmatprep.mubr.bf16.mxu0 %v13149_v26 }
  0x9d   : > { %v1800_v33 = vld [vmem:[#allocation2 + $0x24] sm:$0xf]  ;;  %v583_v35 = vshrl.u32 %v14150_v59, 16  ;;  %v13152_v38 = vld [vmem:[#allocation3 + $0x54] ss:$36 sps:$4 sm:$0xff]   ;;  %v586_v49 = vshll.u32 %v14150_v59, 16  ;;  %4981 = vmatmul.mubr.bf16.gmra.mxu0 %v13151_v27  ;;  %v14179_v53 = vpack.c.bf16 %v401_v25, %v401_v25 }
  0x9e   : > { %v1129_v31 = vrot.slane %v1128_v18, 4  ;;  %v964_v34 = vld [vmem:[#allocation2 + $0x24] sm:$0xf]  ;;  %v13154_v39 = vld [vmem:[#allocation3 + $0x50] ss:$36 sps:$4 sm:$0xff]   ;;  %v868_v42 = vsel %vm14053_vm13, %v580_v6, %v867_v22  ;;  %v352_v44 = vsel %vm14011_vm4, 0, %v351_v61  ;;  %5141 = vmatprep.mubr.bf16.mxu1 %v13152_v38 }
  0x9f   : > { %v402_v37 = vld [vmem:[%s13995_s30 + $0x48] sm:$0xff]  ;;  %1494 = vst [vmem:[#allocation3 + $0xb8] sm:$0xf] %v1144_v32  ;;  %1832 = vst [vmem:[#allocation3 + $0x9c] sm:$0xf] %v1800_v33  ;;  %v14173_v41 = vrot.slane %v583_v35, 7  ;;  %5142 = vmatmul.mubr.bf16.gmra.mxu1 %v13154_v39 }
  0xa0   : > { %996 = vst [vmem:[#allocation3 + $0xd8] sm:$0xf] %v964_v34  ;;  %v1134_v40 = vsel %vm14044_vm12, %v1129_v31, %v1133_v36  ;;  %v1031_v11 = vld [vmem:[#allocation2 + $0x24] sm:$0xf]  ;;  %v1801_v45 = vld [vmem:[#allocation2 + $0x28] sm:$0xf]  ;;  %v14183_v47 = vpack.c.bf16 %v402_v37, %v402_v37 }
  0xa1   : > { %v1530_v43 = vld [vmem:[#allocation2 + $0x24] sm:$0xe]  ;;  %1493 = vst [vmem:[#allocation3 + $0x94] sm:$0xf] %v1134_v40  ;;  %v965_v46 = vld [vmem:[#allocation2 + $0x28] sm:$0xf]  ;;  %v588_v60 = vor.u32 %v586_v49, %v14173_v41 }
  0xa2   : > { %v1032_v48 = vld [vmem:[#allocation2 + $0x28] sm:$0xf]  ;;  %869 = vst [vmem:[#allocation2 + $0x30] sm:$0xf] %v868_v42  ;;  %353 = vst [vmem:[#allocation2 + $0x38] sm:$0x1] %v352_v44 }
  0xa3   : > { %v298_v51 = vld [vmem:[#allocation2 + $0x3c] sm:$0x1]  ;;  %1833 = vst [vmem:[#allocation3 + $0xc0] sm:$0xf] %v1801_v45  ;;  %997 = vst [vmem:[#allocation3 + $0xfc] sm:$0xf] %v965_v46  ;;  %v589_v5 = vsel %vm14065_vm14, %v581_v29, %v588_v60 }
  0xa4   : > { %v1033_v55 = vld [vmem:[#allocation2 + $0x2c] sm:$0x1]  ;;  %v1146_v54 = vshrl.u32 %v1031_v11, 16  ;;  %v1149_v56 = vshll.u32 %v1031_v11, 16  ;;  %v1155_v57 = vshll.u32 %v1032_v48, 16  ;;  %v1159_v58 = vshrl.u32 %v1032_v48, 16 }
  0xa5   : > { %v1165_v59 = vshll.u32 %v1033_v55, 16  ;;  %v590_v62 = vrot.slane %v14173_v41, 4  ;;  %v1531_v0 = vld [vmem:[#allocation2 + $0x28] sm:$0xf]  ;;  %v1532_v36 = vld [vmem:[#allocation2 + $0x2c] sm:$0x1] }
  0xa6   : > { %v1148_v63 = vrot.slane %v1146_v54, 4  ;;  %v1151_v3 = vrot.slane %v1149_v56, 5  ;;  %v1157_v52 = vrot.slane %v1155_v57, 5  ;;  %v1161_v2 = vrot.slane %v1159_v58, 4  ;;  %870 = vst [vmem:[#allocation2 + $0x34] sm:$0xf] %v589_v5 }
  0xa7   : > { %v1167_v4 = vrot.slane %v1165_v59, 5  ;;  %v11367_v7 = vrot.slane %v1530_v43, 9  ;;  %v1643_v8 = vrot.slane %v1531_v0, 5  ;;  %v1646_v13 = vrot.slane %v1532_v36, 5  ;;  %v13189_v18 = vld [vmem:[#allocation7 + $0x120] sm:$0xff]   ;;  %v403_v22 = vld [vmem:[%s13995_s30 + $0x50] sm:$0xff] }
  0xa8   : > { %v1152_v9 = vor.u32 %v1151_v3, %v1148_v63  ;;  %v1162_v10 = vor.u32 %v1161_v2, %v1157_v52  ;;  %v299_v14 = vsel %vm14006_vm3, 0, %v298_v51  ;;  %v592_v61 = vshrl.u32 %v14179_v53, 16  ;;  %v13155_v19 = vld [vmem:[#allocation3 + $0x94] ss:$36 sps:$4 sm:$0xff]   ;;  %12228 = vmatpush3.bf16.msra.mxu0 %v13189_v18  ;;  %v354_v6 = vld [vmem:[#allocation2 + $0x44] sm:$0x1] }
  0xa9   : > { %v1644_v15 = vsel %vm14035_vm11, %v11367_v7, %v1643_v8  ;;  %v1645_v16 = vrot.slane %v1643_v8, 4  ;;  %300 = vst [vmem:[#allocation2 + $0x3c] sm:$0x1] %v299_v14  ;;  %v595_v17 = vshll.u32 %v14179_v53, 16  ;;  %v13157_v20 = vld [vmem:[#allocation3 + $0x90] ss:$36 sps:$4 sm:$0xff]   ;;  %4988 = vmatprep.mubr.bf16.mxu0 %v13155_v19  ;;  %v11942_v53 = vpack.c.bf16 %v403_v22, %v403_v22 }
  0xaa   : > { %v1153_v21 = vrot.slane %v1152_v9, 4  ;;  %1770 = vst [vmem:[#allocation3 + $0xe0] sm:$0xf] %v1644_v15  ;;  %v404_v25 = vld [vmem:[%s13995_s30 + $0x58] sm:$0xff]  ;;  %v1163_v28 = vrot.slane %v1162_v10, 4  ;;  %4989 = vmatmul.mubr.bf16.gmra.mxu0 %v13157_v20  ;;  %v594_v39 = vrot.slane %v592_v61, 7 }
  0xab   : > { %v13159_v26 = vld [vmem:[#allocation3 + $0x9c] ss:$36 sps:$4 sm:$0xff]   ;;  %v1647_v29 = vsel %vm14035_vm11, %v1645_v16, %v1646_v13  ;;  %v1802_v32 = vld [vmem:[#allocation2 + $0x30] sm:$0xf]  ;;  %v600_v49 = vshrl.u32 %v14183_v47, 16  ;;  %v603_v42 = vshll.u32 %v14183_v47, 16  ;;  %v14205_v55 = vpack.c.bf16 %v404_v25, %v404_v25 }
  0xac   : > { %v13162_v27 = vld [vmem:[#allocation3 + $0x98] ss:$36 sps:$4 sm:$0xff]   ;;  %v1158_v31 = vsel %vm14044_vm12, %v1153_v21, %v1157_v52  ;;  %1771 = vst [vmem:[#allocation3 + $0x104] sm:$0xf] %v1647_v29  ;;  %v871_v33 = vld [vmem:[#allocation2 + $0x38] sm:$0x1]  ;;  %5149 = vmatprep.mubr.bf16.mxu1 %v13159_v26  ;;  %v1168_v35 = vsel %vm14044_vm12, %v1163_v28, %v1167_v4  ;;  %v597_v51 = vor.u32 %v595_v17, %v594_v39 }
  0xad   : > { %v966_v34 = vld [vmem:[#allocation2 + $0x30] sm:$0xf]  ;;  %1495 = vst [vmem:[#allocation3 + $0xdc] sm:$0xf] %v1158_v31  ;;  %1834 = vst [vmem:[#allocation3 + $0xe4] sm:$0xf] %v1802_v32  ;;  %v872_v37 = vsel %vm14006_vm3, %v590_v62, %v871_v33  ;;  %5150 = vmatmul.mubr.bf16.gmra.mxu1 %v13162_v27 }
  0xae   : > { %998 = vst [vmem:[#allocation3 + $0x120] sm:$0xf] %v966_v34  ;;  %v1034_v38 = vld [vmem:[#allocation2 + $0x30] sm:$0xf]  ;;  %1496 = vst [vmem:[#allocation3 + $0x100] sm:$0xf] %v1168_v35 }
  0xaf   : > { %v1533_v40 = vld [vmem:[#allocation2 + $0x30] sm:$0xe]  ;;  %873 = vst [vmem:[#allocation2 + $0x38] sm:$0x1] %v872_v37  ;;  %v1170_v11 = vshrl.u32 %v1034_v38, 16  ;;  %v1173_v41 = vshll.u32 %v1034_v38, 16 }
  0xb0   : > { %v11368_v43 = vrot.slane %v1533_v40, 9  ;;  %v301_v44 = vld [vmem:[#allocation2 + $0x48] sm:$0x1]  ;;  %v1803_v45 = vld [vmem:[#allocation2 + $0x34] sm:$0xf]  ;;  %v598_v60 = vrot.slane %v594_v39, 4 }
  0xb1   : > { %v967_v46 = vld [vmem:[#allocation2 + $0x34] sm:$0xf]  ;;  %1835 = vst [vmem:[#allocation3 + $0x108] sm:$0xf] %v1803_v45  ;;  %v1172_v54 = vrot.slane %v1170_v11, 4  ;;  %v1175_v56 = vrot.slane %v1173_v41, 5 }
  0xb2   : > { %v1035_v48 = vld [vmem:[#allocation2 + $0x34] sm:$0xf]  ;;  %999 = vst [vmem:[#allocation3 + $0x144] sm:$0xf] %v967_v46  ;;  %v874_v59 = vld [vmem:[#allocation2 + $0x3c] sm:$0xf] }
  0xb3   : > { %v1179_v57 = vshll.u32 %v1035_v48, 16  ;;  %v1183_v58 = vshrl.u32 %v1035_v48, 16  ;;  %v602_v62 = vrot.slane %v600_v49, 7  ;;  %v875_v0 = vsel %vm14053_vm13, %v597_v51, %v874_v59  ;;  %v1534_v36 = vld [vmem:[#allocation2 + $0x34] sm:$0xf]  ;;  %v406_v35 = vld [vmem:[%s13995_s30 + $0x68] sm:$0xff] }
  0xb4   : > { %v355_v47 = vsel %vm14011_vm4, 0, %v354_v6  ;;  %v1176_v63 = vor.u32 %v1175_v56, %v1172_v54  ;;  %876 = vst [vmem:[#allocation2 + $0x3c] sm:$0xf] %v875_v0  ;;  %v1650_v2 = vrot.slane %v1534_v36, 5  ;;  %v302_v7 = vsel %vm14006_vm3, 0, %v301_v44  ;;  %v13200_v9 = vld [vmem:[#allocation7 + $0x158] sm:$0xff]  }
  0xb5   : > { %v1181_v3 = vrot.slane %v1179_v57, 5  ;;  %v1185_v52 = vrot.slane %v1183_v58, 4  ;;  %356 = vst [vmem:[#allocation2 + $0x44] sm:$0x1] %v355_v47  ;;  %v605_v4 = vor.u32 %v603_v42, %v602_v62  ;;  %v607_v5 = vrot.slane %v602_v62, 4  ;;  %12229 = vmatprep.subr.bf16.mxu0 %v13200_v9  ;;  %v405_v6 = vld [vmem:[%s13995_s30 + $0x60] sm:$0xff] }
  0xb6   : > { %v609_v8 = vshrl.u32 %v11942_v53, 16  ;;  %v1177_v10 = vrot.slane %v1176_v63, 4  ;;  %v1651_v14 = vsel %vm14035_vm11, %v11368_v43, %v1650_v2  ;;  %v1652_v15 = vrot.slane %v1650_v2, 4  ;;  %303 = vst [vmem:[#allocation2 + $0x48] sm:$0x1] %v302_v7  ;;  %s13757_s8 = scalar_lea.vmem %s13756_s26, 8192 }
  0xb7   : > { %v1186_v13 = vor.u32 %v1185_v52, %v1181_v3  ;;  %v13163_v16 = vld [vmem:[#allocation3 + $0xdc] ss:$36 sps:$4 sm:$0xff]   ;;  %v606_v17 = vsel %vm14065_vm14, %v598_v60, %v605_v4  ;;  %1772 = vst [vmem:[#allocation3 + $0x128] sm:$0xf] %v1651_v14  ;;  %v357_v19 = vld [vmem:[#allocation2 + $0x50] sm:$0x1]  ;;  %v11944_v54 = vpack.c.bf16 %v405_v6, %v405_v6  ;;  %v14241_v47 = vpack.c.bf16 %v406_v35, %v406_v35  ;;  %p13759_p12 = scmp.lt.s32.totalorder %s13757_s8, %s13751_s24 }
  0xb8   : > { %v13165_v61 = vld [vmem:[#allocation3 + $0xd8] ss:$36 sps:$4 sm:$0xff]   ;;  %v14217_v18 = vrot.slane %v609_v8, 7  ;;  %v1036_v20 = vld [vmem:[#allocation2 + $0x38] sm:$0x1]  ;;  %v1182_v21 = vsel %vm14044_vm12, %v1177_v10, %v1181_v3  ;;  %v612_v26 = vshll.u32 %v11942_v53, 16  ;;  %4996 = vmatprep.mubr.bf16.mxu0 %v13163_v16 }
  0xb9   : > { %v1187_v22 = vrot.slane %v1186_v13, 4  ;;  %877 = vst [vmem:[#allocation2 + $0x40] sm:$0xf] %v606_v17  ;;  %v1535_v25 = vld [vmem:[#allocation2 + $0x38] sm:$0x1]  ;;  %v1189_v29 = vshll.u32 %v1036_v20, 16  ;;  %4997 = vmatmul.mubr.bf16.gmra.mxu0 %v13165_v61  ;;  %p13760_p7 = por %p13759_p12, %p13758_p6 }
  0xba   : > { %v13166_v27 = vld [vmem:[#allocation3 + $0xe4] ss:$36 sps:$4 sm:$0xff]   ;;  %1497 = vst [vmem:[#allocation3 + $0x124] sm:$0xf] %v1182_v21  ;;  %v1653_v31 = vrot.slane %v1535_v25, 5  ;;  %v614_v32 = vor.u32 %v612_v26, %v14217_v18  ;;  %v615_v33 = vrot.slane %v14217_v18, 4 }
  0xbb   : > { %v13168_v28 = vld [vmem:[#allocation3 + $0xe0] ss:$36 sps:$4 sm:$0xff]   ;;  %v617_v34 = vshrl.u32 %v14205_v55, 16  ;;  %5157 = vmatprep.mubr.bf16.mxu1 %v13166_v27  ;;  %v1191_v37 = vrot.slane %v1189_v29, 5  ;;  %v620_v49 = vshll.u32 %v14205_v55, 16  ;;  %v358_v44 = vsel %vm14011_vm4, 0, %v357_v19  ;;  %p13761_p9 = pnand %p13760_p7, %p13754_p2 }
  0xbc   : > { %v1804_v38 = vld [vmem:[#allocation2 + $0x3c] sm:$0xf]  ;;  %v878_v39 = vld [vmem:[#allocation2 + $0x44] sm:$0x1]  ;;  %5158 = vmatmul.mubr.bf16.gmra.mxu1 %v13168_v28  ;;  %v1654_v40 = vsel %vm14035_vm11, %v1652_v15, %v1653_v31  ;;  %v304_v45 = vld [vmem:[#allocation2 + $0x54] sm:$0x1] }
  0xbd   : > { %1836 = vst [vmem:[#allocation3 + $0x12c] sm:$0xf] %v1804_v38  ;;  %v879_v11 = vsel %vm14006_vm3, %v607_v5, %v878_v39  ;;  %v968_v41 = vld [vmem:[#allocation2 + $0x3c] sm:$0xf]  ;;  %v14231_v43 = vrot.slane %v617_v34, 7  ;;  %v1192_v46 = vsel %vm14044_vm12, %v1187_v22, %v1191_v37  ;;  %v305_v7 = vsel %vm14006_vm3, 0, %v304_v45 }
  0xbe   : > { %v1037_v42 = vld [vmem:[#allocation2 + $0x3c] sm:$0xf]  ;;  %1773 = vst [vmem:[#allocation3 + $0x14c] sm:$0xf] %v1654_v40  ;;  %880 = vst [vmem:[#allocation2 + $0x44] sm:$0x1] %v879_v11 }
  0xbf   : > { %1000 = vst [vmem:[#allocation3 + $0x168] sm:$0xf] %v968_v41  ;;  %v1194_v48 = vshrl.u32 %v1037_v42, 16  ;;  %v1197_v51 = vshll.u32 %v1037_v42, 16  ;;  %v881_v53 = vld [vmem:[#allocation2 + $0x48] sm:$0xf]  ;;  %v622_v56 = vor.u32 %v620_v49, %v14231_v43 }
  0xc0   : > { %v1536_v55 = vld [vmem:[#allocation2 + $0x3c] sm:$0xe]  ;;  %359 = vst [vmem:[#allocation2 + $0x50] sm:$0x1] %v358_v44  ;;  %1498 = vst [vmem:[#allocation3 + $0x148] sm:$0xf] %v1192_v46  ;;  %v882_v58 = vsel %vm14053_vm13, %v614_v32, %v881_v53 }
  0xc1   : > { %v624_v57 = vrot.slane %v14231_v43, 4  ;;  %v11369_v59 = vrot.slane %v1536_v55, 9  ;;  %v360_v60 = vld [vmem:[#allocation2 + $0x5c] sm:$0x1]  ;;  %v1805_v62 = vld [vmem:[#allocation2 + $0x40] sm:$0xf]  ;;  %v623_v4 = vsel %vm14065_vm14, %v615_v33, %v622_v56 }
  0xc2   : > { %v969_v0 = vld [vmem:[#allocation2 + $0x40] sm:$0xf]  ;;  %883 = vst [vmem:[#allocation2 + $0x48] sm:$0xf] %v882_v58  ;;  %1837 = vst [vmem:[#allocation3 + $0x150] sm:$0xf] %v1805_v62 }
  0xc3   : > { %v1038_v36 = vld [vmem:[#allocation2 + $0x40] sm:$0xf]  ;;  %1001 = vst [vmem:[#allocation3 + $0x18c] sm:$0xf] %v969_v0  ;;  %v1196_v63 = vrot.slane %v1194_v48, 4  ;;  %v1199_v3 = vrot.slane %v1197_v51, 5 }
  0xc4   : > { %v1203_v52 = vshll.u32 %v1038_v36, 16  ;;  %v1207_v2 = vshrl.u32 %v1038_v36, 16  ;;  %v1537_v5 = vld [vmem:[#allocation2 + $0x40] sm:$0xf]  ;;  %v626_v8 = vshrl.u32 %v11944_v54, 16  ;;  %v629_v9 = vshll.u32 %v11944_v54, 16 }
  0xc5   : > { %v13203_v10 = vld [vmem:[#allocation7 + $0x118] sm:$0xff]   ;;  %v1200_v13 = vor.u32 %v1199_v3, %v1196_v63  ;;  %884 = vst [vmem:[#allocation2 + $0x4c] sm:$0xf] %v623_v4  ;;  %v1657_v16 = vrot.slane %v1537_v5, 5  ;;  %306 = vst [vmem:[#allocation2 + $0x54] sm:$0x1] %v305_v7 }
  0xc6   : > { %v1205_v14 = vrot.slane %v1203_v52, 5  ;;  %v1209_v15 = vrot.slane %v1207_v2, 4  ;;  %v14247_v61 = vrot.slane %v626_v8, 7  ;;  %v634_v17 = vshrl.u32 %v14241_v47, 16  ;;  %12230 = vmatpush3.bf16.msra.mxu0 %v13203_v10  ;;  %v1039_v20 = vld [vmem:[#allocation2 + $0x44] sm:$0x1] }
  0xc7   : > { %v637_v18 = vshll.u32 %v14241_v47, 16  ;;  %v361_v19 = vsel %vm14011_vm4, 0, %v360_v60  ;;  %v1201_v21 = vrot.slane %v1200_v13, 4  ;;  %v1538_v25 = vld [vmem:[#allocation2 + $0x44] sm:$0x1]  ;;  %v1658_v26 = vsel %vm14035_vm11, %v11369_v59, %v1657_v16  ;;  %v407_v28 = vld [vmem:[%s13995_s30 + $0x70] sm:$0xff] }
  0xc8   : > { %v1210_v22 = vor.u32 %v1209_v15, %v1205_v14  ;;  %v1659_v27 = vrot.slane %v1657_v16, 4  ;;  %362 = vst [vmem:[#allocation2 + $0x5c] sm:$0x1] %v361_v19  ;;  %v408_v29 = vld [vmem:[%s13995_s30 + $0x78] sm:$0xff]  ;;  %v13169_v31 = vld [vmem:[#allocation3 + $0x124] ss:$36 sps:$4 sm:$0xff]   ;;  %v631_v42 = vor.u32 %v629_v9, %v14247_v61  ;;  %v11946_v56 = vpack.c.bf16 %v407_v28, %v407_v28 }
  0xc9   : > { %v13171_v32 = vld [vmem:[#allocation3 + $0x120] ss:$36 sps:$4 sm:$0xff]   ;;  %v1213_v33 = vshll.u32 %v1039_v20, 16  ;;  %1774 = vst [vmem:[#allocation3 + $0x170] sm:$0xf] %v1658_v26  ;;  %v1206_v34 = vsel %vm14044_vm12, %v1201_v21, %v1205_v14  ;;  %v1660_v35 = vrot.slane %v1538_v25, 5  ;;  %5004 = vmatprep.mubr.bf16.mxu0 %v13169_v31 }
  0xca   : > { %v1211_v6 = vrot.slane %v1210_v22, 4  ;;  %v1806_v37 = vld [vmem:[#allocation2 + $0x48] sm:$0xf]  ;;  %v885_v38 = vld [vmem:[#allocation2 + $0x50] sm:$0x1]  ;;  %5005 = vmatmul.mubr.bf16.gmra.mxu0 %v13171_v32  ;;  %v632_v46 = vrot.slane %v14247_v61, 4 }
  0xcb   : > { %v307_v39 = vld [vmem:[#allocation2 + $0x60] sm:$0x1]  ;;  %v13173_v49 = vld [vmem:[#allocation3 + $0x12c] ss:$36 sps:$4 sm:$0xff]   ;;  %v1215_v11 = vrot.slane %v1213_v33, 5  ;;  %v886_v41 = vsel %vm14006_vm3, %v624_v57, %v885_v38  ;;  %v1661_v43 = vsel %vm14035_vm11, %v1659_v27, %v1660_v35  ;;  %v636_v48 = vrot.slane %v634_v17, 7 }
  0xcc   : > { %v13176_v40 = vld [vmem:[#allocation3 + $0x128] ss:$36 sps:$4 sm:$0xff]   ;;  %1499 = vst [vmem:[#allocation3 + $0x16c] sm:$0xf] %v1206_v34  ;;  %1838 = vst [vmem:[#allocation3 + $0x174] sm:$0xf] %v1806_v37  ;;  %5165 = vmatprep.mubr.bf16.mxu1 %v13173_v49  ;;  %v14267_v57 = vpack.c.bf16 %v408_v29, %v408_v29 }
  0xcd   : > { %887 = vst [vmem:[#allocation2 + $0x50] sm:$0x1] %v886_v41  ;;  %v970_v44 = vld [vmem:[#allocation2 + $0x48] sm:$0xf]  ;;  %v1216_v51 = vsel %vm14044_vm12, %v1211_v6, %v1215_v11  ;;  %1775 = vst [vmem:[#allocation3 + $0x194] sm:$0xf] %v1661_v43  ;;  %5166 = vmatmul.mubr.bf16.gmra.mxu1 %v13176_v40  ;;  %v639_v36 = vor.u32 %v637_v18, %v636_v48 }
  0xce   : > { %v1040_v45 = vld [vmem:[#allocation2 + $0x48] sm:$0xf]  ;;  %v1807_v53 = vld [vmem:[#allocation2 + $0x4c] sm:$0xf]  ;;  %1002 = vst [vmem:[#allocation3 + $0x1b0] sm:$0xf] %v970_v44 }
  0xcf   : > { %v971_v55 = vld [vmem:[#allocation2 + $0x4c] sm:$0xf]  ;;  %1500 = vst [vmem:[#allocation3 + $0x190] sm:$0xf] %v1216_v51  ;;  %1839 = vst [vmem:[#allocation3 + $0x198] sm:$0xf] %v1807_v53  ;;  %v640_v10 = vsel %vm14065_vm14, %v632_v46, %v639_v36 }
  0xd0   : > { %v1041_v54 = vld [vmem:[#allocation2 + $0x4c] sm:$0xf]  ;;  %1003 = vst [vmem:[#allocation3 + $0x1d4] sm:$0xf] %v971_v55  ;;  %v1218_v58 = vshrl.u32 %v1040_v45, 16  ;;  %v1221_v59 = vshll.u32 %v1040_v45, 16 }
  0xd1   : > { %v1227_v60 = vshll.u32 %v1041_v54, 16  ;;  %v1231_v62 = vshrl.u32 %v1041_v54, 16  ;;  %v888_v0 = vld [vmem:[#allocation2 + $0x54] sm:$0xf]  ;;  %v641_v47 = vrot.slane %v636_v48, 4  ;;  %v308_v2 = vsel %vm14006_vm3, 0, %v307_v39 }
  0xd2   : > { %v889_v63 = vsel %vm14053_vm13, %v631_v42, %v888_v0  ;;  %v1539_v3 = vld [vmem:[#allocation2 + $0x48] sm:$0xe]  ;;  %v1540_v52 = vld [vmem:[#allocation2 + $0x4c] sm:$0xf]  ;;  %v1220_v4 = vrot.slane %v1218_v58, 4  ;;  %v1223_v5 = vrot.slane %v1221_v59, 5 }
  0xd3   : > { %v1229_v7 = vrot.slane %v1227_v60, 5  ;;  %v1233_v8 = vrot.slane %v1231_v62, 4  ;;  %890 = vst [vmem:[#allocation2 + $0x54] sm:$0xf] %v889_v63  ;;  %v892_v9 = vld [vmem:[#allocation2 + $0x5c] sm:$0x1] }
  0xd4   : > { %309 = vst [vmem:[#allocation2 + $0x60] sm:$0x1] %v308_v2  ;;  %v11370_v13 = vrot.slane %v1539_v3, 9  ;;  %v1664_v14 = vrot.slane %v1540_v52, 5  ;;  %v893_v15 = vsel %vm14006_vm3, %v641_v47, %v892_v9  ;;  %v1224_v16 = vor.u32 %v1223_v5, %v1220_v4  ;;  %891 = vst [vmem:[#allocation2 + $0x58] sm:$0xf] %v640_v10 }
  0xd5   : > { %v1234_v61 = vor.u32 %v1233_v8, %v1229_v7  ;;  %894 = vst [vmem:[#allocation2 + $0x5c] sm:$0x1] %v893_v15  ;;  %v643_v17 = vshrl.u32 %v11946_v56, 16  ;;  %v646_v18 = vshll.u32 %v11946_v56, 16  ;;  %v1042_v19 = vld [vmem:[#allocation2 + $0x50] sm:$0x1] }
  0xd6   : > { %v1541_v20 = vld [vmem:[#allocation2 + $0x50] sm:$0x1]  ;;  %v1665_v21 = vsel %vm14035_vm11, %v11370_v13, %v1664_v14  ;;  %v1666_v22 = vrot.slane %v1664_v14, 4  ;;  %v651_v25 = vshrl.u32 %v14267_v57, 16  ;;  %v1225_v26 = vrot.slane %v1224_v16, 4  ;;  %v409_v31 = vld [vmem:[%s13995_s30 + $0x80] sm:$0xff] }
  0xd7   : > { %v1235_v27 = vrot.slane %v1234_v61, 4  ;;  %v1237_v28 = vshll.u32 %v1042_v19, 16  ;;  %v1667_v29 = vrot.slane %v1541_v20, 5  ;;  %1776 = vst [vmem:[#allocation3 + $0x1b8] sm:$0xf] %v1665_v21  ;;  %v14281_v34 = vrot.slane %v643_v17, 7 }
  0xd8   : > { %v13177_v32 = vld [vmem:[#allocation3 + $0x16c] ss:$36 sps:$4 sm:$0xff]   ;;  %v13180_v6 = vld [vmem:[#allocation3 + $0x174] ss:$36 sps:$4 sm:$0xff]   ;;  %v1230_v37 = vsel %vm14044_vm12, %v1225_v26, %v1229_v7  ;;  %v14293_v58 = vpack.c.bf16 %v409_v31, %v409_v31  ;;  %v653_v3 = vrot.slane %v651_v25, 7  ;;  %v654_v52 = vshll.u32 %v14267_v57, 16 }
  0xd9   : > { %v13179_v33 = vld [vmem:[#allocation3 + $0x168] ss:$36 sps:$4 sm:$0xff]   ;;  %v13182_v35 = vld [vmem:[#allocation3 + $0x170] ss:$36 sps:$4 sm:$0xff]   ;;  %v1239_v38 = vrot.slane %v1237_v28, 5  ;;  %v1668_v39 = vsel %vm14035_vm11, %v1666_v22, %v1667_v29  ;;  %5012 = vmatprep.mubr.bf16.mxu0 %v13177_v32  ;;  %v648_v42 = vor.u32 %v646_v18, %v14281_v34  ;;  %5173 = vmatprep.mubr.bf16.mxu1 %v13180_v6  ;;  %v649_v46 = vrot.slane %v14281_v34, 4 }
  0xda   : > { %v363_v49 = vld [vmem:[#allocation2 + $0x68] sm:$0x1]  ;;  %1501 = vst [vmem:[#allocation3 + $0x1b4] sm:$0xf] %v1230_v37  ;;  %1777 = vst [vmem:[#allocation3 + $0x1dc] sm:$0xf] %v1668_v39  ;;  %5013 = vmatmul.mubr.bf16.gmra.mxu0 %v13179_v33  ;;  %5174 = vmatmul.mubr.bf16.gmra.mxu1 %v13182_v35  ;;  %v656_v14 = vor.u32 %v654_v52, %v653_v3 }
  0xdb   : > { %v1808_v40 = vld [vmem:[#allocation2 + $0x54] sm:$0xf]  ;;  %v1240_v43 = vsel %vm14044_vm12, %v1235_v27, %v1239_v38  ;;  %v895_v48 = vld [vmem:[#allocation2 + $0x60] sm:$0xf]  ;;  %v13214_v51 = vld [vmem:[#allocation7 + $0x150] sm:$0xff]   ;;  %v364_v4 = vsel %vm14011_vm4, 0, %v363_v49 }
  0xdc   : > { %v972_v11 = vld [vmem:[#allocation2 + $0x54] sm:$0xf]  ;;  %1840 = vst [vmem:[#allocation3 + $0x1bc] sm:$0xf] %v1808_v40  ;;  %1502 = vst [vmem:[#allocation3 + $0x1d8] sm:$0xf] %v1240_v43  ;;  %v896_v56 = vsel %vm14053_vm13, %v648_v42, %v895_v48  ;;  %12231 = vmatprep.subr.bf16.mxu0 %v13214_v51  ;;  %v657_v21 = vsel %vm14065_vm14, %v649_v46, %v656_v14 }
  0xdd   : > { %v1043_v41 = vld [vmem:[#allocation2 + $0x54] sm:$0xf]  ;;  %1004 = vst [vmem:[#allocation3 + $0x1f8] sm:$0xf] %v972_v11  ;;  %v1809_v53 = vld [vmem:[#allocation2 + $0x58] sm:$0xf] }
  0xde   : > { %v1242_v44 = vshrl.u32 %v1043_v41, 16  ;;  %v1245_v45 = vshll.u32 %v1043_v41, 16  ;;  %v973_v55 = vld [vmem:[#allocation2 + $0x58] sm:$0xf]  ;;  %1841 = vst [vmem:[#allocation3 + $0x1e0] sm:$0xf] %v1809_v53 }
  0xdf   : > { %v1044_v54 = vld [vmem:[#allocation2 + $0x58] sm:$0xf]  ;;  %1005 = vst [vmem:[#allocation3 + $0x21c] sm:$0xf] %v973_v55  ;;  %v1045_v59 = vld [vmem:[#allocation2 + $0x5c] sm:$0x1] }
  0xe0   : > { %v1244_v60 = vrot.slane %v1242_v44, 4  ;;  %v1247_v62 = vrot.slane %v1245_v45, 5  ;;  %v1251_v0 = vshll.u32 %v1044_v54, 16  ;;  %v1255_v36 = vshrl.u32 %v1044_v54, 16  ;;  %897 = vst [vmem:[#allocation2 + $0x60] sm:$0xf] %v896_v56 }
  0xe1   : > { %v310_v47 = vld [vmem:[#allocation2 + $0x6c] sm:$0x1]  ;;  %v1261_v63 = vshll.u32 %v1045_v59, 16  ;;  %v1542_v2 = vld [vmem:[#allocation2 + $0x54] sm:$0xe]  ;;  %v658_v15 = vrot.slane %v653_v3, 4 }
  0xe2   : > { %v1248_v5 = vor.u32 %v1247_v62, %v1244_v60  ;;  %v1253_v7 = vrot.slane %v1251_v0, 5  ;;  %v1257_v8 = vrot.slane %v1255_v36, 4  ;;  %v1543_v9 = vld [vmem:[#allocation2 + $0x58] sm:$0xf]  ;;  %v1544_v10 = vld [vmem:[#allocation2 + $0x5c] sm:$0x1] }
  0xe3   : > { %365 = vst [vmem:[#allocation2 + $0x68] sm:$0x1] %v364_v4  ;;  %v1263_v13 = vrot.slane %v1261_v63, 5  ;;  %v11371_v16 = vrot.slane %v1542_v2, 9  ;;  %v410_v61 = vld [vmem:[%s13995_s30 + $0x88] sm:$0xff]  ;;  %v411_v17 = vld [vmem:[%s13995_s30 + $0x90] sm:$0xff] }
  0xe4   : > { %v1249_v18 = vrot.slane %v1248_v5, 4  ;;  %v1258_v19 = vor.u32 %v1257_v8, %v1253_v7  ;;  %v1671_v20 = vrot.slane %v1543_v9, 5  ;;  %v1674_v57 = vrot.slane %v1544_v10, 5  ;;  %v366_v27 = vld [vmem:[#allocation2 + $0x74] sm:$0x1]  ;;  %v13217_v56 = vld [vmem:[#allocation7 + $0x110] sm:$0xff]  }
  0xe5   : > { %v311_v22 = vsel %vm14006_vm3, 0, %v310_v47  ;;  %v660_v25 = vshrl.u32 %v14293_v58, 16  ;;  %v663_v26 = vshll.u32 %v14293_v58, 16  ;;  %v13183_v28 = vld [vmem:[#allocation3 + $0x1b4] ss:$36 sps:$4 sm:$0xff]   ;;  %v11949_v34 = vpack.c.bf16 %v410_v61, %v410_v61  ;;  %12232 = vmatpush3.bf16.msra.mxu0 %v13217_v56 }
  0xe6   : > { %v13185_v29 = vld [vmem:[#allocation3 + $0x1b0] ss:$36 sps:$4 sm:$0xff]   ;;  %v1254_v31 = vsel %vm14044_vm12, %v1249_v18, %v1253_v7  ;;  %v1259_v32 = vrot.slane %v1258_v19, 4  ;;  %898 = vst [vmem:[#allocation2 + $0x64] sm:$0xf] %v657_v21  ;;  %v1672_v33 = vsel %vm14035_vm11, %v11371_v16, %v1671_v20  ;;  %v1673_v37 = vrot.slane %v1671_v20, 4  ;;  %5020 = vmatprep.mubr.bf16.mxu0 %v13183_v28 }
  0xe7   : > { %312 = vst [vmem:[#allocation2 + $0x6c] sm:$0x1] %v311_v22  ;;  %v13187_v6 = vld [vmem:[#allocation3 + $0x1bc] ss:$36 sps:$4 sm:$0xff]   ;;  %1503 = vst [vmem:[#allocation3 + $0x1fc] sm:$0xf] %v1254_v31  ;;  %v11950_v41 = vpack.c.bf16 %v411_v17, %v411_v17  ;;  %5021 = vmatmul.mubr.bf16.gmra.mxu0 %v13185_v29 }
  0xe8   : > { %v13190_v35 = vld [vmem:[#allocation3 + $0x1b8] ss:$36 sps:$4 sm:$0xff]   ;;  %1778 = vst [vmem:[#allocation3 + $0x200] sm:$0xf] %v1672_v33  ;;  %v313_v38 = vld [vmem:[#allocation2 + $0x78] sm:$0x1]  ;;  %v1264_v39 = vsel %vm14044_vm12, %v1259_v32, %v1263_v13  ;;  %5181 = vmatprep.mubr.bf16.mxu1 %v13187_v6  ;;  %v1675_v42 = vsel %vm14035_vm11, %v1673_v37, %v1674_v57 }
  0xe9   : > { %v1810_v49 = vld [vmem:[#allocation2 + $0x60] sm:$0xf]  ;;  %1504 = vst [vmem:[#allocation3 + $0x220] sm:$0xf] %v1264_v39  ;;  %v662_v46 = vrot.slane %v660_v25, 7  ;;  %5182 = vmatmul.mubr.bf16.gmra.mxu1 %v13190_v35  ;;  %v668_v51 = vshrl.u32 %v11949_v34, 16 }
  0xea   : > { %v974_v40 = vld [vmem:[#allocation2 + $0x60] sm:$0xf]  ;;  %1842 = vst [vmem:[#allocation3 + $0x204] sm:$0xf] %v1810_v49  ;;  %v899_v43 = vld [vmem:[#allocation2 + $0x68] sm:$0x1] }
  0xeb   : > { %v1046_v11 = vld [vmem:[#allocation2 + $0x60] sm:$0xf]  ;;  %1006 = vst [vmem:[#allocation3 + $0x240] sm:$0xf] %v974_v40  ;;  %1779 = vst [vmem:[#allocation3 + $0x224] sm:$0xf] %v1675_v42  ;;  %v900_v48 = vsel %vm14006_vm3, %v658_v15, %v899_v43  ;;  %v665_v60 = vor.u32 %v663_v26, %v662_v46 }
  0xec   : > { %v1266_v44 = vshrl.u32 %v1046_v11, 16  ;;  %v1269_v45 = vshll.u32 %v1046_v11, 16  ;;  %v671_v53 = vshll.u32 %v11949_v34, 16  ;;  %v1545_v55 = vld [vmem:[#allocation2 + $0x60] sm:$0xe]  ;;  %v367_v54 = vsel %vm14011_vm4, 0, %v366_v27 }
  0xed   : > { %901 = vst [vmem:[#allocation2 + $0x68] sm:$0x1] %v900_v48  ;;  %v666_v62 = vrot.slane %v662_v46, 4  ;;  %368 = vst [vmem:[#allocation2 + $0x74] sm:$0x1] %v367_v54  ;;  %v412_v0 = vld [vmem:[%s13995_s30 + $0x98] sm:$0xff] }
  0xee   : > { %v1268_v58 = vrot.slane %v1266_v44, 4  ;;  %v1271_v59 = vrot.slane %v1269_v45, 5  ;;  %v670_v36 = vrot.slane %v668_v51, 7  ;;  %v11372_v47 = vrot.slane %v1545_v55, 9  ;;  %v1811_v52 = vld [vmem:[#allocation2 + $0x64] sm:$0xf] }
  0xef   : > { %v314_v63 = vsel %vm14006_vm3, 0, %v313_v38  ;;  %v677_v3 = vshrl.u32 %v11950_v41, 16  ;;  %v975_v2 = vld [vmem:[#allocation2 + $0x64] sm:$0xf]  ;;  %1843 = vst [vmem:[#allocation3 + $0x228] sm:$0xf] %v1811_v52  ;;  %v11951_v21 = vpack.c.bf16 %v412_v0, %v412_v0 }
  0xf0   : > { %v1047_v4 = vld [vmem:[#allocation2 + $0x64] sm:$0xf]  ;;  %v1272_v5 = vor.u32 %v1271_v59, %v1268_v58  ;;  %315 = vst [vmem:[#allocation2 + $0x78] sm:$0x1] %v314_v63  ;;  %1007 = vst [vmem:[#allocation3 + $0x264] sm:$0xf] %v975_v2  ;;  %v673_v9 = vor.u32 %v671_v53, %v670_v36 }
  0xf1   : > { %v1275_v7 = vshll.u32 %v1047_v4, 16  ;;  %v1279_v8 = vshrl.u32 %v1047_v4, 16  ;;  %v675_v10 = vrot.slane %v670_v36, 4  ;;  %v902_v13 = vld [vmem:[#allocation2 + $0x6c] sm:$0xf]  ;;  %v14323_v61 = vrot.slane %v677_v3, 7 }
  0xf2   : > { %v1273_v14 = vrot.slane %v1272_v5, 4  ;;  %v903_v15 = vsel %vm14053_vm13, %v665_v60, %v902_v13  ;;  %v1546_v16 = vld [vmem:[#allocation2 + $0x64] sm:$0xf]  ;;  %v680_v17 = vshll.u32 %v11950_v41, 16  ;;  %v13191_v18 = vld [vmem:[#allocation3 + $0x1fc] ss:$36 sps:$4 sm:$0xff]   ;;  %v674_v57 = vsel %vm14065_vm14, %v666_v62, %v673_v9 }
  0xf3   : > { %v13193_v19 = vld [vmem:[#allocation3 + $0x1f8] ss:$36 sps:$4 sm:$0xff]   ;;  %v1277_v20 = vrot.slane %v1275_v7, 5  ;;  %904 = vst [vmem:[#allocation2 + $0x6c] sm:$0xf] %v903_v15  ;;  %v1281_v22 = vrot.slane %v1279_v8, 4  ;;  %5028 = vmatprep.mubr.bf16.mxu0 %v13191_v18 }
  0xf4   : > { %905 = vst [vmem:[#allocation2 + $0x70] sm:$0xf] %v674_v57  ;;  %v1678_v25 = vrot.slane %v1546_v16, 5  ;;  %v682_v26 = vor.u32 %v680_v17, %v14323_v61  ;;  %v683_v27 = vrot.slane %v14323_v61, 4  ;;  %v1048_v28 = vld [vmem:[#allocation2 + $0x68] sm:$0x1]  ;;  %5029 = vmatmul.mubr.bf16.gmra.mxu0 %v13193_v19 }
  0xf5   : > { %v1278_v29 = vsel %vm14044_vm12, %v1273_v14, %v1277_v20  ;;  %v1547_v31 = vld [vmem:[#allocation2 + $0x68] sm:$0x1]  ;;  %v906_v32 = vld [vmem:[#allocation2 + $0x74] sm:$0x1]  ;;  %v1282_v33 = vor.u32 %v1281_v22, %v1277_v20  ;;  %v1285_v34 = vshll.u32 %v1048_v28, 16  ;;  %v413_v38 = vld [vmem:[%s13995_s30 + $0xa0] sm:$0xff] }
  0xf6   : > { %1505 = vst [vmem:[#allocation3 + $0x244] sm:$0xf] %v1278_v29  ;;  %v1679_v6 = vsel %vm14035_vm11, %v11372_v47, %v1678_v25  ;;  %v1680_v35 = vrot.slane %v1678_v25, 4  ;;  %v369_v37 = vld [vmem:[#allocation2 + $0x80] sm:$0x1]  ;;  %v1681_v39 = vrot.slane %v1547_v31, 5  ;;  %v907_v49 = vsel %vm14006_vm3, %v675_v10, %v906_v32 }
  0xf7   : > { %1780 = vst [vmem:[#allocation3 + $0x248] sm:$0xf] %v1679_v6  ;;  %v685_v40 = vshrl.u32 %v11951_v21, 16  ;;  %v688_v11 = vshll.u32 %v11951_v21, 16  ;;  %v909_v41 = vld [vmem:[#allocation2 + $0x78] sm:$0xf]  ;;  %v14347_v63 = vpack.c.bf16 %v413_v38, %v413_v38 }
  0xf8   : > { %v13228_v42 = vld [vmem:[#allocation7 + $0x148] sm:$0xff]   ;;  %v13196_v44 = vld [vmem:[#allocation3 + $0x200] ss:$36 sps:$4 sm:$0xff]   ;;  %v1283_v45 = vrot.slane %v1282_v33, 4  ;;  %908 = vst [vmem:[#allocation2 + $0x74] sm:$0x1] %v907_v49  ;;  %v910_v46 = vsel %vm14053_vm13, %v682_v26, %v909_v41  ;;  %v1682_v51 = vsel %vm14035_vm11, %v1680_v35, %v1681_v39 }
  0xf9   : > { %v13194_v43 = vld [vmem:[#allocation3 + $0x204] ss:$36 sps:$4 sm:$0xff]   ;;  %v1287_v48 = vrot.slane %v1285_v34, 5  ;;  %v14340_v53 = vrot.slane %v685_v40, 7  ;;  %911 = vst [vmem:[#allocation2 + $0x78] sm:$0xf] %v910_v46  ;;  %12233 = vmatprep.subr.bf16.mxu0 %v13228_v42 }
  0xfa   : > { %v370_v55 = vsel %vm14011_vm4, 0, %v369_v37  ;;  %v316_v54 = vld [vmem:[#allocation2 + $0x84] sm:$0x1]  ;;  %5189 = vmatprep.mubr.bf16.mxu1 %v13194_v43  ;;  %1781 = vst [vmem:[#allocation3 + $0x26c] sm:$0xf] %v1682_v51  ;;  %v694_v57 = vshrl.u32 %v14347_v63, 16 }
  0xfb   : > { %v1812_v56 = vld [vmem:[#allocation2 + $0x6c] sm:$0xf]  ;;  %371 = vst [vmem:[#allocation2 + $0x80] sm:$0x1] %v370_v55  ;;  %5190 = vmatmul.mubr.bf16.gmra.mxu1 %v13196_v44  ;;  %v1288_v60 = vsel %vm14044_vm12, %v1283_v45, %v1287_v48  ;;  %v1813_v62 = vld [vmem:[#allocation2 + $0x70] sm:$0xf]  ;;  %v690_v47 = vor.u32 %v688_v11, %v14340_v53 }
  0xfc   : > { %v976_v58 = vld [vmem:[#allocation2 + $0x6c] sm:$0xf]  ;;  %1844 = vst [vmem:[#allocation3 + $0x24c] sm:$0xf] %v1812_v56  ;;  %v977_v0 = vld [vmem:[#allocation2 + $0x70] sm:$0xf] }
  0xfd   : > { %v1049_v59 = vld [vmem:[#allocation2 + $0x6c] sm:$0xf]  ;;  %1008 = vst [vmem:[#allocation3 + $0x288] sm:$0xf] %v976_v58  ;;  %v1050_v36 = vld [vmem:[#allocation2 + $0x70] sm:$0xf]  ;;  %v691_v7 = vsel %vm14065_vm14, %v683_v27, %v690_v47 }
  0xfe   : > { %1506 = vst [vmem:[#allocation3 + $0x268] sm:$0xf] %v1288_v60  ;;  %1845 = vst [vmem:[#allocation3 + $0x270] sm:$0xf] %v1813_v62  ;;  %v1290_v3 = vshrl.u32 %v1049_v59, 16  ;;  %v1293_v52 = vshll.u32 %v1049_v59, 16 }
  0xff   : > { %1009 = vst [vmem:[#allocation3 + $0x2ac] sm:$0xf] %v977_v0  ;;  %v1299_v2 = vshll.u32 %v1050_v36, 16  ;;  %v1303_v4 = vshrl.u32 %v1050_v36, 16  ;;  %v1548_v5 = vld [vmem:[#allocation2 + $0x6c] sm:$0xe] }
 0x100   : > { %v692_v8 = vrot.slane %v14340_v53, 4  ;;  %v1549_v9 = vld [vmem:[#allocation2 + $0x70] sm:$0xf]  ;;  %v11373_v10 = vrot.slane %v1548_v5, 9  ;;  %v317_v13 = vsel %vm14006_vm3, 0, %v316_v54  ;;  %v1292_v14 = vrot.slane %v1290_v3, 4 }
 0x101   : > { %v1295_v15 = vrot.slane %v1293_v52, 5  ;;  %v1301_v16 = vrot.slane %v1299_v2, 5  ;;  %v1305_v61 = vrot.slane %v1303_v4, 4  ;;  %912 = vst [vmem:[#allocation2 + $0x7c] sm:$0xf] %v691_v7  ;;  %v414_v17 = vld [vmem:[%s13995_s30 + $0xa8] sm:$0xff] }
 0x102   : > { %318 = vst [vmem:[#allocation2 + $0x84] sm:$0x1] %v317_v13  ;;  %v1051_v18 = vld [vmem:[#allocation2 + $0x74] sm:$0x1]  ;;  %v1685_v20 = vrot.slane %v1549_v9, 5  ;;  %v14358_v34 = vrot.slane %v694_v57, 7  ;;  %v11953_v43 = vpack.c.bf16 %v414_v17, %v414_v17 }
 0x103   : > { %v1550_v19 = vld [vmem:[#allocation2 + $0x74] sm:$0x1]  ;;  %v1296_v21 = vor.u32 %v1295_v15, %v1292_v14  ;;  %v1306_v22 = vor.u32 %v1305_v61, %v1301_v16  ;;  %v1309_v25 = vshll.u32 %v1051_v18, 16  ;;  %v1814_v27 = vld [vmem:[#allocation2 + $0x78] sm:$0xf]  ;;  %v415_v39 = vld [vmem:[%s13995_s30 + $0xb0] sm:$0xff] }
 0x104   : > { %v1688_v26 = vrot.slane %v1550_v19, 5  ;;  %v978_v28 = vld [vmem:[#allocation2 + $0x78] sm:$0xf]  ;;  %v1686_v29 = vsel %vm14035_vm11, %v11373_v10, %v1685_v20  ;;  %v1687_v31 = vrot.slane %v1685_v20, 4  ;;  %1846 = vst [vmem:[#allocation3 + $0x294] sm:$0xf] %v1814_v27  ;;  %v14370_v60 = vpack.c.bf16 %v415_v39, %v415_v39 }
 0x105   : > { %v913_v32 = vld [vmem:[#allocation2 + $0x80] sm:$0x1]  ;;  %1010 = vst [vmem:[#allocation3 + $0x2d0] sm:$0xf] %v978_v28  ;;  %v1052_v33 = vld [vmem:[#allocation2 + $0x78] sm:$0xf] }
 0x106   : > { %v1297_v6 = vrot.slane %v1296_v21, 4  ;;  %v1307_v35 = vrot.slane %v1306_v22, 4  ;;  %v1311_v37 = vrot.slane %v1309_v25, 5  ;;  %1782 = vst [vmem:[#allocation3 + $0x290] sm:$0xf] %v1686_v29  ;;  %v914_v38 = vsel %vm14006_vm3, %v692_v8, %v913_v32  ;;  %v416_v49 = vld [vmem:[%s13995_s30 + $0xb8] sm:$0xff] }
 0x107   : > { %v13197_v40 = vld [vmem:[#allocation3 + $0x244] ss:$36 sps:$4 sm:$0xff]   ;;  %v1689_v41 = vsel %vm14035_vm11, %v1687_v31, %v1688_v26  ;;  %915 = vst [vmem:[#allocation2 + $0x80] sm:$0x1] %v914_v38  ;;  %v1314_v42 = vshrl.u32 %v1052_v33, 16  ;;  %v1317_v53 = vshll.u32 %v1052_v33, 16  ;;  %v14372_v62 = vpack.c.bf16 %v416_v49, %v416_v49 }
 0x108   : > { %v13199_v11 = vld [vmem:[#allocation3 + $0x240] ss:$36 sps:$4 sm:$0xff]   ;;  %v13201_v45 = vld [vmem:[#allocation3 + $0x24c] ss:$36 sps:$4 sm:$0xff]   ;;  %v1302_v48 = vsel %vm14044_vm12, %v1297_v6, %v1301_v16  ;;  %v1312_v51 = vsel %vm14044_vm12, %v1307_v35, %v1311_v37  ;;  %1783 = vst [vmem:[#allocation3 + $0x2b4] sm:$0xf] %v1689_v41  ;;  %5036 = vmatprep.mubr.bf16.mxu0 %v13197_v40 }
 0x109   : > { %v1551_v44 = vld [vmem:[#allocation2 + $0x78] sm:$0xe]  ;;  %v13204_v46 = vld [vmem:[#allocation3 + $0x248] ss:$36 sps:$4 sm:$0xff]   ;;  %v372_v55 = vld [vmem:[#allocation2 + $0x8c] sm:$0x1]  ;;  %5037 = vmatmul.mubr.bf16.gmra.mxu0 %v13199_v11  ;;  %5197 = vmatprep.mubr.bf16.mxu1 %v13201_v45 }
 0x10a   : > { %1507 = vst [vmem:[#allocation3 + $0x28c] sm:$0xf] %v1302_v48  ;;  %1508 = vst [vmem:[#allocation3 + $0x2b0] sm:$0xf] %v1312_v51  ;;  %v1815_v54 = vld [vmem:[#allocation2 + $0x7c] sm:$0xf]  ;;  %5198 = vmatmul.mubr.bf16.gmra.mxu1 %v13204_v46 }
 0x10b   : > { %v979_v56 = vld [vmem:[#allocation2 + $0x7c] sm:$0xf]  ;;  %v319_v59 = vld [vmem:[#allocation2 + $0x90] sm:$0x1]  ;;  %1847 = vst [vmem:[#allocation3 + $0x2b8] sm:$0xf] %v1815_v54 }
 0x10c   : > { %v1053_v58 = vld [vmem:[#allocation2 + $0x7c] sm:$0xf]  ;;  %1011 = vst [vmem:[#allocation3 + $0x2f4] sm:$0xf] %v979_v56  ;;  %v1316_v36 = vrot.slane %v1314_v42, 4  ;;  %v1319_v47 = vrot.slane %v1317_v53, 5 }
 0x10d   : > { %v417_v0 = vld [vmem:[%s13995_s30 + $0xc0] sm:$0xff]  ;;  %v1323_v3 = vshll.u32 %v1053_v58, 16  ;;  %v1327_v52 = vshrl.u32 %v1053_v58, 16  ;;  %v916_v2 = vld [vmem:[#allocation2 + $0x84] sm:$0xf]  ;;  %v697_v4 = vshll.u32 %v14347_v63, 16 }
 0x10e   : > { %v700_v5 = vrot.slane %v14358_v34, 4  ;;  %v702_v7 = vshrl.u32 %v11953_v43, 16  ;;  %v705_v8 = vshll.u32 %v11953_v43, 16  ;;  %v1552_v9 = vld [vmem:[#allocation2 + $0x7c] sm:$0xf]  ;;  %v1320_v10 = vor.u32 %v1319_v47, %v1316_v36  ;;  %v418_v19 = vld [vmem:[%s13995_s30 + $0xc8] sm:$0xff] }
 0x10f   : > { %v1325_v13 = vrot.slane %v1323_v3, 5  ;;  %v1329_v14 = vrot.slane %v1327_v52, 4  ;;  %v11374_v15 = vrot.slane %v1551_v44, 9  ;;  %v699_v16 = vor.u32 %v697_v4, %v14358_v34  ;;  %v1054_v20 = vld [vmem:[#allocation2 + $0x80] sm:$0x1]  ;;  %v13234_v3 = vld [vmem:[#allocation7 + $0x1b8] sm:$0xff]  }
 0x110   : > { %v14378_v61 = vrot.slane %v702_v7, 7  ;;  %v1692_v17 = vrot.slane %v1552_v9, 5  ;;  %v373_v18 = vsel %vm14011_vm4, 0, %v372_v55  ;;  %v1321_v63 = vrot.slane %v1320_v10, 4  ;;  %v1553_v21 = vld [vmem:[#allocation2 + $0x80] sm:$0x1] }
 0x111   : > { %v1330_v57 = vor.u32 %v1329_v14, %v1325_v13  ;;  %374 = vst [vmem:[#allocation2 + $0x8c] sm:$0x1] %v373_v18  ;;  %v320_v22 = vsel %vm14006_vm3, 0, %v319_v59  ;;  %v375_v25 = vld [vmem:[#allocation2 + $0x98] sm:$0x1]  ;;  %v14385_v27 = vpack.c.bf16 %v417_v0, %v417_v0  ;;  %v1333_v28 = vshll.u32 %v1054_v20, 16 }
 0x112   : > { %v322_v26 = vld [vmem:[#allocation2 + $0x9c] sm:$0x1]  ;;  %v707_v29 = vor.u32 %v705_v8, %v14378_v61  ;;  %v709_v31 = vrot.slane %v14378_v61, 4  ;;  %v917_v32 = vsel %vm14053_vm13, %v699_v16, %v916_v2  ;;  %321 = vst [vmem:[#allocation2 + $0x90] sm:$0x1] %v320_v22  ;;  %v1326_v34 = vsel %vm14044_vm12, %v1321_v63, %v1325_v13  ;;  %v13231_v55 = vld [vmem:[#allocation7 + $0x108] sm:$0xff]  }
 0x113   : > { %v13205_v33 = vld [vmem:[#allocation3 + $0x28c] ss:$36 sps:$4 sm:$0xff]   ;;  %v1331_v6 = vrot.slane %v1330_v57, 4  ;;  %918 = vst [vmem:[#allocation2 + $0x84] sm:$0xf] %v917_v32  ;;  %v1693_v35 = vsel %vm14035_vm11, %v11374_v15, %v1692_v17  ;;  %v1694_v37 = vrot.slane %v1692_v17, 4  ;;  %v14397_v11 = vpack.c.bf16 %v418_v19, %v418_v19  ;;  %12234 = vmatpush3.bf16.msra.mxu0 %v13231_v55 }
 0x114   : > { %v13207_v38 = vld [vmem:[#allocation3 + $0x288] ss:$36 sps:$4 sm:$0xff]   ;;  %v13208_v39 = vld [vmem:[#allocation3 + $0x294] ss:$36 sps:$4 sm:$0xff]   ;;  %v1335_v49 = vrot.slane %v1333_v28, 5  ;;  %v708_v40 = vsel %vm14065_vm14, %v700_v5, %v707_v29  ;;  %5044 = vmatprep.mubr.bf16.mxu0 %v13205_v33  ;;  %v1695_v42 = vrot.slane %v1553_v21, 5 }
 0x115   : > { %1509 = vst [vmem:[#allocation3 + $0x2d4] sm:$0xf] %v1326_v34  ;;  %1784 = vst [vmem:[#allocation3 + $0x2d8] sm:$0xf] %v1693_v35  ;;  %v13210_v41 = vld [vmem:[#allocation3 + $0x290] ss:$36 sps:$4 sm:$0xff]   ;;  %5045 = vmatmul.mubr.bf16.gmra.mxu0 %v13207_v38  ;;  %5205 = vmatprep.mubr.bf16.mxu1 %v13208_v39 }
 0x116   : > { %919 = vst [vmem:[#allocation2 + $0x88] sm:$0xf] %v708_v40  ;;  %v711_v43 = vshrl.u32 %v14370_v60, 16  ;;  %v714_v44 = vshll.u32 %v14370_v60, 16  ;;  %v719_v45 = vshrl.u32 %v14372_v62, 16  ;;  %v1336_v46 = vsel %vm14044_vm12, %v1331_v6, %v1335_v49  ;;  %5206 = vmatmul.mubr.bf16.gmra.mxu1 %v13210_v41  ;;  %v13233_v60 = vld [vmem:[#allocation7 + $0x1f8] sm:$0xff]  }
 0x117   : > { %v722_v48 = vshll.u32 %v14372_v62, 16  ;;  %v376_v51 = vsel %vm14011_vm4, 0, %v375_v25  ;;  %v323_v53 = vsel %vm14006_vm3, 0, %v322_v26  ;;  %1510 = vst [vmem:[#allocation3 + $0x2f8] sm:$0xf] %v1336_v46  ;;  %v1696_v54 = vsel %vm14035_vm11, %v1694_v37, %v1695_v42  ;;  %12333 = vmatprep.subr.bf16.mxu1 %v13233_v60  ;;  %v13235_v8 = vld [vmem:[#allocation7 + $0x1f0] sm:$0xff]  }
 0x118   : > { %v713_v56 = vrot.slane %v711_v43, 7  ;;  %v721_v58 = vrot.slane %v719_v45, 7  ;;  %377 = vst [vmem:[#allocation2 + $0x98] sm:$0x1] %v376_v51  ;;  %324 = vst [vmem:[#allocation2 + $0x9c] sm:$0x1] %v323_v53  ;;  %12334 = vmatpush3.bf16.msra.mxu1 %v13234_v3 }
 0x119   : > { %v728_v59 = vshrl.u32 %v14385_v27, 16  ;;  %1785 = vst [vmem:[#allocation3 + $0x2fc] sm:$0xf] %v1696_v54  ;;  %v920_v62 = vld [vmem:[#allocation2 + $0x8c] sm:$0x1]  ;;  %v731_v0 = vshll.u32 %v14385_v27, 16  ;;  %12335 = vmatprep.subr.bf16.mxu1 %v13235_v8 }
 0x11a   : > { %v736_v36 = vshrl.u32 %v14397_v11, 16  ;;  %v739_v47 = vshll.u32 %v14397_v11, 16  ;;  %v921_v52 = vsel %vm14006_vm3, %v709_v31, %v920_v62  ;;  %v716_v2 = vor.u32 %v714_v44, %v713_v56  ;;  %v923_v7 = vld [vmem:[#allocation2 + $0x90] sm:$0xf]  ;;  %v1816_v9 = vld [vmem:[#allocation2 + $0x84] sm:$0xf] }
 0x11b   : > { %v717_v4 = vrot.slane %v713_v56, 4  ;;  %v724_v5 = vor.u32 %v722_v48, %v721_v58  ;;  %922 = vst [vmem:[#allocation2 + $0x8c] sm:$0x1] %v921_v52  ;;  %v980_v10 = vld [vmem:[#allocation2 + $0x84] sm:$0xf]  ;;  %v726_v61 = vrot.slane %v721_v58, 4 }
 0x11c   : > { %v1055_v13 = vld [vmem:[#allocation2 + $0x84] sm:$0xf]  ;;  %1848 = vst [vmem:[#allocation3 + $0x2dc] sm:$0xf] %v1816_v9  ;;  %1012 = vst [vmem:[#allocation3 + $0x318] sm:$0xf] %v980_v10  ;;  %v924_v63 = vsel %vm14053_vm13, %v716_v2, %v923_v7 }
 0x11d   : > { %v1338_v14 = vshrl.u32 %v1055_v13, 16  ;;  %v1341_v15 = vshll.u32 %v1055_v13, 16  ;;  %v725_v16 = vsel %vm14065_vm14, %v717_v4, %v724_v5  ;;  %v1554_v17 = vld [vmem:[#allocation2 + $0x84] sm:$0xe]  ;;  %v1817_v18 = vld [vmem:[#allocation2 + $0x88] sm:$0xf] }
 0x11e   : > { %v981_v19 = vld [vmem:[#allocation2 + $0x88] sm:$0xf]  ;;  %926 = vst [vmem:[#allocation2 + $0x94] sm:$0xf] %v725_v16  ;;  %1849 = vst [vmem:[#allocation3 + $0x300] sm:$0xf] %v1817_v18 }
 0x11f   : > { %v1056_v20 = vld [vmem:[#allocation2 + $0x88] sm:$0xf]  ;;  %1013 = vst [vmem:[#allocation3 + $0x33c] sm:$0xf] %v981_v19  ;;  %v1340_v57 = vrot.slane %v1338_v14, 4  ;;  %v1343_v21 = vrot.slane %v1341_v15, 5 }
 0x120   : > { %v1347_v22 = vshll.u32 %v1056_v20, 16  ;;  %v1351_v25 = vshrl.u32 %v1056_v20, 16  ;;  %925 = vst [vmem:[#allocation2 + $0x90] sm:$0xf] %v924_v63  ;;  %v1555_v26 = vld [vmem:[#allocation2 + $0x88] sm:$0xf] }
 0x121   : > { %v13211_v28 = vld [vmem:[#allocation3 + $0x2d4] ss:$36 sps:$4 sm:$0xff]   ;;  %v11375_v31 = vrot.slane %v1554_v17, 9  ;;  %v1344_v32 = vor.u32 %v1343_v21, %v1340_v57  ;;  %v1699_v6 = vrot.slane %v1555_v26, 5  ;;  %v927_v35 = vld [vmem:[#allocation2 + $0x98] sm:$0x1] }
 0x122   : > { %v13213_v29 = vld [vmem:[#allocation3 + $0x2d0] ss:$36 sps:$4 sm:$0xff]   ;;  %v1349_v33 = vrot.slane %v1347_v22, 5  ;;  %v1353_v34 = vrot.slane %v1351_v25, 4  ;;  %5052 = vmatprep.mubr.bf16.mxu0 %v13211_v28  ;;  %v928_v38 = vsel %vm14006_vm3, %v726_v61, %v927_v35  ;;  %v730_v39 = vrot.slane %v728_v59, 7  ;;  %v13243_v35 = vld [vmem:[#allocation7 + $0x1e8] sm:$0xff]  }
 0x123   : > { %v13238_v37 = vld [vmem:[#allocation7 + $0x1b0] sm:$0xff]   ;;  %v14423_v49 = vrot.slane %v736_v36, 7  ;;  %v930_v40 = vld [vmem:[#allocation2 + $0x9c] sm:$0xf]  ;;  %5053 = vmatmul.mubr.bf16.gmra.mxu0 %v13213_v29  ;;  %v1345_v42 = vrot.slane %v1344_v32, 4  ;;  %v1700_v45 = vsel %vm14035_vm11, %v11375_v31, %v1699_v6  ;;  %v1701_v46 = vrot.slane %v1699_v6, 4 }
 0x124   : > { %v1057_v41 = vld [vmem:[#allocation2 + $0x8c] sm:$0x1]  ;;  %v1354_v43 = vor.u32 %v1353_v34, %v1349_v33  ;;  %929 = vst [vmem:[#allocation2 + $0x98] sm:$0x1] %v928_v38  ;;  %12336 = vmatpush3.bf16.msra.mxu1 %v13238_v37  ;;  %1786 = vst [vmem:[#allocation3 + $0x320] sm:$0xf] %v1700_v45  ;;  %v733_v53 = vor.u32 %v731_v0, %v730_v39 }
 0x125   : > { %v1556_v44 = vld [vmem:[#allocation2 + $0x8c] sm:$0x1]  ;;  %v1357_v48 = vshll.u32 %v1057_v41, 16  ;;  %v734_v55 = vrot.slane %v730_v39, 4  ;;  %v1350_v54 = vsel %vm14044_vm12, %v1345_v42, %v1349_v33  ;;  %v1819_v58 = vld [vmem:[#allocation2 + $0x94] sm:$0xf]  ;;  %v741_v60 = vor.u32 %v739_v47, %v14423_v49  ;;  %12337 = vmatprep.subr.bf16.mxu1 %v13243_v35 }
 0x126   : > { %v1702_v51 = vrot.slane %v1556_v44, 5  ;;  %v1355_v56 = vrot.slane %v1354_v43, 4  ;;  %v983_v59 = vld [vmem:[#allocation2 + $0x94] sm:$0xf]  ;;  %v743_v62 = vrot.slane %v14423_v49, 4  ;;  %v931_v0 = vsel %vm14053_vm13, %v733_v53, %v930_v40  ;;  %v419_v61 = vld [vmem:[%s13995_s30 + $0xd0] sm:$0xff] }
 0x127   : > { %v13215_v36 = vld [vmem:[#allocation3 + $0x2dc] ss:$36 sps:$4 sm:$0xff]   ;;  %v1359_v52 = vrot.slane %v1357_v48, 5  ;;  %1511 = vst [vmem:[#allocation3 + $0x31c] sm:$0xf] %v1350_v54  ;;  %v742_v11 = vsel %vm14065_vm14, %v734_v55, %v741_v60  ;;  %v14444_v63 = vpack.c.bf16 %v419_v61, %v419_v61 }
 0x128   : > { %v13218_v3 = vld [vmem:[#allocation3 + $0x2d8] ss:$36 sps:$4 sm:$0xff]   ;;  %v1703_v27 = vsel %vm14035_vm11, %v1701_v46, %v1702_v51  ;;  %1851 = vst [vmem:[#allocation3 + $0x348] sm:$0xf] %v1819_v58  ;;  %1015 = vst [vmem:[#allocation3 + $0x384] sm:$0xf] %v983_v59  ;;  %5213 = vmatprep.mubr.bf16.mxu1 %v13215_v36 }
 0x129   : > { %1787 = vst [vmem:[#allocation3 + $0x344] sm:$0xf] %v1703_v27  ;;  %v1818_v2 = vld [vmem:[#allocation2 + $0x90] sm:$0xf]  ;;  %932 = vst [vmem:[#allocation2 + $0x9c] sm:$0xf] %v931_v0  ;;  %v1360_v47 = vsel %vm14044_vm12, %v1355_v56, %v1359_v52  ;;  %5214 = vmatmul.mubr.bf16.gmra.mxu1 %v13218_v3 }
 0x12a   : > { %v982_v4 = vld [vmem:[#allocation2 + $0x90] sm:$0xf]  ;;  %1850 = vst [vmem:[#allocation3 + $0x324] sm:$0xf] %v1818_v2  ;;  %v1059_v7 = vld [vmem:[#allocation2 + $0x94] sm:$0xf] }
 0x12b   : > { %v1058_v5 = vld [vmem:[#allocation2 + $0x90] sm:$0xf]  ;;  %1014 = vst [vmem:[#allocation3 + $0x360] sm:$0xf] %v982_v4  ;;  %933 = vst [vmem:[#allocation2 + $0xa0] sm:$0xf] %v742_v11 }
 0x12c   : > { %v1362_v8 = vshrl.u32 %v1058_v5, 16  ;;  %v1365_v9 = vshll.u32 %v1058_v5, 16  ;;  %v1557_v10 = vld [vmem:[#allocation2 + $0x90] sm:$0xe]  ;;  %1512 = vst [vmem:[#allocation3 + $0x340] sm:$0xf] %v1360_v47 }
 0x12d   : > { %v1371_v13 = vshll.u32 %v1059_v7, 16  ;;  %v1375_v14 = vshrl.u32 %v1059_v7, 16  ;;  %v1558_v15 = vld [vmem:[#allocation2 + $0x94] sm:$0xf]  ;;  %v11376_v16 = vrot.slane %v1557_v10, 9  ;;  %v745_v40 = vshrl.u32 %v14444_v63, 16 }
 0x12e   : > { %v1060_v17 = vld [vmem:[#allocation2 + $0x98] sm:$0x1]  ;;  %v1364_v18 = vrot.slane %v1362_v8, 4  ;;  %v1367_v19 = vrot.slane %v1365_v9, 5  ;;  %v1706_v25 = vrot.slane %v1558_v15, 5  ;;  %v420_v31 = vld [vmem:[%s13995_s30 + $0xd8] sm:$0xff] }
 0x12f   : > { %v1559_v20 = vld [vmem:[#allocation2 + $0x98] sm:$0x1]  ;;  %v1373_v57 = vrot.slane %v1371_v13, 5  ;;  %v1377_v21 = vrot.slane %v1375_v14, 4  ;;  %v1381_v22 = vshll.u32 %v1060_v17, 16  ;;  %v11959_v51 = vpack.c.bf16 %v420_v31, %v420_v31 }
 0x130   : > { %v1368_v26 = vor.u32 %v1367_v19, %v1364_v18  ;;  %v1709_v28 = vrot.slane %v1559_v20, 5  ;;  %v378_v29 = vld [vmem:[#allocation2 + $0xa4] sm:$0x1]  ;;  %v1707_v34 = vsel %vm14035_vm11, %v11376_v16, %v1706_v25  ;;  %v1708_v6 = vrot.slane %v1706_v25, 4  ;;  %v1820_v38 = vld [vmem:[#allocation2 + $0x9c] sm:$0xf] }
 0x131   : > { %v1378_v32 = vor.u32 %v1377_v21, %v1373_v57  ;;  %v1383_v33 = vrot.slane %v1381_v22, 5  ;;  %1788 = vst [vmem:[#allocation3 + $0x368] sm:$0xf] %v1707_v34  ;;  %v379_v39 = vsel %vm14011_vm4, 0, %v378_v29  ;;  %v13222_v41 = vld [vmem:[#allocation3 + $0x324] ss:$36 sps:$4 sm:$0xff]  }
 0x132   : > { %v1369_v37 = vrot.slane %v1368_v26, 4  ;;  %v13224_v42 = vld [vmem:[#allocation3 + $0x320] ss:$36 sps:$4 sm:$0xff]   ;;  %v1710_v44 = vsel %vm14035_vm11, %v1708_v6, %v1709_v28  ;;  %1852 = vst [vmem:[#allocation3 + $0x36c] sm:$0xf] %v1820_v38  ;;  %v747_v53 = vrot.slane %v745_v40, 7  ;;  %5221 = vmatprep.mubr.bf16.mxu1 %v13222_v41 }
 0x133   : > { %v1379_v43 = vrot.slane %v1378_v32, 4  ;;  %380 = vst [vmem:[#allocation2 + $0xa4] sm:$0x1] %v379_v39  ;;  %v13219_v45 = vld [vmem:[#allocation3 + $0x31c] ss:$36 sps:$4 sm:$0xff]   ;;  %5222 = vmatmul.mubr.bf16.gmra.mxu1 %v13224_v42  ;;  %v748_v5 = vshll.u32 %v14444_v63, 16 }
 0x134   : > { %v13221_v46 = vld [vmem:[#allocation3 + $0x318] ss:$36 sps:$4 sm:$0xff]   ;;  %v1374_v48 = vsel %vm14044_vm12, %v1369_v37, %v1373_v57  ;;  %1789 = vst [vmem:[#allocation3 + $0x38c] sm:$0xf] %v1710_v44  ;;  %v1821_v54 = vld [vmem:[#allocation2 + $0xa0] sm:$0xf]  ;;  %5060 = vmatprep.mubr.bf16.mxu0 %v13219_v45 }
 0x135   : > { %v1384_v55 = vsel %vm14044_vm12, %v1379_v43, %v1383_v33  ;;  %1513 = vst [vmem:[#allocation3 + $0x364] sm:$0xf] %v1374_v48  ;;  %v984_v56 = vld [vmem:[#allocation2 + $0x9c] sm:$0xf]  ;;  %v985_v58 = vld [vmem:[#allocation2 + $0xa0] sm:$0xf]  ;;  %5061 = vmatmul.mubr.bf16.gmra.mxu0 %v13221_v46  ;;  %v750_v25 = vor.u32 %v748_v5, %v747_v53 }
 0x136   : > { %1514 = vst [vmem:[#allocation3 + $0x388] sm:$0xf] %v1384_v55  ;;  %1853 = vst [vmem:[#allocation3 + $0x390] sm:$0xf] %v1821_v54  ;;  %v1061_v59 = vld [vmem:[#allocation2 + $0x9c] sm:$0xf] }
 0x137   : > { %1016 = vst [vmem:[#allocation3 + $0x3a8] sm:$0xf] %v984_v56  ;;  %1017 = vst [vmem:[#allocation3 + $0x3cc] sm:$0xf] %v985_v58  ;;  %v1062_v60 = vld [vmem:[#allocation2 + $0xa0] sm:$0xf] }
 0x138   : > { %v325_v36 = vld [vmem:[#allocation2 + $0xa8] sm:$0x1]  ;;  %v1386_v3 = vshrl.u32 %v1061_v59, 16  ;;  %v1389_v52 = vshll.u32 %v1061_v59, 16  ;;  %v1395_v27 = vshll.u32 %v1062_v60, 16  ;;  %v1399_v0 = vshrl.u32 %v1062_v60, 16 }
 0x139   : > { %v1560_v2 = vld [vmem:[#allocation2 + $0x9c] sm:$0xe]  ;;  %v326_v4 = vsel %vm14006_vm3, 0, %v325_v36  ;;  %v751_v11 = vrot.slane %v747_v53, 4  ;;  %v753_v47 = vshrl.u32 %v11959_v51, 16  ;;  %v756_v16 = vshll.u32 %v11959_v51, 16 }
 0x13a   : > { %v1561_v7 = vld [vmem:[#allocation2 + $0xa0] sm:$0xf]  ;;  %v1388_v8 = vrot.slane %v1386_v3, 4  ;;  %v1391_v9 = vrot.slane %v1389_v52, 5  ;;  %v1397_v10 = vrot.slane %v1395_v27, 5  ;;  %v1401_v13 = vrot.slane %v1399_v0, 4 }
 0x13b   : > { %327 = vst [vmem:[#allocation2 + $0xa8] sm:$0x1] %v326_v4  ;;  %v934_v14 = vld [vmem:[#allocation2 + $0xa4] sm:$0x1]  ;;  %v14461_v15 = vrot.slane %v753_v47, 7  ;;  %v11377_v61 = vrot.slane %v1560_v2, 9 }
 0x13c   : > { %v935_v17 = vsel %vm14006_vm3, %v743_v62, %v934_v14  ;;  %v1392_v18 = vor.u32 %v1391_v9, %v1388_v8  ;;  %v1713_v19 = vrot.slane %v1561_v7, 5  ;;  %v13244_v20 = vld [vmem:[#allocation7 + $0x1a8] sm:$0xff]   ;;  %v13227_v21 = vld [vmem:[#allocation3 + $0x360] ss:$36 sps:$4 sm:$0xff]   ;;  %v1402_v49 = vor.u32 %v1401_v13, %v1397_v10  ;;  %v381_v34 = vld [vmem:[#allocation2 + $0xb0] sm:$0x1] }
 0x13d   : > { %936 = vst [vmem:[#allocation2 + $0xa4] sm:$0x1] %v935_v17  ;;  %v758_v63 = vor.u32 %v756_v16, %v14461_v15  ;;  %v13225_v57 = vld [vmem:[#allocation3 + $0x364] ss:$36 sps:$4 sm:$0xff]   ;;  %12338 = vmatpush3.bf16.msra.mxu1 %v13244_v20  ;;  %v13229_v28 = vld [vmem:[#allocation3 + $0x36c] ss:$36 sps:$4 sm:$0xff]  }
 0x13e   : > { %v1393_v22 = vrot.slane %v1392_v18, 4  ;;  %v1714_v26 = vsel %vm14035_vm11, %v11377_v61, %v1713_v19  ;;  %v13232_v29 = vld [vmem:[#allocation3 + $0x368] ss:$36 sps:$4 sm:$0xff]   ;;  %5068 = vmatprep.mubr.bf16.mxu0 %v13225_v57  ;;  %v760_v32 = vrot.slane %v14461_v15, 4  ;;  %v13245_v33 = vld [vmem:[#allocation7 + $0x1e0] sm:$0xff]   ;;  %5229 = vmatprep.mubr.bf16.mxu1 %v13229_v28  ;;  %v382_v35 = vsel %vm14011_vm4, 0, %v381_v34 }
 0x13f   : > { %v759_v62 = vsel %vm14065_vm14, %v751_v11, %v758_v63  ;;  %1790 = vst [vmem:[#allocation3 + $0x3b0] sm:$0xf] %v1714_v26  ;;  %5069 = vmatmul.mubr.bf16.gmra.mxu0 %v13227_v21  ;;  %v13248_v37 = vld [vmem:[#allocation7 + $0x1a0] sm:$0xff]   ;;  %5230 = vmatmul.mubr.bf16.gmra.mxu1 %v13232_v29  ;;  %383 = vst [vmem:[#allocation2 + $0xb0] sm:$0x1] %v382_v35  ;;  %v1403_v39 = vrot.slane %v1402_v49, 4 }
 0x140   : > { %v1398_v31 = vsel %vm14044_vm12, %v1393_v22, %v1397_v10  ;;  %940 = vst [vmem:[#allocation2 + $0xac] sm:$0xf] %v759_v62  ;;  %12339 = vmatprep.subr.bf16.mxu1 %v13245_v33  ;;  %v1715_v40 = vrot.slane %v1713_v19, 4  ;;  %v13250_v41 = vld [vmem:[#allocation7 + $0x140] sm:$0xff]   ;;  %v328_v42 = vld [vmem:[#allocation2 + $0xb4] sm:$0x1] }
 0x141   : > { %1515 = vst [vmem:[#allocation3 + $0x3ac] sm:$0xf] %v1398_v31  ;;  %12340 = vmatpush3.bf16.msra.mxu1 %v13248_v37  ;;  %v421_v43 = vld [vmem:[%s13995_s30 + $0xe0] sm:$0xff]  ;;  %v329_v46 = vsel %vm14006_vm3, 0, %v328_v42  ;;  %v422_v48 = vld [vmem:[%s13995_s30 + $0xe8] sm:$0xff]  ;;  %12235 = vmatprep.subr.bf16.mxu0 %v13250_v41  ;;  %v13255_v60 = vld [vmem:[#allocation7 + $0x1d8] sm:$0xff]  }
 0x142   : > { %v937_v6 = vld [vmem:[#allocation2 + $0xa8] sm:$0xf]  ;;  %v11960_v51 = vpack.c.bf16 %v421_v43, %v421_v43  ;;  %330 = vst [vmem:[#allocation2 + $0xb4] sm:$0x1] %v329_v46  ;;  %v11961_v54 = vpack.c.bf16 %v422_v48, %v422_v48  ;;  %v13253_v59 = vld [vmem:[#allocation7 + $0x100] sm:$0xff]   ;;  %12341 = vmatprep.subr.bf16.mxu1 %v13255_v60  ;;  %v13256_v11 = vld [vmem:[#allocation7 + $0x198] sm:$0xff]  }
 0x143   : > { %v938_v38 = vsel %vm14053_vm13, %v750_v25, %v937_v6  ;;  %12236 = vmatpush3.bf16.msra.mxu0 %v13253_v59  ;;  %v13257_v13 = vld [vmem:[#allocation7 + $0x1d0] sm:$0xff]   ;;  %v384_v6 = vld [vmem:[#allocation2 + $0xbc] sm:$0x1]  ;;  %v424_v59 = vld [vmem:[%s13995_s30 + $0xf8] sm:$0xff] }
 0x144   : > { %939 = vst [vmem:[#allocation2 + $0xa8] sm:$0xf] %v938_v38  ;;  %v1063_v44 = vld [vmem:[#allocation2 + $0xa4] sm:$0x1]  ;;  %v762_v56 = vshrl.u32 %v11960_v51, 16  ;;  %v765_v58 = vshll.u32 %v11960_v51, 16 }
 0x145   : > { %v1562_v45 = vld [vmem:[#allocation2 + $0xa4] sm:$0x1]  ;;  %v1405_v53 = vshll.u32 %v1063_v44, 16  ;;  %v770_v0 = vshrl.u32 %v11961_v54, 16  ;;  %v773_v5 = vshll.u32 %v11961_v54, 16  ;;  %12342 = vmatpush3.bf16.msra.mxu1 %v13256_v11  ;;  %v385_v38 = vsel %vm14011_vm4, 0, %v384_v6 }
 0x146   : > { %v1716_v55 = vrot.slane %v1562_v45, 5  ;;  %v764_v4 = vrot.slane %v762_v56, 7  ;;  %v941_v7 = vld [vmem:[#allocation2 + $0xb0] sm:$0x1]  ;;  %12343 = vmatprep.subr.bf16.mxu1 %v13257_v13  ;;  %386 = vst [vmem:[#allocation2 + $0xbc] sm:$0x1] %v385_v38 }
 0x147   : > { %v1407_v36 = vrot.slane %v1405_v53, 5  ;;  %v1823_v52 = vld [vmem:[#allocation2 + $0xac] sm:$0xf]  ;;  %v14487_v10 = vrot.slane %v770_v0, 7  ;;  %v942_v15 = vsel %vm14006_vm3, %v760_v32, %v941_v7  ;;  %v331_v56 = vld [vmem:[#allocation2 + $0xc0] sm:$0x1] }
 0x148   : > { %v1717_v3 = vsel %vm14035_vm11, %v1715_v40, %v1716_v55  ;;  %v987_v27 = vld [vmem:[#allocation2 + $0xac] sm:$0xf]  ;;  %1855 = vst [vmem:[#allocation3 + $0x3d8] sm:$0xf] %v1823_v52  ;;  %v767_v17 = vor.u32 %v765_v58, %v764_v4  ;;  %943 = vst [vmem:[#allocation2 + $0xb0] sm:$0x1] %v942_v15 }
 0x149   : > { %1791 = vst [vmem:[#allocation3 + $0x3d4] sm:$0xf] %v1717_v3  ;;  %1019 = vst [vmem:[#allocation3 + $0x414] sm:$0xf] %v987_v27  ;;  %v1065_v2 = vld [vmem:[#allocation2 + $0xac] sm:$0xf]  ;;  %v1408_v47 = vsel %vm14044_vm12, %v1403_v39, %v1407_v36  ;;  %v775_v22 = vor.u32 %v773_v5, %v14487_v10  ;;  %v11963_v27 = vpack.c.bf16 %v424_v59, %v424_v59 }
 0x14a   : > { %v1419_v8 = vshll.u32 %v1065_v2, 16  ;;  %v1423_v9 = vshrl.u32 %v1065_v2, 16  ;;  %1516 = vst [vmem:[#allocation3 + $0x3d0] sm:$0xf] %v1408_v47  ;;  %v768_v21 = vrot.slane %v764_v4, 4  ;;  %v777_v35 = vrot.slane %v14487_v10, 4 }
 0x14b   : > { %v1822_v14 = vld [vmem:[#allocation2 + $0xa8] sm:$0xf]  ;;  %v944_v25 = vld [vmem:[#allocation2 + $0xb4] sm:$0xf]  ;;  %v1564_v26 = vld [vmem:[#allocation2 + $0xac] sm:$0xf] }
 0x14c   : > { %v986_v16 = vld [vmem:[#allocation2 + $0xa8] sm:$0xf]  ;;  %1854 = vst [vmem:[#allocation3 + $0x3b4] sm:$0xf] %v1822_v14  ;;  %v1421_v20 = vrot.slane %v1419_v8, 5  ;;  %v1425_v63 = vrot.slane %v1423_v9, 4  ;;  %v945_v49 = vsel %vm14053_vm13, %v767_v17, %v944_v25  ;;  %v776_v62 = vsel %vm14065_vm14, %v768_v21, %v775_v22 }
 0x14d   : > { %v1064_v61 = vld [vmem:[#allocation2 + $0xa8] sm:$0xf]  ;;  %1018 = vst [vmem:[#allocation3 + $0x3f0] sm:$0xf] %v986_v16  ;;  %946 = vst [vmem:[#allocation2 + $0xb4] sm:$0xf] %v945_v49 }
 0x14e   : > { %v1410_v18 = vshrl.u32 %v1064_v61, 16  ;;  %v1413_v19 = vshll.u32 %v1064_v61, 16  ;;  %v1563_v57 = vld [vmem:[#allocation2 + $0xa8] sm:$0xe]  ;;  %v1720_v32 = vrot.slane %v1564_v26, 5  ;;  %v1426_v34 = vor.u32 %v1425_v63, %v1421_v20  ;;  %v13265_v17 = vld [vmem:[#allocation7 + $0x1c8] sm:$0xff]  }
 0x14f   : > { %v11378_v31 = vrot.slane %v1563_v57, 9  ;;  %947 = vst [vmem:[#allocation2 + $0xb8] sm:$0xf] %v776_v62  ;;  %v13239_v40 = vld [vmem:[#allocation3 + $0x3a8] ss:$36 sps:$4 sm:$0xff]   ;;  %v13260_v53 = vld [vmem:[#allocation7 + $0x190] sm:$0xff]  }
 0x150   : > { %v1412_v28 = vrot.slane %v1410_v18, 4  ;;  %v1415_v29 = vrot.slane %v1413_v19, 5  ;;  %v13242_v43 = vld [vmem:[#allocation3 + $0x3b0] ss:$36 sps:$4 sm:$0xff]   ;;  %v1722_v44 = vrot.slane %v1720_v32, 4  ;;  %v1427_v48 = vrot.slane %v1426_v34, 4  ;;  %12344 = vmatpush3.bf16.msra.mxu1 %v13260_v53 }
 0x151   : > { %v1721_v37 = vsel %vm14035_vm11, %v11378_v31, %v1720_v32  ;;  %v13236_v39 = vld [vmem:[#allocation3 + $0x3ac] ss:$36 sps:$4 sm:$0xff]   ;;  %v1066_v45 = vld [vmem:[#allocation2 + $0xb0] sm:$0x1]  ;;  %v332_v8 = vsel %vm14006_vm3, 0, %v331_v56  ;;  %v787_v63 = vshrl.u32 %v11963_v27, 16  ;;  %12345 = vmatprep.subr.bf16.mxu1 %v13265_v17 }
 0x152   : > { %v1416_v33 = vor.u32 %v1415_v29, %v1412_v28  ;;  %1792 = vst [vmem:[#allocation3 + $0x3f8] sm:$0xf] %v1721_v37  ;;  %5076 = vmatprep.mubr.bf16.mxu0 %v13236_v39  ;;  %v1565_v51 = vld [vmem:[#allocation2 + $0xb0] sm:$0x1]  ;;  %v1429_v55 = vshll.u32 %v1066_v45, 16  ;;  %v423_v58 = vld [vmem:[%s13995_s30 + $0xf0] sm:$0xff] }
 0x153   : > { %v13240_v42 = vld [vmem:[#allocation3 + $0x3b4] ss:$36 sps:$4 sm:$0xff]   ;;  %5077 = vmatmul.mubr.bf16.gmra.mxu0 %v13239_v40  ;;  %v1723_v54 = vrot.slane %v1565_v51, 5  ;;  %v11962_v52 = vpack.c.bf16 %v423_v58, %v423_v58  ;;  %v948_v14 = vld [vmem:[#allocation2 + $0xbc] sm:$0x1]  ;;  %v13266_v21 = vld [vmem:[#allocation7 + $0x188] sm:$0xff]  }
 0x154   : > { %v1417_v41 = vrot.slane %v1416_v33, 4  ;;  %5237 = vmatprep.mubr.bf16.mxu1 %v13240_v42  ;;  %v1824_v60 = vld [vmem:[#allocation2 + $0xb4] sm:$0xf]  ;;  %v1431_v0 = vrot.slane %v1429_v55, 5  ;;  %333 = vst [vmem:[#allocation2 + $0xc0] sm:$0x1] %v332_v8  ;;  %v949_v18 = vsel %vm14006_vm3, %v777_v35, %v948_v14  ;;  %12346 = vmatpush3.bf16.msra.mxu1 %v13266_v21 }
 0x155   : > { %5238 = vmatmul.mubr.bf16.gmra.mxu1 %v13242_v43  ;;  %v988_v36 = vld [vmem:[#allocation2 + $0xb4] sm:$0xf]  ;;  %v1724_v2 = vsel %vm14035_vm11, %v1722_v44, %v1723_v54  ;;  %1856 = vst [vmem:[#allocation3 + $0x3fc] sm:$0xf] %v1824_v60  ;;  %v779_v9 = vshrl.u32 %v11962_v52, 16  ;;  %v782_v10 = vshll.u32 %v11962_v52, 16 }
 0x156   : > { %v1422_v46 = vsel %vm14044_vm12, %v1417_v41, %v1421_v20  ;;  %v1067_v3 = vld [vmem:[#allocation2 + $0xb4] sm:$0xf]  ;;  %v1825_v4 = vld [vmem:[#allocation2 + $0xb8] sm:$0xf]  ;;  %1020 = vst [vmem:[#allocation3 + $0x438] sm:$0xf] %v988_v36  ;;  %v1432_v13 = vsel %vm14044_vm12, %v1427_v48, %v1431_v0 }
 0x157   : > { %1517 = vst [vmem:[#allocation3 + $0x3f4] sm:$0xf] %v1422_v46  ;;  %v989_v5 = vld [vmem:[#allocation2 + $0xb8] sm:$0xf]  ;;  %v1434_v11 = vshrl.u32 %v1067_v3, 16  ;;  %v1437_v7 = vshll.u32 %v1067_v3, 16 }
 0x158   : > { %1793 = vst [vmem:[#allocation3 + $0x41c] sm:$0xf] %v1724_v2  ;;  %1857 = vst [vmem:[#allocation3 + $0x420] sm:$0xf] %v1825_v4  ;;  %v1068_v47 = vld [vmem:[#allocation2 + $0xb8] sm:$0xf] }
 0x159   : > { %1021 = vst [vmem:[#allocation3 + $0x45c] sm:$0xf] %v989_v5  ;;  %v1436_v15 = vrot.slane %v1434_v11, 4  ;;  %v1443_v16 = vshll.u32 %v1068_v47, 16  ;;  %v1447_v61 = vshrl.u32 %v1068_v47, 16  ;;  %v1439_v19 = vrot.slane %v1437_v7, 5 }
 0x15a   : > { %1518 = vst [vmem:[#allocation3 + $0x418] sm:$0xf] %v1432_v13  ;;  %v781_v20 = vrot.slane %v779_v9, 7  ;;  %v1566_v57 = vld [vmem:[#allocation2 + $0xb4] sm:$0xe]  ;;  %v790_v26 = vshll.u32 %v11963_v27, 16 }
 0x15b   : > { %950 = vst [vmem:[#allocation2 + $0xbc] sm:$0x1] %v949_v18  ;;  %v1445_v22 = vrot.slane %v1443_v16, 5  ;;  %v1449_v25 = vrot.slane %v1447_v61, 4  ;;  %v1567_v28 = vld [vmem:[#allocation2 + $0xb8] sm:$0xf]  ;;  %v1440_v49 = vor.u32 %v1439_v19, %v1436_v15 }
 0x15c   : > { %v11379_v29 = vrot.slane %v1566_v57, 9  ;;  %v785_v62 = vrot.slane %v781_v20, 4  ;;  %v14513_v31 = vrot.slane %v787_v63, 7  ;;  %v13267_v32 = vld [vmem:[#allocation7 + $0x1c0] sm:$0xff]   ;;  %v784_v34 = vor.u32 %v782_v10, %v781_v20  ;;  %v14516_v39 = vld [vmem:[#allocation7 + $0x238] sm:$0xff]  }
 0x15d   : > { %v1450_v33 = vor.u32 %v1449_v25, %v1445_v22  ;;  %v1727_v6 = vrot.slane %v1567_v28, 5  ;;  %v13270_v35 = vld [vmem:[#allocation7 + $0x180] sm:$0xff]   ;;  %v1441_v37 = vrot.slane %v1440_v49, 4  ;;  %12347 = vmatprep.subr.bf16.mxu1 %v13267_v32  ;;  %v951_v46 = vld [vmem:[#allocation2 + $0xc0] sm:$0xf]  ;;  %12941 = vmatprep.subr.bf16.mxu0 %v14516_v39 }
 0x15e   : > { %17082 = vst [vmem:[#allocation19_spill] sm:$0xff] %v14513_v31  ;;  %v792_v38 = vor.u32 %v790_v26, %v14513_v31  ;;  %12348 = vmatpush3.bf16.msra.mxu1 %v13270_v35  ;;  %v13249_v51 = vld [vmem:[#allocation3 + $0x3f0] ss:$36 sps:$4 sm:$0xff]   ;;  %v952_v53 = vsel %vm14053_vm13, %v784_v34, %v951_v46  ;;  %v1861_v36 = vld [vmem:[#allocation2 + $0x10] sm:$0xf] }
 0x15f   : > { %v13251_v40 = vld [vmem:[#allocation3 + $0x3fc] ss:$36 sps:$4 sm:$0xff]   ;;  %v1728_v42 = vsel %vm14035_vm11, %v11379_v29, %v1727_v6  ;;  %v1446_v43 = vsel %vm14044_vm12, %v1441_v37, %v1445_v22  ;;  %v1451_v44 = vrot.slane %v1450_v33, 4  ;;  %v1729_v55 = vrot.slane %v1727_v6, 4  ;;  %953 = vst [vmem:[#allocation2 + $0xc0] sm:$0xf] %v952_v53 }
 0x160   : > { %v13254_v41 = vld [vmem:[#allocation3 + $0x3f8] ss:$36 sps:$4 sm:$0xff]   ;;  %v793_v45 = vsel %vm14065_vm14, %v785_v62, %v792_v38  ;;  %1794 = vst [vmem:[#allocation3 + $0x440] sm:$0xf] %v1728_v42  ;;  %5245 = vmatprep.mubr.bf16.mxu1 %v13251_v40  ;;  %1519 = vst [vmem:[#allocation3 + $0x43c] sm:$0xf] %v1446_v43 }
 0x161   : > { %v13246_v48 = vld [vmem:[#allocation3 + $0x3f4] ss:$36 sps:$4 sm:$0xff]   ;;  %954 = vst [vmem:[#allocation2 + $0xc4] sm:$0xf] %v793_v45  ;;  %5246 = vmatmul.mubr.bf16.gmra.mxu1 %v13254_v41  ;;  %v1862_v3 = vld [vmem:[#allocation2 + $0x14] sm:$0x1]  ;;  %v12013_v45 = vpop.f32.mrf.mxu0 }
 0x162   : > { %v1069_v54 = vld [vmem:[#allocation2 + $0xbc] sm:$0x1]  ;;  %5084 = vmatprep.mubr.bf16.mxu0 %v13246_v48  ;;  %v1860_v60 = vld [vmem:[#allocation2 + $0xc] sm:$0xf]  ;;  %v1918_v0 = vshll.u32 %v1861_v36, 16  ;;  %v1922_v2 = vshrl.u32 %v1861_v36, 16 }
 0x163   : > { %v1568_v56 = vld [vmem:[#allocation2 + $0xbc] sm:$0x1]  ;;  %v1453_v58 = vshll.u32 %v1069_v54, 16  ;;  %5085 = vmatmul.mubr.bf16.gmra.mxu0 %v13249_v51  ;;  %v1909_v52 = vshrl.u32 %v1860_v60, 16  ;;  %v1912_v27 = vshll.u32 %v1860_v60, 16  ;;  %v1928_v11 = vshll.u32 %v1862_v3, 16 }
 0x164   : > { %v1730_v59 = vrot.slane %v1568_v56, 5  ;;  %v2356_v47 = vld [vmem:[#allocation2 + $0xc] sm:$0xe]  ;;  %v2357_v7 = vld [vmem:[#allocation2 + $0x10] sm:$0xf]  ;;  %v1920_v10 = vrot.slane %v1918_v0, 5 }
 0x165   : > { %v1455_v4 = vrot.slane %v1453_v58, 5  ;;  %v1911_v8 = vrot.slane %v1909_v52, 4  ;;  %v1914_v9 = vrot.slane %v1912_v27, 5  ;;  %v1924_v13 = vrot.slane %v1922_v2, 4  ;;  %v2358_v14 = vld [vmem:[#allocation2 + $0x14] sm:$0x1] }
 0x166   : > { %v1731_v5 = vsel %vm14035_vm11, %v1729_v55, %v1730_v59  ;;  %v1930_v16 = vrot.slane %v1928_v11, 5  ;;  %v11380_v61 = vrot.slane %v2356_v47, 9  ;;  %v2454_v17 = vrot.slane %v2357_v7, 5  ;;  %v1826_v57 = vld [vmem:[#allocation2 + $0xc0] sm:$0xf]  ;;  %v12014_v59 = vpop.f32.mrf.mxu0 }
 0x167   : > { %1795 = vst [vmem:[#allocation3 + $0x464] sm:$0xf] %v1731_v5  ;;  %v1456_v15 = vsel %vm14044_vm12, %v1451_v44, %v1455_v4  ;;  %v1915_v19 = vor.u32 %v1914_v9, %v1911_v8  ;;  %v1925_v20 = vor.u32 %v1924_v13, %v1920_v10  ;;  %v2457_v63 = vrot.slane %v2358_v14, 5  ;;  %1858 = vst [vmem:[#allocation3 + $0x444] sm:$0xf] %v1826_v57 }
 0x168   : > { %1520 = vst [vmem:[#allocation3 + $0x460] sm:$0xf] %v1456_v15  ;;  %v1827_v18 = vld [vmem:[#allocation2 + $0xc4] sm:$0xf]  ;;  %v2455_v21 = vsel %vm14035_vm11, %v11380_v61, %v2454_v17  ;;  %v2456_v22 = vrot.slane %v2454_v17, 4  ;;  %v14539_v5 = vadd.f32 %v12014_v59, %v12013_v45 }
 0x169   : > { %1859 = vst [vmem:[#allocation3 + $0x468] sm:$0xf] %v1827_v18  ;;  %v1916_v25 = vrot.slane %v1915_v19, 4  ;;  %v1926_v26 = vrot.slane %v1925_v20, 4  ;;  %2596 = vst [vmem:[#allocation3 + $0x14] sm:$0xf] %v2455_v21 }
 0x16a   : > { %v2629_v28 = vld [vmem:[#allocation2 + $0x18] sm:$0xf]  ;;  %v2458_v29 = vsel %vm14035_vm11, %v2456_v22, %v2457_v63  ;;  %v2630_v49 = vld [vmem:[#allocation2 + $0x1c] sm:$0xf]  ;;  %v2695_v6 = vld [vmem:[#allocation2 + $0x20] sm:$0x1] }
 0x16b   : > { %2661 = vst [vmem:[#allocation3 + $0x18] sm:$0xf] %v2629_v28  ;;  %v2693_v62 = vld [vmem:[#allocation2 + $0x18] sm:$0xf]  ;;  %v2694_v32 = vld [vmem:[#allocation2 + $0x1c] sm:$0xf]  ;;  %v1921_v33 = vsel %vm14044_vm12, %v1916_v25, %v1920_v10  ;;  %v1931_v34 = vsel %vm14044_vm12, %v1926_v26, %v1930_v16 }
 0x16c   : > { %2597 = vst [vmem:[#allocation3 + $0x38] sm:$0xf] %v2458_v29  ;;  %2662 = vst [vmem:[#allocation3 + $0x3c] sm:$0xf] %v2630_v49  ;;  %v2742_v35 = vshrl.u32 %v2693_v62, 16  ;;  %v2745_v37 = vshll.u32 %v2693_v62, 16 }
 0x16d   : > { %v1863_v38 = vld [vmem:[#allocation2 + $0x18] sm:$0xf]  ;;  %2324 = vst [vmem:[#allocation3 + $0x10] sm:$0xf] %v1921_v33  ;;  %2325 = vst [vmem:[#allocation3 + $0x34] sm:$0xf] %v1931_v34 }
 0x16e   : > { %v2751_v40 = vshll.u32 %v2694_v32, 16  ;;  %v2755_v41 = vshrl.u32 %v2694_v32, 16  ;;  %v2761_v42 = vshll.u32 %v2695_v6, 16  ;;  %v1864_v43 = vld [vmem:[#allocation2 + $0x1c] sm:$0xf]  ;;  %v1933_v44 = vshrl.u32 %v1863_v38, 16  ;;  %v12125_v6 = vpop.f32.mrf.mxu1 }
 0x16f   : > { %v2744_v46 = vrot.slane %v2742_v35, 4  ;;  %v2747_v48 = vrot.slane %v2745_v37, 5  ;;  %v1865_v51 = vld [vmem:[#allocation2 + $0x20] sm:$0x1]  ;;  %v1936_v53 = vshll.u32 %v1863_v38, 16  ;;  %v1942_v55 = vshll.u32 %v1864_v43, 16 }
 0x170   : > { %v13258_v54 = vld [vmem:[#allocation3 + $0x43c] ss:$36 sps:$4 sm:$0xff]   ;;  %v2753_v58 = vrot.slane %v2751_v40, 5  ;;  %v2757_v36 = vrot.slane %v2755_v41, 4  ;;  %v2763_v3 = vrot.slane %v2761_v42, 5  ;;  %v1935_v52 = vrot.slane %v1933_v44, 4 }
 0x171   : > { %v13261_v56 = vld [vmem:[#allocation3 + $0x438] ss:$36 sps:$4 sm:$0xff]   ;;  %v2748_v60 = vor.u32 %v2747_v48, %v2744_v46  ;;  %v2359_v27 = vld [vmem:[#allocation2 + $0x18] sm:$0xe]  ;;  %5092 = vmatprep.mubr.bf16.mxu0 %v13258_v54  ;;  %v13262_v0 = vld [vmem:[#allocation3 + $0x444] ss:$36 sps:$4 sm:$0xff]  }
 0x172   : > { %v13264_v2 = vld [vmem:[#allocation3 + $0x440] ss:$36 sps:$4 sm:$0xff]   ;;  %v1938_v4 = vrot.slane %v1936_v53, 5  ;;  %5093 = vmatmul.mubr.bf16.gmra.mxu0 %v13261_v56  ;;  %v2758_v47 = vor.u32 %v2757_v36, %v2753_v58  ;;  %v1944_v7 = vrot.slane %v1942_v55, 5  ;;  %v1946_v8 = vshrl.u32 %v1864_v43, 16  ;;  %5253 = vmatprep.mubr.bf16.mxu1 %v13262_v0  ;;  %v13285_v42 = vld [vmem:[#allocation7 + $0x230] sm:$0xff]   ;;  %v14551_v43 = vpop.f32.mrf.mxu0  ;;  %v12126_v53 = vpop.f32.mrf.mxu1 }
 0x173   : > { %v2749_v11 = vrot.slane %v2748_v60, 4  ;;  %v2360_v9 = vld [vmem:[#allocation2 + $0x1c] sm:$0xf]  ;;  %v1952_v13 = vshll.u32 %v1865_v51, 16  ;;  %v2361_v14 = vld [vmem:[#allocation2 + $0x20] sm:$0x1]  ;;  %5254 = vmatmul.mubr.bf16.gmra.mxu1 %v13264_v2 }
 0x174   : > { %v1939_v10 = vor.u32 %v1938_v4, %v1935_v52  ;;  %v11381_v15 = vrot.slane %v2359_v27, 9  ;;  %v2461_v16 = vrot.slane %v2360_v9, 5  ;;  %v13268_v61 = vld [vmem:[#allocation3 + $0x14] ss:$36 sps:$4 sm:$0xff]   ;;  %v2759_v18 = vrot.slane %v2758_v47, 4  ;;  %v13298_v60 = vld [vmem:[#allocation7 + $0x228] sm:$0xff]   ;;  %v14556_v2 = vpop.f32.mrf.mxu1  ;;  %v14558_v9 = vpop.f32.mrf.mxu0 }
 0x175   : > { %v2754_v17 = vsel %vm14044_vm12, %v2749_v11, %v2753_v58  ;;  %v1948_v19 = vrot.slane %v1946_v8, 4  ;;  %v13271_v20 = vld [vmem:[#allocation3 + $0x10] ss:$36 sps:$4 sm:$0xff]   ;;  %v1954_v57 = vrot.slane %v1952_v13, 5  ;;  %5294 = vmatprep.mubr.bf16.mxu0 %v13268_v61  ;;  %v2464_v28 = vrot.slane %v2361_v14, 5 }
 0x176   : > { %3157 = vst [vmem:[#allocation3 + $0x1c] sm:$0xf] %v2754_v17  ;;  %v1940_v63 = vrot.slane %v1939_v10, 4  ;;  %v2462_v21 = vsel %vm14035_vm11, %v11381_v15, %v2461_v16  ;;  %v2463_v22 = vrot.slane %v2461_v16, 4  ;;  %v2764_v25 = vsel %vm14044_vm12, %v2759_v18, %v2763_v3  ;;  %v2631_v29 = vld [vmem:[#allocation2 + $0x24] sm:$0xf] }
 0x177   : > { %v1949_v26 = vor.u32 %v1948_v19, %v1944_v7  ;;  %2598 = vst [vmem:[#allocation3 + $0x5c] sm:$0xf] %v2462_v21  ;;  %v2632_v49 = vld [vmem:[#allocation2 + $0x28] sm:$0xf]  ;;  %3158 = vst [vmem:[#allocation3 + $0x40] sm:$0xf] %v2764_v25  ;;  %v14560_v19 = vadd.f32 %v12126_v53, %v12125_v6 }
 0x178   : > { %v1945_v62 = vsel %vm14044_vm12, %v1940_v63, %v1944_v7  ;;  %2663 = vst [vmem:[#allocation3 + $0x60] sm:$0xf] %v2631_v29  ;;  %2664 = vst [vmem:[#allocation3 + $0x84] sm:$0xf] %v2632_v49  ;;  %v2696_v32 = vld [vmem:[#allocation2 + $0x24] sm:$0xf]  ;;  %v2465_v37 = vsel %vm14035_vm11, %v2463_v22, %v2464_v28  ;;  %v12019_v49 = vpop.f32.mrf.mxu0 }
 0x179   : > { %v2697_v33 = vld [vmem:[#allocation2 + $0x28] sm:$0xf]  ;;  %v2698_v34 = vld [vmem:[#allocation2 + $0x2c] sm:$0x1]  ;;  %v1950_v35 = vrot.slane %v1949_v26, 4  ;;  %v2766_v38 = vshrl.u32 %v2696_v32, 16 }
 0x17a   : > { %2326 = vst [vmem:[#allocation3 + $0x58] sm:$0xf] %v1945_v62  ;;  %v2769_v40 = vshll.u32 %v2696_v32, 16  ;;  %v1866_v41 = vld [vmem:[#allocation2 + $0x24] sm:$0xf]  ;;  %v2775_v44 = vshll.u32 %v2697_v33, 16  ;;  %5295 = vmatmul.mubr.bf16.vlgmr.msra.gmra.mxu0 %v13271_v20  ;;  %v14562_v20 = vpop.f32.mrf.mxu1 }
 0x17b   : > { %2599 = vst [vmem:[#allocation3 + $0x80] sm:$0xf] %v2465_v37  ;;  %v2779_v45 = vshrl.u32 %v2697_v33, 16  ;;  %v2785_v46 = vshll.u32 %v2698_v34, 16  ;;  %v1867_v48 = vld [vmem:[#allocation2 + $0x28] sm:$0xf]  ;;  %v1955_v55 = vsel %vm14044_vm12, %v1950_v35, %v1954_v57  ;;  %12942 = vmatpush3.bf16.msra.mxu0 %v14516_v39 }
 0x17c   : > { %v1957_v51 = vshrl.u32 %v1866_v41, 16  ;;  %v2768_v54 = vrot.slane %v2766_v38, 4  ;;  %v2771_v56 = vrot.slane %v2769_v40, 5  ;;  %v1868_v58 = vld [vmem:[#allocation2 + $0x2c] sm:$0x1]  ;;  %v1960_v59 = vshll.u32 %v1866_v41, 16  ;;  %12943 = vmatprep.subr.bf16.mxu0 %v13285_v42  ;;  %v12020_v41 = vpop.f32.mrf.mxu0 }
 0x17d   : > { %2327 = vst [vmem:[#allocation3 + $0x7c] sm:$0xf] %v1955_v55  ;;  %v2777_v36 = vrot.slane %v2775_v44, 5  ;;  %v2781_v3 = vrot.slane %v2779_v45, 4  ;;  %v2787_v52 = vrot.slane %v2785_v46, 5  ;;  %v1966_v47 = vshll.u32 %v1867_v48, 16 }
 0x17e   : > { %v1959_v27 = vrot.slane %v1957_v51, 4  ;;  %v2362_v0 = vld [vmem:[#allocation2 + $0x24] sm:$0xe]  ;;  %v2772_v4 = vor.u32 %v2771_v56, %v2768_v54  ;;  %v1962_v11 = vrot.slane %v1960_v59, 5  ;;  %v1970_v7 = vshrl.u32 %v1867_v48, 16  ;;  %v13311_v22 = vld [vmem:[#allocation7 + $0x220] sm:$0xff]  }
 0x17f   : > { %v2363_v8 = vld [vmem:[#allocation2 + $0x28] sm:$0xf]  ;;  %v2782_v10 = vor.u32 %v2781_v3, %v2777_v36  ;;  %v1976_v13 = vshll.u32 %v1868_v58, 16  ;;  %v2364_v14 = vld [vmem:[#allocation2 + $0x2c] sm:$0x1]  ;;  %v11382_v39 = vrot.slane %v2362_v0, 9  ;;  %12944 = vmatpush3.bf16.msra.mxu0 %v13285_v42  ;;  %v12131_v42 = vpop.f32.mrf.mxu1  ;;  %v14574_v53 = vadd.f32 %v12020_v41, %v12019_v49 }
 0x180   : > { %v2468_v15 = vrot.slane %v2363_v8, 5  ;;  %v13273_v16 = vld [vmem:[#allocation3 + $0x1c] ss:$36 sps:$4 sm:$0xff]   ;;  %v2773_v17 = vrot.slane %v2772_v4, 4  ;;  %v1963_v18 = vor.u32 %v1962_v11, %v1959_v27  ;;  %v1968_v57 = vrot.slane %v1966_v47, 5  ;;  %12945 = vmatprep.subr.bf16.mxu0 %v13298_v60 }
 0x181   : > { %v13275_v61 = vld [vmem:[#allocation3 + $0x18] ss:$36 sps:$4 sm:$0xff]   ;;  %v2783_v63 = vrot.slane %v2782_v10, 4  ;;  %v1972_v21 = vrot.slane %v1970_v7, 4  ;;  %5455 = vmatprep.mubr.bf16.mxu1 %v13273_v16  ;;  %v1978_v33 = vrot.slane %v1976_v13, 5  ;;  %v2471_v34 = vrot.slane %v2364_v14, 5  ;;  %v12132_v3 = vpop.f32.mrf.mxu1 }
 0x182   : > { %v2778_v25 = vsel %vm14044_vm12, %v2773_v17, %v2777_v36  ;;  %v1964_v26 = vrot.slane %v1963_v18, 4  ;;  %v2469_v28 = vsel %vm14035_vm11, %v11382_v39, %v2468_v15  ;;  %v2470_v29 = vrot.slane %v2468_v15, 4  ;;  %5456 = vmatmul.mubr.bf16.vlgmr.msra.gmra.mxu1 %v13275_v61  ;;  %v2633_v6 = vld [vmem:[#allocation2 + $0x30] sm:$0xf]  ;;  %v2634_v35 = vld [vmem:[#allocation2 + $0x34] sm:$0xf]  ;;  %v14576_v36 = vpop.f32.mrf.mxu0 }
 0x183   : > { %v2788_v62 = vsel %vm14044_vm12, %v2783_v63, %v2787_v52  ;;  %3159 = vst [vmem:[#allocation3 + $0x64] sm:$0xf] %v2778_v25  ;;  %v1973_v32 = vor.u32 %v1972_v21, %v1968_v57  ;;  %2600 = vst [vmem:[#allocation3 + $0xa4] sm:$0xf] %v2469_v28  ;;  %v13276_v37 = vld [vmem:[#allocation3 + $0x5c] ss:$36 sps:$4 sm:$0xff]   ;;  %12946 = vmatpush3.bf16.msra.mxu0 %v13298_v60  ;;  %v14580_v4 = vadd.f32 %v12132_v3, %v12131_v42  ;;  %v14582_v13 = vpop.f32.mrf.mxu1 }
 0x184   : > { %v13278_v38 = vld [vmem:[#allocation3 + $0x58] ss:$36 sps:$4 sm:$0xff]   ;;  %3160 = vst [vmem:[#allocation3 + $0x88] sm:$0xf] %v2788_v62  ;;  %v1969_v40 = vsel %vm14044_vm12, %v1964_v26, %v1968_v57  ;;  %2665 = vst [vmem:[#allocation3 + $0xa8] sm:$0xf] %v2633_v6  ;;  %v2472_v45 = vsel %vm14035_vm11, %v2470_v29, %v2471_v34  ;;  %5302 = vmatprep.mubr.bf16.mxu0 %v13276_v37  ;;  %12947 = vmatprep.subr.bf16.mxu0 %v13311_v22  ;;  %v14584_v17 = vpop.f32.mrf.mxu0 }
 0x185   : > { %2666 = vst [vmem:[#allocation3 + $0xcc] sm:$0xf] %v2634_v35  ;;  %v1974_v44 = vrot.slane %v1973_v32, 4  ;;  %2328 = vst [vmem:[#allocation3 + $0xa0] sm:$0xf] %v1969_v40  ;;  %v13324_v51 = vld [vmem:[#allocation7 + $0x218] sm:$0xff]   ;;  %5303 = vmatmul.mubr.bf16.gmra.mxu0 %v13278_v38  ;;  %v14586_v26 = vpop.f32.mrf.mxu1 }
 0x186   : > { %v2699_v46 = vld [vmem:[#allocation2 + $0x30] sm:$0xf]  ;;  %v2700_v48 = vld [vmem:[#allocation2 + $0x34] sm:$0xf]  ;;  %2601 = vst [vmem:[#allocation3 + $0xc8] sm:$0xf] %v2472_v45  ;;  %v12025_v41 = vpop.f32.mrf.mxu0 }
 0x187   : > { %v2701_v55 = vld [vmem:[#allocation2 + $0x38] sm:$0x1]  ;;  %v2790_v54 = vshrl.u32 %v2699_v46, 16  ;;  %v2793_v56 = vshll.u32 %v2699_v46, 16  ;;  %v2799_v58 = vshll.u32 %v2700_v48, 16  ;;  %v2803_v59 = vshrl.u32 %v2700_v48, 16  ;;  %12948 = vmatpush3.bf16.msra.mxu0 %v13311_v22 }
 0x188   : > { %v1979_v52 = vsel %vm14044_vm12, %v1974_v44, %v1978_v33  ;;  %v2809_v27 = vshll.u32 %v2701_v55, 16  ;;  %v1869_v60 = vld [vmem:[#allocation2 + $0x30] sm:$0xf]  ;;  %v1870_v0 = vld [vmem:[#allocation2 + $0x34] sm:$0xf]  ;;  %12949 = vmatprep.subr.bf16.mxu0 %v13324_v51  ;;  %v13337_v28 = vld [vmem:[#allocation7 + $0x210] sm:$0xff]  }
 0x189   : > { %2329 = vst [vmem:[#allocation3 + $0xc4] sm:$0xf] %v1979_v52  ;;  %v2792_v11 = vrot.slane %v2790_v54, 4  ;;  %v2795_v47 = vrot.slane %v2793_v56, 5  ;;  %v2801_v7 = vrot.slane %v2799_v58, 5  ;;  %v2805_v8 = vrot.slane %v2803_v59, 4  ;;  %v12137_v54 = vpop.f32.mrf.mxu1 }
 0x18a   : > { %v1871_v10 = vld [vmem:[#allocation2 + $0x38] sm:$0x1]  ;;  %v2811_v14 = vrot.slane %v2809_v27, 5  ;;  %v1981_v39 = vshrl.u32 %v1869_v60, 16  ;;  %v1984_v15 = vshll.u32 %v1869_v60, 16  ;;  %v1990_v16 = vshll.u32 %v1870_v0, 16  ;;  %v12026_v27 = vpop.f32.mrf.mxu0 }
 0x18b   : > { %v2365_v61 = vld [vmem:[#allocation2 + $0x30] sm:$0xe]  ;;  %v2796_v18 = vor.u32 %v2795_v47, %v2792_v11  ;;  %v2806_v63 = vor.u32 %v2805_v8, %v2801_v7  ;;  %v1994_v57 = vshrl.u32 %v1870_v0, 16  ;;  %v2000_v21 = vshll.u32 %v1871_v10, 16  ;;  %v2366_v25 = vld [vmem:[#allocation2 + $0x34] sm:$0xf]  ;;  %12950 = vmatpush3.bf16.msra.mxu0 %v13324_v51 }
 0x18c   : > { %v13279_v29 = vld [vmem:[#allocation3 + $0x64] ss:$36 sps:$4 sm:$0xff]   ;;  %v1983_v62 = vrot.slane %v1981_v39, 4  ;;  %v1986_v34 = vrot.slane %v1984_v15, 5  ;;  %v1992_v6 = vrot.slane %v1990_v16, 5  ;;  %v11383_v38 = vrot.slane %v2365_v61, 9  ;;  %12951 = vmatprep.subr.bf16.mxu0 %v13337_v28  ;;  %v14598_v16 = vpop.f32.mrf.mxu0 }
 0x18d   : > { %v13281_v49 = vld [vmem:[#allocation3 + $0x60] ss:$36 sps:$4 sm:$0xff]   ;;  %v2797_v32 = vrot.slane %v2796_v18, 4  ;;  %v2807_v33 = vrot.slane %v2806_v63, 4  ;;  %5463 = vmatprep.mubr.bf16.mxu1 %v13279_v29  ;;  %v1996_v22 = vrot.slane %v1994_v57, 4  ;;  %v2002_v35 = vrot.slane %v2000_v21, 5 }
 0x18e   : > { %v2367_v37 = vld [vmem:[#allocation2 + $0x38] sm:$0x1]  ;;  %v2475_v40 = vrot.slane %v2366_v25, 5  ;;  %5464 = vmatmul.mubr.bf16.gmra.mxu1 %v13281_v49  ;;  %v1987_v45 = vor.u32 %v1986_v34, %v1983_v62  ;;  %v2635_v48 = vld [vmem:[#allocation2 + $0x3c] sm:$0xf]  ;;  %v13350_v56 = vld [vmem:[#allocation7 + $0x208] sm:$0xff]   ;;  %v14594_v47 = vadd.f32 %v12026_v27, %v12025_v41 }
 0x18f   : > { %v2802_v42 = vsel %vm14044_vm12, %v2797_v32, %v2801_v7  ;;  %v2812_v44 = vsel %vm14044_vm12, %v2807_v33, %v2811_v14  ;;  %v2478_v46 = vrot.slane %v2367_v37, 5  ;;  %v2636_v55 = vld [vmem:[#allocation2 + $0x40] sm:$0xf]  ;;  %v1997_v51 = vor.u32 %v1996_v22, %v1992_v6  ;;  %2667 = vst [vmem:[#allocation3 + $0xf0] sm:$0xf] %v2635_v48  ;;  %v12138_v7 = vpop.f32.mrf.mxu1  ;;  %12952 = vmatpush3.bf16.msra.mxu0 %v13337_v28 }
 0x190   : > { %v13282_v58 = vld [vmem:[#allocation3 + $0xa4] ss:$36 sps:$4 sm:$0xff]   ;;  %3161 = vst [vmem:[#allocation3 + $0xac] sm:$0xf] %v2802_v42  ;;  %3162 = vst [vmem:[#allocation3 + $0xd0] sm:$0xf] %v2812_v44  ;;  %v2476_v3 = vsel %vm14035_vm11, %v11383_v38, %v2475_v40  ;;  %12953 = vmatprep.subr.bf16.mxu0 %v13350_v56  ;;  %v14606_v33 = vadd.f32 %v12138_v7, %v12137_v54 }
 0x191   : > { %v13284_v59 = vld [vmem:[#allocation3 + $0xa0] ss:$36 sps:$4 sm:$0xff]   ;;  %v2477_v52 = vrot.slane %v2475_v40, 4  ;;  %2668 = vst [vmem:[#allocation3 + $0x114] sm:$0xf] %v2636_v55  ;;  %v1988_v60 = vrot.slane %v1987_v45, 4  ;;  %5310 = vmatprep.mubr.bf16.mxu0 %v13282_v58  ;;  %v14602_v25 = vpop.f32.mrf.mxu1  ;;  %v14608_v40 = vpop.f32.mrf.mxu0 }
 0x192   : > { %2602 = vst [vmem:[#allocation3 + $0xec] sm:$0xf] %v2476_v3  ;;  %v2702_v0 = vld [vmem:[#allocation2 + $0x3c] sm:$0xf]  ;;  %v2703_v11 = vld [vmem:[#allocation2 + $0x40] sm:$0xf]  ;;  %5311 = vmatmul.mubr.bf16.gmra.mxu0 %v13284_v59 }
 0x193   : > { %v1998_v8 = vrot.slane %v1997_v51, 4  ;;  %v2479_v10 = vsel %vm14035_vm11, %v2477_v52, %v2478_v46  ;;  %v2704_v14 = vld [vmem:[#allocation2 + $0x44] sm:$0x1]  ;;  %v2814_v39 = vshrl.u32 %v2702_v0, 16  ;;  %v2817_v15 = vshll.u32 %v2702_v0, 16  ;;  %12954 = vmatpush3.bf16.msra.mxu0 %v13350_v56  ;;  %v14610_v54 = vpop.f32.mrf.mxu1 }
 0x194   : > { %v1993_v61 = vsel %vm14044_vm12, %v1988_v60, %v1992_v6  ;;  %2603 = vst [vmem:[#allocation3 + $0x110] sm:$0xf] %v2479_v10  ;;  %v2823_v18 = vshll.u32 %v2703_v11, 16  ;;  %v2827_v63 = vshrl.u32 %v2703_v11, 16  ;;  %v2833_v57 = vshll.u32 %v2704_v14, 16  ;;  %v12031_v10 = vpop.f32.mrf.mxu0 }
 0x195   : > { %v1872_v21 = vld [vmem:[#allocation2 + $0x3c] sm:$0xf]  ;;  %v2003_v29 = vsel %vm14044_vm12, %v1998_v8, %v2002_v35  ;;  %2330 = vst [vmem:[#allocation3 + $0xe8] sm:$0xf] %v1993_v61  ;;  %v2816_v49 = vrot.slane %v2814_v39, 4  ;;  %v2819_v28 = vrot.slane %v2817_v15, 5 }
 0x196   : > { %v1873_v62 = vld [vmem:[#allocation2 + $0x40] sm:$0xf]  ;;  %v1874_v32 = vld [vmem:[#allocation2 + $0x44] sm:$0x1]  ;;  %2331 = vst [vmem:[#allocation3 + $0x10c] sm:$0xf] %v2003_v29  ;;  %v12032_v29 = vpop.f32.mrf.mxu0 }
 0x197   : > { %v2825_v34 = vrot.slane %v2823_v18, 5  ;;  %v2829_v6 = vrot.slane %v2827_v63, 4  ;;  %v2835_v22 = vrot.slane %v2833_v57, 5  ;;  %v2005_v37 = vshrl.u32 %v1872_v21, 16  ;;  %v2368_v38 = vld [vmem:[#allocation2 + $0x3c] sm:$0xe] }
 0x198   : > { %v2820_v41 = vor.u32 %v2819_v28, %v2816_v49  ;;  %v2008_v42 = vshll.u32 %v1872_v21, 16  ;;  %v2014_v44 = vshll.u32 %v1873_v62, 16  ;;  %v2018_v45 = vshrl.u32 %v1873_v62, 16  ;;  %v2369_v35 = vld [vmem:[#allocation2 + $0x40] sm:$0xf]  ;;  %v12143_v49 = vpop.f32.mrf.mxu1 }
 0x199   : > { %v13286_v46 = vld [vmem:[#allocation3 + $0xac] ss:$36 sps:$4 sm:$0xff]   ;;  %v2830_v48 = vor.u32 %v2829_v6, %v2825_v34  ;;  %v2007_v55 = vrot.slane %v2005_v37, 4  ;;  %v2024_v58 = vshll.u32 %v1874_v32, 16  ;;  %v11384_v7 = vrot.slane %v2368_v38, 9 }
 0x19a   : > { %v13288_v59 = vld [vmem:[#allocation3 + $0xa8] ss:$36 sps:$4 sm:$0xff]   ;;  %v2821_v51 = vrot.slane %v2820_v41, 4  ;;  %v2010_v3 = vrot.slane %v2008_v42, 5  ;;  %v2016_v52 = vrot.slane %v2014_v44, 5  ;;  %v2020_v27 = vrot.slane %v2018_v45, 4  ;;  %5471 = vmatprep.mubr.bf16.mxu1 %v13286_v46  ;;  %v12144_v41 = vpop.f32.mrf.mxu1 }
 0x19b   : > { %v2831_v60 = vrot.slane %v2830_v48, 4  ;;  %v2026_v0 = vrot.slane %v2024_v58, 5  ;;  %v2370_v11 = vld [vmem:[#allocation2 + $0x44] sm:$0x1]  ;;  %v2482_v8 = vrot.slane %v2369_v35, 5  ;;  %5472 = vmatmul.mubr.bf16.gmra.mxu1 %v13288_v59  ;;  %v13363_v42 = vld [vmem:[#allocation7 + $0x200] sm:$0xff]  }
 0x19c   : > { %v2826_v56 = vsel %vm14044_vm12, %v2821_v51, %v2825_v34  ;;  %v2011_v14 = vor.u32 %v2010_v3, %v2007_v55  ;;  %v2021_v39 = vor.u32 %v2020_v27, %v2016_v52  ;;  %v2485_v15 = vrot.slane %v2370_v11, 5  ;;  %v2637_v57 = vld [vmem:[#allocation2 + $0x48] sm:$0xf]  ;;  %v2638_v21 = vld [vmem:[#allocation2 + $0x4c] sm:$0xf]  ;;  %v14626_v27 = vpop.f32.mrf.mxu0  ;;  %12955 = vmatprep.subr.bf16.mxu0 %v13363_v42 }
 0x19d   : > { %v2836_v61 = vsel %vm14044_vm12, %v2831_v60, %v2835_v22  ;;  %3163 = vst [vmem:[#allocation3 + $0xf4] sm:$0xf] %v2826_v56  ;;  %v2483_v18 = vsel %vm14035_vm11, %v11384_v7, %v2482_v8  ;;  %v2484_v63 = vrot.slane %v2482_v8, 4  ;;  %v13289_v28 = vld [vmem:[#allocation3 + $0xec] ss:$36 sps:$4 sm:$0xff]   ;;  %v14618_v34 = vadd.f32 %v12032_v29, %v12031_v10  ;;  %12956 = vmatpush3.bf16.msra.mxu0 %v13363_v42 }
 0x19e   : > { %v13291_v62 = vld [vmem:[#allocation3 + $0xe8] ss:$36 sps:$4 sm:$0xff]   ;;  %3164 = vst [vmem:[#allocation3 + $0x118] sm:$0xf] %v2836_v61  ;;  %v2012_v32 = vrot.slane %v2011_v14, 4  ;;  %v2022_v6 = vrot.slane %v2021_v39, 4  ;;  %5318 = vmatprep.mubr.bf16.mxu0 %v13289_v28  ;;  %v14628_v60 = vadd.f32 %v12144_v41, %v12143_v49  ;;  %v14630_v61 = vpop.f32.mrf.mxu1 }
 0x19f   : > { %2604 = vst [vmem:[#allocation3 + $0x134] sm:$0xf] %v2483_v18  ;;  %2669 = vst [vmem:[#allocation3 + $0x138] sm:$0xf] %v2637_v57  ;;  %v2486_v22 = vsel %vm14035_vm11, %v2484_v63, %v2485_v15  ;;  %v2705_v37 = vld [vmem:[#allocation2 + $0x48] sm:$0xf]  ;;  %5319 = vmatmul.mubr.bf16.gmra.mxu0 %v13291_v62 }
 0x1a0   : > { %2670 = vst [vmem:[#allocation3 + $0x15c] sm:$0xf] %v2638_v21  ;;  %v2706_v38 = vld [vmem:[#allocation2 + $0x4c] sm:$0xf]  ;;  %v2017_v44 = vsel %vm14044_vm12, %v2012_v32, %v2016_v52  ;;  %2605 = vst [vmem:[#allocation3 + $0x158] sm:$0xf] %v2486_v22  ;;  %v2027_v55 = vsel %vm14044_vm12, %v2022_v6, %v2026_v0  ;;  %v14632_v6 = vpop.f32.mrf.mxu0 }
 0x1a1   : > { %v2707_v45 = vld [vmem:[#allocation2 + $0x50] sm:$0x1]  ;;  %v2838_v35 = vshrl.u32 %v2705_v37, 16  ;;  %v2841_v46 = vshll.u32 %v2705_v37, 16  ;;  %v2847_v48 = vshll.u32 %v2706_v38, 16  ;;  %v2851_v58 = vshrl.u32 %v2706_v38, 16 }
 0x1a2   : > { %2332 = vst [vmem:[#allocation3 + $0x130] sm:$0xf] %v2017_v44  ;;  %v2857_v59 = vshll.u32 %v2707_v45, 16  ;;  %v1875_v51 = vld [vmem:[#allocation2 + $0x48] sm:$0xf] }
 0x1a3   : > { %v1876_v3 = vld [vmem:[#allocation2 + $0x4c] sm:$0xf]  ;;  %2333 = vst [vmem:[#allocation3 + $0x154] sm:$0xf] %v2027_v55  ;;  %v2840_v52 = vrot.slane %v2838_v35, 4  ;;  %v2843_v11 = vrot.slane %v2841_v46, 5  ;;  %v14634_v55 = vpop.f32.mrf.mxu1 }
 0x1a4   : > { %v2849_v7 = vrot.slane %v2847_v48, 5  ;;  %v1877_v8 = vld [vmem:[#allocation2 + $0x50] sm:$0x1]  ;;  %v2029_v10 = vshrl.u32 %v1875_v51, 16  ;;  %v2853_v56 = vrot.slane %v2851_v58, 4  ;;  %v2859_v14 = vrot.slane %v2857_v59, 5 }
 0x1a5   : > { %v2032_v0 = vshll.u32 %v1875_v51, 16  ;;  %v2038_v39 = vshll.u32 %v1876_v3, 16  ;;  %v2371_v15 = vld [vmem:[#allocation2 + $0x48] sm:$0xe]  ;;  %v2844_v18 = vor.u32 %v2843_v11, %v2840_v52  ;;  %v2042_v57 = vshrl.u32 %v1876_v3, 16 }
 0x1a6   : > { %v2031_v63 = vrot.slane %v2029_v10, 4  ;;  %v2048_v21 = vshll.u32 %v1877_v8, 16  ;;  %v2372_v29 = vld [vmem:[#allocation2 + $0x4c] sm:$0xf]  ;;  %v2854_v62 = vor.u32 %v2853_v56, %v2849_v7  ;;  %v2373_v42 = vld [vmem:[#allocation2 + $0x50] sm:$0x1] }
 0x1a7   : > { %v13292_v49 = vld [vmem:[#allocation3 + $0xf4] ss:$36 sps:$4 sm:$0xff]   ;;  %v2034_v32 = vrot.slane %v2032_v0, 5  ;;  %v2845_v22 = vrot.slane %v2844_v18, 4  ;;  %v2040_v37 = vrot.slane %v2038_v39, 5  ;;  %v2044_v38 = vrot.slane %v2042_v57, 4  ;;  %v12037_v39 = vpop.f32.mrf.mxu0 }
 0x1a8   : > { %v13294_v28 = vld [vmem:[#allocation3 + $0xf0] ss:$36 sps:$4 sm:$0xff]   ;;  %v2050_v41 = vrot.slane %v2048_v21, 5  ;;  %5479 = vmatprep.mubr.bf16.mxu1 %v13292_v49  ;;  %v2855_v44 = vrot.slane %v2854_v62, 4  ;;  %v11385_v35 = vrot.slane %v2371_v15, 9  ;;  %v2489_v46 = vrot.slane %v2372_v29, 5  ;;  %v12149_v62 = vpop.f32.mrf.mxu1 }
 0x1a9   : > { %v2035_v45 = vor.u32 %v2034_v32, %v2031_v63  ;;  %v2639_v48 = vld [vmem:[#allocation2 + $0x54] sm:$0xf]  ;;  %5480 = vmatmul.mubr.bf16.gmra.mxu1 %v13294_v28  ;;  %v2850_v58 = vsel %vm14044_vm12, %v2845_v22, %v2849_v7  ;;  %v2045_v59 = vor.u32 %v2044_v38, %v2040_v37  ;;  %v2492_v51 = vrot.slane %v2373_v42, 5  ;;  %v2640_v3 = vld [vmem:[#allocation2 + $0x58] sm:$0xf]  ;;  %v12038_v28 = vpop.f32.mrf.mxu0 }
 0x1aa   : > { %2671 = vst [vmem:[#allocation3 + $0x180] sm:$0xf] %v2639_v48  ;;  %v2708_v52 = vld [vmem:[#allocation2 + $0x54] sm:$0xf]  ;;  %v13295_v11 = vld [vmem:[#allocation3 + $0x134] ss:$36 sps:$4 sm:$0xff]   ;;  %v2860_v10 = vsel %vm14044_vm12, %v2855_v44, %v2859_v14  ;;  %v2490_v0 = vsel %vm14035_vm11, %v11385_v35, %v2489_v46  ;;  %v14652_v50 = vadd.f32 %v12038_v28, %v12037_v39 }
 0x1ab   : > { %v13297_v8 = vld [vmem:[#allocation3 + $0x130] ss:$36 sps:$4 sm:$0xff]   ;;  %3165 = vst [vmem:[#allocation3 + $0x13c] sm:$0xf] %v2850_v58  ;;  %v2036_v56 = vrot.slane %v2035_v45, 4  ;;  %v2046_v15 = vrot.slane %v2045_v59, 4  ;;  %5326 = vmatprep.mubr.bf16.mxu0 %v13295_v11  ;;  %v14648_v59 = vpop.f32.mrf.mxu0 }
 0x1ac   : > { %2672 = vst [vmem:[#allocation3 + $0x1a4] sm:$0xf] %v2640_v3  ;;  %3166 = vst [vmem:[#allocation3 + $0x160] sm:$0xf] %v2860_v10  ;;  %v2491_v7 = vrot.slane %v2489_v46, 4  ;;  %v2862_v21 = vshrl.u32 %v2708_v52, 16  ;;  %5327 = vmatmul.mubr.bf16.gmra.mxu0 %v13297_v8  ;;  %v12150_v3 = vpop.f32.mrf.mxu1 }
 0x1ad   : > { %2606 = vst [vmem:[#allocation3 + $0x17c] sm:$0xf] %v2490_v0  ;;  %v2709_v18 = vld [vmem:[#allocation2 + $0x58] sm:$0xf]  ;;  %v2710_v63 = vld [vmem:[#allocation2 + $0x5c] sm:$0x1]  ;;  %v2041_v57 = vsel %vm14044_vm12, %v2036_v56, %v2040_v37  ;;  %v2051_v32 = vsel %vm14044_vm12, %v2046_v15, %v2050_v41 }
 0x1ae   : > { %v2865_v29 = vshll.u32 %v2708_v52, 16  ;;  %v2871_v14 = vshll.u32 %v2709_v18, 16  ;;  %v1878_v49 = vld [vmem:[#allocation2 + $0x54] sm:$0xf]  ;;  %2334 = vst [vmem:[#allocation3 + $0x178] sm:$0xf] %v2041_v57  ;;  %v2493_v22 = vsel %vm14035_vm11, %v2491_v7, %v2492_v51 }
 0x1af   : > { %v2875_v38 = vshrl.u32 %v2709_v18, 16  ;;  %v2881_v42 = vshll.u32 %v2710_v63, 16  ;;  %v1879_v44 = vld [vmem:[#allocation2 + $0x58] sm:$0xf]  ;;  %v1880_v45 = vld [vmem:[#allocation2 + $0x5c] sm:$0x1]  ;;  %v14650_v18 = vpop.f32.mrf.mxu1 }
 0x1b0   : > { %2335 = vst [vmem:[#allocation3 + $0x19c] sm:$0xf] %v2051_v32  ;;  %2607 = vst [vmem:[#allocation3 + $0x1a0] sm:$0xf] %v2493_v22  ;;  %v2864_v37 = vrot.slane %v2862_v21, 4  ;;  %v2867_v35 = vrot.slane %v2865_v29, 5 }
 0x1b1   : > { %v2873_v46 = vrot.slane %v2871_v14, 5  ;;  %v2053_v48 = vshrl.u32 %v1878_v49, 16  ;;  %v2374_v58 = vld [vmem:[#allocation2 + $0x54] sm:$0xe]  ;;  %v2877_v52 = vrot.slane %v2875_v38, 4  ;;  %v2883_v41 = vrot.slane %v2881_v42, 5 }
 0x1b2   : > { %v2056_v11 = vshll.u32 %v1878_v49, 16  ;;  %v2062_v8 = vshll.u32 %v1879_v44, 16  ;;  %v2375_v10 = vld [vmem:[#allocation2 + $0x58] sm:$0xf]  ;;  %v2868_v51 = vor.u32 %v2867_v35, %v2864_v37  ;;  %v2066_v0 = vshrl.u32 %v1879_v44, 16  ;;  %v14656_v49 = vpop.f32.mrf.mxu0  ;;  %v14659_v35 = vpop.f32.mrf.mxu1 }
 0x1b3   : > { %v2055_v56 = vrot.slane %v2053_v48, 4  ;;  %v2072_v15 = vshll.u32 %v1880_v45, 16  ;;  %v2376_v7 = vld [vmem:[#allocation2 + $0x5c] sm:$0x1]  ;;  %v2878_v63 = vor.u32 %v2877_v52, %v2873_v46  ;;  %v11386_v29 = vrot.slane %v2374_v58, 9 }
 0x1b4   : > { %v2058_v57 = vrot.slane %v2056_v11, 5  ;;  %v2064_v21 = vrot.slane %v2062_v8, 5  ;;  %v13299_v14 = vld [vmem:[#allocation3 + $0x13c] ss:$36 sps:$4 sm:$0xff]   ;;  %v2869_v22 = vrot.slane %v2868_v51, 4  ;;  %v14654_v38 = vadd.f32 %v12150_v3, %v12149_v62 }
 0x1b5   : > { %v13301_v32 = vld [vmem:[#allocation3 + $0x138] ss:$36 sps:$4 sm:$0xff]   ;;  %v2879_v44 = vrot.slane %v2878_v63, 4  ;;  %v2068_v37 = vrot.slane %v2066_v0, 4  ;;  %5487 = vmatprep.mubr.bf16.mxu1 %v13299_v14  ;;  %v2074_v58 = vrot.slane %v2072_v15, 5  ;;  %v2496_v52 = vrot.slane %v2375_v10, 5  ;;  %v12043_v63 = vpop.f32.mrf.mxu0 }
 0x1b6   : > { %v2059_v45 = vor.u32 %v2058_v57, %v2055_v56  ;;  %v2874_v48 = vsel %vm14044_vm12, %v2869_v22, %v2873_v46  ;;  %v2499_v11 = vrot.slane %v2376_v7, 5  ;;  %v2641_v39 = vld [vmem:[#allocation2 + $0x60] sm:$0xf]  ;;  %5488 = vmatmul.mubr.bf16.gmra.mxu1 %v13301_v32  ;;  %v14667_v56 = vadd.f32 %v14558_v9, %v14551_v43  ;;  %v2642_v0 = vld [vmem:[#allocation2 + $0x64] sm:$0xf] }
 0x1b7   : > { %v13302_v28 = vld [vmem:[#allocation3 + $0x17c] ss:$36 sps:$4 sm:$0xff]   ;;  %v2884_v3 = vsel %vm14044_vm12, %v2879_v44, %v2883_v41  ;;  %3167 = vst [vmem:[#allocation3 + $0x184] sm:$0xf] %v2874_v48  ;;  %v2069_v51 = vor.u32 %v2068_v37, %v2064_v21  ;;  %2673 = vst [vmem:[#allocation3 + $0x1c8] sm:$0xf] %v2641_v39  ;;  %v2497_v46 = vsel %vm14035_vm11, %v11386_v29, %v2496_v52  ;;  %v12044_v44 = vpop.f32.mrf.mxu0 }
 0x1b8   : > { %v13304_v62 = vld [vmem:[#allocation3 + $0x178] ss:$36 sps:$4 sm:$0xff]   ;;  %v2060_v8 = vrot.slane %v2059_v45, 4  ;;  %3168 = vst [vmem:[#allocation3 + $0x1a8] sm:$0xf] %v2884_v3  ;;  %v2498_v10 = vrot.slane %v2496_v52, 4  ;;  %v14673_v7 = vadd.f32 %v14562_v20, %v14556_v2  ;;  %v14677_v41 = vadd.f32 %v14584_v17, %v14576_v36  ;;  %5334 = vmatprep.mubr.bf16.mxu0 %v13302_v28  ;;  %v12155_v2 = vpop.f32.mrf.mxu1 }
 0x1b9   : > { %v2711_v15 = vld [vmem:[#allocation2 + $0x60] sm:$0xf]  ;;  %v2070_v9 = vrot.slane %v2069_v51, 4  ;;  %2608 = vst [vmem:[#allocation3 + $0x1c4] sm:$0xf] %v2497_v46  ;;  %v14683_v32 = vadd.f32 %v14586_v26, %v14582_v13  ;;  %5335 = vmatmul.mubr.bf16.gmra.mxu0 %v13304_v62  ;;  %v14689_v26 = vadd.f32 %v12044_v44, %v12043_v63  ;;  %v14691_v51 = vpop.f32.mrf.mxu0 }
 0x1ba   : > { %v2065_v43 = vsel %vm14044_vm12, %v2060_v8, %v2064_v21  ;;  %2674 = vst [vmem:[#allocation3 + $0x1ec] sm:$0xf] %v2642_v0  ;;  %v2712_v57 = vld [vmem:[#allocation2 + $0x64] sm:$0xf]  ;;  %v2713_v29 = vld [vmem:[#allocation2 + $0x68] sm:$0x1]  ;;  %v2500_v20 = vsel %vm14035_vm11, %v2498_v10, %v2499_v11  ;;  %v12156_v39 = vpop.f32.mrf.mxu1 }
 0x1bb   : > { %v2886_v14 = vshrl.u32 %v2711_v15, 16  ;;  %2336 = vst [vmem:[#allocation3 + $0x1c0] sm:$0xf] %v2065_v43  ;;  %v2889_v36 = vshll.u32 %v2711_v15, 16  ;;  %v2895_v17 = vshll.u32 %v2712_v57, 16  ;;  %v2899_v22 = vshrl.u32 %v2712_v57, 16 }
 0x1bc   : > { %v1881_v21 = vld [vmem:[#allocation2 + $0x60] sm:$0xf]  ;;  %v2075_v45 = vsel %vm14044_vm12, %v2070_v9, %v2074_v58  ;;  %2609 = vst [vmem:[#allocation3 + $0x1e8] sm:$0xf] %v2500_v20  ;;  %v2905_v48 = vshll.u32 %v2713_v29, 16  ;;  %v14693_v43 = vpop.f32.mrf.mxu1  ;;  %v14703_v44 = vadd.f32 %v12156_v39, %v12155_v2 }
 0x1bd   : > { %v2888_v37 = vrot.slane %v2886_v14, 4  ;;  %v1882_v52 = vld [vmem:[#allocation2 + $0x64] sm:$0xf]  ;;  %v1883_v13 = vld [vmem:[#allocation2 + $0x68] sm:$0x1]  ;;  %v2891_v28 = vrot.slane %v2889_v36, 5 }
 0x1be   : > { %2337 = vst [vmem:[#allocation3 + $0x1e4] sm:$0xf] %v2075_v45  ;;  %v2897_v62 = vrot.slane %v2895_v17, 5  ;;  %v2901_v11 = vrot.slane %v2899_v22, 4  ;;  %v2077_v3 = vshrl.u32 %v1881_v21, 16  ;;  %v2907_v46 = vrot.slane %v2905_v48, 5  ;;  %v14705_v45 = vpop.f32.mrf.mxu0 }
 0x1bf   : > { %v2377_v8 = vld [vmem:[#allocation2 + $0x60] sm:$0xe]  ;;  %v2080_v10 = vshll.u32 %v1881_v21, 16  ;;  %v2086_v0 = vshll.u32 %v1882_v52, 16  ;;  %v2090_v58 = vshrl.u32 %v1882_v52, 16  ;;  %v2892_v9 = vor.u32 %v2891_v28, %v2888_v37 }
 0x1c0   : > { %v2378_v15 = vld [vmem:[#allocation2 + $0x64] sm:$0xf]  ;;  %v2902_v57 = vor.u32 %v2901_v11, %v2897_v62  ;;  %v2079_v63 = vrot.slane %v2077_v3, 4  ;;  %v2096_v29 = vshll.u32 %v1883_v13, 16  ;;  %v2379_v14 = vld [vmem:[#allocation2 + $0x68] sm:$0x1]  ;;  %v14697_v22 = vadd.f32 %v14608_v40, %v14598_v16  ;;  %v14707_v11 = vpop.f32.mrf.mxu1 }
 0x1c1   : > { %v13305_v20 = vld [vmem:[#allocation3 + $0x184] ss:$36 sps:$4 sm:$0xff]   ;;  %v2082_v17 = vrot.slane %v2080_v10, 5  ;;  %v14701_v21 = vadd.f32 %v14610_v54, %v14602_v25  ;;  %v2893_v37 = vrot.slane %v2892_v9, 4  ;;  %v2088_v52 = vrot.slane %v2086_v0, 5 }
 0x1c2   : > { %v13307_v36 = vld [vmem:[#allocation3 + $0x180] ss:$36 sps:$4 sm:$0xff]   ;;  %v2903_v48 = vrot.slane %v2902_v57, 4  ;;  %v2092_v13 = vrot.slane %v2090_v58, 4  ;;  %v2643_v28 = vld [vmem:[#allocation2 + $0x6c] sm:$0xf]  ;;  %5495 = vmatprep.mubr.bf16.mxu1 %v13305_v20 }
 0x1c3   : > { %v2083_v3 = vor.u32 %v2082_v17, %v2079_v63  ;;  %v2098_v10 = vrot.slane %v2096_v29, 5  ;;  %v11387_v16 = vrot.slane %v2377_v8, 9  ;;  %v2503_v40 = vrot.slane %v2378_v15, 5  ;;  %v2644_v42 = vld [vmem:[#allocation2 + $0x70] sm:$0xf]  ;;  %5496 = vmatmul.mubr.bf16.gmra.mxu1 %v13307_v36  ;;  %v12161_v17 = vpop.f32.mrf.mxu1 }
 0x1c4   : > { %2675 = vst [vmem:[#allocation3 + $0x210] sm:$0xf] %v2643_v28  ;;  %v2898_v25 = vsel %vm14044_vm12, %v2893_v37, %v2897_v62  ;;  %v2908_v54 = vsel %vm14044_vm12, %v2903_v48, %v2907_v46  ;;  %v2093_v2 = vor.u32 %v2092_v13, %v2088_v52  ;;  %v2506_v39 = vrot.slane %v2379_v14, 5  ;;  %2676 = vst [vmem:[#allocation3 + $0x234] sm:$0xf] %v2644_v42  ;;  %v12049_v46 = vpop.f32.mrf.mxu0 }
 0x1c5   : > { %v2714_v0 = vld [vmem:[#allocation2 + $0x6c] sm:$0xf]  ;;  %v2715_v58 = vld [vmem:[#allocation2 + $0x70] sm:$0xf]  ;;  %v13308_v9 = vld [vmem:[#allocation3 + $0x1c4] ss:$36 sps:$4 sm:$0xff]   ;;  %v2504_v15 = vsel %vm14035_vm11, %v11387_v16, %v2503_v40  ;;  %v14717_v63 = vadd.f32 %v14632_v6, %v14626_v27  ;;  %v14721_v62 = vadd.f32 %v14634_v55, %v14630_v61 }
 0x1c6   : > { %v13310_v57 = vld [vmem:[#allocation3 + $0x1c0] ss:$36 sps:$4 sm:$0xff]   ;;  %3169 = vst [vmem:[#allocation3 + $0x1cc] sm:$0xf] %v2898_v25  ;;  %3170 = vst [vmem:[#allocation3 + $0x1f0] sm:$0xf] %v2908_v54  ;;  %5342 = vmatprep.mubr.bf16.mxu0 %v13308_v9  ;;  %v12050_v28 = vpop.f32.mrf.mxu0  ;;  %v12162_v54 = vpop.f32.mrf.mxu1 }
 0x1c7   : > { %v2084_v8 = vrot.slane %v2083_v3, 4  ;;  %v2094_v42 = vrot.slane %v2093_v2, 4  ;;  %v2505_v29 = vrot.slane %v2503_v40, 4  ;;  %2610 = vst [vmem:[#allocation3 + $0x20c] sm:$0xf] %v2504_v15  ;;  %v2910_v20 = vshrl.u32 %v2714_v0, 16  ;;  %5343 = vmatmul.mubr.bf16.gmra.mxu0 %v13310_v57 }
 0x1c8   : > { %v2716_v14 = vld [vmem:[#allocation2 + $0x74] sm:$0x1]  ;;  %v2913_v36 = vshll.u32 %v2714_v0, 16  ;;  %v2919_v48 = vshll.u32 %v2715_v58, 16  ;;  %v2923_v13 = vshrl.u32 %v2715_v58, 16  ;;  %v12052_v57 = vpop.f32.mrf.mxu0 }
 0x1c9   : > { %v2089_v37 = vsel %vm14044_vm12, %v2084_v8, %v2088_v52  ;;  %v2929_v27 = vshll.u32 %v2716_v14, 16  ;;  %v1884_v6 = vld [vmem:[#allocation2 + $0x6c] sm:$0xf]  ;;  %v2099_v61 = vsel %vm14044_vm12, %v2094_v42, %v2098_v10  ;;  %v2507_v55 = vsel %vm14035_vm11, %v2505_v29, %v2506_v39  ;;  %v1885_v40 = vld [vmem:[#allocation2 + $0x70] sm:$0xf] }
 0x1ca   : > { %2338 = vst [vmem:[#allocation3 + $0x208] sm:$0xf] %v2089_v37  ;;  %v2912_v3 = vrot.slane %v2910_v20, 4  ;;  %v2915_v16 = vrot.slane %v2913_v36, 5  ;;  %v1886_v25 = vld [vmem:[#allocation2 + $0x74] sm:$0x1]  ;;  %v12164_v37 = vpop.f32.mrf.mxu1  ;;  %v12053_v31 = vpop.f32.mrf.mxu0 }
 0x1cb   : > { %2339 = vst [vmem:[#allocation3 + $0x22c] sm:$0xf] %v2099_v61  ;;  %2611 = vst [vmem:[#allocation3 + $0x230] sm:$0xf] %v2507_v55  ;;  %v2921_v52 = vrot.slane %v2919_v48, 5  ;;  %v2925_v2 = vrot.slane %v2923_v13, 4  ;;  %v14729_v13 = vadd.f32 %v12050_v28, %v12049_v46 }
 0x1cc   : > { %v2931_v0 = vrot.slane %v2929_v27, 5  ;;  %v2101_v58 = vshrl.u32 %v1884_v6, 16  ;;  %v2380_v9 = vld [vmem:[#allocation2 + $0x6c] sm:$0xe]  ;;  %v2916_v8 = vor.u32 %v2915_v16, %v2912_v3  ;;  %v2104_v15 = vshll.u32 %v1884_v6, 16 }
 0x1cd   : > { %v2110_v10 = vshll.u32 %v1885_v40, 16  ;;  %v2114_v42 = vshrl.u32 %v1885_v40, 16  ;;  %v2381_v14 = vld [vmem:[#allocation2 + $0x70] sm:$0xf]  ;;  %v2926_v39 = vor.u32 %v2925_v2, %v2921_v52  ;;  %v2120_v20 = vshll.u32 %v1886_v25, 16 }
 0x1ce   : > { %v2103_v29 = vrot.slane %v2101_v58, 4  ;;  %v2382_v36 = vld [vmem:[#allocation2 + $0x74] sm:$0x1]  ;;  %v11388_v30 = vrot.slane %v2380_v9, 9  ;;  %v13312_v61 = vld [vmem:[#allocation3 + $0x1cc] ss:$36 sps:$4 sm:$0xff]   ;;  %v14731_v27 = vadd.f32 %v12162_v54, %v12161_v17  ;;  %v14735_v40 = vadd.f32 %v14656_v49, %v14648_v59  ;;  %v14745_v49 = vpop.f32.mrf.mxu0 }
 0x1cf   : > { %v2917_v55 = vrot.slane %v2916_v8, 4  ;;  %v2106_v48 = vrot.slane %v2104_v15, 5  ;;  %v13314_v23 = vld [vmem:[#allocation3 + $0x1c8] ss:$36 sps:$4 sm:$0xff]   ;;  %v2927_v3 = vrot.slane %v2926_v39, 4  ;;  %v2112_v6 = vrot.slane %v2110_v10, 5  ;;  %5503 = vmatprep.mubr.bf16.mxu1 %v13312_v61  ;;  %v12165_v8 = vpop.f32.mrf.mxu1 }
 0x1d0   : > { %v2116_v16 = vrot.slane %v2114_v42, 4  ;;  %v2122_v58 = vrot.slane %v2120_v20, 5  ;;  %v2510_v9 = vrot.slane %v2381_v14, 5  ;;  %5504 = vmatmul.mubr.bf16.gmra.mxu1 %v13314_v23  ;;  %v2513_v28 = vrot.slane %v2382_v36, 5  ;;  %v2645_v54 = vld [vmem:[#allocation2 + $0x78] sm:$0xf] }
 0x1d1   : > { %v2922_v25 = vsel %vm14044_vm12, %v2917_v55, %v2921_v52  ;;  %v2107_v2 = vor.u32 %v2106_v48, %v2103_v29  ;;  %v2932_v46 = vsel %vm14044_vm12, %v2927_v3, %v2931_v0  ;;  %v2646_v15 = vld [vmem:[#allocation2 + $0x7c] sm:$0xf]  ;;  %v14743_v59 = vadd.f32 %v14659_v35, %v14650_v18  ;;  %2677 = vst [vmem:[#allocation3 + $0x258] sm:$0xf] %v2645_v54  ;;  %v2717_v39 = vld [vmem:[#allocation2 + $0x78] sm:$0xf]  ;;  %v14772_v3 = vpop.f32.mrf.mxu0 }
 0x1d2   : > { %3171 = vst [vmem:[#allocation3 + $0x214] sm:$0xf] %v2922_v25  ;;  %v2117_v17 = vor.u32 %v2116_v16, %v2112_v6  ;;  %v13315_v52 = vld [vmem:[#allocation3 + $0x20c] ss:$36 sps:$4 sm:$0xff]   ;;  %3172 = vst [vmem:[#allocation3 + $0x238] sm:$0xf] %v2932_v46  ;;  %v2511_v23 = vsel %vm14035_vm11, %v11388_v30, %v2510_v9  ;;  %v14751_v0 = vadd.f32 %v14705_v45, %v14691_v51 }
 0x1d3   : > { %v13317_v10 = vld [vmem:[#allocation3 + $0x208] ss:$36 sps:$4 sm:$0xff]   ;;  %v2108_v42 = vrot.slane %v2107_v2, 4  ;;  %2678 = vst [vmem:[#allocation3 + $0x27c] sm:$0xf] %v2646_v15  ;;  %v14755_v14 = vadd.f32 %v14707_v11, %v14693_v43  ;;  %v2512_v35 = vrot.slane %v2510_v9, 4  ;;  %v14757_v20 = vadd.f32 %v12053_v31, %v12052_v57  ;;  %5350 = vmatprep.mubr.bf16.mxu0 %v13315_v52  ;;  %v14776_v9 = vpop.f32.mrf.mxu1 }
 0x1d4   : > { %v2118_v18 = vrot.slane %v2117_v17, 4  ;;  %2612 = vst [vmem:[#allocation3 + $0x254] sm:$0xf] %v2511_v23  ;;  %v2718_v29 = vld [vmem:[#allocation2 + $0x7c] sm:$0xf]  ;;  %v14759_v36 = vadd.f32 %v12165_v8, %v12164_v37  ;;  %v2934_v51 = vshrl.u32 %v2717_v39, 16  ;;  %5351 = vmatmul.mubr.bf16.gmra.mxu0 %v13317_v10 }
 0x1d5   : > { %v2113_v30 = vsel %vm14044_vm12, %v2108_v42, %v2112_v6  ;;  %v2719_v61 = vld [vmem:[#allocation2 + $0x80] sm:$0x1]  ;;  %v2937_v45 = vshll.u32 %v2717_v39, 16  ;;  %v2943_v55 = vshll.u32 %v2718_v29, 16  ;;  %v2514_v11 = vsel %vm14035_vm11, %v2512_v35, %v2513_v28  ;;  %v1887_v48 = vld [vmem:[#allocation2 + $0x78] sm:$0xf] }
 0x1d6   : > { %v2123_v43 = vsel %vm14044_vm12, %v2118_v18, %v2122_v58  ;;  %2340 = vst [vmem:[#allocation3 + $0x250] sm:$0xf] %v2113_v30  ;;  %v2947_v31 = vshrl.u32 %v2718_v29, 16  ;;  %v2953_v57 = vshll.u32 %v2719_v61, 16  ;;  %v14770_v37 = vld [vmem:[%s17034_s2] ss:$0 sm:$0xff]  ;;  %v14783_v18 = vpop.f32.mrf.mxu1  ;;  %v14790_v61 = vpop.f32.mrf.mxu0 }
 0x1d7   : > { %2341 = vst [vmem:[#allocation3 + $0x274] sm:$0xf] %v2123_v43  ;;  %2613 = vst [vmem:[#allocation3 + $0x278] sm:$0xf] %v2514_v11  ;;  %v2936_v6 = vrot.slane %v2934_v51, 4  ;;  %v2939_v16 = vrot.slane %v2937_v45, 5  ;;  %v4975_v2 = vadd.f32 %v14539_v5, %v14770_v37  ;;  %v4978_v17 = vadd.f32 %v14667_v56, %v14770_v37 }
 0x1d8   : > { %v2945_v25 = vrot.slane %v2943_v55, 5  ;;  %v1888_v58 = vld [vmem:[#allocation2 + $0x7c] sm:$0xf]  ;;  %v2949_v8 = vrot.slane %v2947_v31, 4  ;;  %v2955_v46 = vrot.slane %v2953_v57, 5  ;;  %v2125_v54 = vshrl.u32 %v1887_v48, 16  ;;  %v14792_v11 = vpop.f32.mrf.mxu1 }
 0x1d9   : > { %v1889_v28 = vld [vmem:[#allocation2 + $0x80] sm:$0x1]  ;;  %v2940_v15 = vor.u32 %v2939_v16, %v2936_v6  ;;  %v14781_v52 = vadd.f32 %v14560_v19, %v4975_v2  ;;  %v2128_v10 = vshll.u32 %v1887_v48, 16  ;;  %v2134_v42 = vshll.u32 %v1888_v58, 16  ;;  %v2383_v23 = vld [vmem:[#allocation2 + $0x78] sm:$0xe] }
 0x1da   : > { %v13318_v5 = vld [vmem:[#allocation3 + $0x214] ss:$36 sps:$4 sm:$0xff]   ;;  %v2950_v39 = vor.u32 %v2949_v8, %v2945_v25  ;;  %v2127_v29 = vrot.slane %v2125_v54, 4  ;;  %v14786_v30 = vadd.f32 %v14673_v7, %v4978_v17  ;;  %v4983_v56 = vadd.f32 %v14574_v53, %v14770_v37  ;;  %v2384_v43 = vld [vmem:[#allocation2 + $0x7c] sm:$0xf] }
 0x1db   : > { %v13320_v35 = vld [vmem:[#allocation3 + $0x210] ss:$36 sps:$4 sm:$0xff]   ;;  %v2941_v51 = vrot.slane %v2940_v15, 4  ;;  %v2130_v19 = vrot.slane %v2128_v10, 5  ;;  %v2136_v45 = vrot.slane %v2134_v42, 5  ;;  %v2138_v55 = vshrl.u32 %v1888_v58, 16  ;;  %5511 = vmatprep.mubr.bf16.mxu1 %v13318_v5 }
 0x1dc   : > { %17083 = vst [vmem:[#allocation20_spill] sm:$0xff] %v14786_v30  ;;  %v2951_v31 = vrot.slane %v2950_v39, 4  ;;  %v2144_v57 = vshll.u32 %v1889_v28, 16  ;;  %v2385_v48 = vld [vmem:[#allocation2 + $0x80] sm:$0x1]  ;;  %v11389_v6 = vrot.slane %v2383_v23, 9  ;;  %5512 = vmatmul.mubr.bf16.gmra.mxu1 %v13320_v35  ;;  %v14801_v42 = vadd.f32 %v14580_v4, %v4983_v56  ;;  %v14803_v23 = vpop.f32.mrf.mxu0 }
 0x1dd   : > { %v2517_v16 = vrot.slane %v2384_v43, 5  ;;  %v2946_v7 = vsel %vm14044_vm12, %v2941_v51, %v2945_v25  ;;  %v2131_v53 = vor.u32 %v2130_v19, %v2127_v29  ;;  %v2140_v2 = vrot.slane %v2138_v55, 4  ;;  %v2647_v17 = vld [vmem:[#allocation2 + $0x84] sm:$0xf]  ;;  %v2648_v39 = vld [vmem:[#allocation2 + $0x88] sm:$0xf]  ;;  %v14807_v51 = vpop.f32.mrf.mxu1 }
 0x1de   : > { %v2520_v8 = vrot.slane %v2385_v48, 5  ;;  %v13321_v54 = vld [vmem:[#allocation3 + $0x254] ss:$36 sps:$4 sm:$0xff]   ;;  %v2956_v58 = vsel %vm14044_vm12, %v2951_v31, %v2955_v46  ;;  %3173 = vst [vmem:[#allocation3 + $0x25c] sm:$0xf] %v2946_v7  ;;  %v2146_v10 = vrot.slane %v2144_v57, 5  ;;  %v4986_v46 = vadd.f32 %v14677_v41, %v14770_v37 }
 0x1df   : > { %v13323_v15 = vld [vmem:[#allocation3 + $0x250] ss:$36 sps:$4 sm:$0xff]   ;;  %v2518_v28 = vsel %vm14035_vm11, %v11389_v6, %v2517_v16  ;;  %2679 = vst [vmem:[#allocation3 + $0x2a0] sm:$0xf] %v2647_v17  ;;  %17084 = vst [vmem:[#allocation21_spill] sm:$0xff] %v14801_v42  ;;  %v2132_v25 = vrot.slane %v2131_v53, 4  ;;  %v2141_v5 = vor.u32 %v2140_v2, %v2136_v45  ;;  %5358 = vmatprep.mubr.bf16.mxu0 %v13321_v54 }
 0x1e0   : > { %3174 = vst [vmem:[#allocation3 + $0x280] sm:$0xf] %v2956_v58  ;;  %v2519_v35 = vrot.slane %v2517_v16, 4  ;;  %2614 = vst [vmem:[#allocation3 + $0x29c] sm:$0xf] %v2518_v28  ;;  %v4991_v43 = vadd.f32 %v14594_v47, %v14770_v37  ;;  %v4994_v31 = vadd.f32 %v14697_v22, %v14770_v37  ;;  %5359 = vmatmul.mubr.bf16.gmra.mxu0 %v13323_v15  ;;  %v14817_v58 = vpop.f32.mrf.mxu0 }
 0x1e1   : > { %v2720_v29 = vld [vmem:[#allocation2 + $0x84] sm:$0xf]  ;;  %2680 = vst [vmem:[#allocation3 + $0x2c4] sm:$0xf] %v2648_v39  ;;  %v2721_v19 = vld [vmem:[#allocation2 + $0x88] sm:$0xf]  ;;  %v2137_v57 = vsel %vm14044_vm12, %v2132_v25, %v2136_v45  ;;  %v14828_v30 = vadd.f32 %v14683_v32, %v4986_v46 }
 0x1e2   : > { %v2722_v55 = vld [vmem:[#allocation2 + $0x8c] sm:$0x1]  ;;  %v2958_v4 = vshrl.u32 %v2720_v29, 16  ;;  %v2961_v56 = vshll.u32 %v2720_v29, 16  ;;  %v2142_v48 = vrot.slane %v2141_v5, 4  ;;  %v2521_v41 = vsel %vm14035_vm11, %v2519_v35, %v2520_v8  ;;  %v14821_v8 = vpop.f32.mrf.mxu1 }
 0x1e3   : > { %v2967_v6 = vshll.u32 %v2721_v19, 16  ;;  %v1890_v16 = vld [vmem:[#allocation2 + $0x84] sm:$0xf]  ;;  %v1891_v7 = vld [vmem:[#allocation2 + $0x88] sm:$0xf]  ;;  %v2971_v17 = vshrl.u32 %v2721_v19, 16  ;;  %v14823_v19 = vpop.f32.mrf.mxu0 }
 0x1e4   : > { %2342 = vst [vmem:[#allocation3 + $0x298] sm:$0xf] %v2137_v57  ;;  %2615 = vst [vmem:[#allocation3 + $0x2c0] sm:$0xf] %v2521_v41  ;;  %v2960_v53 = vrot.slane %v2958_v4, 4  ;;  %v2963_v2 = vrot.slane %v2961_v56, 5  ;;  %v2147_v22 = vsel %vm14044_vm12, %v2142_v48, %v2146_v10  ;;  %v14825_v42 = vpop.f32.mrf.mxu1 }
 0x1e5   : > { %v2977_v47 = vshll.u32 %v2722_v55, 16  ;;  %v1892_v54 = vld [vmem:[#allocation2 + $0x8c] sm:$0x1]  ;;  %v2969_v45 = vrot.slane %v2967_v6, 5  ;;  %v2149_v15 = vshrl.u32 %v1890_v16, 16  ;;  %v2152_v28 = vshll.u32 %v1890_v16, 16 }
 0x1e6   : > { %v2386_v25 = vld [vmem:[#allocation2 + $0x84] sm:$0xe]  ;;  %2343 = vst [vmem:[#allocation3 + $0x2bc] sm:$0xf] %v2147_v22  ;;  %v2964_v5 = vor.u32 %v2963_v2, %v2960_v53  ;;  %v2973_v35 = vrot.slane %v2971_v17, 4  ;;  %v2158_v29 = vshll.u32 %v1891_v7, 16  ;;  %v14831_v53 = vadd.f32 %v14606_v33, %v4991_v43  ;;  %v14833_v2 = vpop.f32.mrf.mxu0 }
 0x1e7   : > { %v2979_v39 = vrot.slane %v2977_v47, 5  ;;  %v2387_v4 = vld [vmem:[#allocation2 + $0x88] sm:$0xf]  ;;  %v2151_v55 = vrot.slane %v2149_v15, 4  ;;  %v2154_v56 = vrot.slane %v2152_v28, 5  ;;  %v2162_v57 = vshrl.u32 %v1891_v7, 16 }
 0x1e8   : > { %v2168_v41 = vshll.u32 %v1892_v54, 16  ;;  %v13325_v10 = vld [vmem:[#allocation3 + $0x25c] ss:$36 sps:$4 sm:$0xff]   ;;  %v2965_v6 = vrot.slane %v2964_v5, 4  ;;  %v2974_v16 = vor.u32 %v2973_v35, %v2969_v45  ;;  %17085 = vst [vmem:[#allocation22_spill] sm:$0xff] %v14828_v30  ;;  %17086 = vst [vmem:[#allocation23_spill] sm:$0xff] %v14831_v53  ;;  %v14835_v54 = vpop.f32.mrf.mxu1  ;;  %v14839_v46 = vpop.f32.mrf.mxu0 }
 0x1e9   : > { %v13327_v48 = vld [vmem:[#allocation3 + $0x258] ss:$36 sps:$4 sm:$0xff]   ;;  %v2155_v17 = vor.u32 %v2154_v56, %v2151_v55  ;;  %v2160_v47 = vrot.slane %v2158_v29, 5  ;;  %v2164_v22 = vrot.slane %v2162_v57, 4  ;;  %v2388_v7 = vld [vmem:[#allocation2 + $0x8c] sm:$0x1]  ;;  %5519 = vmatprep.mubr.bf16.mxu1 %v13325_v10  ;;  %v14842_v29 = vadd.f32 %v14701_v21, %v4994_v31 }
 0x1ea   : > { %v2170_v15 = vrot.slane %v2168_v41, 5  ;;  %v2970_v28 = vsel %vm14044_vm12, %v2965_v6, %v2969_v45  ;;  %v2975_v5 = vrot.slane %v2974_v16, 4  ;;  %v11390_v35 = vrot.slane %v2386_v25, 9  ;;  %5520 = vmatmul.mubr.bf16.gmra.mxu1 %v13327_v48  ;;  %v14844_v56 = vpop.f32.mrf.mxu1  ;;  %v2650_v41 = vld [vmem:[#allocation2 + $0x94] sm:$0xf] }
 0x1eb   : > { %v2524_v32 = vrot.slane %v2387_v4, 5  ;;  %3175 = vst [vmem:[#allocation3 + $0x2a4] sm:$0xf] %v2970_v28  ;;  %v2156_v33 = vrot.slane %v2155_v17, 4  ;;  %v2165_v43 = vor.u32 %v2164_v22, %v2160_v47  ;;  %v2527_v55 = vrot.slane %v2388_v7, 5  ;;  %17087 = vst [vmem:[#allocation24_spill] sm:$0xff] %v14842_v29  ;;  %v14858_v17 = vpop.f32.mrf.mxu0 }
 0x1ec   : > { %v2980_v57 = vsel %vm14044_vm12, %v2975_v5, %v2979_v39  ;;  %v2649_v4 = vld [vmem:[#allocation2 + $0x90] sm:$0xf]  ;;  %v4999_v10 = vadd.f32 %v14618_v34, %v14770_v37  ;;  %v13328_v48 = vld [vmem:[#allocation3 + $0x29c] ss:$36 sps:$4 sm:$0xff]   ;;  %2682 = vst [vmem:[#allocation3 + $0x30c] sm:$0xf] %v2650_v41  ;;  %v5002_v39 = vadd.f32 %v14717_v63, %v14770_v37  ;;  %v5007_v16 = vadd.f32 %v14652_v50, %v14770_v37 }
 0x1ed   : > { %v2525_v45 = vsel %vm14035_vm11, %v11390_v35, %v2524_v32  ;;  %v2526_v25 = vrot.slane %v2524_v32, 4  ;;  %v13330_v6 = vld [vmem:[#allocation3 + $0x298] ss:$36 sps:$4 sm:$0xff]   ;;  %3176 = vst [vmem:[#allocation3 + $0x2c8] sm:$0xf] %v2980_v57  ;;  %v2161_v21 = vsel %vm14044_vm12, %v2156_v33, %v2160_v47  ;;  %v2166_v31 = vrot.slane %v2165_v43, 4  ;;  %v14869_v35 = vpop.f32.mrf.mxu1  ;;  %5366 = vmatprep.mubr.bf16.mxu0 %v13328_v48  ;;  %v14873_v57 = vpop.f32.mrf.mxu0 }
 0x1ee   : > { %2616 = vst [vmem:[#allocation3 + $0x2e4] sm:$0xf] %v2525_v45  ;;  %2681 = vst [vmem:[#allocation3 + $0x2e8] sm:$0xf] %v2649_v4  ;;  %v2723_v22 = vld [vmem:[#allocation2 + $0x90] sm:$0xf]  ;;  %v14863_v47 = vadd.f32 %v14628_v60, %v4999_v10  ;;  %v5010_v5 = vadd.f32 %v14735_v40, %v14770_v37  ;;  %v5015_v63 = vadd.f32 %v14689_v26, %v14770_v37  ;;  %5367 = vmatmul.mubr.bf16.gmra.mxu0 %v13330_v6 }
 0x1ef   : > { %2344 = vst [vmem:[#allocation3 + $0x2e0] sm:$0xf] %v2161_v21  ;;  %v2528_v34 = vsel %vm14035_vm11, %v2526_v25, %v2527_v55  ;;  %v2724_v7 = vld [vmem:[#allocation2 + $0x94] sm:$0xf]  ;;  %v2725_v28 = vld [vmem:[#allocation2 + $0x98] sm:$0x1]  ;;  %v2171_v50 = vsel %vm14044_vm12, %v2166_v31, %v2170_v15  ;;  %v14876_v26 = vadd.f32 %v14721_v62, %v5002_v39  ;;  %v14879_v4 = vadd.f32 %v14654_v38, %v5007_v16  ;;  %v14881_v31 = vpop.f32.mrf.mxu0 }
 0x1f0   : > { %17088 = vst [vmem:[#allocation25_spill] sm:$0xff] %v14863_v47  ;;  %2617 = vst [vmem:[#allocation3 + $0x308] sm:$0xf] %v2528_v34  ;;  %v2982_v32 = vshrl.u32 %v2723_v22, 16  ;;  %v2985_v33 = vshll.u32 %v2723_v22, 16  ;;  %v2991_v43 = vshll.u32 %v2724_v7, 16 }
 0x1f1   : > { %v1893_v55 = vld [vmem:[#allocation2 + $0x90] sm:$0xf]  ;;  %2345 = vst [vmem:[#allocation3 + $0x304] sm:$0xf] %v2171_v50  ;;  %v2995_v60 = vshrl.u32 %v2724_v7, 16  ;;  %v3001_v40 = vshll.u32 %v2725_v28, 16  ;;  %v14883_v28 = vpop.f32.mrf.mxu1 }
 0x1f2   : > { %v1894_v45 = vld [vmem:[#allocation2 + $0x94] sm:$0xf]  ;;  %v1895_v25 = vld [vmem:[#allocation2 + $0x98] sm:$0x1]  ;;  %17089 = vst [vmem:[#allocation26_spill] sm:$0xff] %v14876_v26  ;;  %17090 = vst [vmem:[#allocation27_spill] sm:$0xff] %v14879_v4  ;;  %v14889_v4 = vadd.f32 %v14703_v44, %v5015_v63 }
 0x1f3   : > { %v2984_v15 = vrot.slane %v2982_v32, 4  ;;  %v2987_v41 = vrot.slane %v2985_v33, 5  ;;  %v2993_v10 = vrot.slane %v2991_v43, 5  ;;  %v2173_v48 = vshrl.u32 %v1893_v55, 16  ;;  %v2389_v21 = vld [vmem:[#allocation2 + $0x90] sm:$0xe] }
 0x1f4   : > { %v2997_v34 = vrot.slane %v2995_v60, 4  ;;  %v3003_v6 = vrot.slane %v3001_v40, 5  ;;  %v2176_v22 = vshll.u32 %v1893_v55, 16  ;;  %v2182_v7 = vshll.u32 %v1894_v45, 16  ;;  %v2390_v26 = vld [vmem:[#allocation2 + $0x94] sm:$0xf]  ;;  %v14891_v60 = vpop.f32.mrf.mxu0 }
 0x1f5   : > { %v2988_v50 = vor.u32 %v2987_v41, %v2984_v15  ;;  %v2175_v47 = vrot.slane %v2173_v48, 4  ;;  %v2186_v62 = vshrl.u32 %v1894_v45, 16  ;;  %v2192_v39 = vshll.u32 %v1895_v25, 16  ;;  %v13331_v38 = vld [vmem:[#allocation3 + $0x2a4] ss:$36 sps:$4 sm:$0xff]   ;;  %17092 = vst [vmem:[#allocation29_spill] sm:$0xff] %v14889_v4 }
 0x1f6   : > { %v13333_v16 = vld [vmem:[#allocation3 + $0x2a0] ss:$36 sps:$4 sm:$0xff]   ;;  %v2998_v32 = vor.u32 %v2997_v34, %v2993_v10  ;;  %v2178_v33 = vrot.slane %v2176_v22, 5  ;;  %v14886_v43 = vadd.f32 %v14743_v59, %v5010_v5  ;;  %v2184_v40 = vrot.slane %v2182_v7, 5  ;;  %5527 = vmatprep.mubr.bf16.mxu1 %v13331_v38  ;;  %v14893_v34 = vpop.f32.mrf.mxu1  ;;  %v14903_v38 = vpop.f32.mrf.mxu0  ;;  %v13340_v4 = vld [vmem:[#allocation3 + $0x2e8] ss:$36 sps:$4 sm:$0xff]  }
 0x1f7   : > { %v2989_v55 = vrot.slane %v2988_v50, 4  ;;  %v2188_v29 = vrot.slane %v2186_v62, 4  ;;  %v2194_v15 = vrot.slane %v2192_v39, 5  ;;  %v2391_v41 = vld [vmem:[#allocation2 + $0x98] sm:$0x1]  ;;  %v11391_v48 = vrot.slane %v2389_v21, 9  ;;  %5528 = vmatmul.mubr.bf16.gmra.mxu1 %v13333_v16 }
 0x1f8   : > { %17091 = vst [vmem:[#allocation28_spill] sm:$0xff] %v14886_v43  ;;  %v2999_v45 = vrot.slane %v2998_v32, 4  ;;  %v2179_v25 = vor.u32 %v2178_v33, %v2175_v47  ;;  %v2531_v53 = vrot.slane %v2390_v26, 5  ;;  %v13334_v59 = vld [vmem:[#allocation3 + $0x2e4] ss:$36 sps:$4 sm:$0xff]   ;;  %v2534_v22 = vrot.slane %v2391_v41, 5 }
 0x1f9   : > { %v13336_v5 = vld [vmem:[#allocation3 + $0x2e0] ss:$36 sps:$4 sm:$0xff]   ;;  %v2994_v44 = vsel %vm14044_vm12, %v2989_v55, %v2993_v10  ;;  %v2189_v63 = vor.u32 %v2188_v29, %v2184_v40  ;;  %v5018_v7 = vadd.f32 %v14751_v0, %v14770_v37  ;;  %v2652_v39 = vld [vmem:[#allocation2 + $0xa0] sm:$0xf]  ;;  %5374 = vmatprep.mubr.bf16.mxu0 %v13334_v59  ;;  %v5023_v16 = vadd.f32 %v14729_v13, %v14770_v37  ;;  %v2728_v55 = vld [vmem:[#allocation2 + $0xa4] sm:$0x1] }
 0x1fa   : > { %v3004_v50 = vsel %vm14044_vm12, %v2999_v45, %v3003_v6  ;;  %3177 = vst [vmem:[#allocation3 + $0x2ec] sm:$0xf] %v2994_v44  ;;  %v2180_v47 = vrot.slane %v2179_v25, 4  ;;  %v2532_v26 = vsel %vm14035_vm11, %v11391_v48, %v2531_v53  ;;  %v2533_v21 = vrot.slane %v2531_v53, 4  ;;  %v2651_v62 = vld [vmem:[#allocation2 + $0x9c] sm:$0xf]  ;;  %5375 = vmatmul.mubr.bf16.gmra.mxu0 %v13336_v5  ;;  %v14916_v48 = vpop.f32.mrf.mxu1 }
 0x1fb   : > { %3178 = vst [vmem:[#allocation3 + $0x310] sm:$0xf] %v3004_v50  ;;  %v2190_v29 = vrot.slane %v2189_v63, 4  ;;  %2618 = vst [vmem:[#allocation3 + $0x32c] sm:$0xf] %v2532_v26  ;;  %v14906_v6 = vadd.f32 %v14755_v14, %v5018_v7  ;;  %v5026_v53 = vadd.f32 %v14757_v20, %v14770_v37  ;;  %v3025_v59 = vshll.u32 %v2728_v55, 16  ;;  %v14920_v50 = vpop.f32.mrf.mxu0 }
 0x1fc   : > { %2683 = vst [vmem:[#allocation3 + $0x330] sm:$0xf] %v2651_v62  ;;  %2684 = vst [vmem:[#allocation3 + $0x354] sm:$0xf] %v2652_v39  ;;  %v2726_v0 = vld [vmem:[#allocation2 + $0x9c] sm:$0xf]  ;;  %v2185_v32 = vsel %vm14044_vm12, %v2180_v47, %v2184_v40  ;;  %v2535_v33 = vsel %vm14035_vm11, %v2533_v21, %v2534_v22 }
 0x1fd   : > { %v2727_v10 = vld [vmem:[#allocation2 + $0xa0] sm:$0xf]  ;;  %17093 = vst [vmem:[#allocation30_spill] sm:$0xff] %v14906_v6  ;;  %v3006_v45 = vshrl.u32 %v2726_v0, 16  ;;  %v3009_v25 = vshll.u32 %v2726_v0, 16  ;;  %v2195_v14 = vsel %vm14044_vm12, %v2190_v29, %v2194_v15  ;;  %v3027_v21 = vrot.slane %v3025_v59, 5 }
 0x1fe   : > { %v1896_v41 = vld [vmem:[#allocation2 + $0x9c] sm:$0xf]  ;;  %2346 = vst [vmem:[#allocation3 + $0x328] sm:$0xf] %v2185_v32  ;;  %2619 = vst [vmem:[#allocation3 + $0x350] sm:$0xf] %v2535_v33  ;;  %v14922_v33 = vpop.f32.mrf.mxu1  ;;  %v14928_v59 = vadd.f32 %v14759_v36, %v5026_v53 }
 0x1ff   : > { %v3015_v13 = vshll.u32 %v2727_v10, 16  ;;  %v3019_v20 = vshrl.u32 %v2727_v10, 16  ;;  %v1897_v5 = vld [vmem:[#allocation2 + $0xa0] sm:$0xf]  ;;  %2347 = vst [vmem:[#allocation3 + $0x34c] sm:$0xf] %v2195_v14 }
 0x200   : > { %v3008_v40 = vrot.slane %v3006_v45, 4  ;;  %v3011_v44 = vrot.slane %v3009_v25, 5  ;;  %v1898_v63 = vld [vmem:[#allocation2 + $0xa4] sm:$0x1]  ;;  %v2197_v22 = vshrl.u32 %v1896_v41, 16  ;;  %v2200_v7 = vshll.u32 %v1896_v41, 16 }
 0x201   : > { %v3017_v47 = vrot.slane %v3015_v13, 5  ;;  %v3021_v26 = vrot.slane %v3019_v20, 4  ;;  %v2206_v62 = vshll.u32 %v1897_v5, 16  ;;  %v2392_v39 = vld [vmem:[#allocation2 + $0x9c] sm:$0xe]  ;;  %v2210_v32 = vshrl.u32 %v1897_v5, 16  ;;  %v14932_v5 = vpop.f32.mrf.mxu1 }
 0x202   : > { %v3012_v15 = vor.u32 %v3011_v44, %v3008_v40  ;;  %v2199_v29 = vrot.slane %v2197_v22, 4  ;;  %v2202_v0 = vrot.slane %v2200_v7, 5  ;;  %v2393_v10 = vld [vmem:[#allocation2 + $0xa0] sm:$0xf]  ;;  %v2216_v25 = vshll.u32 %v1898_v63, 16  ;;  %17095 = vst [vmem:[#allocation32_spill] sm:$0xff] %v14928_v59  ;;  %v14930_v40 = vpop.f32.mrf.mxu0 }
 0x203   : > { %v3022_v55 = vor.u32 %v3021_v26, %v3017_v47  ;;  %v2208_v45 = vrot.slane %v2206_v62, 5  ;;  %v2394_v14 = vld [vmem:[#allocation2 + $0xa4] sm:$0x1]  ;;  %v11392_v6 = vrot.slane %v2392_v39, 9  ;;  %v14925_v20 = vadd.f32 %v14731_v27, %v5023_v16  ;;  %v14938_v16 = vpop.f32.mrf.mxu1 }
 0x204   : > { %v13338_v41 = vld [vmem:[#allocation3 + $0x2ec] ss:$36 sps:$4 sm:$0xff]   ;;  %v3013_v43 = vrot.slane %v3012_v15, 4  ;;  %v2203_v13 = vor.u32 %v2202_v0, %v2199_v29  ;;  %v2212_v22 = vrot.slane %v2210_v32, 4  ;;  %v2218_v7 = vrot.slane %v2216_v25, 5 }
 0x205   : > { %17094 = vst [vmem:[#allocation31_spill] sm:$0xff] %v14925_v20  ;;  %v3023_v44 = vrot.slane %v3022_v55, 4  ;;  %v2538_v63 = vrot.slane %v2393_v10, 5  ;;  %5535 = vmatprep.mubr.bf16.mxu1 %v13338_v41  ;;  %v2541_v39 = vrot.slane %v2394_v14, 5  ;;  %v12057_v27 = vadd.f32 %v14772_v3, %v14745_v49  ;;  %v13341_v36 = vld [vmem:[#allocation3 + $0x32c] ss:$36 sps:$4 sm:$0xff]   ;;  %v14951_v55 = vpop.f32.mrf.mxu0 }
 0x206   : > { %v3018_v26 = vsel %vm14044_vm12, %v3013_v43, %v3017_v47  ;;  %v2204_v62 = vrot.slane %v2203_v13, 4  ;;  %5536 = vmatmul.mubr.bf16.gmra.mxu1 %v13340_v4  ;;  %v13343_v53 = vld [vmem:[#allocation3 + $0x328] ss:$36 sps:$4 sm:$0xff]   ;;  %v2213_v29 = vor.u32 %v2212_v22, %v2208_v45  ;;  %v2653_v49 = vld [vmem:[#allocation2 + $0xa8] sm:$0xf]  ;;  %v12169_v10 = vadd.f32 %v14783_v18, %v14776_v9  ;;  %5382 = vmatprep.mubr.bf16.mxu0 %v13341_v36 }
 0x207   : > { %v3028_v15 = vsel %vm14044_vm12, %v3023_v44, %v3027_v21  ;;  %3179 = vst [vmem:[#allocation3 + $0x334] sm:$0xf] %v3018_v26  ;;  %v2539_v0 = vsel %vm14035_vm11, %v11392_v6, %v2538_v63  ;;  %v2540_v32 = vrot.slane %v2538_v63, 4  ;;  %v2654_v3 = vld [vmem:[#allocation2 + $0xac] sm:$0xf]  ;;  %v5031_v4 = vadd.f32 %v12057_v27, %v14770_v37  ;;  %v14953_v6 = vpop.f32.mrf.mxu1  ;;  %5383 = vmatmul.mubr.bf16.gmra.mxu0 %v13343_v53 }
 0x208   : > { %3180 = vst [vmem:[#allocation3 + $0x358] sm:$0xf] %v3028_v15  ;;  %v2209_v43 = vsel %vm14044_vm12, %v2204_v62, %v2208_v45  ;;  %2620 = vst [vmem:[#allocation3 + $0x374] sm:$0xf] %v2539_v0  ;;  %v2729_v47 = vld [vmem:[#allocation2 + $0xa8] sm:$0xf]  ;;  %v12060_v21 = vadd.f32 %v14803_v23, %v14790_v61  ;;  %v14959_v9 = vadd.f32 %v14807_v51, %v14792_v11 }
 0x209   : > { %v2214_v25 = vrot.slane %v2213_v29, 4  ;;  %2348 = vst [vmem:[#allocation3 + $0x370] sm:$0xf] %v2209_v43  ;;  %v2542_v45 = vsel %vm14035_vm11, %v2540_v32, %v2541_v39  ;;  %2685 = vst [vmem:[#allocation3 + $0x378] sm:$0xf] %v2653_v49  ;;  %v3030_v13 = vshrl.u32 %v2729_v47, 16  ;;  %v14963_v36 = vadd.f32 %v12169_v10, %v5031_v4  ;;  %v14965_v15 = vpop.f32.mrf.mxu1  ;;  %v14967_v32 = vpop.f32.mrf.mxu0 }
 0x20a   : > { %2686 = vst [vmem:[#allocation3 + $0x39c] sm:$0xf] %v2654_v3  ;;  %v2730_v14 = vld [vmem:[#allocation2 + $0xac] sm:$0xf]  ;;  %v2731_v41 = vld [vmem:[#allocation2 + $0xb0] sm:$0x1] }
 0x20b   : > { %2621 = vst [vmem:[#allocation3 + $0x398] sm:$0xf] %v2542_v45  ;;  %v3033_v18 = vshll.u32 %v2729_v47, 16  ;;  %v3039_v61 = vshll.u32 %v2730_v14, 16  ;;  %v3043_v23 = vshrl.u32 %v2730_v14, 16  ;;  %v3049_v44 = vshll.u32 %v2731_v41, 16 }
 0x20c   : > { %v1899_v22 = vld [vmem:[#allocation2 + $0xa8] sm:$0xf]  ;;  %v2219_v63 = vsel %vm14044_vm12, %v2214_v25, %v2218_v7  ;;  %v3032_v26 = vrot.slane %v3030_v13, 4  ;;  %v1900_v62 = vld [vmem:[#allocation2 + $0xac] sm:$0xf]  ;;  %17096 = vst [vmem:[#allocation33_spill] sm:$0xff] %v14963_v36  ;;  %v14969_v25 = vpop.f32.mrf.mxu1  ;;  %v14971_v13 = vpop.f32.mrf.mxu0 }
 0x20d   : > { %v1901_v39 = vld [vmem:[#allocation2 + $0xb0] sm:$0x1]  ;;  %v2221_v27 = vshrl.u32 %v1899_v22, 16  ;;  %2349 = vst [vmem:[#allocation3 + $0x394] sm:$0xf] %v2219_v63  ;;  %v3035_v11 = vrot.slane %v3033_v18, 5  ;;  %v5034_v63 = vadd.f32 %v12060_v21, %v14770_v37 }
 0x20e   : > { %v3041_v51 = vrot.slane %v3039_v61, 5  ;;  %v3045_v53 = vrot.slane %v3043_v23, 4  ;;  %v3051_v29 = vrot.slane %v3049_v44, 5  ;;  %v2395_v0 = vld [vmem:[#allocation2 + $0xa8] sm:$0xe]  ;;  %v2224_v49 = vshll.u32 %v1899_v22, 16  ;;  %v14982_v30 = vpop.f32.mrf.mxu1 }
 0x20f   : > { %v2223_v43 = vrot.slane %v2221_v27, 4  ;;  %v2230_v3 = vshll.u32 %v1900_v62, 16  ;;  %v2234_v7 = vshrl.u32 %v1900_v62, 16  ;;  %v2396_v47 = vld [vmem:[#allocation2 + $0xac] sm:$0xf]  ;;  %v3036_v45 = vor.u32 %v3035_v11, %v3032_v26  ;;  %v13388_v18 = vld [vmem:[#allocation9 + $0x78] sm:$0xff]  }
 0x210   : > { %v3046_v4 = vor.u32 %v3045_v53, %v3041_v51  ;;  %v2240_v10 = vshll.u32 %v1901_v39, 16  ;;  %v2397_v14 = vld [vmem:[#allocation2 + $0xb0] sm:$0x1]  ;;  %v11393_v41 = vrot.slane %v2395_v0, 9  ;;  %v13346_v23 = vld [vmem:[#allocation3 + $0x330] ss:$36 sps:$4 sm:$0xff]   ;;  %v12063_v22 = vadd.f32 %v14823_v19, %v14817_v58  ;;  %v14980_v53 = vpop.f32.mrf.mxu0  ;;  %12469 = vmatprep.subr.bf16.mxu1 %v13388_v18 }
 0x211   : > { %v13344_v61 = vld [vmem:[#allocation3 + $0x334] ss:$36 sps:$4 sm:$0xff]   ;;  %v2226_v44 = vrot.slane %v2224_v49, 5  ;;  %v14978_v62 = vadd.f32 %v14825_v42, %v14821_v8  ;;  %v3037_v26 = vrot.slane %v3036_v45, 4  ;;  %v2232_v39 = vrot.slane %v2230_v3, 5 }
 0x212   : > { %v3047_v27 = vrot.slane %v3046_v4, 4  ;;  %v2236_v11 = vrot.slane %v2234_v7, 4  ;;  %v13389_v0 = vld [vmem:[#allocation9 + $0x38] sm:$0xff]   ;;  %5543 = vmatprep.mubr.bf16.mxu1 %v13344_v61  ;;  %v2242_v49 = vrot.slane %v2240_v10, 5  ;;  %v2545_v59 = vrot.slane %v2396_v47, 5 }
 0x213   : > { %v2227_v36 = vor.u32 %v2226_v44, %v2223_v43  ;;  %v2548_v21 = vrot.slane %v2397_v14, 5  ;;  %v2655_v20 = vld [vmem:[#allocation2 + $0xb4] sm:$0xf]  ;;  %5544 = vmatmul.mubr.bf16.gmra.mxu1 %v13346_v23  ;;  %v3042_v42 = vsel %vm14044_vm12, %v3037_v26, %v3041_v51  ;;  %v2656_v19 = vld [vmem:[#allocation2 + $0xb8] sm:$0xf]  ;;  %v14989_v43 = vadd.f32 %v14959_v9, %v5034_v63  ;;  %v14996_v23 = vpop.f32.mrf.mxu0  ;;  %v15000_v26 = vpop.f32.mrf.mxu1 }
 0x214   : > { %v3052_v58 = vsel %vm14044_vm12, %v3047_v27, %v3051_v29  ;;  %v2237_v8 = vor.u32 %v2236_v11, %v2232_v39  ;;  %2687 = vst [vmem:[#allocation3 + $0x3c0] sm:$0xf] %v2655_v20  ;;  %v2732_v3 = vld [vmem:[#allocation2 + $0xb4] sm:$0xf]  ;;  %v2733_v7 = vld [vmem:[#allocation2 + $0xb8] sm:$0xf]  ;;  %v2546_v10 = vsel %vm14035_vm11, %v11393_v41, %v2545_v59  ;;  %v5039_v51 = vadd.f32 %v12063_v22, %v14770_v37 }
 0x215   : > { %v13347_v47 = vld [vmem:[#allocation3 + $0x374] ss:$36 sps:$4 sm:$0xff]   ;;  %3181 = vst [vmem:[#allocation3 + $0x37c] sm:$0xf] %v3042_v42  ;;  %3182 = vst [vmem:[#allocation3 + $0x3a0] sm:$0xf] %v3052_v58  ;;  %v12066_v29 = vadd.f32 %v14839_v46, %v14833_v2  ;;  %12470 = vmatpush3.bf16.msra.mxu1 %v13389_v0 }
 0x216   : > { %v13349_v45 = vld [vmem:[#allocation3 + $0x370] ss:$36 sps:$4 sm:$0xff]   ;;  %v2228_v4 = vrot.slane %v2227_v36, 4  ;;  %2688 = vst [vmem:[#allocation3 + $0x3e4] sm:$0xf] %v2656_v19  ;;  %v2238_v20 = vrot.slane %v2237_v8, 4  ;;  %5390 = vmatprep.mubr.bf16.mxu0 %v13347_v47 }
 0x217   : > { %v2547_v14 = vrot.slane %v2545_v59, 4  ;;  %2622 = vst [vmem:[#allocation3 + $0x3bc] sm:$0xf] %v2546_v10  ;;  %v2734_v9 = vld [vmem:[#allocation2 + $0xbc] sm:$0x1]  ;;  %v3054_v18 = vshrl.u32 %v2732_v3, 16  ;;  %5391 = vmatmul.mubr.bf16.gmra.mxu0 %v13349_v45 }
 0x218   : > { %v3057_v61 = vshll.u32 %v2732_v3, 16  ;;  %v2233_v36 = vsel %vm14044_vm12, %v2228_v4, %v2232_v39  ;;  %v3063_v41 = vshll.u32 %v2733_v7, 16  ;;  %v3067_v44 = vshrl.u32 %v2733_v7, 16  ;;  %v1902_v22 = vld [vmem:[#allocation2 + $0xb4] sm:$0xf]  ;;  %v15006_v4 = vpop.f32.mrf.mxu0 }
 0x219   : > { %v3073_v63 = vshll.u32 %v2734_v9, 16  ;;  %v2243_v2 = vsel %vm14044_vm12, %v2238_v20, %v2242_v49  ;;  %2350 = vst [vmem:[#allocation3 + $0x3b8] sm:$0xf] %v2233_v36  ;;  %v2549_v46 = vsel %vm14035_vm11, %v2547_v14, %v2548_v21  ;;  %v3056_v59 = vrot.slane %v3054_v18, 4  ;;  %v1903_v11 = vld [vmem:[#allocation2 + $0xb8] sm:$0xf]  ;;  %v15008_v18 = vpop.f32.mrf.mxu1 }
 0x21a   : > { %v3059_v27 = vrot.slane %v3057_v61, 5  ;;  %v1904_v0 = vld [vmem:[#allocation2 + $0xbc] sm:$0x1]  ;;  %2351 = vst [vmem:[#allocation3 + $0x3dc] sm:$0xf] %v2243_v2  ;;  %v3065_v39 = vrot.slane %v3063_v41, 5 }
 0x21b   : > { %2623 = vst [vmem:[#allocation3 + $0x3e0] sm:$0xf] %v2549_v46  ;;  %v3069_v42 = vrot.slane %v3067_v44, 4  ;;  %v3075_v58 = vrot.slane %v3073_v63, 5  ;;  %v2245_v8 = vshrl.u32 %v1902_v22, 16  ;;  %v2248_v7 = vshll.u32 %v1902_v22, 16 }
 0x21c   : > { %v2398_v19 = vld [vmem:[#allocation2 + $0xb4] sm:$0xe]  ;;  %v3060_v3 = vor.u32 %v3059_v27, %v3056_v59  ;;  %v2254_v47 = vshll.u32 %v1903_v11, 16  ;;  %v2258_v45 = vshrl.u32 %v1903_v11, 16  ;;  %v2399_v49 = vld [vmem:[#allocation2 + $0xb8] sm:$0xf]  ;;  %v15011_v44 = vadd.f32 %v14978_v62, %v5039_v51 }
 0x21d   : > { %v3070_v10 = vor.u32 %v3069_v42, %v3065_v39  ;;  %v2247_v21 = vrot.slane %v2245_v8, 4  ;;  %v2264_v20 = vshll.u32 %v1904_v0, 16  ;;  %v2400_v14 = vld [vmem:[#allocation2 + $0xbc] sm:$0x1]  ;;  %v11394_v9 = vrot.slane %v2398_v19, 9  ;;  %v15016_v19 = vpop.f32.mrf.mxu0 }
 0x21e   : > { %v13351_v61 = vld [vmem:[#allocation3 + $0x37c] ss:$36 sps:$4 sm:$0xff]   ;;  %v3061_v36 = vrot.slane %v3060_v3, 4  ;;  %v2250_v41 = vrot.slane %v2248_v7, 5  ;;  %v5042_v63 = vadd.f32 %v12066_v29, %v14770_v37  ;;  %v2256_v46 = vrot.slane %v2254_v47, 5 }
 0x21f   : > { %v13353_v22 = vld [vmem:[#allocation3 + $0x378] ss:$36 sps:$4 sm:$0xff]   ;;  %v3071_v2 = vrot.slane %v3070_v10, 4  ;;  %v2260_v59 = vrot.slane %v2258_v45, 4  ;;  %v2266_v27 = vrot.slane %v2264_v20, 5  ;;  %5551 = vmatprep.mubr.bf16.mxu1 %v13351_v61  ;;  %v2552_v42 = vrot.slane %v2399_v49, 5 }
 0x220   : > { %v3066_v11 = vsel %vm14044_vm12, %v3061_v36, %v3065_v39  ;;  %v2251_v0 = vor.u32 %v2250_v41, %v2247_v21  ;;  %v2555_v8 = vrot.slane %v2400_v14, 5  ;;  %5552 = vmatmul.mubr.bf16.gmra.mxu1 %v13353_v22  ;;  %v387_v29 = vld [vmem:[#allocation2 + $0xc8] sm:$0x1]  ;;  %v2657_v3 = vld [vmem:[#allocation2 + $0xc0] sm:$0xf]  ;;  %v12178_v7 = vadd.f32 %v14844_v56, %v14835_v54  ;;  %v15024_v39 = vpop.f32.mrf.mxu1  ;;  %v15042_v22 = vpop.f32.mrf.mxu0 }
 0x221   : > { %v3076_v62 = vsel %vm14044_vm12, %v3071_v2, %v3075_v58  ;;  %3183 = vst [vmem:[#allocation3 + $0x3c4] sm:$0xf] %v3066_v11  ;;  %v2261_v51 = vor.u32 %v2260_v59, %v2256_v46  ;;  %v12069_v47 = vadd.f32 %v14873_v57, %v14858_v17  ;;  %v13356_v49 = vld [vmem:[#allocation3 + $0x3b8] ss:$36 sps:$4 sm:$0xff]   ;;  %v2553_v21 = vsel %vm14035_vm11, %v11394_v9, %v2552_v42  ;;  %v2658_v57 = vld [vmem:[#allocation2 + $0xc4] sm:$0xf] }
 0x222   : > { %v13354_v45 = vld [vmem:[#allocation3 + $0x3bc] ss:$36 sps:$4 sm:$0xff]   ;;  %3184 = vst [vmem:[#allocation3 + $0x3e8] sm:$0xf] %v3076_v62  ;;  %v2252_v10 = vrot.slane %v2251_v0, 4  ;;  %v12181_v58 = vadd.f32 %v14883_v28, %v14869_v35  ;;  %v12072_v20 = vadd.f32 %v14891_v60, %v14881_v31  ;;  %v2554_v56 = vrot.slane %v2552_v42, 4  ;;  %v15048_v42 = vpop.f32.mrf.mxu1 }
 0x223   : > { %2689 = vst [vmem:[#allocation3 + $0x408] sm:$0xf] %v2657_v3  ;;  %v2262_v54 = vrot.slane %v2261_v51, 4  ;;  %2624 = vst [vmem:[#allocation3 + $0x404] sm:$0xf] %v2553_v21  ;;  %v388_v17 = vsel %vm14011_vm4, 0, %v387_v29  ;;  %v15034_v14 = vadd.f32 %v12178_v7, %v5042_v63  ;;  %5398 = vmatprep.mubr.bf16.mxu0 %v13354_v45  ;;  %v5047_v31 = vadd.f32 %v12069_v47, %v14770_v37  ;;  %v15050_v21 = vpop.f32.mrf.mxu0 }
 0x224   : > { %v13390_v61 = vld [vmem:[#allocation9 + $0x70] sm:$0xff]   ;;  %v2257_v9 = vsel %vm14044_vm12, %v2252_v10, %v2256_v46  ;;  %389 = vst [vmem:[#allocation2 + $0xc8] sm:$0x1] %v388_v17  ;;  %2690 = vst [vmem:[#allocation3 + $0x42c] sm:$0xf] %v2658_v57  ;;  %v5050_v60 = vadd.f32 %v12072_v20, %v14770_v37  ;;  %v12184_v41 = vadd.f32 %v14916_v48, %v14893_v34  ;;  %5399 = vmatmul.mubr.bf16.gmra.mxu0 %v13356_v49 }
 0x225   : > { %v2735_v35 = vld [vmem:[#allocation2 + $0xc0] sm:$0xf]  ;;  %v2736_v28 = vld [vmem:[#allocation2 + $0xc4] sm:$0xf]  ;;  %v2267_v63 = vsel %vm14044_vm12, %v2262_v54, %v2266_v27  ;;  %2352 = vst [vmem:[#allocation3 + $0x400] sm:$0xf] %v2257_v9  ;;  %v2556_v2 = vsel %vm14035_vm11, %v2554_v56, %v2555_v8  ;;  %12471 = vmatprep.subr.bf16.mxu1 %v13390_v61  ;;  %v15052_v61 = vadd.f32 %v12181_v58, %v5047_v31 }
 0x226   : > { %v1905_v36 = vld [vmem:[#allocation2 + $0xc0] sm:$0xf]  ;;  %v3078_v46 = vshrl.u32 %v2735_v35, 16  ;;  %v3081_v59 = vshll.u32 %v2735_v35, 16  ;;  %v1906_v11 = vld [vmem:[#allocation2 + $0xc4] sm:$0xf]  ;;  %v15054_v9 = vadd.f32 %v12184_v41, %v5050_v60  ;;  %v15056_v35 = vpop.f32.mrf.mxu1 }
 0x227   : > { %v2401_v0 = vld [vmem:[#allocation2 + $0xc0] sm:$0xe]  ;;  %2353 = vst [vmem:[#allocation3 + $0x424] sm:$0xf] %v2267_v63  ;;  %2625 = vst [vmem:[#allocation3 + $0x428] sm:$0xf] %v2556_v2 }
 0x228   : > { %v3087_v37 = vshll.u32 %v2736_v28, 16  ;;  %v3091_v34 = vshrl.u32 %v2736_v28, 16  ;;  %v2269_v48 = vshrl.u32 %v1905_v36, 16  ;;  %v2272_v62 = vshll.u32 %v1905_v36, 16  ;;  %v2402_v51 = vld [vmem:[#allocation2 + $0xc4] sm:$0xf] }
 0x229   : > { %v3080_v29 = vrot.slane %v3078_v46, 4  ;;  %v3083_v27 = vrot.slane %v3081_v59, 5  ;;  %v2278_v3 = vshll.u32 %v1906_v11, 16  ;;  %v2282_v7 = vshrl.u32 %v1906_v11, 16  ;;  %v334_v47 = vld [vmem:[#allocation2 + $0xcc] sm:$0x1] }
 0x22a   : > { %v3089_v8 = vrot.slane %v3087_v37, 5  ;;  %v3093_v45 = vrot.slane %v3091_v34, 4  ;;  %v2271_v49 = vrot.slane %v2269_v48, 4  ;;  %v2274_v10 = vrot.slane %v2272_v62, 5  ;;  %v13391_v20 = vld [vmem:[#allocation9 + $0x30] sm:$0xff]   ;;  %v17098_v31 = vld [vmem:[#allocation19_spill] sm:$0xff] }
 0x22b   : > { %v13357_v54 = vld [vmem:[#allocation3 + $0x3c4] ss:$36 sps:$4 sm:$0xff]   ;;  %v3084_v17 = vor.u32 %v3083_v27, %v3080_v29  ;;  %v2280_v57 = vrot.slane %v2278_v3, 5  ;;  %v2284_v63 = vrot.slane %v2282_v7, 4  ;;  %v11395_v2 = vrot.slane %v2401_v0, 9  ;;  %12472 = vmatpush3.bf16.msra.mxu1 %v13391_v20  ;;  %v15068_v3 = vpop.f32.mrf.mxu0  ;;  %v15078_v20 = vpop.f32.mrf.mxu1  ;;  %v13402_v48 = vld [vmem:[#allocation9 + $0xb8] sm:$0xff]  }
 0x22c   : > { %v13359_v56 = vld [vmem:[#allocation3 + $0x3c0] ss:$36 sps:$4 sm:$0xff]   ;;  %v3094_v28 = vor.u32 %v3093_v45, %v3089_v8  ;;  %v2275_v36 = vor.u32 %v2274_v10, %v2271_v49  ;;  %v390_v46 = vld [vmem:[#allocation2 + $0xd4] sm:$0x1]  ;;  %v2660_v59 = vld [vmem:[#allocation2 + $0xd0] sm:$0xf]  ;;  %5559 = vmatprep.mubr.bf16.mxu1 %v13357_v54  ;;  %v12075_v10 = vadd.f32 %v14920_v50, %v14903_v38 }
 0x22d   : > { %v955_v11 = vld [vmem:[#allocation2 + $0xc8] sm:$0x1]  ;;  %v3085_v37 = vrot.slane %v3084_v17, 4  ;;  %v2559_v34 = vrot.slane %v2402_v51, 5  ;;  %v335_v62 = vsel %vm14006_vm3, 0, %v334_v47  ;;  %v391_v58 = vsel %vm14011_vm4, 0, %v390_v46  ;;  %5560 = vmatmul.mubr.bf16.gmra.mxu1 %v13359_v56 }
 0x22e   : > { %2692 = vst [vmem:[#allocation3 + $0x474] sm:$0xf] %v2660_v59  ;;  %v17099_v60 = vrot.slane %v17098_v31, 4  ;;  %v15066_v0 = vrot.slane %v3094_v28, 4  ;;  %v2276_v29 = vrot.slane %v2275_v36, 4  ;;  %v2285_v27 = vor.u32 %v2284_v63, %v2280_v57  ;;  %v15098_v59 = vpop.f32.mrf.mxu0 }
 0x22f   : > { %336 = vst [vmem:[#allocation2 + $0xcc] sm:$0x1] %v335_v62  ;;  %392 = vst [vmem:[#allocation2 + $0xd4] sm:$0x1] %v391_v58  ;;  %v2739_v51 = vld [vmem:[#allocation2 + $0xd0] sm:$0xf]  ;;  %v3090_v24 = vsel %vm14044_vm12, %v3085_v37, %v3089_v8  ;;  %v2560_v45 = vsel %vm14035_vm11, %v11395_v2, %v2559_v34  ;;  %v12078_v2 = vadd.f32 %v14951_v55, %v14930_v40 }
 0x230   : > { %v956_v41 = vsel %vm14006_vm3, %v17099_v60, %v955_v11  ;;  %v13360_v7 = vld [vmem:[#allocation3 + $0x404] ss:$36 sps:$4 sm:$0xff]   ;;  %v15074_v49 = vrot.slane %v2559_v34, 4  ;;  %3185 = vst [vmem:[#allocation3 + $0x40c] sm:$0xf] %v3090_v24  ;;  %v2281_v54 = vsel %vm14044_vm12, %v2276_v29, %v2280_v57  ;;  %v15082_v56 = vrot.slane %v2285_v27, 4  ;;  %v15100_v11 = vpop.f32.mrf.mxu1 }
 0x231   : > { %v13362_v47 = vld [vmem:[#allocation3 + $0x400] ss:$36 sps:$4 sm:$0xff]   ;;  %957 = vst [vmem:[#allocation2 + $0xc8] sm:$0x1] %v956_v41  ;;  %2626 = vst [vmem:[#allocation3 + $0x44c] sm:$0xf] %v2560_v45  ;;  %5406 = vmatprep.mubr.bf16.mxu0 %v13360_v7  ;;  %v12187_v57 = vadd.f32 %v14932_v5, %v14922_v33  ;;  %v12190_v46 = vadd.f32 %v14953_v6, %v14938_v16  ;;  %v15122_v24 = vadd.f32 %v14969_v25, %v14965_v15 }
 0x232   : > { %v3111_v17 = vshll.u32 %v2739_v51, 16  ;;  %v3115_v28 = vshrl.u32 %v2739_v51, 16  ;;  %2354 = vst [vmem:[#allocation3 + $0x448] sm:$0xf] %v2281_v54  ;;  %v8079_v8 = vld [vmem:[#allocation2 + $0xd0] sm:$0xf]  ;;  %5407 = vmatmul.mubr.bf16.gmra.mxu0 %v13362_v47  ;;  %v12081_v47 = vadd.f32 %v14971_v13, %v14967_v32  ;;  %v15126_v45 = vadd.f32 %v14996_v23, %v14980_v53  ;;  %v15130_v54 = vpop.f32.mrf.mxu1 }
 0x233   : > { %v3189_v36 = vld [vmem:[#allocation2 + $0x18] sm:$0xe]  ;;  %v15084_v63 = vld [vmem:[#allocation2 + $0x1c] sm:$0xf]  ;;  %v15089_v38 = vld [vmem:[%s17034_s2] ss:$0 sm:$0xff]  ;;  %v15137_v15 = vadd.f32 %v15000_v26, %v14982_v30  ;;  %v15141_v25 = vadd.f32 %v15016_v19, %v15006_v4 }
 0x234   : > { %v5055_v50 = vadd.f32 %v15089_v38, %v12075_v10  ;;  %v15102_v37 = vrot.slane %v3111_v17, 5  ;;  %v3117_v34 = vrot.slane %v3115_v28, 4  ;;  %v8451_v62 = vshll.u32 %v8079_v8, 16  ;;  %v15104_v31 = vld [vmem:[#allocation2 + $0x20] sm:$0x1]  ;;  %v15128_v10 = vpop.f32.mrf.mxu0 }
 0x235   : > { %v8455_v58 = vshrl.u32 %v8079_v8, 16  ;;  %v11396_v60 = vrot.slane %v3189_v36, 9  ;;  %v3287_v33 = vrot.slane %v15084_v63, 5  ;;  %v3290_v40 = vrot.slane %v15104_v31, 5  ;;  %v3194_v19 = vld [vmem:[#allocation2 + $0x2c] sm:$0x1] }
 0x236   : > { %v15108_v5 = vadd.f32 %v12187_v57, %v5055_v50  ;;  %v3118_v16 = vor.u32 %v3117_v34, %v15102_v37  ;;  %v15111_v55 = vrot.slane %v8451_v62, 5  ;;  %v5058_v41 = vadd.f32 %v15089_v38, %v12078_v2  ;;  %v2659_v29 = vld [vmem:[#allocation2 + $0xcc] sm:$0xf]  ;;  %v2740_v51 = vld [vmem:[#allocation2 + $0xd4] sm:$0x1] }
 0x237   : > { %v8457_v6 = vrot.slane %v8455_v58, 4  ;;  %v2738_v27 = vld [vmem:[#allocation2 + $0xcc] sm:$0xf]  ;;  %v3288_v7 = vsel %vm14035_vm11, %v11396_v60, %v3287_v33  ;;  %2691 = vst [vmem:[#allocation3 + $0x450] sm:$0xf] %v2659_v29  ;;  %v3121_v34 = vshll.u32 %v2740_v51, 16  ;;  %v15151_v29 = vpop.f32.mrf.mxu1 }
 0x238   : > { %v2737_v17 = vld [vmem:[#allocation2 + $0xc8] sm:$0x1]  ;;  %3429 = vst [vmem:[#allocation3 + $0x20] sm:$0xf] %v3288_v7  ;;  %v15133_v32 = vadd.f32 %v12190_v46, %v5058_v41  ;;  %v3102_v50 = vshrl.u32 %v2738_v27, 16  ;;  %v3105_v57 = vshll.u32 %v2738_v27, 16  ;;  %v15144_v46 = vadd.f32 %v15089_v38, %v12081_v47  ;;  %v15149_v41 = vpop.f32.mrf.mxu0 }
 0x239   : > { %v1907_v28 = vld [vmem:[#allocation2 + $0xc8] sm:$0x1]  ;;  %v8458_v36 = vor.u32 %v8457_v6, %v15111_v55  ;;  %v3097_v13 = vshll.u32 %v2737_v17, 16  ;;  %v3119_v2 = vrot.slane %v3118_v16, 4  ;;  %v3192_v62 = vld [vmem:[#allocation2 + $0x24] sm:$0xe] }
 0x23a   : > { %v2403_v8 = vld [vmem:[#allocation2 + $0xc8] sm:$0x1]  ;;  %v2288_v53 = vshll.u32 %v1907_v28, 16  ;;  %v3104_v26 = vrot.slane %v3102_v50, 4  ;;  %v8078_v4 = vld [vmem:[#allocation2 + $0xcc] sm:$0xf] }
 0x23b   : > { %v2562_v23 = vrot.slane %v2403_v8, 5  ;;  %v3193_v58 = vld [vmem:[#allocation2 + $0x28] sm:$0xf]  ;;  %v3099_v60 = vrot.slane %v3097_v13, 5  ;;  %v3107_v16 = vrot.slane %v3105_v57, 5  ;;  %v3123_v27 = vrot.slane %v3121_v34, 5 }
 0x23c   : > { %v2290_v6 = vrot.slane %v2288_v53, 5  ;;  %v8080_v51 = vld [vmem:[#allocation2 + $0xd4] sm:$0x1]  ;;  %v8442_v7 = vshrl.u32 %v8078_v4, 16  ;;  %v8445_v47 = vshll.u32 %v8078_v4, 16  ;;  %v15159_v28 = vrot.slane %v8458_v36, 4 }
 0x23d   : > { %v2563_v30 = vsel %vm14035_vm11, %v15074_v49, %v2562_v23  ;;  %v3100_v17 = vsel %vm14044_vm12, %v15066_v0, %v3099_v60  ;;  %v8461_v8 = vshll.u32 %v8080_v51, 16  ;;  %v3195_v13 = vld [vmem:[#allocation2 + $0x30] sm:$0xe]  ;;  %v3196_v53 = vld [vmem:[#allocation2 + $0x34] sm:$0xf]  ;;  %v3108_v23 = vor.u32 %v3107_v16, %v3104_v26  ;;  %v15169_v51 = vpop.f32.mrf.mxu1 }
 0x23e   : > { %2627 = vst [vmem:[#allocation3 + $0x470] sm:$0xf] %v2563_v30  ;;  %v2291_v49 = vsel %vm14044_vm12, %v15082_v56, %v2290_v6  ;;  %3186 = vst [vmem:[#allocation3 + $0x430] sm:$0xf] %v3100_v17  ;;  %v3124_v50 = vsel %vm14044_vm12, %v3119_v2, %v3123_v27  ;;  %v8444_v57 = vrot.slane %v8442_v7, 4  ;;  %v8447_v34 = vrot.slane %v8445_v47, 5  ;;  %v15167_v6 = vpop.f32.mrf.mxu0 }
 0x23f   : > { %2355 = vst [vmem:[#allocation3 + $0x46c] sm:$0xf] %v2291_v49  ;;  %v3197_v30 = vld [vmem:[#allocation2 + $0x38] sm:$0x1]  ;;  %v3198_v4 = vld [vmem:[#allocation2 + $0x3c] sm:$0xe]  ;;  %v15190_v47 = vpop.f32.mrf.mxu1 }
 0x240   : > { %3188 = vst [vmem:[#allocation3 + $0x478] sm:$0xf] %v3124_v50  ;;  %v15163_v0 = vrot.slane %v8461_v8, 5  ;;  %v3289_v56 = vrot.slane %v3287_v33, 4  ;;  %v11397_v36 = vrot.slane %v3192_v62, 9  ;;  %v3294_v60 = vrot.slane %v3193_v58, 5 }
 0x241   : > { %v3109_v26 = vrot.slane %v3108_v23, 4  ;;  %v8448_v16 = vor.u32 %v8447_v34, %v8444_v57  ;;  %v3297_v17 = vrot.slane %v3194_v19, 5  ;;  %v11398_v2 = vrot.slane %v3195_v13, 9  ;;  %v3199_v27 = vld [vmem:[#allocation2 + $0x40] sm:$0xf]  ;;  %v15181_v19 = vpop.f32.mrf.mxu0 }
 0x242   : > { %v13392_v7 = vld [vmem:[#allocation9 + $0x68] sm:$0xff]   ;;  %v3291_v63 = vsel %vm14035_vm11, %v3289_v56, %v3290_v40  ;;  %v3295_v33 = vsel %vm14035_vm11, %v11397_v36, %v3294_v60  ;;  %v3296_v62 = vrot.slane %v3294_v60, 4  ;;  %v3201_v49 = vld [vmem:[#allocation2 + $0x48] sm:$0xe]  ;;  %v3301_v31 = vrot.slane %v3196_v53, 5 }
 0x243   : > { %v3200_v58 = vld [vmem:[#allocation2 + $0x44] sm:$0x1]  ;;  %v3114_v13 = vsel %vm14044_vm12, %v3109_v26, %v15102_v37  ;;  %v15186_v23 = vrot.slane %v8448_v16, 4  ;;  %3430 = vst [vmem:[#allocation3 + $0x44] sm:$0xf] %v3291_v63  ;;  %v3304_v50 = vrot.slane %v3197_v30, 5  ;;  %12473 = vmatprep.subr.bf16.mxu1 %v13392_v7 }
 0x244   : > { %v13393_v8 = vld [vmem:[#allocation9 + $0x28] sm:$0xff]   ;;  %3431 = vst [vmem:[#allocation3 + $0x68] sm:$0xf] %v3295_v33  ;;  %v3202_v40 = vld [vmem:[#allocation2 + $0x4c] sm:$0xf]  ;;  %v3298_v57 = vsel %vm14035_vm11, %v3296_v62, %v3297_v17  ;;  %v11399_v34 = vrot.slane %v3198_v4, 9  ;;  %v3302_v53 = vsel %vm14035_vm11, %v11398_v2, %v3301_v31  ;;  %v15202_v33 = vadd.f32 %v15122_v24, %v15144_v46  ;;  %v15206_v62 = vpop.f32.mrf.mxu0 }
 0x245   : > { %3187 = vst [vmem:[#allocation3 + $0x454] sm:$0xf] %v3114_v13  ;;  %v3308_v56 = vrot.slane %v3199_v27, 5  ;;  %v3311_v36 = vrot.slane %v3200_v58, 5  ;;  %v3203_v60 = vld [vmem:[#allocation2 + $0x50] sm:$0x1]  ;;  %12474 = vmatpush3.bf16.msra.mxu1 %v13393_v8  ;;  %v8454_v37 = vsel %vm14044_vm12, %v15186_v23, %v15111_v55  ;;  %v5066_v55 = vadd.f32 %v15089_v38, %v15126_v45 }
 0x246   : > { %3432 = vst [vmem:[#allocation3 + $0x8c] sm:$0xf] %v3298_v57  ;;  %v3303_v30 = vrot.slane %v3301_v31, 4  ;;  %v11400_v26 = vrot.slane %v3201_v49, 9  ;;  %v3204_v16 = vld [vmem:[#allocation2 + $0x54] sm:$0xe]  ;;  %v5071_v31 = vadd.f32 %v15089_v38, %v15141_v25  ;;  %v12199_v24 = vadd.f32 %v15024_v39, %v15008_v18 }
 0x247   : > { %v3205_v17 = vld [vmem:[#allocation2 + $0x58] sm:$0xf]  ;;  %v13364_v4 = vld [vmem:[#allocation3 + $0x40c] ss:$36 sps:$4 sm:$0xff]   ;;  %3433 = vst [vmem:[#allocation3 + $0xb0] sm:$0xf] %v3302_v53  ;;  %v3309_v7 = vsel %vm14035_vm11, %v11399_v34, %v3308_v56 }
 0x248   : > { %v13366_v27 = vld [vmem:[#allocation3 + $0x408] ss:$36 sps:$4 sm:$0xff]   ;;  %v3310_v63 = vrot.slane %v3308_v56, 4  ;;  %v7999_v49 = vld [vmem:[#allocation2 + $0xcc] sm:$0xf]  ;;  %v3305_v13 = vsel %vm14035_vm11, %v3303_v30, %v3304_v50  ;;  %v3315_v23 = vrot.slane %v3202_v40, 5  ;;  %5567 = vmatprep.mubr.bf16.mxu1 %v13364_v4  ;;  %v15218_v50 = vpop.f32.mrf.mxu1  ;;  %v15223_v4 = vadd.f32 %v15137_v15, %v5066_v55 }
 0x249   : > { %v13367_v2 = vld [vmem:[#allocation3 + $0x44c] ss:$36 sps:$4 sm:$0xff]   ;;  %v8000_v8 = vld [vmem:[#allocation2 + $0xd0] sm:$0xf]  ;;  %3435 = vst [vmem:[#allocation3 + $0xf8] sm:$0xf] %v3309_v7  ;;  %5568 = vmatmul.mubr.bf16.gmra.mxu1 %v13366_v27  ;;  %v12101_v27 = vpop.f32.mrf.mxu0 }
 0x24a   : > { %v13369_v58 = vld [vmem:[#allocation3 + $0x448] ss:$36 sps:$4 sm:$0xff]   ;;  %v15214_v46 = vld [vmem:[#allocation3 + $0x474] sm:$0xff]  ;;  %3434 = vst [vmem:[#allocation3 + $0xd4] sm:$0xf] %v3305_v13  ;;  %v3312_v45 = vsel %vm14035_vm11, %v3310_v63, %v3311_v36  ;;  %v3318_v57 = vrot.slane %v3203_v60, 5  ;;  %5414 = vmatprep.mubr.bf16.mxu0 %v13367_v2  ;;  %v3316_v25 = vsel %vm14035_vm11, %v11400_v26, %v3315_v23  ;;  %v12202_v26 = vadd.f32 %v15056_v35, %v15048_v42 }
 0x24b   : > { %v3206_v34 = vld [vmem:[#allocation2 + $0x5c] sm:$0x1]  ;;  %v11401_v56 = vrot.slane %v3204_v16, 9  ;;  %v3322_v53 = vrot.slane %v3205_v17, 5  ;;  %3436 = vst [vmem:[#allocation3 + $0x11c] sm:$0xf] %v3312_v45  ;;  %5415 = vmatmul.mubr.bf16.gmra.mxu0 %v13369_v58  ;;  %v15227_v16 = vadd.f32 %v12199_v24, %v5071_v31  ;;  %v12090_v17 = vadd.f32 %v15050_v21, %v15042_v22  ;;  %v12103_v45 = vpop.f32.mrf.mxu0 }
 0x24c   : > { %v3317_v18 = vrot.slane %v3315_v23, 4  ;;  %v3325_v39 = vrot.slane %v3206_v34, 5  ;;  %v3207_v40 = vld [vmem:[#allocation2 + $0x60] sm:$0xe]  ;;  %v3208_v30 = vld [vmem:[#allocation2 + $0x64] sm:$0xf]  ;;  %v12093_v58 = vadd.f32 %v15098_v59, %v15068_v3  ;;  %v12205_v13 = vadd.f32 %v15100_v11, %v15078_v20  ;;  %v12213_v59 = vpop.f32.mrf.mxu1 }
 0x24d   : > { %v13372_v36 = vld [vmem:[#allocation3 + $0x20] ss:$36 sps:$4 sm:$0xff]   ;;  %3437 = vst [vmem:[#allocation3 + $0x140] sm:$0xf] %v3316_v25  ;;  %v3323_v60 = vsel %vm14035_vm11, %v11401_v56, %v3322_v53  ;;  %v3614_v7 = vld [vmem:[#allocation3 + $0x450] sm:$0xff]  ;;  %v3324_v55 = vrot.slane %v3322_v53, 4  ;;  %v17100_v22 = vsel %vm14044_vm12, %v15159_v28, %v15163_v0  ;;  %v5074_v3 = vadd.f32 %v15089_v38, %v12090_v17 }
 0x24e   : > { %v13370_v63 = vld [vmem:[#allocation3 + $0x454] ss:$36 sps:$4 sm:$0xff]   ;;  %v3319_v15 = vsel %vm14035_vm11, %v3317_v18, %v3318_v57  ;;  %3439 = vst [vmem:[#allocation3 + $0x188] sm:$0xf] %v3323_v60  ;;  %v3209_v2 = vld [vmem:[#allocation2 + $0x68] sm:$0x1]  ;;  %v11554_v42 = vcombine.low %v3614_v7, %v15214_v46  ;;  %12957 = vmatprep.mubr.bf16.mxu0 %v13372_v36  ;;  %v12096_v28 = vadd.f32 %v15149_v41, %v15128_v10  ;;  %v12215_v36 = vpop.f32.mrf.mxu1 }
 0x24f   : > { %8031 = vst [vmem:[#allocation3 + $0x450] sm:$0xf] %v7999_v49  ;;  %8032 = vst [vmem:[#allocation3 + $0x474] sm:$0xf] %v8000_v8  ;;  %v13373_v21 = vld [vmem:[#allocation3 + $0x68] ss:$36 sps:$4 sm:$0xff]   ;;  %5575 = vmatprep.mubr.bf16.mxu1 %v13370_v63  ;;  %v3326_v20 = vsel %vm14035_vm11, %v3324_v55, %v3325_v39  ;;  %v5079_v49 = vadd.f32 %v15089_v38, %v12093_v58  ;;  %v15253_v46 = vadd.f32 %v12202_v26, %v5074_v3 }
 0x250   : > { %8527 = vst [vmem:[#allocation3 + $0x454] sm:$0xf] %v8454_v37  ;;  %8528 = vst [vmem:[#allocation3 + $0x478] sm:$0xf] %v17100_v22  ;;  %v11402_v35 = vrot.slane %v3207_v40, 9  ;;  %v3329_v23 = vrot.slane %v3208_v30, 5  ;;  %v5082_v53 = vadd.f32 %v15089_v38, %v12096_v28  ;;  %v12208_v10 = vadd.f32 %v15151_v29, %v15130_v54  ;;  %v12104_v30 = vpop.f32.mrf.mxu0  ;;  %v12216_v55 = vpop.f32.mrf.mxu1 }
 0x251   : > { %3438 = vst [vmem:[#allocation3 + $0x164] sm:$0xf] %v3319_v15  ;;  %v3332_v11 = vrot.slane %v3209_v2, 5  ;;  %v3210_v37 = vld [vmem:[#allocation2 + $0x6c] sm:$0xe]  ;;  %v15255_v56 = vadd.f32 %v12205_v13, %v5079_v49  ;;  %v12099_v41 = vadd.f32 %v15181_v19, %v15167_v6  ;;  %v12211_v40 = vadd.f32 %v15190_v47, %v15169_v51  ;;  %5576 = vmatmul.mubr.bf16.gmra.mxu1 %v11554_v42 }
 0x252   : > { %3440 = vst [vmem:[#allocation3 + $0x1ac] sm:$0xf] %v3326_v20  ;;  %v3330_v0 = vsel %vm14035_vm11, %v11402_v35, %v3329_v23  ;;  %v3331_v8 = vrot.slane %v3329_v23, 4  ;;  %v3211_v31 = vld [vmem:[#allocation2 + $0x70] sm:$0xf]  ;;  %v11403_v24 = vrot.slane %v3210_v37, 9  ;;  %v15266_v26 = vadd.f32 %v12208_v10, %v5082_v53  ;;  %v12106_v15 = vpop.f32.mrf.mxu0 }
 0x253   : > { %v13374_v57 = vld [vmem:[#allocation3 + $0xb0] ss:$36 sps:$4 sm:$0xff]   ;;  %3441 = vst [vmem:[#allocation3 + $0x1d0] sm:$0xf] %v3330_v0  ;;  %v3212_v34 = vld [vmem:[#allocation2 + $0x74] sm:$0x1]  ;;  %v5087_v54 = vadd.f32 %v15089_v38, %v12099_v41  ;;  %v12102_v29 = vadd.f32 %v12101_v27, %v15206_v62  ;;  %v12214_v6 = vadd.f32 %v12213_v59, %v15218_v50  ;;  %12958 = vmatmul.mubr.bf16.vlgmr.msra.gmra.mxu0 %v13373_v21  ;;  %v12218_v59 = vpop.f32.mrf.mxu1 }
 0x254   : > { %v3333_v25 = vsel %vm14035_vm11, %v3331_v8, %v3332_v11  ;;  %v3336_v18 = vrot.slane %v3211_v31, 5  ;;  %v3339_v39 = vrot.slane %v3212_v34, 5  ;;  %v3213_v60 = vld [vmem:[#allocation2 + $0x78] sm:$0xe]  ;;  %v3214_v17 = vld [vmem:[#allocation2 + $0x7c] sm:$0xf]  ;;  %v12105_v63 = vadd.f32 %v12104_v30, %v12103_v45  ;;  %12961 = vmatprep.mubr.bf16.mxu0 %v13374_v57  ;;  %v12107_v3 = vpop.f32.mrf.mxu0 }
 0x255   : > { %3442 = vst [vmem:[#allocation3 + $0x1f4] sm:$0xf] %v3333_v25  ;;  %v3215_v51 = vld [vmem:[#allocation2 + $0x80] sm:$0x1]  ;;  %v11404_v47 = vrot.slane %v3213_v60, 9  ;;  %v3343_v2 = vrot.slane %v3214_v17, 5  ;;  %v15273_v13 = vadd.f32 %v12211_v40, %v5087_v54  ;;  %v5090_v62 = vadd.f32 %v15089_v38, %v12102_v29  ;;  %v12219_v57 = vpop.f32.mrf.mxu1 }
 0x256   : > { %v3337_v19 = vsel %vm14035_vm11, %v11403_v24, %v3336_v18  ;;  %v3338_v7 = vrot.slane %v3336_v18, 4  ;;  %v3346_v58 = vrot.slane %v3215_v51, 5  ;;  %v13375_v27 = vld [vmem:[#allocation3 + $0xf8] ss:$36 sps:$4 sm:$0xff]   ;;  %v3216_v22 = vld [vmem:[#allocation2 + $0x84] sm:$0xe]  ;;  %v5095_v35 = vadd.f32 %v15089_v38, %v12105_v63  ;;  %v12237_v34 = vpop.f32.mrf.mxu0 }
 0x257   : > { %3443 = vst [vmem:[#allocation3 + $0x218] sm:$0xf] %v3337_v19  ;;  %v3217_v42 = vld [vmem:[#allocation2 + $0x88] sm:$0xf]  ;;  %v3218_v21 = vld [vmem:[#allocation2 + $0x8c] sm:$0x1]  ;;  %v12217_v23 = vadd.f32 %v12216_v55, %v12215_v36  ;;  %v3344_v11 = vsel %vm14035_vm11, %v11404_v47, %v3343_v2  ;;  %v15281_v28 = vadd.f32 %v12214_v6, %v5090_v62  ;;  %v12108_v45 = vadd.f32 %v12107_v3, %v12106_v15 }
 0x258   : > { %v3340_v50 = vsel %vm14035_vm11, %v3338_v7, %v3339_v39  ;;  %v13376_v20 = vld [vmem:[#allocation3 + $0x140] ss:$36 sps:$4 sm:$0xff]   ;;  %v3345_v37 = vrot.slane %v3343_v2, 4  ;;  %v11405_v49 = vrot.slane %v3216_v22, 9  ;;  %3445 = vst [vmem:[#allocation3 + $0x260] sm:$0xf] %v3344_v11  ;;  %v12220_v18 = vadd.f32 %v12219_v57, %v12218_v59  ;;  %v12238_v17 = vpop.f32.mrf.mxu0 }
 0x259   : > { %3444 = vst [vmem:[#allocation3 + $0x23c] sm:$0xf] %v3340_v50  ;;  %v3350_v0 = vrot.slane %v3217_v42, 5  ;;  %v3353_v8 = vrot.slane %v3218_v21, 5  ;;  %v3219_v31 = vld [vmem:[#allocation2 + $0x90] sm:$0xe]  ;;  %v15283_v24 = vadd.f32 %v12217_v23, %v5095_v35  ;;  %v5098_v60 = vadd.f32 %v15089_v38, %v12108_v45 }
 0x25a   : > { %v3347_v53 = vsel %vm14035_vm11, %v3345_v37, %v3346_v58  ;;  %v3220_v10 = vld [vmem:[#allocation2 + $0x94] sm:$0xf]  ;;  %v3221_v41 = vld [vmem:[#allocation2 + $0x98] sm:$0x1]  ;;  %v11406_v25 = vrot.slane %v3219_v31, 9  ;;  %v12239_v19 = vadd.f32 %v12238_v17, %v12237_v34  ;;  %v12240_v2 = vpop.f32.mrf.mxu0  ;;  %v15303_v37 = vpop.f32.mrf.mxu1 }
 0x25b   : > { %17101 = vst [vmem:[#allocation19_spill] sm:$0xff] %v15283_v24  ;;  %v13394_v39 = vld [vmem:[#allocation9 + $0x60] sm:$0xff]   ;;  %3446 = vst [vmem:[#allocation3 + $0x284] sm:$0xf] %v3347_v53  ;;  %v3351_v40 = vsel %vm14035_vm11, %v11405_v49, %v3350_v0  ;;  %v3352_v30 = vrot.slane %v3350_v0, 4  ;;  %v3357_v36 = vrot.slane %v3220_v10, 5  ;;  %12962 = vmatmul.mubr.bf16.gmra.mxu0 %v13375_v27  ;;  %v15294_v22 = vadd.f32 %v12220_v18, %v5098_v60 }
 0x25c   : > { %3447 = vst [vmem:[#allocation3 + $0x2a8] sm:$0xf] %v3351_v40  ;;  %v3360_v54 = vrot.slane %v3221_v41, 5  ;;  %v3222_v29 = vld [vmem:[#allocation2 + $0x9c] sm:$0xe]  ;;  %12475 = vmatprep.subr.bf16.mxu1 %v13394_v39  ;;  %12965 = vmatprep.mubr.bf16.mxu0 %v13376_v20  ;;  %v15297_v27 = vadd.f32 %v12239_v19, %v14781_v52  ;;  %v12241_v23 = vpop.f32.mrf.mxu0  ;;  %v15309_v10 = vpop.f32.mrf.mxu1  ;;  %v17103_v18 = vld [vmem:[#allocation20_spill] sm:$0xff] }
 0x25d   : > { %v3223_v6 = vld [vmem:[#allocation2 + $0xa0] sm:$0xf]  ;;  %v13395_v7 = vld [vmem:[#allocation9 + $0x20] sm:$0xff]   ;;  %v3354_v51 = vsel %vm14035_vm11, %v3352_v30, %v3353_v8  ;;  %v3358_v47 = vsel %vm14035_vm11, %v11406_v25, %v3357_v36  ;;  %v3359_v63 = vrot.slane %v3357_v36, 4  ;;  %v3224_v15 = vld [vmem:[#allocation2 + $0xa4] sm:$0x1]  ;;  %v12242_v8 = vadd.f32 %v12241_v23, %v12240_v2 }
 0x25e   : > { %v11407_v55 = vrot.slane %v3222_v29, 9  ;;  %3448 = vst [vmem:[#allocation3 + $0x2cc] sm:$0xf] %v3354_v51  ;;  %3449 = vst [vmem:[#allocation3 + $0x2f0] sm:$0xf] %v3358_v47  ;;  %v3364_v38 = vrot.slane %v3223_v6, 5  ;;  %12476 = vmatpush3.bf16.msra.mxu1 %v13395_v7  ;;  %v15316_v17 = vpop.f32.mrf.mxu1 }
 0x25f   : > { %v3367_v58 = vrot.slane %v3224_v15, 5  ;;  %v3225_v62 = vld [vmem:[#allocation2 + $0xa8] sm:$0xe]  ;;  %v3226_v50 = vld [vmem:[#allocation2 + $0xac] sm:$0xf]  ;;  %17102 = vst [vmem:[#allocation34_spill] sm:$0xff] %v15294_v22  ;;  %v3361_v21 = vsel %vm14035_vm11, %v3359_v63, %v3360_v54  ;;  %v15312_v39 = vadd.f32 %v12242_v8, %v17103_v18  ;;  %v12243_v54 = vpop.f32.mrf.mxu0 }
 0x260   : > { %v13377_v42 = vld [vmem:[#allocation3 + $0x188] ss:$36 sps:$4 sm:$0xff]   ;;  %v3227_v35 = vld [vmem:[#allocation2 + $0xb0] sm:$0x1]  ;;  %3450 = vst [vmem:[#allocation3 + $0x314] sm:$0xf] %v3361_v21  ;;  %v3365_v3 = vsel %vm14035_vm11, %v11407_v55, %v3364_v38  ;;  %v15320_v55 = vpop.f32.mrf.mxu1 }
 0x261   : > { %v3366_v59 = vrot.slane %v3364_v38, 4  ;;  %v11408_v20 = vrot.slane %v3225_v62, 9  ;;  %v3371_v11 = vrot.slane %v3226_v50, 5  ;;  %3451 = vst [vmem:[#allocation3 + $0x338] sm:$0xf] %v3365_v3  ;;  %v3374_v49 = vrot.slane %v3227_v35, 5  ;;  %v12244_v47 = vpop.f32.mrf.mxu0 }
 0x262   : > { %v3228_v52 = vld [vmem:[#allocation2 + $0xb4] sm:$0xe]  ;;  %v3229_v0 = vld [vmem:[#allocation2 + $0xb8] sm:$0xf]  ;;  %v13378_v31 = vld [vmem:[#allocation3 + $0x1d0] ss:$36 sps:$4 sm:$0xff]   ;;  %v12245_v2 = vadd.f32 %v12244_v47, %v12243_v54 }
 0x263   : > { %v3368_v45 = vsel %vm14035_vm11, %v3366_v59, %v3367_v58  ;;  %v3372_v57 = vsel %vm14035_vm11, %v11408_v20, %v3371_v11  ;;  %v3373_v34 = vrot.slane %v3371_v11, 4  ;;  %v11409_v53 = vrot.slane %v3228_v52, 9  ;;  %v3230_v41 = vld [vmem:[#allocation2 + $0xbc] sm:$0x1]  ;;  %v3231_v36 = vld [vmem:[#allocation2 + $0xc0] sm:$0xe]  ;;  %12966 = vmatmul.mubr.bf16.gmra.mxu0 %v13377_v42  ;;  %v12246_v42 = vpop.f32.mrf.mxu0 }
 0x264   : > { %3452 = vst [vmem:[#allocation3 + $0x35c] sm:$0xf] %v3368_v45  ;;  %3453 = vst [vmem:[#allocation3 + $0x380] sm:$0xf] %v3372_v57  ;;  %v3378_v25 = vrot.slane %v3229_v0, 5  ;;  %v3381_v30 = vrot.slane %v3230_v41, 5  ;;  %12969 = vmatprep.mubr.bf16.mxu0 %v13378_v31  ;;  %v15331_v31 = vpop.f32.mrf.mxu1 }
 0x265   : > { %v3375_v40 = vsel %vm14035_vm11, %v3373_v34, %v3374_v49  ;;  %v3232_v60 = vld [vmem:[#allocation2 + $0xc4] sm:$0xf]  ;;  %v3233_v19 = vld [vmem:[#allocation2 + $0xc8] sm:$0x1]  ;;  %v11410_v7 = vrot.slane %v3231_v36, 9  ;;  %v17104_v3 = vld [vmem:[#allocation21_spill] sm:$0xff]  ;;  %v12247_v49 = vpop.f32.mrf.mxu0 }
 0x266   : > { %3454 = vst [vmem:[#allocation3 + $0x3a4] sm:$0xf] %v3375_v40  ;;  %v3379_v29 = vsel %vm14035_vm11, %v11409_v53, %v3378_v25  ;;  %v3380_v6 = vrot.slane %v3378_v25, 4  ;;  %v3385_v51 = vrot.slane %v3232_v60, 5  ;;  %v13379_v63 = vld [vmem:[#allocation3 + $0x218] ss:$36 sps:$4 sm:$0xff]   ;;  %v15327_v59 = vadd.f32 %v12245_v2, %v17104_v3  ;;  %v15335_v18 = vpop.f32.mrf.mxu1 }
 0x267   : > { %3455 = vst [vmem:[#allocation3 + $0x3c8] sm:$0xf] %v3379_v29  ;;  %v3388_v15 = vrot.slane %v3233_v19, 5  ;;  %v3234_v50 = vld [vmem:[#allocation2 + $0xcc] sm:$0xe]  ;;  %v12248_v45 = vadd.f32 %v12247_v49, %v12246_v42  ;;  %v17105_v40 = vld [vmem:[#allocation22_spill] sm:$0xff] }
 0x268   : > { %v3382_v38 = vsel %vm14035_vm11, %v3380_v6, %v3381_v30  ;;  %v3386_v58 = vsel %vm14035_vm11, %v11410_v7, %v3385_v51  ;;  %v3387_v62 = vrot.slane %v3385_v51, 4  ;;  %v3235_v21 = vld [vmem:[#allocation2 + $0xd0] sm:$0xf]  ;;  %v3236_v35 = vld [vmem:[#allocation2 + $0xd4] sm:$0x1]  ;;  %v11411_v23 = vrot.slane %v3234_v50, 9  ;;  %v15342_v29 = vpop.f32.mrf.mxu1  ;;  %v12249_v6 = vpop.f32.mrf.mxu0 }
 0x269   : > { %3456 = vst [vmem:[#allocation3 + $0x3ec] sm:$0xf] %v3382_v38  ;;  %3457 = vst [vmem:[#allocation3 + $0x410] sm:$0xf] %v3386_v58  ;;  %v13380_v20 = vld [vmem:[#allocation3 + $0x260] ss:$36 sps:$4 sm:$0xff]   ;;  %v15338_v30 = vadd.f32 %v12248_v45, %v17105_v40 }
 0x26a   : > { %v3389_v11 = vsel %vm14035_vm11, %v3387_v62, %v3388_v15  ;;  %v3392_v52 = vrot.slane %v3235_v21, 5  ;;  %v3395_v0 = vrot.slane %v3236_v35, 5  ;;  %v8575_v8 = vld [vmem:[#allocation2 + $0xd0] sm:$0xf]  ;;  %v8574_v57 = vld [vmem:[#allocation2 + $0xcc] sm:$0xe]  ;;  %v12250_v51 = vpop.f32.mrf.mxu0 }
 0x26b   : > { %3458 = vst [vmem:[#allocation3 + $0x434] sm:$0xf] %v3389_v11  ;;  %12970 = vmatmul.mubr.bf16.gmra.mxu0 %v13379_v63  ;;  %v8576_v41 = vld [vmem:[#allocation2 + $0xd4] sm:$0x1]  ;;  %v8732_v25 = vrot.slane %v8575_v8, 5  ;;  %v11708_v54 = vrot.slane %v8574_v57, 9  ;;  %v15344_v63 = vpop.f32.mrf.mxu1  ;;  %v12251_v15 = vadd.f32 %v12250_v51, %v12249_v6 }
 0x26c   : > { %v3393_v34 = vsel %vm14035_vm11, %v11411_v23, %v3392_v52  ;;  %v3394_v53 = vrot.slane %v3392_v52, 4  ;;  %12973 = vmatprep.mubr.bf16.mxu0 %v13380_v20  ;;  %v13381_v36 = vld [vmem:[#allocation3 + $0x2a8] ss:$36 sps:$4 sm:$0xff]   ;;  %v8735_v7 = vrot.slane %v8576_v41, 5  ;;  %v13382_v47 = vld [vmem:[#allocation3 + $0x2f0] ss:$36 sps:$4 sm:$0xff]   ;;  %v12252_v2 = vpop.f32.mrf.mxu0 }
 0x26d   : > { %3459 = vst [vmem:[#allocation3 + $0x458] sm:$0xf] %v3393_v34  ;;  %v8734_v19 = vrot.slane %v8732_v25, 4  ;;  %v17106_v38 = vld [vmem:[#allocation23_spill] sm:$0xff]  ;;  %v8733_v62 = vsel %vm14035_vm11, %v11708_v54, %v8732_v25  ;;  %v15353_v21 = vpop.f32.mrf.mxu1  ;;  %v13396_v23 = vld [vmem:[#allocation9 + $0x58] sm:$0xff]   ;;  %v17107_v52 = vld [vmem:[#allocation24_spill] sm:$0xff] }
 0x26e   : > { %v3396_v60 = vsel %vm14035_vm11, %v3394_v53, %v3395_v0  ;;  %v15347_v58 = vadd.f32 %v12251_v15, %v17106_v38  ;;  %v12253_v42 = vpop.f32.mrf.mxu0  ;;  %v13383_v3 = vld [vmem:[#allocation3 + $0x338] ss:$36 sps:$4 sm:$0xff]   ;;  %v13384_v11 = vld [vmem:[#allocation3 + $0x380] ss:$36 sps:$4 sm:$0xff]   ;;  %12477 = vmatprep.subr.bf16.mxu1 %v13396_v23  ;;  %v17113_v23 = vld [vmem:[#allocation27_spill] sm:$0xff] }
 0x26f   : > { %3460 = vst [vmem:[#allocation3 + $0x47c] sm:$0xf] %v3396_v60  ;;  %v8736_v50 = vsel %vm14035_vm11, %v8734_v19, %v8735_v7  ;;  %v12254_v35 = vadd.f32 %v12253_v42, %v12252_v2  ;;  %v15355_v49 = vpop.f32.mrf.mxu1  ;;  %v13397_v8 = vld [vmem:[#allocation9 + $0x18] sm:$0xff]  }
 0x270   : > { %12478 = vmatpush3.bf16.msra.mxu1 %v13397_v8  ;;  %v12255_v57 = vpop.f32.mrf.mxu0  ;;  %v13385_v25 = vld [vmem:[#allocation3 + $0x3c8] ss:$36 sps:$4 sm:$0xff]   ;;  %v17109_v60 = vld [vmem:[#allocation25_spill] sm:$0xff] }
 0x271   : > { %v15358_v0 = vadd.f32 %v12254_v35, %v17107_v52  ;;  %v15360_v45 = vpop.f32.mrf.mxu1 }
 0x272   : > { %v12256_v34 = vpop.f32.mrf.mxu0 }
 0x273   : > { %12974 = vmatmul.mubr.bf16.gmra.mxu0 %v13381_v36  ;;  %17108 = vst [vmem:[#allocation20_spill] sm:$0xff] %v15358_v0  ;;  %v15362_v53 = vpop.f32.mrf.mxu1  ;;  %v12257_v41 = vadd.f32 %v12256_v34, %v12255_v57  ;;  %v13386_v36 = vld [vmem:[#allocation3 + $0x410] ss:$36 sps:$4 sm:$0xff]  }
 0x274   : > { %12977 = vmatprep.mubr.bf16.mxu0 %v13382_v47  ;;  %v12258_v40 = vpop.f32.mrf.mxu0  ;;  %v17111_v47 = vld [vmem:[#allocation26_spill] sm:$0xff]  ;;  %v17115_v57 = vld [vmem:[#allocation28_spill] sm:$0xff] }
 0x275   : > { %v15365_v54 = vadd.f32 %v12257_v41, %v17109_v60  ;;  %v15367_v19 = vpop.f32.mrf.mxu1  ;;  %v13398_v60 = vld [vmem:[#allocation9 + $0x50] sm:$0xff]  }
 0x276   : > { %v13387_v20 = vld [vmem:[#allocation3 + $0x458] ss:$36 sps:$4 sm:$0xff]   ;;  %v12259_v6 = vpop.f32.mrf.mxu0  ;;  %12479 = vmatprep.subr.bf16.mxu1 %v13398_v60 }
 0x277   : > { %8799 = vst [vmem:[#allocation3 + $0x458] sm:$0xf] %v8733_v62  ;;  %8800 = vst [vmem:[#allocation3 + $0x47c] sm:$0xf] %v8736_v50  ;;  %v12260_v7 = vadd.f32 %v12259_v6, %v12258_v40  ;;  %v15369_v51 = vpop.f32.mrf.mxu1  ;;  %v13399_v6 = vld [vmem:[#allocation9 + $0x10] sm:$0xff]  }
 0x278   : > { %17110 = vst [vmem:[#allocation21_spill] sm:$0xff] %v15365_v54  ;;  %v12261_v38 = vpop.f32.mrf.mxu0  ;;  %12480 = vmatpush3.bf16.msra.mxu1 %v13399_v6  ;;  %v13412_v54 = vld [vmem:[#allocation9 + $0x98] sm:$0xff]  }
 0x279   : > { %v15372_v15 = vadd.f32 %v12260_v7, %v17111_v47  ;;  %v15374_v2 = vpop.f32.mrf.mxu1 }
 0x27a   : > { %v12262_v62 = vpop.f32.mrf.mxu0 }
 0x27b   : > { %12978 = vmatmul.mubr.bf16.gmra.mxu0 %v13383_v3  ;;  %17112 = vst [vmem:[#allocation22_spill] sm:$0xff] %v15372_v15  ;;  %v12263_v50 = vadd.f32 %v12262_v62, %v12261_v38  ;;  %v15376_v42 = vpop.f32.mrf.mxu1  ;;  %v17125_v15 = vld [vmem:[#allocation33_spill] sm:$0xff] }
 0x27c   : > { %12981 = vmatprep.mubr.bf16.mxu0 %v13384_v11  ;;  %v12264_v35 = vpop.f32.mrf.mxu0 }
 0x27d   : > { %v15379_v3 = vadd.f32 %v12263_v50, %v17113_v23  ;;  %v15381_v8 = vpop.f32.mrf.mxu1 }
 0x27e   : > { %v12265_v11 = vpop.f32.mrf.mxu0 }
 0x27f   : > { %17114 = vst [vmem:[#allocation23_spill] sm:$0xff] %v15379_v3  ;;  %v12266_v52 = vadd.f32 %v12265_v11, %v12264_v35  ;;  %v15386_v41 = vpop.f32.mrf.mxu1  ;;  %v17119_v11 = vld [vmem:[#allocation30_spill] sm:$0xff] }
 0x281   : > { %v15384_v34 = vadd.f32 %v12266_v52, %v17115_v57  ;;  %v15388_v40 = vpop.f32.mrf.mxu1 }
 0x283   : > { %12982 = vmatmul.mubr.bf16.gmra.mxu0 %v13385_v25  ;;  %17116 = vst [vmem:[#allocation24_spill] sm:$0xff] %v15384_v34  ;;  %v12267_v25 = vpop.f32.mrf.mxu0  ;;  %v15390_v47 = vpop.f32.mrf.mxu1  ;;  %v17123_v34 = vld [vmem:[#allocation32_spill] sm:$0xff] }
 0x284   : > { %12985 = vmatprep.mubr.bf16.mxu0 %v13386_v36 }
 0x285   : > { %v12268_v36 = vpop.f32.mrf.mxu0  ;;  %v15395_v23 = vpop.f32.mrf.mxu1 }
 0x286   : > { %v12269_v7 = vadd.f32 %v12268_v36, %v12267_v25  ;;  %v13400_v36 = vld [vmem:[#allocation9 + $0xf8] sm:$0xff]  }
 0x287   : > { %v12270_v38 = vpop.f32.mrf.mxu0  ;;  %v15400_v57 = vpop.f32.mrf.mxu1  ;;  %12581 = vmatprep.subr.bf16.mxu0 %v13400_v36 }
 0x288   : > { %12582 = vmatpush3.bf16.msra.mxu0 %v13402_v48 }
 0x289   : > { %v12271_v50 = vpop.f32.mrf.mxu0  ;;  %v15402_v12 = vpop.f32.mrf.mxu1 }
 0x28a   : > { %v12272_v35 = vadd.f32 %v12271_v50, %v12270_v38  ;;  %v17121_v38 = vld [vmem:[#allocation31_spill] sm:$0xff]  ;;  %v13404_v50 = vld [vmem:[#allocation9 + $0xf0] sm:$0xff]  }
 0x28b   : > { %12986 = vmatmul.mubr.bf16.gmra.mxu0 %v13387_v20  ;;  %v17117_v20 = vld [vmem:[#allocation29_spill] sm:$0xff]  ;;  %v12273_v25 = vpop.f32.mrf.mxu0  ;;  %v15404_v60 = vpop.f32.mrf.mxu1  ;;  %12583 = vmatprep.subr.bf16.mxu0 %v13404_v50 }
 0x28c   : > { %v15393_v62 = vadd.f32 %v12269_v7, %v17117_v20  ;;  %v15398_v52 = vadd.f32 %v12272_v35, %v17119_v11  ;;  %v13405_v11 = vld [vmem:[#allocation9 + $0xb0] sm:$0xff]  }
 0x28d   : > { %v12274_v1 = vpop.f32.mrf.mxu0  ;;  %12584 = vmatpush3.bf16.msra.mxu0 %v13405_v11  ;;  %v13403_v11 = vld [vmem:[#allocation9 + $0x8] sm:$0xff]  }
 0x28e   : > { %17118 = vst [vmem:[#allocation25_spill] sm:$0xff] %v15393_v62  ;;  %17120 = vst [vmem:[#allocation26_spill] sm:$0xff] %v15398_v52  ;;  %v12275_v7 = vadd.f32 %v12274_v1, %v12273_v25  ;;  %v13406_v1 = vld [vmem:[#allocation9 + $0xe8] sm:$0xff]  }
 0x28f   : > { %v12276_v6 = vpop.f32.mrf.mxu0  ;;  %v13407_v25 = vld [vmem:[#allocation9 + $0xa8] sm:$0xff]   ;;  %12585 = vmatprep.subr.bf16.mxu0 %v13406_v1 }
 0x290   : > { %v15407_v20 = vadd.f32 %v12275_v7, %v17121_v38  ;;  %v15409_v22 = vpop.f32.mrf.mxu1  ;;  %v13408_v38 = vld [vmem:[#allocation9 + $0xe0] sm:$0xff]  }
 0x291   : > { %v12277_v35 = vpop.f32.mrf.mxu0  ;;  %12586 = vmatpush3.bf16.msra.mxu0 %v13407_v25  ;;  %v13410_v25 = vld [vmem:[#allocation9 + $0xd8] sm:$0xff]  }
 0x292   : > { %17122 = vst [vmem:[#allocation27_spill] sm:$0xff] %v15407_v20  ;;  %v12278_v52 = vadd.f32 %v12277_v35, %v12276_v6  ;;  %v15411_v62 = vpop.f32.mrf.mxu1  ;;  %v13409_v6 = vld [vmem:[#allocation9 + $0xa0] sm:$0xff]   ;;  %v13401_v35 = vld [vmem:[#allocation9 + $0x48] sm:$0xff]   ;;  %12587 = vmatprep.subr.bf16.mxu0 %v13408_v38  ;;  %v13415_v38 = vld [vmem:[#allocation9 + $0x90] sm:$0xff]  }
 0x293   : > { %12481 = vmatprep.subr.bf16.mxu1 %v13401_v35 }
 0x294   : > { %v15414_v3 = vadd.f32 %v12278_v52, %v17123_v34  ;;  %v15416_v36 = vpop.f32.mrf.mxu1  ;;  %v12279_v48 = vpop.f32.mrf.mxu0  ;;  %12482 = vmatpush3.bf16.msra.mxu1 %v13403_v11 }
 0x295   : > { %12588 = vmatpush3.bf16.msra.mxu0 %v13409_v6 }
 0x296   : > { %17124 = vst [vmem:[#allocation28_spill] sm:$0xff] %v15414_v3  ;;  %v12280_v7 = vpop.f32.mrf.mxu0  ;;  %v15418_v20 = vpop.f32.mrf.mxu1  ;;  %12589 = vmatprep.subr.bf16.mxu0 %v13410_v25  ;;  %v13420_v25 = vld [vmem:[#allocation3 + $0x4] ss:$36 sps:$4 sm:$0xff]  }
 0x297   : > { %v12281_v24 = vadd.f32 %v12280_v7, %v12279_v48  ;;  %10344 = vmatprep.mubr.bf16.mxu1 %v13420_v25 }
 0x298   : > { %v12282_v50 = vpop.f32.mrf.mxu0 }
 0x299   : > { %v15421_v34 = vadd.f32 %v12281_v24, %v17125_v15  ;;  %12590 = vmatpush3.bf16.msra.mxu0 %v13412_v54  ;;  %v13414_v15 = vld [vmem:[#allocation9 + $0xd0] sm:$0xff]   ;;  %v13417_v54 = vld [vmem:[#allocation9 + $0x88] sm:$0xff]  }
 0x29a   : > { %v12283_v52 = vpop.f32.mrf.mxu0  ;;  %12591 = vmatprep.subr.bf16.mxu0 %v13414_v15  ;;  %v13418_v15 = vld [vmem:[#allocation3] ss:$36 sps:$4 sm:$0xff]  }
 0x29b   : > { %17126 = vst [vmem:[#allocation29_spill] sm:$0xff] %v15421_v34  ;;  %v12284_v1 = vadd.f32 %v12283_v52, %v12282_v50  ;;  %v13411_v34 = vld [vmem:[#allocation9 + $0x40] sm:$0xff]  }
 0x29c   : > { %v15423_v3 = vpop.f32.mrf.mxu1  ;;  %v13413_v52 = vld [vmem:[#allocation9] sm:$0xff]   ;;  %12483 = vmatprep.subr.bf16.mxu1 %v13411_v34 }
 0x29d   : > { %v15428_v48 = vadd.f32 %v12284_v1, %v14989_v43  ;;  %12592 = vmatpush3.bf16.msra.mxu0 %v13415_v38  ;;  %12484 = vmatpush3.bf16.msra.mxu1 %v13413_v52  ;;  %v13421_v38 = vld [vmem:[#allocation9 + $0xc0] sm:$0xff]  }
 0x29e   : > { %v15425_v0 = vpop.f32.mrf.mxu1  ;;  %v13422_v34 = vld [vmem:[#allocation9 + $0x80] sm:$0xff]  }
 0x29f   : > { %17127 = vst [vmem:[#allocation30_spill] sm:$0xff] %v15425_v0  ;;  %17128 = vst [vmem:[#allocation31_spill] sm:$0xff] %v15428_v48  ;;  %v13416_v0 = vld [vmem:[#allocation9 + $0xc8] sm:$0xff]  }
 0x2a0   : > { %v15430_v7 = vpop.f32.mrf.mxu1  ;;  %v12285_v24 = vpop.f32.mrf.mxu0  ;;  %12593 = vmatprep.subr.bf16.mxu0 %v13416_v0  ;;  %10345 = vmatmul.mubr.bf16.vlgmr.msra.gmra.mxu1 %v13418_v15 }
 0x2a1   : > { %12594 = vmatpush3.bf16.msra.mxu0 %v13417_v54 }
 0x2a2   : > { %v12286_v6 = vpop.f32.mrf.mxu0  ;;  %v15432_v50 = vpop.f32.mrf.mxu1  ;;  %12595 = vmatprep.subr.bf16.mxu0 %v13421_v38 }
 0x2a3   : > { %v12287_v35 = vadd.f32 %v12286_v6, %v12285_v24  ;;  %17129 = vst [vmem:[#allocation32_spill] sm:$0xff] %v15432_v50 }
 0x2a4   : > { %v12288_v11 = vpop.f32.mrf.mxu0 }
 0x2a5   : > { %v15435_v43 = vadd.f32 %v12287_v35, %v15011_v44  ;;  %12596 = vmatpush3.bf16.msra.mxu0 %v13422_v34 }
 0x2a6   : > { %v12289_v1 = vpop.f32.mrf.mxu0 }
 0x2a7   : > { %17130 = vst [vmem:[#allocation33_spill] sm:$0xff] %v15435_v43  ;;  %v12290_v48 = vadd.f32 %v12289_v1, %v12288_v11 }
 0x2a9   : > { %v15440_v6 = vadd.f32 %v12290_v48, %v15034_v14 }
 0x2aa   : > { %v15437_v24 = vpop.f32.mrf.mxu1 }
 0x2ab   : > { %17131 = vst [vmem:[#allocation35_spill] sm:$0xff] %v15440_v6 }
 0x2ac   : > { %v15442_v50 = vpop.f32.mrf.mxu1 }
 0x2ae   : > { %v15444_v44 = vpop.f32.mrf.mxu1  ;;  %v12291_v35 = vpop.f32.mrf.mxu0 }
 0x2af   : > { %17132 = vst [vmem:[#allocation36_spill] sm:$0xff] %v15444_v44 }
 0x2b0   : > { %v12292_v0 = vpop.f32.mrf.mxu0  ;;  %v15446_v11 = vpop.f32.mrf.mxu1 }
 0x2b1   : > { %17133 = vst [vmem:[#allocation37_spill] sm:$0xff] %v15446_v11  ;;  %v12293_v52 = vadd.f32 %v12292_v0, %v12291_v35 }
 0x2b2   : > { %v12294_v54 = vpop.f32.mrf.mxu0 }
 0x2b3   : > { %v15449_v1 = vadd.f32 %v12293_v52, %v15052_v61 }
 0x2b4   : > { %v12295_v25 = vpop.f32.mrf.mxu0 }
 0x2b5   : > { %17134 = vst [vmem:[#allocation38_spill] sm:$0xff] %v15449_v1  ;;  %v12296_v48 = vadd.f32 %v12295_v25, %v12294_v54  ;;  %v13426_v1 = vld [vmem:[#allocation9 + $0x178] sm:$0xff]  }
 0x2b6   : > { %v13427_v54 = vld [vmem:[#allocation9 + $0x138] sm:$0xff]   ;;  %12693 = vmatprep.subr.bf16.mxu1 %v13426_v1 }
 0x2b7   : > { %v15451_v14 = vpop.f32.mrf.mxu1  ;;  %v15456_v38 = vadd.f32 %v12296_v48, %v15054_v9  ;;  %12694 = vmatpush3.bf16.msra.mxu1 %v13427_v54 }
 0x2b9   : > { %v15453_v15 = vpop.f32.mrf.mxu1  ;;  %17135 = vst [vmem:[#allocation39_spill] sm:$0xff] %v15456_v38 }
 0x2ba   : > { %v12297_v6 = vpop.f32.mrf.mxu0 }
 0x2bb   : > { %v15458_v43 = vpop.f32.mrf.mxu1 }
 0x2bc   : > { %v12298_v34 = vpop.f32.mrf.mxu0 }
 0x2bd   : > { %v12299_v44 = vadd.f32 %v12298_v34, %v12297_v6  ;;  %v15460_v35 = vpop.f32.mrf.mxu1 }
 0x2be   : > { %v12300_v11 = vpop.f32.mrf.mxu0  ;;  %17136 = vst [vmem:[#allocation40_spill] sm:$0xff] %v15460_v35 }
 0x2bf   : > { %v15463_v61 = vadd.f32 %v12299_v44, %v15108_v5 }
 0x2c0   : > { %v12301_v0 = vpop.f32.mrf.mxu0 }
 0x2c1   : > { %17137 = vst [vmem:[#allocation41_spill] sm:$0xff] %v15463_v61  ;;  %v12302_v52 = vadd.f32 %v12301_v0, %v12300_v11 }
 0x2c3   : > { %v15468_v9 = vadd.f32 %v12302_v52, %v15133_v32 }
 0x2c5   : > { %17139 = vst [vmem:[#allocation43_spill] sm:$0xff] %v15468_v9 }
 0x2c6   : > { %v15465_v25 = vpop.f32.mrf.mxu1 }
 0x2c7   : > { %17138 = vst [vmem:[#allocation42_spill] sm:$0xff] %v15465_v25  ;;  %v12303_v6 = vpop.f32.mrf.mxu0 }
 0x2c8   : > { %v15470_v48 = vpop.f32.mrf.mxu1 }
 0x2c9   : > { %v12304_v38 = vpop.f32.mrf.mxu0 }
 0x2ca   : > { %v15472_v34 = vpop.f32.mrf.mxu1  ;;  %v12305_v35 = vadd.f32 %v12304_v38, %v12303_v6 }
 0x2cb   : > { %v12306_v44 = vpop.f32.mrf.mxu0 }
 0x2cc   : > { %v15474_v5 = vpop.f32.mrf.mxu1  ;;  %v15477_v11 = vadd.f32 %v12305_v35, %v15202_v33 }
 0x2cd   : > { %17140 = vst [vmem:[#allocation44_spill] sm:$0xff] %v15474_v5  ;;  %v12307_v0 = vpop.f32.mrf.mxu0 }
 0x2ce   : > { %17141 = vst [vmem:[#allocation45_spill] sm:$0xff] %v15477_v11  ;;  %v12308_v61 = vadd.f32 %v12307_v0, %v12306_v44 }
 0x2d0   : > { %v15482_v32 = vadd.f32 %v12308_v61, %v15223_v4 }
 0x2d2   : > { %17142 = vst [vmem:[#allocation46_spill] sm:$0xff] %v15482_v32 }
 0x2d3   : > { %v15479_v25 = vpop.f32.mrf.mxu1 }
 0x2d5   : > { %v15484_v1 = vpop.f32.mrf.mxu1 }
 0x2d6   : > { %17143 = vst [vmem:[#allocation47_spill] sm:$0xff] %v15484_v1 }
 0x2d7   : > { %v12309_v52 = vpop.f32.mrf.mxu0  ;;  %v15486_v54 = vpop.f32.mrf.mxu1 }
 0x2d8   : > { %17144 = vst [vmem:[#allocation48_spill] sm:$0xff] %v15486_v54 }
 0x2d9   : > { %v12310_v9 = vpop.f32.mrf.mxu0  ;;  %v15491_v33 = vpop.f32.mrf.mxu1 }
 0x2da   : > { %v12311_v38 = vadd.f32 %v12310_v9, %v12309_v52 }
 0x2db   : > { %v12312_v6 = vpop.f32.mrf.mxu0 }
 0x2dc   : > { %v15489_v5 = vadd.f32 %v12311_v38, %v15227_v16 }
 0x2dd   : > { %v12313_v35 = vpop.f32.mrf.mxu0 }
 0x2de   : > { %17145 = vst [vmem:[#allocation49_spill] sm:$0xff] %v15489_v5  ;;  %v12314_v44 = vadd.f32 %v12313_v35, %v12312_v6 }
 0x2e0   : > { %v15494_v0 = vadd.f32 %v12314_v44, %v15253_v46  ;;  %v15496_v4 = vpop.f32.mrf.mxu1  ;;  %v13443_v44 = vld [vmem:[#allocation9 + $0x170] sm:$0xff]  }
 0x2e1   : > { %12695 = vmatprep.subr.bf16.mxu1 %v13443_v44  ;;  %v12366_v44 = vadd.f32 %v15362_v53, %v15360_v45  ;;  %v12381_v45 = vadd.f32 %v15400_v57, %v15395_v23  ;;  %v17153_v57 = vld [vmem:[#allocation22_spill] sm:$0xff] }
 0x2e2   : > { %17146 = vst [vmem:[#allocation50_spill] sm:$0xff] %v15494_v0  ;;  %v15498_v11 = vpop.f32.mrf.mxu1 }
 0x2e3   : > { %17147 = vst [vmem:[#allocation51_spill] sm:$0xff] %v15498_v11 }
 0x2e4   : > { %v12315_v61 = vpop.f32.mrf.mxu0  ;;  %v15503_v52 = vpop.f32.mrf.mxu1 }
 0x2e6   : > { %v12316_v32 = vpop.f32.mrf.mxu0  ;;  %v15508_v46 = vpop.f32.mrf.mxu1 }
 0x2e7   : > { %v12317_v54 = vadd.f32 %v12316_v32, %v12315_v61 }
 0x2e8   : > { %v12318_v1 = vpop.f32.mrf.mxu0 }
 0x2e9   : > { %v15501_v9 = vadd.f32 %v12317_v54, %v15255_v56 }
 0x2ea   : > { %v12319_v16 = vpop.f32.mrf.mxu0 }
 0x2eb   : > { %17148 = vst [vmem:[#allocation52_spill] sm:$0xff] %v15501_v9  ;;  %v12320_v38 = vadd.f32 %v12319_v16, %v12318_v1  ;;  %v13447_v1 = vld [vmem:[#allocation9 + $0x130] sm:$0xff]  }
 0x2ec   : > { %12696 = vmatpush3.bf16.msra.mxu1 %v13447_v1 }
 0x2ed   : > { %v15506_v6 = vadd.f32 %v12320_v38, %v15266_v26  ;;  %v15510_v11 = vpop.f32.mrf.mxu1 }
 0x2ef   : > { %v15515_v9 = vpop.f32.mrf.mxu1 }
 0x2f1   : > { %v15520_v16 = vpop.f32.mrf.mxu1 }
 0x2f2   : > { %v12321_v35 = vpop.f32.mrf.mxu0 }
 0x2f3   : > { %v15522_v38 = vpop.f32.mrf.mxu1 }
 0x2f4   : > { %v12322_v0 = vpop.f32.mrf.mxu0 }
 0x2f5   : > { %v12323_v5 = vadd.f32 %v12322_v0, %v12321_v35  ;;  %v12351_v0 = vadd.f32 %v15309_v10, %v15303_v37  ;;  %v12360_v35 = vadd.f32 %v15344_v63, %v15342_v29  ;;  %v12369_v37 = vadd.f32 %v15369_v51, %v15367_v19  ;;  %v13457_v51 = vld [vmem:[#allocation9 + $0x168] sm:$0xff]  }
 0x2f6   : > { %v12324_v32 = vpop.f32.mrf.mxu0  ;;  %v12372_v10 = vadd.f32 %v15376_v42, %v15374_v2  ;;  %v12378_v29 = vadd.f32 %v15390_v47, %v15388_v40  ;;  %v12390_v2 = vadd.f32 %v15418_v20, %v15416_v36  ;;  %12697 = vmatprep.subr.bf16.mxu1 %v13457_v51  ;;  %v17155_v20 = vld [vmem:[#allocation37_spill] sm:$0xff] }
 0x2f7   : > { %v15513_v56 = vadd.f32 %v12323_v5, %v15273_v13  ;;  %v12354_v13 = vadd.f32 %v15320_v55, %v15316_v17  ;;  %v12357_v5 = vadd.f32 %v15335_v18, %v15331_v31  ;;  %v5458_v55 = vadd.f32 %v12351_v0, %v15297_v27  ;;  %v17157_v0 = vld [vmem:[#allocation23_spill] sm:$0xff] }
 0x2f8   : > { %v12325_v54 = vpop.f32.mrf.mxu0  ;;  %v12375_v18 = vadd.f32 %v15386_v41, %v15381_v8  ;;  %v12384_v27 = vadd.f32 %v15404_v60, %v15402_v12  ;;  %v17150_v41 = vld [vmem:[#allocation20_spill] sm:$0xff]  ;;  %v15578_v60 = vadd.f32 %v12372_v10, %v17153_v57  ;;  %v17161_v10 = vld [vmem:[#allocation27_spill] sm:$0xff] }
 0x2f9   : > { %v12326_v61 = vadd.f32 %v12325_v54, %v12324_v32  ;;  %v15544_v31 = vadd.f32 %v12354_v13, %v15312_v39  ;;  %v12387_v39 = vadd.f32 %v15411_v62, %v15409_v22  ;;  %v15568_v40 = vadd.f32 %v12366_v44, %v17150_v41  ;;  %v17151_v12 = vld [vmem:[#allocation32_spill] sm:$0xff]  ;;  %v17152_v62 = vld [vmem:[#allocation21_spill] sm:$0xff]  ;;  %v17160_v44 = vld [vmem:[#allocation26_spill] sm:$0xff] }
 0x2fa   : > { %v12396_v22 = vadd.f32 %v17151_v12, %v15430_v7  ;;  %v15575_v23 = vadd.f32 %v12369_v37, %v17152_v62  ;;  %v15586_v7 = vadd.f32 %v12375_v18, %v17157_v0  ;;  %v17158_v13 = vld [vmem:[#allocation24_spill] sm:$0xff]  ;;  %v15597_v37 = vadd.f32 %v12384_v27, %v17160_v44 }
 0x2fb   : > { %v15518_v26 = vadd.f32 %v12326_v61, %v15281_v28  ;;  %v12363_v28 = vadd.f32 %v15355_v49, %v15353_v21  ;;  %v5466_v21 = vadd.f32 %v12357_v5, %v15327_v59  ;;  %v5469_v49 = vadd.f32 %v12360_v35, %v15338_v30  ;;  %v17149_v59 = vld [vmem:[#allocation30_spill] sm:$0xff]  ;;  %v17156_v61 = vld [vmem:[#allocation19_spill] sm:$0xff]  ;;  %v17159_v35 = vld [vmem:[#allocation25_spill] sm:$0xff] }
 0x2fc   : > { %v12393_v30 = vadd.f32 %v17149_v59, %v15423_v3  ;;  %v17154_v3 = vld [vmem:[#allocation36_spill] sm:$0xff] }
 0x2fd   : > { %v15559_v19 = vadd.f32 %v12363_v28, %v15347_v58  ;;  %v12399_v58 = vadd.f32 %v15442_v50, %v15437_v24  ;;  %v12402_v36 = vadd.f32 %v17155_v20, %v17154_v3  ;;  %v15589_v50 = vadd.f32 %v12378_v29, %v17158_v13  ;;  %v17163_v29 = vld [vmem:[#allocation29_spill] sm:$0xff]  ;;  %v17164_v41 = vld [vmem:[#allocation28_spill] sm:$0xff]  ;;  %v17171_v13 = vld [vmem:[#allocation35_spill] sm:$0xff] }
 0x2fe   : > { %v12405_v24 = vadd.f32 %v15453_v15, %v15451_v14  ;;  %v15594_v28 = vadd.f32 %v12381_v45, %v17159_v35  ;;  %v15608_v14 = vadd.f32 %v12390_v2, %v17164_v41  ;;  %v17165_v15 = vld [vmem:[#allocation42_spill] sm:$0xff]  ;;  %v17166_v27 = vld [vmem:[#allocation44_spill] sm:$0xff]  ;;  %v17168_v3 = vld [vmem:[#allocation33_spill] sm:$0xff] }
 0x2ff   : > { %v12411_v45 = vadd.f32 %v15470_v48, %v17165_v15  ;;  %v12414_v12 = vadd.f32 %v17166_v27, %v15472_v34  ;;  %v15626_v48 = vadd.f32 %v12402_v36, %v17171_v13 }
 0x309   : > { %v15536_v32 = vpop.f32.mrf.mxu1 }
 0x30b   : > { %v12327_v17 = vpop.f32.mrf.mxu0  ;;  %v12434_v63 = vpop.f32.mrf.mxu1 }
 0x30d   : > { %v12328_v53 = vpop.f32.mrf.mxu0  ;;  %v15565_v42 = vpop.f32.mrf.mxu1 }
 0x30e   : > { %v12329_v8 = vadd.f32 %v12328_v53, %v12327_v17  ;;  %v15600_v17 = vadd.f32 %v12387_v39, %v17161_v10  ;;  %v17162_v53 = vld [vmem:[#allocation40_spill] sm:$0xff]  ;;  %v17167_v39 = vld [vmem:[#allocation31_spill] sm:$0xff]  ;;  %v17174_v10 = vld [vmem:[#allocation38_spill] sm:$0xff] }
 0x30f   : > { %v12330_v47 = vpop.f32.mrf.mxu0  ;;  %v12437_v54 = vpop.f32.mrf.mxu1  ;;  %v12408_v18 = vadd.f32 %v17162_v53, %v15458_v43  ;;  %v15615_v57 = vadd.f32 %v12396_v22, %v17167_v39  ;;  %v15618_v43 = vadd.f32 %v12399_v58, %v17168_v3  ;;  %v17173_v22 = vld [vmem:[#allocation51_spill] sm:$0xff]  ;;  %v12426_v58 = vadd.f32 %v15508_v46, %v15503_v52  ;;  %v17176_v46 = vld [vmem:[#allocation41_spill] sm:$0xff] }
 0x310   : > { %v15583_v1 = vadd.f32 %v12329_v8, %v17156_v61  ;;  %v15605_v8 = vadd.f32 %v12393_v30, %v17163_v29  ;;  %v17169_v30 = vld [vmem:[#allocation47_spill] sm:$0xff]  ;;  %v17170_v61 = vld [vmem:[#allocation34_spill] sm:$0xff]  ;;  %v12423_v35 = vadd.f32 %v17173_v22, %v15496_v4  ;;  %v15635_v53 = vadd.f32 %v12405_v24, %v17174_v10  ;;  %v17178_v39 = vld [vmem:[#allocation45_spill] sm:$0xff] }
 0x311   : > { %v12331_v5 = vpop.f32.mrf.mxu0  ;;  %v12439_v51 = vpop.f32.mrf.mxu1  ;;  %v12417_v20 = vadd.f32 %v17169_v30, %v15479_v25  ;;  %v12429_v25 = vadd.f32 %v15515_v9, %v15510_v11  ;;  %v17175_v29 = vld [vmem:[#allocation39_spill] sm:$0xff]  ;;  %v12435_v4 = vadd.f32 %v12434_v63, %v15536_v32  ;;  %v15646_v15 = vadd.f32 %v12411_v45, %v17176_v46  ;;  %v17181_v32 = vld [vmem:[#allocation50_spill] sm:$0xff] }
 0x312   : > { %v12332_v59 = vadd.f32 %v12331_v5, %v12330_v47  ;;  %v13461_v47 = vld [vmem:[#allocation9 + $0x128] sm:$0xff]   ;;  %v17172_v5 = vld [vmem:[#allocation48_spill] sm:$0xff]  ;;  %v15640_v41 = vadd.f32 %v12408_v18, %v17175_v29  ;;  %v15661_v63 = vadd.f32 %v12426_v58, %v17181_v32  ;;  %v6200_v10 = vld [vmem:[#allocation2 + $0x18] sm:$0xf] }
 0x313   : > { %v12959_v62 = vpop.f32.mrf.mxu0  ;;  %v12420_v34 = vadd.f32 %v15491_v33, %v17172_v5  ;;  %12698 = vmatpush3.bf16.msra.mxu1 %v13461_v47  ;;  %v12432_v33 = vadd.f32 %v15522_v38, %v15520_v16  ;;  %v17177_v24 = vld [vmem:[#allocation43_spill] sm:$0xff]  ;;  %v17179_v47 = vld [vmem:[#allocation46_spill] sm:$0xff]  ;;  %v17180_v16 = vld [vmem:[#allocation49_spill] sm:$0xff] }
 0x314   : > { %v15623_v2 = vadd.f32 %v12332_v59, %v17170_v61  ;;  %v5627_v0 = vadd.f32 %v12959_v62, %v5466_v21  ;;  %v12440_v21 = vpop.f32.mrf.mxu1  ;;  %v15649_v27 = vadd.f32 %v12414_v12, %v17177_v24  ;;  %v15658_v38 = vadd.f32 %v12423_v35, %v17180_v16 }
 0x315   : > { %v5618_v44 = vpop.f32.mrf.mxu0  ;;  %v12441_v18 = vadd.f32 %v12440_v21, %v12439_v51  ;;  %v15655_v30 = vadd.f32 %v12420_v34, %v17179_v47  ;;  %v15671_v5 = vadd.f32 %v12432_v33, %v15506_v6  ;;  %v15674_v34 = vadd.f32 %v12435_v4, %v15513_v56  ;;  %v6193_v56 = vld [vmem:[#allocation2 + $0xc] sm:$0xf] }
 0x316   : > { %v5747_v36 = vmax.f32 %v5627_v0, 0.0  ;;  %v5619_v59 = vadd.f32 %v5618_v44, %v5458_v55  ;;  %v15652_v55 = vadd.f32 %v12417_v20, %v17178_v39  ;;  %v17182_v0 = vld [vmem:[#allocation52_spill] sm:$0xff] }
 0x317   : > { %v12960_v52 = vpop.f32.mrf.mxu0  ;;  %v15664_v13 = vadd.f32 %v12429_v25, %v17182_v0 }
 0x318   : > { %v11966_v62 = vpack.c.bf16 %v5747_v36, %v5747_v36  ;;  %v5745_v11 = vmax.f32 %v5619_v59, 0.0  ;;  %v5630_v9 = vadd.f32 %v12960_v52, %v5469_v49  ;;  %v15667_v49 = vadd.f32 %v12437_v54, %v15565_v42 }
 0x319   : > { %v5621_v3 = vpop.f32.mrf.mxu0  ;;  %v15678_v54 = vadd.f32 %v12441_v18, %v15583_v1 }
 0x31a   : > { %v5891_v45 = vshrl.u32 %v11966_v62, 16  ;;  %v11964_v12 = vpack.c.bf16 %v5745_v11, %v5745_v11  ;;  %v5748_v61 = vmax.f32 %v5630_v9, 0.0  ;;  %v5622_v51 = vadd.f32 %v5621_v3, %v15544_v31  ;;  %v13471_v31 = vld [vmem:[#allocation9 + $0x160] sm:$0xff]   ;;  %v6204_v3 = vld [vmem:[#allocation2 + $0x20] sm:$0x1] }
 0x31b   : > { %v12963_v20 = vpop.f32.mrf.mxu0  ;;  %v5894_v35 = vshll.u32 %v11966_v62, 16  ;;  %12699 = vmatprep.subr.bf16.mxu1 %v13471_v31  ;;  %v13475_v11 = vld [vmem:[#allocation9 + $0x120] sm:$0xff]  }
 0x31c   : > { %v5893_v22 = vrot.slane %v5891_v45, 7  ;;  %v5874_v58 = vshrl.u32 %v11964_v12, 16  ;;  %v11967_v44 = vpack.c.bf16 %v5748_v61, %v5748_v61  ;;  %v5877_v21 = vshll.u32 %v11964_v12, 16  ;;  %12700 = vmatpush3.bf16.msra.mxu1 %v13475_v11  ;;  %v13482_v11 = vld [vmem:[#allocation9 + $0x1f8] sm:$0xff]  }
 0x31d   : > { %v5746_v25 = vmax.f32 %v5622_v51, 0.0  ;;  %v5643_v36 = vadd.f32 %v12963_v20, %v15575_v23  ;;  %v5634_v42 = vpop.f32.mrf.mxu0  ;;  %12805 = vmatprep.subr.bf16.mxu0 %v13482_v11 }
 0x31e   : > { %v5896_v59 = vor.u32 %v5894_v35, %v5893_v22  ;;  %v5897_v6 = vrot.slane %v5893_v22, 4  ;;  %v5876_v29 = vrot.slane %v5874_v58, 7  ;;  %v5899_v33 = vshrl.u32 %v11967_v44, 16 }
 0x31f   : > { %v5902_v4 = vshll.u32 %v11967_v44, 16  ;;  %v11965_v52 = vpack.c.bf16 %v5746_v25, %v5746_v25  ;;  %v5751_v46 = vmax.f32 %v5643_v36, 0.0  ;;  %v5635_v24 = vadd.f32 %v5634_v42, %v15559_v19  ;;  %v12964_v62 = vpop.f32.mrf.mxu0  ;;  %v6197_v42 = vld [vmem:[#allocation2 + $0x14] sm:$0x1] }
 0x320   : > { %v6201_v23 = vsel %vm14053_vm13, %v5896_v59, %v6200_v10  ;;  %v5879_v39 = vor.u32 %v5877_v21, %v5876_v29  ;;  %v5880_v1 = vrot.slane %v5876_v29, 4  ;;  %v5901_v18 = vrot.slane %v5899_v33, 7  ;;  %v13553_v10 = vld [vmem:[#allocation9 + $0x180] sm:$0xff]  }
 0x321   : > { %6202 = vst [vmem:[#allocation2 + $0x18] sm:$0xf] %v6201_v23  ;;  %v5882_v47 = vshrl.u32 %v11965_v52, 16  ;;  %v5885_v16 = vshll.u32 %v11965_v52, 16  ;;  %v11970_v32 = vpack.c.bf16 %v5751_v46, %v5751_v46  ;;  %v5749_v45 = vmax.f32 %v5635_v24, 0.0  ;;  %v5637_v12 = vpop.f32.mrf.mxu0 }
 0x322   : > { %v6194_v19 = vsel %vm14053_vm13, %v5879_v39, %v6193_v56  ;;  %v5904_v61 = vor.u32 %v5902_v4, %v5901_v18  ;;  %v5906_v0 = vrot.slane %v5901_v18, 4  ;;  %v5646_v51 = vadd.f32 %v12964_v62, %v15578_v60  ;;  %v6214_v52 = vld [vmem:[#allocation2 + $0x30] sm:$0xf] }
 0x323   : > { %6195 = vst [vmem:[#allocation2 + $0xc] sm:$0xf] %v6194_v19  ;;  %v5884_v20 = vrot.slane %v5882_v47, 7  ;;  %v5925_v22 = vshrl.u32 %v11970_v32, 16  ;;  %v5928_v35 = vshll.u32 %v11970_v32, 16  ;;  %v11968_v58 = vpack.c.bf16 %v5749_v45, %v5749_v45  ;;  %v12967_v44 = vpop.f32.mrf.mxu0 }
 0x324   : > { %v5905_v21 = vsel %vm14065_vm14, %v5897_v6, %v5904_v61  ;;  %v6205_v36 = vsel %vm14006_vm3, %v5906_v0, %v6204_v3  ;;  %v5752_v31 = vmax.f32 %v5646_v51, 0.0  ;;  %v5638_v59 = vadd.f32 %v5637_v12, %v15568_v40  ;;  %v6207_v19 = vld [vmem:[#allocation2 + $0x24] sm:$0xf] }
 0x325   : > { %6203 = vst [vmem:[#allocation2 + $0x1c] sm:$0xf] %v5905_v21  ;;  %6206 = vst [vmem:[#allocation2 + $0x20] sm:$0x1] %v6205_v36  ;;  %v5887_v29 = vor.u32 %v5885_v16, %v5884_v20  ;;  %v5889_v60 = vrot.slane %v5884_v20, 4  ;;  %v5927_v33 = vrot.slane %v5925_v22, 7  ;;  %v5650_v4 = vpop.f32.mrf.mxu0  ;;  %v5659_v6 = vadd.f32 %v12967_v44, %v15594_v28 }
 0x326   : > { %v5908_v56 = vshrl.u32 %v11968_v58, 16  ;;  %v5911_v46 = vshll.u32 %v11968_v58, 16  ;;  %v11971_v24 = vpack.c.bf16 %v5752_v31, %v5752_v31  ;;  %v5750_v62 = vmax.f32 %v5638_v59, 0.0  ;;  %v6218_v36 = vld [vmem:[#allocation2 + $0x38] sm:$0x1] }
 0x327   : > { %v5888_v23 = vsel %vm14065_vm14, %v5880_v1, %v5887_v29  ;;  %v6198_v40 = vsel %vm14006_vm3, %v5889_v60, %v6197_v42  ;;  %v5930_v39 = vor.u32 %v5928_v35, %v5927_v33  ;;  %v5931_v18 = vrot.slane %v5927_v33, 4  ;;  %v12968_v3 = vpop.f32.mrf.mxu0 }
 0x328   : > { %6196 = vst [vmem:[#allocation2 + $0x10] sm:$0xf] %v5888_v23  ;;  %6199 = vst [vmem:[#allocation2 + $0x14] sm:$0x1] %v6198_v40  ;;  %v5910_v47 = vrot.slane %v5908_v56, 7  ;;  %v5933_v16 = vshrl.u32 %v11971_v24, 16  ;;  %v11969_v45 = vpack.c.bf16 %v5750_v62, %v5750_v62  ;;  %v5651_v1 = vadd.f32 %v5650_v4, %v15586_v7 }
 0x329   : > { %v5936_v32 = vshll.u32 %v11971_v24, 16  ;;  %v7139_v12 = vld [vmem:[#allocation2 + $0x18] sm:$0xf]  ;;  %v6215_v28 = vsel %vm14053_vm13, %v5930_v39, %v6214_v52  ;;  %v5755_v61 = vmax.f32 %v5659_v6, 0.0  ;;  %v5662_v0 = vadd.f32 %v12968_v3, %v15597_v37  ;;  %v5653_v51 = vpop.f32.mrf.mxu0 }
 0x32a   : > { %7171 = vst [vmem:[#allocation3 + $0x54] sm:$0xf] %v7139_v12  ;;  %v6309_v20 = vld [vmem:[#allocation2 + $0x18] sm:$0xf]  ;;  %6216 = vst [vmem:[#allocation2 + $0x30] sm:$0xf] %v6215_v28  ;;  %v5913_v22 = vor.u32 %v5911_v46, %v5910_v47 }
 0x32b   : > { %v5914_v35 = vrot.slane %v5910_v47, 4  ;;  %v5935_v58 = vrot.slane %v5933_v16, 7  ;;  %v5916_v44 = vshrl.u32 %v11969_v45, 16  ;;  %v7137_v21 = vld [vmem:[#allocation2 + $0xc] sm:$0xf]  ;;  %v5919_v42 = vshll.u32 %v11969_v45, 16  ;;  %v12971_v60 = vpop.f32.mrf.mxu0 }
 0x32c   : > { %6341 = vst [vmem:[#allocation3 + $0x90] sm:$0xf] %v6309_v20  ;;  %v11974_v31 = vpack.c.bf16 %v5755_v61, %v5755_v61  ;;  %v5753_v59 = vmax.f32 %v5651_v1, 0.0  ;;  %v5756_v29 = vmax.f32 %v5662_v0, 0.0  ;;  %7169 = vst [vmem:[#allocation3 + $0xc] sm:$0xf] %v7137_v21  ;;  %v6208_v7 = vsel %vm14053_vm13, %v5913_v22, %v6207_v19 }
 0x32d   : > { %v5938_v37 = vor.u32 %v5936_v32, %v5935_v58  ;;  %v5940_v33 = vrot.slane %v5935_v58, 4  ;;  %v5918_v56 = vrot.slane %v5916_v44, 7  ;;  %v7140_v4 = vld [vmem:[#allocation2 + $0x1c] sm:$0xf]  ;;  %v6307_v52 = vld [vmem:[#allocation2 + $0xc] sm:$0xf]  ;;  %v5666_v23 = vpop.f32.mrf.mxu0  ;;  %v5654_v58 = vadd.f32 %v5653_v51, %v15589_v50 }
 0x32e   : > { %6209 = vst [vmem:[#allocation2 + $0x24] sm:$0xf] %v6208_v7  ;;  %v6211_v46 = vld [vmem:[#allocation2 + $0x2c] sm:$0x1]  ;;  %v5959_v24 = vshrl.u32 %v11974_v31, 16  ;;  %v5962_v62 = vshll.u32 %v11974_v31, 16  ;;  %v11972_v6 = vpack.c.bf16 %v5753_v59, %v5753_v59  ;;  %v11975_v11 = vpack.c.bf16 %v5756_v29, %v5756_v29 }
 0x32f   : > { %7172 = vst [vmem:[#allocation3 + $0x78] sm:$0xf] %v7140_v4  ;;  %6339 = vst [vmem:[#allocation3 + $0x48] sm:$0xf] %v6307_v52  ;;  %v5939_v40 = vsel %vm14065_vm14, %v5931_v18, %v5938_v37  ;;  %v6219_v39 = vsel %vm14006_vm3, %v5940_v33, %v6218_v36  ;;  %v5921_v3 = vor.u32 %v5919_v42, %v5918_v56  ;;  %v5923_v47 = vrot.slane %v5918_v56, 4  ;;  %v13487_v32 = vld [vmem:[#allocation9 + $0x158] sm:$0xff]   ;;  %v12972_v61 = vpop.f32.mrf.mxu0 }
 0x330   : > { %v6310_v16 = vld [vmem:[#allocation2 + $0x1c] sm:$0xf]  ;;  %6217 = vst [vmem:[#allocation2 + $0x34] sm:$0xf] %v5939_v40  ;;  %6220 = vst [vmem:[#allocation2 + $0x38] sm:$0x1] %v6219_v39  ;;  %12701 = vmatprep.subr.bf16.mxu1 %v13487_v32  ;;  %v5675_v37 = vadd.f32 %v12971_v60, %v15605_v8  ;;  %v5667_v33 = vadd.f32 %v5666_v23, %v15600_v17  ;;  %v5678_v50 = vadd.f32 %v12972_v61, %v15615_v57 }
 0x331   : > { %v5961_v45 = vrot.slane %v5959_v24, 7  ;;  %v5942_v12 = vshrl.u32 %v11972_v6, 16  ;;  %v5945_v28 = vshll.u32 %v11972_v6, 16  ;;  %v5967_v19 = vshrl.u32 %v11975_v11, 16  ;;  %v7138_v1 = vld [vmem:[#allocation2 + $0x10] sm:$0xf]  ;;  %v5669_v59 = vpop.f32.mrf.mxu0 }
 0x332   : > { %6342 = vst [vmem:[#allocation3 + $0xb4] sm:$0xf] %v6310_v16  ;;  %v5922_v0 = vsel %vm14065_vm14, %v5914_v35, %v5921_v3  ;;  %v6212_v18 = vsel %vm14006_vm3, %v5923_v47, %v6211_v46  ;;  %v6228_v20 = vld [vmem:[#allocation2 + $0x48] sm:$0xf]  ;;  %v5970_v22 = vshll.u32 %v11975_v11, 16  ;;  %v13491_v44 = vld [vmem:[#allocation9 + $0x118] sm:$0xff]   ;;  %v5670_v40 = vadd.f32 %v5669_v59, %v15608_v14 }
 0x333   : > { %7170 = vst [vmem:[#allocation3 + $0x30] sm:$0xf] %v7138_v1  ;;  %6210 = vst [vmem:[#allocation2 + $0x28] sm:$0xf] %v5922_v0  ;;  %v5964_v21 = vor.u32 %v5962_v62, %v5961_v45  ;;  %v5965_v36 = vrot.slane %v5961_v45, 4  ;;  %v15711_v42 = vrot.slane %v5942_v12, 7  ;;  %12702 = vmatpush3.bf16.msra.mxu1 %v13491_v44  ;;  %v12975_v24 = vpop.f32.mrf.mxu0 }
 0x334   : > { %6213 = vst [vmem:[#allocation2 + $0x2c] sm:$0x1] %v6212_v18  ;;  %v5969_v31 = vrot.slane %v5967_v19, 7  ;;  %v6308_v29 = vld [vmem:[#allocation2 + $0x10] sm:$0xf]  ;;  %v5754_v7 = vmax.f32 %v5654_v58, 0.0  ;;  %v5691_v0 = vadd.f32 %v12975_v24, %v15635_v53 }
 0x335   : > { %v6221_v35 = vld [vmem:[#allocation2 + $0x3c] sm:$0xf]  ;;  %6340 = vst [vmem:[#allocation3 + $0x6c] sm:$0xf] %v6308_v29  ;;  %v6229_v51 = vsel %vm14053_vm13, %v5964_v21, %v6228_v20  ;;  %v5947_v56 = vor.u32 %v5945_v28, %v15711_v42  ;;  %v5948_v4 = vrot.slane %v15711_v42, 4  ;;  %v5759_v8 = vmax.f32 %v5675_v37, 0.0  ;;  %v5682_v39 = vpop.f32.mrf.mxu0 }
 0x336   : > { %v5972_v52 = vor.u32 %v5970_v22, %v5969_v31  ;;  %v6232_v46 = vld [vmem:[#allocation2 + $0x50] sm:$0x1]  ;;  %6230 = vst [vmem:[#allocation2 + $0x48] sm:$0xf] %v6229_v51  ;;  %v5974_v62 = vrot.slane %v5969_v31, 4  ;;  %v11973_v6 = vpack.c.bf16 %v5754_v7, %v5754_v7  ;;  %v5757_v60 = vmax.f32 %v5667_v33, 0.0 }
 0x337   : > { %v7141_v17 = vld [vmem:[#allocation2 + $0x24] sm:$0xf]  ;;  %v6222_v57 = vsel %vm14053_vm13, %v5947_v56, %v6221_v35  ;;  %v5760_v23 = vmax.f32 %v5678_v50, 0.0  ;;  %v13483_v3 = vld [vmem:[#allocation9 + $0x1b8] sm:$0xff]   ;;  %v11978_v45 = vpack.c.bf16 %v5759_v8, %v5759_v8  ;;  %v5758_v1 = vmax.f32 %v5670_v40, 0.0  ;;  %v15728_v14 = vpop.f32.mrf.mxu0  ;;  %v13498_v31 = vld [vmem:[#allocation9 + $0x1f0] sm:$0xff]  }
 0x338   : > { %v5973_v11 = vsel %vm14065_vm14, %v5965_v36, %v5972_v52  ;;  %7173 = vst [vmem:[#allocation3 + $0x9c] sm:$0xf] %v7141_v17  ;;  %6223 = vst [vmem:[#allocation2 + $0x3c] sm:$0xf] %v6222_v57  ;;  %v6233_v47 = vsel %vm14006_vm3, %v5974_v62, %v6232_v46  ;;  %v5950_v16 = vshrl.u32 %v11973_v6, 16  ;;  %v5953_v32 = vshll.u32 %v11973_v6, 16 }
 0x339   : > { %6231 = vst [vmem:[#allocation2 + $0x4c] sm:$0xf] %v5973_v11  ;;  %v7143_v12 = vld [vmem:[#allocation2 + $0x30] sm:$0xf]  ;;  %v7144_v28 = vld [vmem:[#allocation2 + $0x34] sm:$0xf]  ;;  %v11976_v19 = vpack.c.bf16 %v5757_v60, %v5757_v60  ;;  %v11979_v61 = vpack.c.bf16 %v5760_v23, %v5760_v23  ;;  %v5683_v21 = vadd.f32 %v5682_v39, %v15618_v43  ;;  %v15731_v33 = vpop.f32.mrf.mxu0  ;;  %v11977_v52 = vpack.c.bf16 %v5758_v1, %v5758_v1 }
 0x33a   : > { %6234 = vst [vmem:[#allocation2 + $0x50] sm:$0x1] %v6233_v47  ;;  %v13423_v18 = vld [vmem:[#allocation3 + $0x8] ss:$36 sps:$4 sm:$0xff]   ;;  %7175 = vst [vmem:[#allocation3 + $0xe4] sm:$0xf] %v7143_v12 }
 0x33b   : > { %v13425_v20 = vld [vmem:[#allocation3 + $0xc] ss:$36 sps:$4 sm:$0xff]   ;;  %7176 = vst [vmem:[#allocation3 + $0x108] sm:$0xf] %v7144_v28  ;;  %v5952_v22 = vrot.slane %v5950_v16, 7  ;;  %v5993_v58 = vshrl.u32 %v11978_v45, 16  ;;  %v12979_v8 = vpop.f32.mrf.mxu0 }
 0x33c   : > { %v5996_v44 = vshll.u32 %v11978_v45, 16  ;;  %v7142_v36 = vld [vmem:[#allocation2 + $0x28] sm:$0xf]  ;;  %v6225_v59 = vld [vmem:[#allocation2 + $0x44] sm:$0x1]  ;;  %v5976_v29 = vshrl.u32 %v11976_v19, 16  ;;  %10505 = vmatprep.mubr.bf16.mxu0 %v13425_v20 }
 0x33d   : > { %v5979_v35 = vshll.u32 %v11976_v19, 16  ;;  %v6001_v7 = vshrl.u32 %v11979_v61, 16  ;;  %v6004_v37 = vshll.u32 %v11979_v61, 16  ;;  %7174 = vst [vmem:[#allocation3 + $0xc0] sm:$0xf] %v7142_v36  ;;  %v5955_v53 = vor.u32 %v5953_v32, %v5952_v22  ;;  %10506 = vmatmul.mubr.bf16.vlgmr.msra.gmra.mxu0 %v13423_v18  ;;  %v13499_v47 = vld [vmem:[#allocation9 + $0x1b0] sm:$0xff]   ;;  %v5698_v45 = vpop.f32.mrf.mxu0 }
 0x33e   : > { %v5957_v50 = vrot.slane %v5952_v22, 4  ;;  %v5995_v51 = vrot.slane %v5993_v58, 7  ;;  %v6242_v56 = vld [vmem:[#allocation2 + $0x60] sm:$0xf]  ;;  %v6311_v46 = vld [vmem:[#allocation2 + $0x24] sm:$0xf]  ;;  %12806 = vmatpush3.bf16.msra.mxu0 %v13483_v3 }
 0x33f   : > { %v15733_v24 = vrot.slane %v5976_v29, 7  ;;  %v6003_v43 = vrot.slane %v6001_v7, 7  ;;  %v5763_v62 = vmax.f32 %v5691_v0, 0.0  ;;  %v5761_v6 = vmax.f32 %v5683_v21, 0.0  ;;  %v6312_v60 = vld [vmem:[#allocation2 + $0x28] sm:$0xf]  ;;  %12807 = vmatprep.subr.bf16.mxu0 %v13498_v31  ;;  %v15751_v20 = vpop.f32.mrf.mxu0 }
 0x340   : > { %6343 = vst [vmem:[#allocation3 + $0xd8] sm:$0xf] %v6311_v46  ;;  %v5956_v17 = vsel %vm14065_vm14, %v5948_v4, %v5955_v53  ;;  %v6226_v57 = vsel %vm14006_vm3, %v5957_v50, %v6225_v59  ;;  %v5998_v11 = vor.u32 %v5996_v44, %v5995_v51  ;;  %v5999_v23 = vrot.slane %v5995_v51, 4  ;;  %v6235_v40 = vld [vmem:[#allocation2 + $0x54] sm:$0xf]  ;;  %v13503_v29 = vld [vmem:[#allocation9 + $0x150] sm:$0xff]  }
 0x341   : > { %v6246_v39 = vld [vmem:[#allocation2 + $0x68] sm:$0x1]  ;;  %6344 = vst [vmem:[#allocation3 + $0xfc] sm:$0xf] %v6312_v60  ;;  %6224 = vst [vmem:[#allocation2 + $0x40] sm:$0xf] %v5956_v17  ;;  %v5981_v16 = vor.u32 %v5979_v35, %v15733_v24  ;;  %v6006_v42 = vor.u32 %v6004_v37, %v6003_v43  ;;  %v11982_v19 = vpack.c.bf16 %v5763_v62, %v5763_v62  ;;  %12703 = vmatprep.subr.bf16.mxu1 %v13503_v29 }
 0x342   : > { %6227 = vst [vmem:[#allocation2 + $0x44] sm:$0x1] %v6226_v57  ;;  %v5982_v3 = vrot.slane %v15733_v24, 4  ;;  %v6008_v32 = vrot.slane %v6003_v43, 4  ;;  %v6243_v4 = vsel %vm14053_vm13, %v5998_v11, %v6242_v56  ;;  %v5984_v12 = vshrl.u32 %v11977_v52, 16  ;;  %12808 = vmatpush3.bf16.msra.mxu0 %v13499_v47  ;;  %v13507_v62 = vld [vmem:[#allocation9 + $0x110] sm:$0xff]  }
 0x343   : > { %v5987_v28 = vshll.u32 %v11977_v52, 16  ;;  %6244 = vst [vmem:[#allocation2 + $0x60] sm:$0xf] %v6243_v4  ;;  %v6236_v61 = vsel %vm14053_vm13, %v5981_v16, %v6235_v40  ;;  %v6007_v1 = vsel %vm14065_vm14, %v5999_v23, %v6006_v42  ;;  %v11980_v18 = vpack.c.bf16 %v5761_v6, %v5761_v6  ;;  %v7145_v22 = vld [vmem:[#allocation2 + $0x3c] sm:$0xf]  ;;  %12704 = vmatpush3.bf16.msra.mxu1 %v13507_v62  ;;  %v13515_v29 = vld [vmem:[#allocation9 + $0x1a8] sm:$0xff]  }
 0x344   : > { %v6247_v0 = vsel %vm14006_vm3, %v6008_v32, %v6246_v39  ;;  %v6313_v58 = vld [vmem:[#allocation2 + $0x30] sm:$0xf]  ;;  %v6314_v44 = vld [vmem:[#allocation2 + $0x34] sm:$0xf]  ;;  %6237 = vst [vmem:[#allocation2 + $0x54] sm:$0xf] %v6236_v61  ;;  %v5694_v59 = vadd.f32 %v15728_v14, %v15640_v41  ;;  %v5686_v50 = vadd.f32 %v15731_v33, %v15626_v48  ;;  %v5707_v51 = vadd.f32 %v12979_v8, %v15652_v55  ;;  %v15762_v14 = vpop.f32.mrf.mxu0 }
 0x345   : > { %6245 = vst [vmem:[#allocation2 + $0x64] sm:$0xf] %v6007_v1  ;;  %6248 = vst [vmem:[#allocation2 + $0x68] sm:$0x1] %v6247_v0  ;;  %v5986_v21 = vrot.slane %v5984_v12, 7  ;;  %v6027_v36 = vshrl.u32 %v11982_v19, 16  ;;  %v5699_v48 = vadd.f32 %v5698_v45, %v15646_v15 }
 0x346   : > { %v6030_v31 = vshll.u32 %v11982_v19, 16  ;;  %7177 = vst [vmem:[#allocation3 + $0x12c] sm:$0xf] %v7145_v22  ;;  %6345 = vst [vmem:[#allocation3 + $0x120] sm:$0xf] %v6313_v58  ;;  %v6010_v37 = vshrl.u32 %v11980_v18, 16 }
 0x347   : > { %6346 = vst [vmem:[#allocation3 + $0x144] sm:$0xf] %v6314_v44  ;;  %v6239_v35 = vld [vmem:[#allocation2 + $0x5c] sm:$0x1]  ;;  %v6256_v7 = vld [vmem:[#allocation2 + $0x78] sm:$0xf]  ;;  %v5989_v56 = vor.u32 %v5987_v28, %v5986_v21  ;;  %v15782_v28 = vpop.f32.mrf.mxu0 }
 0x348   : > { %v6013_v53 = vshll.u32 %v11980_v18, 16  ;;  %v5991_v52 = vrot.slane %v5986_v21, 4  ;;  %v15758_v46 = vrot.slane %v6027_v36, 7  ;;  %v6249_v24 = vld [vmem:[#allocation2 + $0x6c] sm:$0xf]  ;;  %v5764_v43 = vmax.f32 %v5694_v59, 0.0 }
 0x349   : > { %v15760_v41 = vld [vmem:[#allocation2 + $0xc] sm:$0xe]  ;;  %v15764_v6 = vrot.slane %v6010_v37, 7  ;;  %v5762_v60 = vmax.f32 %v5686_v50, 0.0  ;;  %v5767_v17 = vmax.f32 %v5707_v51, 0.0  ;;  %v5990_v55 = vsel %vm14065_vm14, %v5982_v3, %v5989_v56  ;;  %v13514_v58 = vld [vmem:[#allocation9 + $0x1e8] sm:$0xff]  }
 0x34a   : > { %v7147_v33 = vld [vmem:[#allocation2 + $0x48] sm:$0xf]  ;;  %v6240_v8 = vsel %vm14006_vm3, %v5991_v52, %v6239_v35  ;;  %v6032_v57 = vor.u32 %v6030_v31, %v15758_v46  ;;  %v6033_v11 = vrot.slane %v15758_v46, 4  ;;  %v15773_v23 = vld [vmem:[#allocation2 + $0x10] sm:$0xf]  ;;  %v11983_v47 = vpack.c.bf16 %v5764_v43, %v5764_v43  ;;  %12809 = vmatprep.subr.bf16.mxu0 %v13514_v58 }
 0x34b   : > { %v7146_v40 = vld [vmem:[#allocation2 + $0x40] sm:$0xf]  ;;  %7179 = vst [vmem:[#allocation3 + $0x174] sm:$0xf] %v7147_v33  ;;  %6238 = vst [vmem:[#allocation2 + $0x58] sm:$0xf] %v5990_v55  ;;  %v6015_v15 = vor.u32 %v6013_v53, %v15764_v6  ;;  %v11981_v16 = vpack.c.bf16 %v5762_v60, %v5762_v60  ;;  %v11986_v45 = vpack.c.bf16 %v5767_v17, %v5767_v17  ;;  %12810 = vmatpush3.bf16.msra.mxu0 %v13515_v29 }
 0x34c   : > { %6241 = vst [vmem:[#allocation2 + $0x5c] sm:$0x1] %v6240_v8  ;;  %v6016_v39 = vrot.slane %v15764_v6, 4  ;;  %v15777_v3 = vld [vmem:[#allocation2 + $0x14] sm:$0x1]  ;;  %v6257_v32 = vsel %vm14053_vm13, %v6032_v57, %v6256_v7  ;;  %v5765_v4 = vmax.f32 %v5699_v48, 0.0  ;;  %v5710_v43 = vadd.f32 %v15751_v20, %v15655_v30 }
 0x34d   : > { %7178 = vst [vmem:[#allocation3 + $0x150] sm:$0xf] %v7146_v40  ;;  %v7148_v42 = vld [vmem:[#allocation2 + $0x4c] sm:$0xf]  ;;  %v11662_v12 = vrot.slane %v15760_v41, 9  ;;  %v6250_v1 = vsel %vm14053_vm13, %v6015_v15, %v6249_v24  ;;  %v6035_v0 = vshrl.u32 %v11983_v47, 16  ;;  %v15792_v41 = vpop.f32.mrf.mxu0 }
 0x34e   : > { %7180 = vst [vmem:[#allocation3 + $0x198] sm:$0xf] %v7148_v42  ;;  %v6315_v19 = vld [vmem:[#allocation2 + $0x3c] sm:$0xf]  ;;  %v6316_v61 = vld [vmem:[#allocation2 + $0x40] sm:$0xf]  ;;  %v11984_v59 = vpack.c.bf16 %v5765_v4, %v5765_v4 }
 0x34f   : > { %6258 = vst [vmem:[#allocation2 + $0x78] sm:$0xf] %v6257_v32  ;;  %v6038_v18 = vshll.u32 %v11983_v47, 16  ;;  %v6018_v22 = vshrl.u32 %v11981_v16, 16  ;;  %6347 = vst [vmem:[#allocation3 + $0x168] sm:$0xf] %v6315_v19 }
 0x350   : > { %6348 = vst [vmem:[#allocation3 + $0x18c] sm:$0xf] %v6316_v61  ;;  %6251 = vst [vmem:[#allocation2 + $0x6c] sm:$0xf] %v6250_v1  ;;  %v6260_v44 = vld [vmem:[#allocation2 + $0x80] sm:$0x1]  ;;  %v5702_v61 = vadd.f32 %v15762_v14, %v15649_v27 }
 0x351   : > { %v6021_v21 = vshll.u32 %v11981_v16, 16  ;;  %v6061_v36 = vshrl.u32 %v11986_v45, 16  ;;  %v6064_v31 = vshll.u32 %v11986_v45, 16  ;;  %v6037_v35 = vrot.slane %v6035_v0, 7  ;;  %v6253_v37 = vld [vmem:[#allocation2 + $0x74] sm:$0x1] }
 0x352   : > { %v6020_v7 = vrot.slane %v6018_v22, 7  ;;  %v6970_v53 = vrot.slane %v15773_v23, 5  ;;  %v6973_v50 = vrot.slane %v15777_v3, 5  ;;  %v6270_v56 = vld [vmem:[#allocation2 + $0x90] sm:$0xf]  ;;  %v6044_v52 = vshrl.u32 %v11984_v59, 16 }
 0x353   : > { %v15788_v51 = vrot.slane %v6061_v36, 7  ;;  %v6047_v24 = vshll.u32 %v11984_v59, 16  ;;  %v6040_v62 = vor.u32 %v6038_v18, %v6037_v35  ;;  %v6042_v6 = vrot.slane %v6037_v35, 4  ;;  %v6263_v48 = vld [vmem:[#allocation2 + $0x84] sm:$0xf] }
 0x354   : > { %v6023_v60 = vor.u32 %v6021_v21, %v6020_v7  ;;  %v6025_v17 = vrot.slane %v6020_v7, 4  ;;  %v6372_v33 = vld [vmem:[#allocation2 + $0xc] sm:$0xf]  ;;  %v15796_v57 = vrot.slane %v6044_v52, 7  ;;  %v6971_v40 = vsel %vm14035_vm11, %v11662_v12, %v6970_v53  ;;  %v7149_v15 = vld [vmem:[#allocation2 + $0x54] sm:$0xf]  ;;  %v15814_v12 = vpop.f32.mrf.mxu0 }
 0x355   : > { %v6066_v55 = vor.u32 %v6064_v31, %v15788_v51  ;;  %v6067_v8 = vrot.slane %v15788_v51, 4  ;;  %v7150_v30 = vld [vmem:[#allocation2 + $0x58] sm:$0xf]  ;;  %v6041_v20 = vsel %vm14065_vm14, %v6033_v11, %v6040_v62  ;;  %v6261_v47 = vsel %vm14006_vm3, %v6042_v6, %v6260_v44  ;;  %7107 = vst [vmem:[#allocation3 + $0x50] sm:$0xf] %v6971_v40  ;;  %v13519_v22 = vld [vmem:[#allocation9 + $0x148] sm:$0xff]  }
 0x356   : > { %v6024_v16 = vsel %vm14065_vm14, %v6016_v39, %v6023_v60  ;;  %v6254_v3 = vsel %vm14006_vm3, %v6025_v17, %v6253_v37  ;;  %v6373_v42 = vld [vmem:[#allocation2 + $0x10] sm:$0xf]  ;;  %7181 = vst [vmem:[#allocation3 + $0x1bc] sm:$0xf] %v7149_v15  ;;  %7182 = vst [vmem:[#allocation3 + $0x1e0] sm:$0xf] %v7150_v30  ;;  %v6049_v11 = vor.u32 %v6047_v24, %v15796_v57  ;;  %12705 = vmatprep.subr.bf16.mxu1 %v13519_v22 }
 0x357   : > { %v6317_v32 = vld [vmem:[#allocation2 + $0x48] sm:$0xf]  ;;  %v6318_v45 = vld [vmem:[#allocation2 + $0x4c] sm:$0xf]  ;;  %6259 = vst [vmem:[#allocation2 + $0x7c] sm:$0xf] %v6041_v20  ;;  %v6271_v46 = vsel %vm14053_vm13, %v6066_v55, %v6270_v56 }
 0x358   : > { %6262 = vst [vmem:[#allocation2 + $0x80] sm:$0x1] %v6261_v47  ;;  %6252 = vst [vmem:[#allocation2 + $0x70] sm:$0xf] %v6024_v16  ;;  %v6050_v39 = vrot.slane %v15796_v57, 4  ;;  %v6972_v4 = vrot.slane %v6970_v53, 4  ;;  %v6264_v58 = vsel %vm14053_vm13, %v6049_v11, %v6263_v48  ;;  %v12442_v47 = vpop.f32.mrf.mxu1 }
 0x359   : > { %6255 = vst [vmem:[#allocation2 + $0x74] sm:$0x1] %v6254_v3  ;;  %6349 = vst [vmem:[#allocation3 + $0x1b0] sm:$0xf] %v6317_v32  ;;  %v5768_v19 = vmax.f32 %v5710_v43, 0.0  ;;  %v6442_v0 = vshrl.u32 %v6372_v33, 16  ;;  %v15828_v43 = vpop.f32.mrf.mxu0 }
 0x35a   : > { %6350 = vst [vmem:[#allocation3 + $0x1d4] sm:$0xf] %v6318_v45  ;;  %6272 = vst [vmem:[#allocation2 + $0x90] sm:$0xf] %v6271_v46  ;;  %v6374_v1 = vld [vmem:[#allocation2 + $0x14] sm:$0x1]  ;;  %v6974_v44 = vsel %vm14035_vm11, %v6972_v4, %v6973_v50  ;;  %v5723_v50 = vadd.f32 %v15782_v28, %v15664_v13 }
 0x35b   : > { %v6445_v18 = vshll.u32 %v6372_v33, 16  ;;  %v6451_v21 = vshll.u32 %v6373_v42, 16  ;;  %v6455_v36 = vshrl.u32 %v6373_v42, 16  ;;  %v6871_v31 = vld [vmem:[#allocation2 + $0x18] sm:$0xe]  ;;  %v11987_v59 = vpack.c.bf16 %v5768_v19, %v5768_v19  ;;  %v13523_v53 = vld [vmem:[#allocation9 + $0x108] sm:$0xff]   ;;  %v15832_v19 = vpop.f32.mrf.mxu0 }
 0x35c   : > { %6265 = vst [vmem:[#allocation2 + $0x84] sm:$0xf] %v6264_v58  ;;  %7108 = vst [vmem:[#allocation3 + $0x74] sm:$0xf] %v6974_v44  ;;  %v5766_v29 = vmax.f32 %v5702_v61, 0.0  ;;  %v6444_v35 = vrot.slane %v6442_v0, 4  ;;  %12706 = vmatpush3.bf16.msra.mxu1 %v13523_v53 }
 0x35d   : > { %v6447_v7 = vrot.slane %v6445_v18, 5  ;;  %v15822_v27 = vld [vmem:[#allocation2 + $0x1c] sm:$0xf]  ;;  %v15824_v14 = vld [vmem:[#allocation2 + $0x20] sm:$0x1]  ;;  %v6453_v56 = vrot.slane %v6451_v21, 5 }
 0x35e   : > { %v7151_v37 = vld [vmem:[#allocation2 + $0x60] sm:$0xf]  ;;  %v6457_v52 = vrot.slane %v6455_v36, 4  ;;  %v6461_v24 = vshll.u32 %v6374_v1, 16  ;;  %v7152_v62 = vld [vmem:[#allocation2 + $0x64] sm:$0xf]  ;;  %v11985_v17 = vpack.c.bf16 %v5766_v29, %v5766_v29 }
 0x35f   : > { %7183 = vst [vmem:[#allocation3 + $0x204] sm:$0xf] %v7151_v37  ;;  %v6069_v6 = vshrl.u32 %v11987_v59, 16  ;;  %v6072_v60 = vshll.u32 %v11987_v59, 16  ;;  %v6448_v48 = vor.u32 %v6447_v7, %v6444_v35  ;;  %7184 = vst [vmem:[#allocation3 + $0x228] sm:$0xf] %v7152_v62  ;;  %v5715_v7 = vadd.f32 %v15792_v41, %v15658_v38 }
 0x360   : > { %v6319_v33 = vld [vmem:[#allocation2 + $0x54] sm:$0xf]  ;;  %v6320_v55 = vld [vmem:[#allocation2 + $0x58] sm:$0xf]  ;;  %v6458_v40 = vor.u32 %v6457_v52, %v6453_v56  ;;  %v6463_v15 = vrot.slane %v6461_v24, 5  ;;  %v5771_v30 = vmax.f32 %v5723_v50, 0.0 }
 0x361   : > { %v11663_v20 = vrot.slane %v6871_v31, 9  ;;  %6351 = vst [vmem:[#allocation3 + $0x1f8] sm:$0xf] %v6319_v33  ;;  %6352 = vst [vmem:[#allocation3 + $0x21c] sm:$0xf] %v6320_v55  ;;  %v6071_v13 = vrot.slane %v6069_v6, 7 }
 0x362   : > { %v6274_v28 = vld [vmem:[#allocation2 + $0x98] sm:$0x1]  ;;  %v6052_v16 = vshrl.u32 %v11985_v17, 16  ;;  %v6055_v3 = vshll.u32 %v11985_v17, 16  ;;  %v6449_v42 = vrot.slane %v6448_v48, 4  ;;  %v6459_v45 = vrot.slane %v6458_v40, 4 }
 0x363   : > { %v6267_v32 = vld [vmem:[#allocation2 + $0x8c] sm:$0x1]  ;;  %v11990_v46 = vpack.c.bf16 %v5771_v30, %v5771_v30  ;;  %v6977_v11 = vrot.slane %v15822_v27, 5  ;;  %v6980_v4 = vrot.slane %v15824_v14, 5  ;;  %v13530_v61 = vld [vmem:[#allocation9 + $0x1e0] sm:$0xff]   ;;  %v6074_v1 = vor.u32 %v6072_v60, %v6071_v13  ;;  %v12443_v27 = vpop.f32.mrf.mxu1  ;;  %v5730_v60 = vpop.f32.mrf.mxu0 }
 0x364   : > { %v6076_v0 = vrot.slane %v6071_v13, 4  ;;  %v6054_v18 = vrot.slane %v6052_v16, 7  ;;  %v6454_v58 = vsel %vm14044_vm12, %v6449_v42, %v6453_v56  ;;  %v6375_v44 = vld [vmem:[#allocation2 + $0x18] sm:$0xf]  ;;  %v6376_v21 = vld [vmem:[#allocation2 + $0x1c] sm:$0xf]  ;;  %v6464_v31 = vsel %vm14044_vm12, %v6459_v45, %v6463_v15  ;;  %12811 = vmatprep.subr.bf16.mxu0 %v13530_v61 }
 0x365   : > { %v13430_v36 = vld [vmem:[#allocation3 + $0x54] ss:$36 sps:$4 sm:$0xff]   ;;  %6835 = vst [vmem:[#allocation3 + $0x4c] sm:$0xf] %v6454_v58  ;;  %v6095_v59 = vshrl.u32 %v11990_v46, 16  ;;  %v6978_v29 = vsel %vm14035_vm11, %v11663_v20, %v6977_v11  ;;  %v6075_v37 = vsel %vm14065_vm14, %v6067_v8, %v6074_v1  ;;  %v13531_v62 = vld [vmem:[#allocation9 + $0x1a0] sm:$0xff]   ;;  %v12444_v30 = vadd.f32 %v12443_v27, %v12442_v47 }
 0x366   : > { %v15840_v35 = vld [vmem:[#allocation2 + $0x20] sm:$0x1]  ;;  %v13428_v14 = vld [vmem:[#allocation3 + $0x50] ss:$36 sps:$4 sm:$0xff]   ;;  %v6275_v53 = vsel %vm14006_vm3, %v6076_v0, %v6274_v28  ;;  %v6057_v56 = vor.u32 %v6055_v3, %v6054_v18  ;;  %v6059_v52 = vrot.slane %v6054_v18, 4  ;;  %10513 = vmatprep.mubr.bf16.mxu0 %v13430_v36  ;;  %v6098_v41 = vshll.u32 %v11990_v46, 16  ;;  %12812 = vmatpush3.bf16.msra.mxu0 %v13531_v62  ;;  %v12988_v46 = vpop.f32.mrf.mxu0 }
 0x367   : > { %6836 = vst [vmem:[#allocation3 + $0x70] sm:$0xf] %v6464_v31  ;;  %v6284_v24 = vld [vmem:[#allocation2 + $0xa8] sm:$0xf]  ;;  %7109 = vst [vmem:[#allocation3 + $0x98] sm:$0xf] %v6978_v29  ;;  %10514 = vmatmul.mubr.bf16.gmra.mxu0 %v13428_v14  ;;  %v5718_v45 = vadd.f32 %v15828_v43, %v15661_v63  ;;  %v5739_v0 = vadd.f32 %v15832_v19, %v15678_v54  ;;  %v5573_v63 = vadd.f32 %v15667_v49, %v15518_v26 }
 0x368   : > { %v7153_v50 = vld [vmem:[#allocation2 + $0x6c] sm:$0xf]  ;;  %6273 = vst [vmem:[#allocation2 + $0x94] sm:$0xf] %v6075_v37  ;;  %6276 = vst [vmem:[#allocation2 + $0x98] sm:$0x1] %v6275_v53  ;;  %v6058_v17 = vsel %vm14065_vm14, %v6050_v39, %v6057_v56  ;;  %v6268_v48 = vsel %vm14006_vm3, %v6059_v52, %v6267_v32  ;;  %v5726_v32 = vadd.f32 %v15814_v12, %v15671_v5 }
 0x369   : > { %v15850_v38 = vrot.slane %v6095_v59, 7  ;;  %v6979_v51 = vrot.slane %v6977_v11, 4  ;;  %v6466_v6 = vshrl.u32 %v6375_v44, 16  ;;  %v7154_v8 = vld [vmem:[#allocation2 + $0x70] sm:$0xf]  ;;  %v6469_v33 = vshll.u32 %v6375_v44, 16 }
 0x36a   : > { %7185 = vst [vmem:[#allocation3 + $0x24c] sm:$0xf] %v7153_v50  ;;  %v6475_v55 = vshll.u32 %v6376_v21, 16  ;;  %7186 = vst [vmem:[#allocation3 + $0x270] sm:$0xf] %v7154_v8  ;;  %v6479_v16 = vshrl.u32 %v6376_v21, 16  ;;  %v5581_v12 = vadd.f32 %v12444_v30, %v15623_v2  ;;  %v15879_v14 = vadd.f32 %v5730_v60, %v15674_v34  ;;  %v5733_v2 = vpop.f32.mrf.mxu0 }
 0x36b   : > { %v6321_v40 = vld [vmem:[#allocation2 + $0x60] sm:$0xf]  ;;  %v6322_v15 = vld [vmem:[#allocation2 + $0x64] sm:$0xf]  ;;  %6266 = vst [vmem:[#allocation2 + $0x88] sm:$0xf] %v6058_v17  ;;  %v6100_v20 = vor.u32 %v6098_v41, %v15850_v38  ;;  %v6981_v57 = vsel %vm14035_vm11, %v6979_v51, %v6980_v4 }
 0x36c   : > { %6269 = vst [vmem:[#allocation2 + $0x8c] sm:$0x1] %v6268_v48  ;;  %v6468_v13 = vrot.slane %v6466_v6, 4  ;;  %6353 = vst [vmem:[#allocation3 + $0x240] sm:$0xf] %v6321_v40  ;;  %v6471_v39 = vrot.slane %v6469_v33, 5  ;;  %v15886_v17 = vadd.f32 %v12988_v46, %v5581_v12 }
 0x36d   : > { %6354 = vst [vmem:[#allocation3 + $0x264] sm:$0xf] %v6322_v15  ;;  %7110 = vst [vmem:[#allocation3 + $0xbc] sm:$0xf] %v6981_v57  ;;  %v6477_v28 = vrot.slane %v6475_v55, 5  ;;  %v6485_v3 = vshll.u32 %v15840_v35, 16  ;;  %v6285_v47 = vsel %vm14053_vm13, %v6100_v20, %v6284_v24  ;;  %v15890_v15 = vadd.f32 %v5733_v2, %v5573_v63 }
 0x36e   : > { %v5769_v42 = vmax.f32 %v5715_v7, 0.0  ;;  %v13532_v11 = vld [vmem:[#allocation9 + $0x1d8] sm:$0xff]   ;;  %v6101_v4 = vrot.slane %v15850_v38, 4  ;;  %6286 = vst [vmem:[#allocation2 + $0xa8] sm:$0xf] %v6285_v47  ;;  %v6472_v61 = vor.u32 %v6471_v39, %v6468_v13  ;;  %v6481_v1 = vrot.slane %v6479_v16, 4 }
 0x36f   : > { %v15871_v18 = vld [vmem:[#allocation2 + $0x24] sm:$0xe]  ;;  %v13536_v58 = vld [vmem:[#allocation9 + $0x140] sm:$0xff]   ;;  %v5772_v5 = vmax.f32 %v5726_v32, 0.0  ;;  %12813 = vmatprep.subr.bf16.mxu0 %v13532_v11  ;;  %v5770_v59 = vmax.f32 %v5718_v45, 0.0  ;;  %v5775_v29 = vmax.f32 %v5739_v0, 0.0 }
 0x370   : > { %v13431_v44 = vld [vmem:[#allocation3 + $0x48] ss:$36 sps:$4 sm:$0xff]   ;;  %v11988_v36 = vpack.c.bf16 %v5769_v42, %v5769_v42  ;;  %v6473_v43 = vrot.slane %v6472_v61, 4  ;;  %v6482_v31 = vor.u32 %v6481_v1, %v6477_v28  ;;  %v7155_v35 = vld [vmem:[#allocation2 + $0x78] sm:$0xf]  ;;  %12707 = vmatprep.subr.bf16.mxu1 %v13536_v58  ;;  %v6487_v54 = vrot.slane %v6485_v3, 5 }
 0x371   : > { %v13433_v21 = vld [vmem:[#allocation3 + $0x4c] ss:$36 sps:$4 sm:$0xff]   ;;  %v11991_v7 = vpack.c.bf16 %v5772_v5, %v5772_v5  ;;  %v7156_v37 = vld [vmem:[#allocation2 + $0x7c] sm:$0xf]  ;;  %7187 = vst [vmem:[#allocation3 + $0x294] sm:$0xf] %v7155_v35  ;;  %v11989_v52 = vpack.c.bf16 %v5770_v59, %v5770_v59  ;;  %v11994_v24 = vpack.c.bf16 %v5775_v29, %v5775_v29 }
 0x372   : > { %10352 = vmatprep.mubr.bf16.mxu1 %v13433_v21  ;;  %v6078_v19 = vshrl.u32 %v11988_v36, 16  ;;  %v15876_v27 = vld [vmem:[#allocation2 + $0x28] sm:$0xf]  ;;  %v13537_v26 = vld [vmem:[#allocation9 + $0x198] sm:$0xff]   ;;  %v6478_v49 = vsel %vm14044_vm12, %v6473_v43, %v6477_v28  ;;  %v6483_v53 = vrot.slane %v6482_v31, 4  ;;  %v13541_v51 = vld [vmem:[#allocation9 + $0x100] sm:$0xff]  }
 0x373   : > { %10353 = vmatmul.mubr.bf16.gmra.mxu1 %v13431_v44  ;;  %v6277_v56 = vld [vmem:[#allocation2 + $0x9c] sm:$0xf]  ;;  %v15883_v50 = vld [vmem:[#allocation2 + $0x24] sm:$0xf]  ;;  %7188 = vst [vmem:[#allocation3 + $0x2b8] sm:$0xf] %v7156_v37  ;;  %12814 = vmatpush3.bf16.msra.mxu0 %v13537_v26 }
 0x374   : > { %v6323_v62 = vld [vmem:[#allocation2 + $0x6c] sm:$0xf]  ;;  %v6324_v41 = vld [vmem:[#allocation2 + $0x70] sm:$0xf]  ;;  %v13436_v34 = vld [vmem:[#allocation3 + $0x9c] ss:$36 sps:$4 sm:$0xff]   ;;  %v6488_v33 = vsel %vm14044_vm12, %v6483_v53, %v6487_v54  ;;  %12708 = vmatpush3.bf16.msra.mxu1 %v13541_v51 }
 0x375   : > { %6837 = vst [vmem:[#allocation3 + $0x94] sm:$0xf] %v6478_v49  ;;  %v6080_v6 = vrot.slane %v6078_v19, 7  ;;  %v6081_v60 = vshll.u32 %v11988_v36, 16  ;;  %v11664_v8 = vrot.slane %v15871_v18, 9  ;;  %v6103_v55 = vshrl.u32 %v11991_v7, 16  ;;  %10521 = vmatprep.mubr.bf16.mxu0 %v13436_v34 }
 0x376   : > { %6355 = vst [vmem:[#allocation3 + $0x288] sm:$0xf] %v6323_v62  ;;  %6356 = vst [vmem:[#allocation3 + $0x2ac] sm:$0xf] %v6324_v41  ;;  %v13434_v48 = vld [vmem:[#allocation3 + $0x98] ss:$36 sps:$4 sm:$0xff]  }
 0x377   : > { %v6086_v40 = vshrl.u32 %v11989_v52, 16  ;;  %v13542_v30 = vld [vmem:[#allocation9 + $0x1d0] sm:$0xff]   ;;  %6838 = vst [vmem:[#allocation3 + $0xb8] sm:$0xf] %v6488_v33  ;;  %v6083_v20 = vor.u32 %v6081_v60, %v6080_v6  ;;  %v6084_v57 = vrot.slane %v6080_v6, 4  ;;  %v6106_v13 = vshll.u32 %v11991_v7, 16  ;;  %10522 = vmatmul.mubr.bf16.gmra.mxu0 %v13434_v48 }
 0x378   : > { %v6288_v39 = vld [vmem:[#allocation2 + $0xb0] sm:$0x1]  ;;  %v6281_v28 = vld [vmem:[#allocation2 + $0xa4] sm:$0x1]  ;;  %v6129_v16 = vshrl.u32 %v11994_v24, 16  ;;  %v13543_v3 = vld [vmem:[#allocation9 + $0x190] sm:$0xff]   ;;  %12815 = vmatprep.subr.bf16.mxu0 %v13542_v30 }
 0x379   : > { %v6105_v47 = vrot.slane %v6103_v55, 7  ;;  %v6088_v42 = vrot.slane %v6086_v40, 7  ;;  %v6089_v32 = vshll.u32 %v11989_v52, 16  ;;  %v6876_v45 = vld [vmem:[#allocation2 + $0x2c] sm:$0x1]  ;;  %v6984_v46 = vrot.slane %v15876_v27, 5  ;;  %12816 = vmatpush3.bf16.msra.mxu0 %v13543_v3 }
 0x37a   : > { %v6278_v11 = vsel %vm14053_vm13, %v6083_v20, %v6277_v56  ;;  %v15895_v61 = vrot.slane %v6129_v16, 7  ;;  %v6132_v1 = vshll.u32 %v11994_v24, 16  ;;  %v6298_v0 = vld [vmem:[#allocation2 + $0xc0] sm:$0xf]  ;;  %v6490_v18 = vshrl.u32 %v15883_v50, 16 }
 0x37b   : > { %v13544_v58 = vld [vmem:[#allocation9 + $0x1c8] sm:$0xff]   ;;  %6279 = vst [vmem:[#allocation2 + $0x9c] sm:$0xf] %v6278_v11  ;;  %v6108_v44 = vor.u32 %v6106_v13, %v6105_v47  ;;  %v6110_v21 = vrot.slane %v6105_v47, 4  ;;  %v6091_v36 = vor.u32 %v6089_v32, %v6088_v42  ;;  %v6093_v5 = vrot.slane %v6088_v42, 4 }
 0x37c   : > { %v6379_v12 = vld [vmem:[#allocation2 + $0x28] sm:$0xf]  ;;  %v6380_v63 = vld [vmem:[#allocation2 + $0x2c] sm:$0x1]  ;;  %v6134_v43 = vor.u32 %v6132_v1, %v15895_v61  ;;  %v6985_v31 = vsel %vm14035_vm11, %v11664_v8, %v6984_v46  ;;  %v6986_v59 = vrot.slane %v6984_v46, 4  ;;  %v6987_v29 = vrot.slane %v6876_v45, 5  ;;  %12817 = vmatprep.subr.bf16.mxu0 %v13544_v58 }
 0x37d   : > { %v7157_v35 = vld [vmem:[#allocation2 + $0x84] sm:$0xf]  ;;  %v7158_v54 = vld [vmem:[#allocation2 + $0x88] sm:$0xf]  ;;  %v6109_v19 = vsel %vm14065_vm14, %v6101_v4, %v6108_v44  ;;  %v6289_v7 = vsel %vm14006_vm3, %v6110_v21, %v6288_v39  ;;  %v6092_v27 = vsel %vm14065_vm14, %v6084_v57, %v6091_v36  ;;  %v6282_v2 = vsel %vm14006_vm3, %v6093_v5, %v6281_v28  ;;  %7111 = vst [vmem:[#allocation3 + $0xe0] sm:$0xf] %v6985_v31 }
 0x37e   : > { %7189 = vst [vmem:[#allocation3 + $0x2dc] sm:$0xf] %v7157_v35  ;;  %7190 = vst [vmem:[#allocation3 + $0x300] sm:$0xf] %v7158_v54  ;;  %v6325_v37 = vld [vmem:[#allocation2 + $0x78] sm:$0xf]  ;;  %v6299_v38 = vsel %vm14053_vm13, %v6134_v43, %v6298_v0  ;;  %v6988_v4 = vsel %vm14035_vm11, %v6986_v59, %v6987_v29 }
 0x37f   : > { %v6326_v26 = vld [vmem:[#allocation2 + $0x7c] sm:$0xf]  ;;  %6287 = vst [vmem:[#allocation2 + $0xac] sm:$0xf] %v6109_v19  ;;  %6290 = vst [vmem:[#allocation2 + $0xb0] sm:$0x1] %v6289_v7 }
 0x380   : > { %6280 = vst [vmem:[#allocation2 + $0xa0] sm:$0xf] %v6092_v27  ;;  %6283 = vst [vmem:[#allocation2 + $0xa4] sm:$0x1] %v6282_v2  ;;  %v6492_v49 = vrot.slane %v6490_v18, 4  ;;  %v6493_v53 = vshll.u32 %v15883_v50, 16 }
 0x381   : > { %v6877_v56 = vld [vmem:[#allocation2 + $0x30] sm:$0xe]  ;;  %6357 = vst [vmem:[#allocation3 + $0x2d0] sm:$0xf] %v6325_v37  ;;  %6358 = vst [vmem:[#allocation3 + $0x2f4] sm:$0xf] %v6326_v26 }
 0x382   : > { %v13439_v52 = vld [vmem:[#allocation3 + $0x94] ss:$36 sps:$4 sm:$0xff]   ;;  %6300 = vst [vmem:[#allocation2 + $0xc0] sm:$0xf] %v6299_v38  ;;  %7112 = vst [vmem:[#allocation3 + $0x104] sm:$0xf] %v6988_v4 }
 0x383   : > { %v6499_v24 = vshll.u32 %v6379_v12, 16  ;;  %v6878_v62 = vld [vmem:[#allocation2 + $0x34] sm:$0xf]  ;;  %v13437_v41 = vld [vmem:[#allocation3 + $0x90] ss:$36 sps:$4 sm:$0xff]   ;;  %v6495_v51 = vrot.slane %v6493_v53, 5  ;;  %10360 = vmatprep.mubr.bf16.mxu1 %v13439_v52 }
 0x384   : > { %v6503_v34 = vshrl.u32 %v6379_v12, 16  ;;  %v6509_v6 = vshll.u32 %v6380_v63, 16  ;;  %v5773_v60 = vmax.f32 %v15879_v14, 0.0  ;;  %v6135_v8 = vrot.slane %v15895_v61, 4  ;;  %v6879_v55 = vld [vmem:[#allocation2 + $0x38] sm:$0x1]  ;;  %10361 = vmatmul.mubr.bf16.gmra.mxu1 %v13437_v41 }
 0x385   : > { %v6501_v48 = vrot.slane %v6499_v24, 5  ;;  %v5776_v50 = vmax.f32 %v15886_v17, 0.0  ;;  %v5774_v33 = vmax.f32 %v15890_v15, 0.0  ;;  %v6496_v40 = vor.u32 %v6495_v51, %v6492_v49  ;;  %v6381_v3 = vld [vmem:[#allocation2 + $0x30] sm:$0xf]  ;;  %v13545_v26 = vld [vmem:[#allocation9 + $0x188] sm:$0xff]  }
 0x386   : > { %v6505_v30 = vrot.slane %v6503_v34, 4  ;;  %v11992_v20 = vpack.c.bf16 %v5773_v60, %v5773_v60  ;;  %v11665_v57 = vrot.slane %v6877_v56, 9  ;;  %v6511_v13 = vrot.slane %v6509_v6, 5  ;;  %v15920_v14 = vld [vmem:[#allocation2 + $0x34] sm:$0xf]  ;;  %12818 = vmatpush3.bf16.msra.mxu0 %v13545_v26 }
 0x387   : > { %v11995_v39 = vpack.c.bf16 %v5776_v50, %v5776_v50  ;;  %v11993_v28 = vpack.c.bf16 %v5774_v33, %v5774_v33  ;;  %v6991_v16 = vrot.slane %v6878_v62, 5  ;;  %v7159_v47 = vld [vmem:[#allocation2 + $0x90] sm:$0xf]  ;;  %v7160_v42 = vld [vmem:[#allocation2 + $0x94] sm:$0xf]  ;;  %v6497_v32 = vrot.slane %v6496_v40, 4 }
 0x388   : > { %v6506_v45 = vor.u32 %v6505_v30, %v6501_v48  ;;  %v6112_v17 = vshrl.u32 %v11992_v20, 16  ;;  %v6994_v46 = vrot.slane %v6879_v55, 5  ;;  %7191 = vst [vmem:[#allocation3 + $0x324] sm:$0xf] %v7159_v47  ;;  %7192 = vst [vmem:[#allocation3 + $0x348] sm:$0xf] %v7160_v42 }
 0x389   : > { %v6327_v15 = vld [vmem:[#allocation2 + $0x84] sm:$0xf]  ;;  %v6115_v11 = vshll.u32 %v11992_v20, 16  ;;  %v6137_v1 = vshrl.u32 %v11995_v39, 16  ;;  %v6140_v0 = vshll.u32 %v11995_v39, 16  ;;  %v6120_v18 = vshrl.u32 %v11993_v28, 16 }
 0x38a   : > { %v6328_v58 = vld [vmem:[#allocation2 + $0x88] sm:$0xf]  ;;  %6359 = vst [vmem:[#allocation3 + $0x318] sm:$0xf] %v6327_v15  ;;  %v13442_v44 = vld [vmem:[#allocation3 + $0xe4] ss:$36 sps:$4 sm:$0xff]   ;;  %v6502_v21 = vsel %vm14044_vm12, %v6497_v32, %v6501_v48  ;;  %v6992_v43 = vsel %vm14035_vm11, %v11665_v57, %v6991_v16 }
 0x38b   : > { %v6507_v36 = vrot.slane %v6506_v45, 4  ;;  %v6291_v5 = vld [vmem:[#allocation2 + $0xb4] sm:$0xf]  ;;  %v6302_v12 = vld [vmem:[#allocation2 + $0xc8] sm:$0x1]  ;;  %v6123_v63 = vshll.u32 %v11993_v28, 16  ;;  %10529 = vmatprep.mubr.bf16.mxu0 %v13442_v44 }
 0x38c   : > { %6360 = vst [vmem:[#allocation3 + $0x33c] sm:$0xf] %v6328_v58  ;;  %v13440_v31 = vld [vmem:[#allocation3 + $0xe0] ss:$36 sps:$4 sm:$0xff]   ;;  %6839 = vst [vmem:[#allocation3 + $0xdc] sm:$0xf] %v6502_v21 }
 0x38d   : > { %v6114_v59 = vrot.slane %v6112_v17, 7  ;;  %v6139_v29 = vrot.slane %v6137_v1, 7  ;;  %v6122_v35 = vrot.slane %v6120_v18, 7  ;;  %v6993_v54 = vrot.slane %v6991_v16, 4  ;;  %7113 = vst [vmem:[#allocation3 + $0x128] sm:$0xf] %v6992_v43  ;;  %10530 = vmatmul.mubr.bf16.gmra.mxu0 %v13440_v31 }
 0x38e   : > { %v6512_v19 = vsel %vm14044_vm12, %v6507_v36, %v6511_v13  ;;  %v6295_v7 = vld [vmem:[#allocation2 + $0xbc] sm:$0x1]  ;;  %v6514_v27 = vshrl.u32 %v6381_v3, 16  ;;  %v6517_v2 = vshll.u32 %v6381_v3, 16  ;;  %v6523_v37 = vshll.u32 %v15920_v14, 16  ;;  %v13557_v18 = vld [vmem:[#allocation9 + $0x238] sm:$0xff]  }
 0x38f   : > { %6840 = vst [vmem:[#allocation3 + $0x100] sm:$0xf] %v6512_v19  ;;  %v6117_v38 = vor.u32 %v6115_v11, %v6114_v59  ;;  %v6118_v4 = vrot.slane %v6114_v59, 4  ;;  %v6142_v49 = vor.u32 %v6140_v0, %v6139_v29  ;;  %v6144_v53 = vrot.slane %v6139_v29, 4  ;;  %v15929_v56 = vld [vmem:[#allocation2 + $0x38] sm:$0x1]  ;;  %12989 = vmatprep.subr.bf16.mxu1 %v13557_v18 }
 0x390   : > { %v6880_v52 = vld [vmem:[#allocation2 + $0x3c] sm:$0xe]  ;;  %v6881_v24 = vld [vmem:[#allocation2 + $0x40] sm:$0xf]  ;;  %v6125_v62 = vor.u32 %v6123_v63, %v6122_v35  ;;  %v6127_v41 = vrot.slane %v6122_v35, 4  ;;  %v6995_v51 = vsel %vm14035_vm11, %v6993_v54, %v6994_v46  ;;  %v6516_v34 = vrot.slane %v6514_v27, 4 }
 0x391   : > { %v6882_v6 = vld [vmem:[#allocation2 + $0x44] sm:$0x1]  ;;  %v6384_v60 = vld [vmem:[#allocation2 + $0x3c] sm:$0xf]  ;;  %v6292_v48 = vsel %vm14053_vm13, %v6117_v38, %v6291_v5  ;;  %v6143_v50 = vsel %vm14065_vm14, %v6135_v8, %v6142_v49  ;;  %v6303_v33 = vsel %vm14006_vm3, %v6144_v53, %v6302_v12  ;;  %7114 = vst [vmem:[#allocation3 + $0x14c] sm:$0xf] %v6995_v51 }
 0x392   : > { %v6519_v55 = vrot.slane %v6517_v2, 5  ;;  %v7161_v40 = vld [vmem:[#allocation2 + $0x9c] sm:$0xf]  ;;  %v7162_v30 = vld [vmem:[#allocation2 + $0xa0] sm:$0xf]  ;;  %v6126_v9 = vsel %vm14065_vm14, %v6118_v4, %v6125_v62  ;;  %v6296_v61 = vsel %vm14006_vm3, %v6127_v41, %v6295_v7  ;;  %v6525_v57 = vrot.slane %v6523_v37, 5 }
 0x393   : > { %v13552_v20 = vld [vmem:[#allocation9 + $0x1c0] sm:$0xff]   ;;  %6293 = vst [vmem:[#allocation2 + $0xb4] sm:$0xf] %v6292_v48  ;;  %6301 = vst [vmem:[#allocation2 + $0xc4] sm:$0xf] %v6143_v50  ;;  %v6527_v8 = vshrl.u32 %v15920_v14, 16 }
 0x394   : > { %6304 = vst [vmem:[#allocation2 + $0xc8] sm:$0x1] %v6303_v33  ;;  %7193 = vst [vmem:[#allocation3 + $0x36c] sm:$0xf] %v7161_v40  ;;  %v6329_v13 = vld [vmem:[#allocation2 + $0x90] sm:$0xf]  ;;  %v6520_v28 = vor.u32 %v6519_v55, %v6516_v34  ;;  %12819 = vmatprep.subr.bf16.mxu0 %v13552_v20 }
 0x395   : > { %7194 = vst [vmem:[#allocation3 + $0x390] sm:$0xf] %v7162_v30  ;;  %v6330_v39 = vld [vmem:[#allocation2 + $0x94] sm:$0xf]  ;;  %6294 = vst [vmem:[#allocation2 + $0xb8] sm:$0xf] %v6126_v9  ;;  %12820 = vmatpush3.bf16.msra.mxu0 %v13553_v10 }
 0x396   : > { %6297 = vst [vmem:[#allocation2 + $0xbc] sm:$0x1] %v6296_v61  ;;  %v11666_v16 = vrot.slane %v6880_v52, 9  ;;  %v6998_v3 = vrot.slane %v6881_v24, 5  ;;  %v6385_v47 = vld [vmem:[#allocation2 + $0x40] sm:$0xf] }
 0x397   : > { %6361 = vst [vmem:[#allocation3 + $0x360] sm:$0xf] %v6329_v13  ;;  %6362 = vst [vmem:[#allocation3 + $0x384] sm:$0xf] %v6330_v39  ;;  %v6529_v42 = vrot.slane %v6527_v8, 4  ;;  %v6533_v25 = vshll.u32 %v15929_v56, 16 }
 0x398   : > { %v6538_v32 = vshrl.u32 %v6384_v60, 16  ;;  %v6541_v45 = vshll.u32 %v6384_v60, 16  ;;  %v6521_v14 = vrot.slane %v6520_v28, 4  ;;  %v6999_v17 = vsel %vm14035_vm11, %v11666_v16, %v6998_v3  ;;  %v15949_v11 = vld [vmem:[#allocation2 + $0x44] sm:$0x1] }
 0x399   : > { %v7000_v46 = vrot.slane %v6998_v3, 4  ;;  %v7001_v15 = vrot.slane %v6882_v6, 5  ;;  %v6883_v1 = vld [vmem:[#allocation2 + $0x48] sm:$0xe]  ;;  %v6884_v0 = vld [vmem:[#allocation2 + $0x4c] sm:$0xf]  ;;  %v6530_v44 = vor.u32 %v6529_v42, %v6525_v57 }
 0x39a   : > { %v13446_v58 = vld [vmem:[#allocation3 + $0xdc] ss:$36 sps:$4 sm:$0xff]   ;;  %7115 = vst [vmem:[#allocation3 + $0x170] sm:$0xf] %v6999_v17  ;;  %v6540_v21 = vrot.slane %v6538_v32, 4  ;;  %v6526_v12 = vsel %vm14044_vm12, %v6521_v14, %v6525_v57  ;;  %v6543_v43 = vrot.slane %v6541_v45, 5 }
 0x39b   : > { %v6885_v36 = vld [vmem:[#allocation2 + $0x50] sm:$0x1]  ;;  %v7002_v63 = vsel %vm14035_vm11, %v7000_v46, %v7001_v15  ;;  %v6547_v31 = vshll.u32 %v6385_v47, 16  ;;  %v6387_v59 = vld [vmem:[#allocation2 + $0x48] sm:$0xf]  ;;  %10368 = vmatprep.mubr.bf16.mxu1 %v13446_v58  ;;  %v6531_v35 = vrot.slane %v6530_v44, 4 }
 0x39c   : > { %v13444_v5 = vld [vmem:[#allocation3 + $0xd8] ss:$36 sps:$4 sm:$0xff]   ;;  %v13450_v29 = vld [vmem:[#allocation3 + $0x12c] ss:$36 sps:$4 sm:$0xff]   ;;  %v6535_v54 = vrot.slane %v6533_v25, 5  ;;  %v6544_v7 = vor.u32 %v6543_v43, %v6540_v21  ;;  %v6551_v2 = vshrl.u32 %v6385_v47, 16 }
 0x39d   : > { %6841 = vst [vmem:[#allocation3 + $0x124] sm:$0xf] %v6526_v12  ;;  %7116 = vst [vmem:[#allocation3 + $0x194] sm:$0xf] %v7002_v63  ;;  %10369 = vmatmul.mubr.bf16.gmra.mxu1 %v13444_v5  ;;  %v13448_v19 = vld [vmem:[#allocation3 + $0x128] ss:$36 sps:$4 sm:$0xff]   ;;  %10537 = vmatprep.mubr.bf16.mxu0 %v13450_v29 }
 0x39e   : > { %v6549_v27 = vrot.slane %v6547_v31, 5  ;;  %v6388_v37 = vld [vmem:[#allocation2 + $0x4c] sm:$0xf]  ;;  %v6536_v26 = vsel %vm14044_vm12, %v6531_v35, %v6535_v54  ;;  %v6557_v38 = vshll.u32 %v15949_v11, 16  ;;  %v11667_v4 = vrot.slane %v6883_v1, 9  ;;  %10538 = vmatmul.mubr.bf16.gmra.mxu0 %v13448_v19 }
 0x39f   : > { %v7005_v49 = vrot.slane %v6884_v0, 5  ;;  %v6389_v53 = vld [vmem:[#allocation2 + $0x50] sm:$0x1]  ;;  %6842 = vst [vmem:[#allocation3 + $0x148] sm:$0xf] %v6536_v26  ;;  %v6545_v56 = vrot.slane %v6544_v7, 4 }
 0x3a0   : > { %v6553_v52 = vrot.slane %v6551_v2, 4  ;;  %v7008_v24 = vrot.slane %v6885_v36, 5  ;;  %v6562_v62 = vshrl.u32 %v6387_v59, 16  ;;  %v6886_v41 = vld [vmem:[#allocation2 + $0x54] sm:$0xe]  ;;  %v6565_v48 = vshll.u32 %v6387_v59, 16 }
 0x3a1   : > { %v6887_v51 = vld [vmem:[#allocation2 + $0x58] sm:$0xf]  ;;  %v7163_v34 = vld [vmem:[#allocation2 + $0xa8] sm:$0xf]  ;;  %v7006_v6 = vsel %vm14035_vm11, %v11667_v4, %v7005_v49  ;;  %v7007_v60 = vrot.slane %v7005_v49, 4  ;;  %v6571_v50 = vshll.u32 %v6388_v37, 16  ;;  %v6550_v40 = vsel %vm14044_vm12, %v6545_v56, %v6549_v27 }
 0x3a2   : > { %v6390_v33 = vld [vmem:[#allocation2 + $0x54] sm:$0xf]  ;;  %v7164_v55 = vld [vmem:[#allocation2 + $0xac] sm:$0xf]  ;;  %7195 = vst [vmem:[#allocation3 + $0x3b4] sm:$0xf] %v7163_v34  ;;  %v6554_v30 = vor.u32 %v6553_v52, %v6549_v27 }
 0x3a3   : > { %7117 = vst [vmem:[#allocation3 + $0x1b8] sm:$0xf] %v7006_v6  ;;  %v6564_v20 = vrot.slane %v6562_v62, 4  ;;  %v6575_v9 = vshrl.u32 %v6388_v37, 16  ;;  %v6888_v61 = vld [vmem:[#allocation2 + $0x5c] sm:$0x1]  ;;  %v7009_v8 = vsel %vm14035_vm11, %v7007_v60, %v7008_v24 }
 0x3a4   : > { %7196 = vst [vmem:[#allocation3 + $0x3d8] sm:$0xf] %v7164_v55  ;;  %v6331_v57 = vld [vmem:[#allocation2 + $0x9c] sm:$0xf]  ;;  %6843 = vst [vmem:[#allocation3 + $0x16c] sm:$0xf] %v6550_v40 }
 0x3a5   : > { %v6567_v13 = vrot.slane %v6565_v48, 5  ;;  %v6573_v39 = vrot.slane %v6571_v50, 5  ;;  %v6581_v28 = vshll.u32 %v6389_v53, 16  ;;  %v6332_v16 = vld [vmem:[#allocation2 + $0xa0] sm:$0xf]  ;;  %v6555_v3 = vrot.slane %v6554_v30, 4 }
 0x3a6   : > { %6363 = vst [vmem:[#allocation3 + $0x3a8] sm:$0xf] %v6331_v57  ;;  %v6559_v47 = vrot.slane %v6557_v38, 5  ;;  %7118 = vst [vmem:[#allocation3 + $0x1dc] sm:$0xf] %v7009_v8  ;;  %v6577_v10 = vrot.slane %v6575_v9, 4 }
 0x3a7   : > { %v6391_v42 = vld [vmem:[#allocation2 + $0x58] sm:$0xf]  ;;  %6364 = vst [vmem:[#allocation3 + $0x3cc] sm:$0xf] %v6332_v16  ;;  %v13456_v25 = vld [vmem:[#allocation3 + $0x174] ss:$36 sps:$4 sm:$0xff]   ;;  %v6568_v32 = vor.u32 %v6567_v13, %v6564_v20 }
 0x3a8   : > { %v11668_v45 = vrot.slane %v6886_v41, 9  ;;  %v7012_v14 = vrot.slane %v6887_v51, 5  ;;  %v6392_v17 = vld [vmem:[#allocation2 + $0x5c] sm:$0x1]  ;;  %v13454_v46 = vld [vmem:[#allocation3 + $0x170] ss:$36 sps:$4 sm:$0xff]   ;;  %v6560_v15 = vsel %vm14044_vm12, %v6555_v3, %v6559_v47  ;;  %v6578_v11 = vor.u32 %v6577_v10, %v6573_v39  ;;  %10545 = vmatprep.mubr.bf16.mxu0 %v13456_v25 }
 0x3a9   : > { %v6586_v1 = vshrl.u32 %v6390_v33, 16  ;;  %v6889_v0 = vld [vmem:[#allocation2 + $0x60] sm:$0xe]  ;;  %6844 = vst [vmem:[#allocation3 + $0x190] sm:$0xf] %v6560_v15  ;;  %v6569_v58 = vrot.slane %v6568_v32, 4  ;;  %10546 = vmatmul.mubr.bf16.gmra.mxu0 %v13454_v46 }
 0x3aa   : > { %v13453_v18 = vld [vmem:[#allocation3 + $0x124] ss:$36 sps:$4 sm:$0xff]   ;;  %v6583_v44 = vrot.slane %v6581_v28, 5  ;;  %v7013_v21 = vsel %vm14035_vm11, %v11668_v45, %v7012_v14  ;;  %v7015_v36 = vrot.slane %v6888_v61, 5  ;;  %v6890_v5 = vld [vmem:[#allocation2 + $0x64] sm:$0xf] }
 0x3ab   : > { %v13451_v12 = vld [vmem:[#allocation3 + $0x120] ss:$36 sps:$4 sm:$0xff]   ;;  %v6579_v63 = vrot.slane %v6578_v11, 4  ;;  %v7014_v43 = vrot.slane %v7012_v14, 4  ;;  %7119 = vst [vmem:[#allocation3 + $0x200] sm:$0xf] %v7013_v21  ;;  %10376 = vmatprep.mubr.bf16.mxu1 %v13453_v18  ;;  %v6574_v29 = vsel %vm14044_vm12, %v6569_v58, %v6573_v39 }
 0x3ac   : > { %v6588_v31 = vrot.slane %v6586_v1, 4  ;;  %v6589_v59 = vshll.u32 %v6390_v33, 16  ;;  %v6595_v35 = vshll.u32 %v6391_v42, 16  ;;  %v6599_v54 = vshrl.u32 %v6391_v42, 16  ;;  %v6891_v7 = vld [vmem:[#allocation2 + $0x68] sm:$0x1]  ;;  %10377 = vmatmul.mubr.bf16.gmra.mxu1 %v13451_v12 }
 0x3ad   : > { %v6605_v19 = vshll.u32 %v6392_v17, 16  ;;  %v6584_v27 = vsel %vm14044_vm12, %v6579_v63, %v6583_v44  ;;  %6845 = vst [vmem:[#allocation3 + $0x1b4] sm:$0xf] %v6574_v29  ;;  %v7016_v2 = vsel %vm14035_vm11, %v7014_v43, %v7015_v36  ;;  %v6393_v26 = vld [vmem:[#allocation2 + $0x60] sm:$0xf]  ;;  %v11669_v53 = vrot.slane %v6889_v0, 9 }
 0x3ae   : > { %v6591_v37 = vrot.slane %v6589_v59, 5  ;;  %v6394_v38 = vld [vmem:[#allocation2 + $0x64] sm:$0xf]  ;;  %v13464_v4 = vld [vmem:[#allocation3 + $0x1bc] ss:$36 sps:$4 sm:$0xff]   ;;  %v6597_v49 = vrot.slane %v6595_v35, 5 }
 0x3af   : > { %6846 = vst [vmem:[#allocation3 + $0x1d8] sm:$0xf] %v6584_v27  ;;  %7120 = vst [vmem:[#allocation3 + $0x224] sm:$0xf] %v7016_v2  ;;  %v6395_v56 = vld [vmem:[#allocation2 + $0x68] sm:$0x1]  ;;  %10553 = vmatprep.mubr.bf16.mxu0 %v13464_v4 }
 0x3b0   : > { %v13462_v52 = vld [vmem:[#allocation3 + $0x1b8] ss:$36 sps:$4 sm:$0xff]   ;;  %v6592_v24 = vor.u32 %v6591_v37, %v6588_v31  ;;  %v6601_v62 = vrot.slane %v6599_v54, 4  ;;  %v6607_v41 = vrot.slane %v6605_v19, 5  ;;  %v7019_v51 = vrot.slane %v6890_v5, 5 }
 0x3b1   : > { %v6892_v34 = vld [vmem:[#allocation2 + $0x6c] sm:$0xe]  ;;  %v6893_v6 = vld [vmem:[#allocation2 + $0x70] sm:$0xf]  ;;  %v7022_v60 = vrot.slane %v6891_v7, 5  ;;  %v6610_v48 = vshrl.u32 %v6393_v26, 16  ;;  %10554 = vmatmul.mubr.bf16.gmra.mxu0 %v13462_v52 }
 0x3b2   : > { %v6613_v50 = vshll.u32 %v6393_v26, 16  ;;  %v6619_v33 = vshll.u32 %v6394_v38, 16  ;;  %v7165_v55 = vld [vmem:[#allocation2 + $0xb4] sm:$0xf]  ;;  %v13458_v40 = vld [vmem:[#allocation3 + $0x168] ss:$36 sps:$4 sm:$0xff]   ;;  %v6602_v9 = vor.u32 %v6601_v62, %v6597_v49  ;;  %v7020_v61 = vsel %vm14035_vm11, %v11669_v53, %v7019_v51 }
 0x3b3   : > { %v13460_v30 = vld [vmem:[#allocation3 + $0x16c] ss:$36 sps:$4 sm:$0xff]   ;;  %v6593_v20 = vrot.slane %v6592_v24, 4  ;;  %7197 = vst [vmem:[#allocation3 + $0x3fc] sm:$0xf] %v7165_v55  ;;  %v7021_v57 = vrot.slane %v7019_v51, 4 }
 0x3b4   : > { %7121 = vst [vmem:[#allocation3 + $0x248] sm:$0xf] %v7020_v61  ;;  %v6612_v8 = vrot.slane %v6610_v48, 4  ;;  %v6615_v13 = vrot.slane %v6613_v50, 5  ;;  %v6621_v39 = vrot.slane %v6619_v33, 5  ;;  %10384 = vmatprep.mubr.bf16.mxu1 %v13460_v30  ;;  %v6603_v3 = vrot.slane %v6602_v9, 4 }
 0x3b5   : > { %v6894_v28 = vld [vmem:[#allocation2 + $0x74] sm:$0x1]  ;;  %v6598_v16 = vsel %vm14044_vm12, %v6593_v20, %v6597_v49  ;;  %v6623_v47 = vshrl.u32 %v6394_v38, 16  ;;  %v6629_v10 = vshll.u32 %v6395_v56, 16  ;;  %v6396_v42 = vld [vmem:[#allocation2 + $0x6c] sm:$0xf]  ;;  %v7023_v45 = vsel %vm14035_vm11, %v7021_v57, %v7022_v60  ;;  %10385 = vmatmul.mubr.bf16.gmra.mxu1 %v13458_v40 }
 0x3b6   : > { %v6397_v25 = vld [vmem:[#allocation2 + $0x70] sm:$0xf]  ;;  %v7166_v32 = vld [vmem:[#allocation2 + $0xb8] sm:$0xf]  ;;  %6847 = vst [vmem:[#allocation3 + $0x1fc] sm:$0xf] %v6598_v16  ;;  %v6616_v14 = vor.u32 %v6615_v13, %v6612_v8  ;;  %v6608_v1 = vsel %vm14044_vm12, %v6603_v3, %v6607_v41 }
 0x3b7   : > { %v11670_v17 = vrot.slane %v6892_v34, 9  ;;  %v7026_v46 = vrot.slane %v6893_v6, 5  ;;  %7198 = vst [vmem:[#allocation3 + $0x420] sm:$0xf] %v7166_v32  ;;  %v6333_v15 = vld [vmem:[#allocation2 + $0xa8] sm:$0xf] }
 0x3b8   : > { %v13467_v11 = vld [vmem:[#allocation3 + $0x1b4] ss:$36 sps:$4 sm:$0xff]   ;;  %7122 = vst [vmem:[#allocation3 + $0x26c] sm:$0xf] %v7023_v45  ;;  %v6625_v0 = vrot.slane %v6623_v47, 4  ;;  %v6617_v44 = vrot.slane %v6616_v14, 4 }
 0x3b9   : > { %v6398_v18 = vld [vmem:[#allocation2 + $0x74] sm:$0x1]  ;;  %6365 = vst [vmem:[#allocation3 + $0x3f0] sm:$0xf] %v6333_v15  ;;  %v13470_v58 = vld [vmem:[#allocation3 + $0x204] ss:$36 sps:$4 sm:$0xff]   ;;  %v7027_v21 = vsel %vm14035_vm11, %v11670_v17, %v7026_v46  ;;  %10392 = vmatprep.mubr.bf16.mxu1 %v13467_v11 }
 0x3ba   : > { %6848 = vst [vmem:[#allocation3 + $0x220] sm:$0xf] %v6608_v1  ;;  %v6895_v36 = vld [vmem:[#allocation2 + $0x78] sm:$0xe]  ;;  %v6896_v5 = vld [vmem:[#allocation2 + $0x7c] sm:$0xf]  ;;  %v6626_v12 = vor.u32 %v6625_v0, %v6621_v39  ;;  %10561 = vmatprep.mubr.bf16.mxu0 %v13470_v58  ;;  %v6622_v29 = vsel %vm14044_vm12, %v6617_v44, %v6621_v39 }
 0x3bb   : > { %v6631_v63 = vrot.slane %v6629_v10, 5  ;;  %v7028_v43 = vrot.slane %v7026_v46, 4  ;;  %v7029_v31 = vrot.slane %v6894_v28, 5  ;;  %7123 = vst [vmem:[#allocation3 + $0x290] sm:$0xf] %v7027_v21  ;;  %v6634_v35 = vshrl.u32 %v6396_v42, 16 }
 0x3bc   : > { %v6334_v59 = vld [vmem:[#allocation2 + $0xac] sm:$0xf]  ;;  %v6637_v54 = vshll.u32 %v6396_v42, 16  ;;  %v6643_v19 = vshll.u32 %v6397_v25, 16  ;;  %v6897_v7 = vld [vmem:[#allocation2 + $0x80] sm:$0x1] }
 0x3bd   : > { %6366 = vst [vmem:[#allocation3 + $0x414] sm:$0xf] %v6334_v59  ;;  %v13468_v27 = vld [vmem:[#allocation3 + $0x200] ss:$36 sps:$4 sm:$0xff]   ;;  %v6627_v2 = vrot.slane %v6626_v12, 4  ;;  %v7030_v37 = vsel %vm14035_vm11, %v7028_v43, %v7029_v31  ;;  %v6647_v26 = vshrl.u32 %v6397_v25, 16 }
 0x3be   : > { %6849 = vst [vmem:[#allocation3 + $0x244] sm:$0xf] %v6622_v29  ;;  %v6653_v38 = vshll.u32 %v6398_v18, 16  ;;  %v6399_v4 = vld [vmem:[#allocation2 + $0x78] sm:$0xf]  ;;  %v6636_v49 = vrot.slane %v6634_v35, 4  ;;  %10562 = vmatmul.mubr.bf16.gmra.mxu0 %v13468_v27 }
 0x3bf   : > { %7124 = vst [vmem:[#allocation3 + $0x2b4] sm:$0xf] %v7030_v37  ;;  %v6639_v53 = vrot.slane %v6637_v54, 5  ;;  %v6645_v56 = vrot.slane %v6643_v19, 5  ;;  %v6400_v52 = vld [vmem:[#allocation2 + $0x7c] sm:$0xf]  ;;  %v6632_v62 = vsel %vm14044_vm12, %v6627_v2, %v6631_v63 }
 0x3c0   : > { %v13465_v24 = vld [vmem:[#allocation3 + $0x1b0] ss:$36 sps:$4 sm:$0xff]   ;;  %v6649_v41 = vrot.slane %v6647_v26, 4  ;;  %v11671_v51 = vrot.slane %v6895_v36, 9  ;;  %v7033_v34 = vrot.slane %v6896_v5, 5  ;;  %v6655_v48 = vrot.slane %v6653_v38, 5 }
 0x3c1   : > { %v13478_v6 = vld [vmem:[#allocation3 + $0x24c] ss:$36 sps:$4 sm:$0xff]   ;;  %6850 = vst [vmem:[#allocation3 + $0x268] sm:$0xf] %v6632_v62  ;;  %v6640_v60 = vor.u32 %v6639_v53, %v6636_v49  ;;  %v6401_v50 = vld [vmem:[#allocation2 + $0x80] sm:$0x1]  ;;  %10393 = vmatmul.mubr.bf16.gmra.mxu1 %v13465_v24 }
 0x3c2   : > { %v13474_v33 = vld [vmem:[#allocation3 + $0x1fc] ss:$36 sps:$4 sm:$0xff]   ;;  %v6650_v55 = vor.u32 %v6649_v41, %v6645_v56  ;;  %v7034_v40 = vsel %vm14035_vm11, %v11671_v51, %v7033_v34  ;;  %v7035_v30 = vrot.slane %v7033_v34, 4  ;;  %v7036_v20 = vrot.slane %v6897_v7, 5  ;;  %v6898_v9 = vld [vmem:[#allocation2 + $0x84] sm:$0xe]  ;;  %10569 = vmatprep.mubr.bf16.mxu0 %v13478_v6 }
 0x3c3   : > { %v6899_v61 = vld [vmem:[#allocation2 + $0x88] sm:$0xf]  ;;  %v6641_v57 = vrot.slane %v6640_v60, 4  ;;  %7125 = vst [vmem:[#allocation3 + $0x2d8] sm:$0xf] %v7034_v40  ;;  %v6658_v8 = vshrl.u32 %v6399_v4, 16  ;;  %10400 = vmatprep.mubr.bf16.mxu1 %v13474_v33 }
 0x3c4   : > { %v6661_v13 = vshll.u32 %v6399_v4, 16  ;;  %v6667_v39 = vshll.u32 %v6400_v52, 16  ;;  %v6900_v28 = vld [vmem:[#allocation2 + $0x8c] sm:$0x1]  ;;  %v6651_v16 = vrot.slane %v6650_v55, 4  ;;  %v7037_v3 = vsel %vm14035_vm11, %v7035_v30, %v7036_v20 }
 0x3c5   : > { %v6671_v47 = vshrl.u32 %v6400_v52, 16  ;;  %v6677_v10 = vshll.u32 %v6401_v50, 16  ;;  %v6402_v42 = vld [vmem:[#allocation2 + $0x84] sm:$0xf]  ;;  %v6646_v25 = vsel %vm14044_vm12, %v6641_v57, %v6645_v56  ;;  %7126 = vst [vmem:[#allocation3 + $0x2fc] sm:$0xf] %v7037_v3 }
 0x3c6   : > { %v6660_v32 = vrot.slane %v6658_v8, 4  ;;  %v6663_v45 = vrot.slane %v6661_v13, 5  ;;  %v6669_v14 = vrot.slane %v6667_v39, 5  ;;  %v6403_v17 = vld [vmem:[#allocation2 + $0x88] sm:$0xf]  ;;  %v6656_v11 = vsel %vm14044_vm12, %v6651_v16, %v6655_v48 }
 0x3c7   : > { %v13472_v46 = vld [vmem:[#allocation3 + $0x1f8] ss:$36 sps:$4 sm:$0xff]   ;;  %v13476_v15 = vld [vmem:[#allocation3 + $0x248] ss:$36 sps:$4 sm:$0xff]   ;;  %6851 = vst [vmem:[#allocation3 + $0x28c] sm:$0xf] %v6646_v25 }
 0x3c8   : > { %v6673_v1 = vrot.slane %v6671_v47, 4  ;;  %v6404_v0 = vld [vmem:[#allocation2 + $0x8c] sm:$0x1]  ;;  %6852 = vst [vmem:[#allocation3 + $0x2b0] sm:$0xf] %v6656_v11  ;;  %v6664_v58 = vor.u32 %v6663_v45, %v6660_v32  ;;  %v11672_v44 = vrot.slane %v6898_v9, 9  ;;  %10570 = vmatmul.mubr.bf16.gmra.mxu0 %v13476_v15 }
 0x3c9   : > { %v13486_v18 = vld [vmem:[#allocation3 + $0x294] ss:$36 sps:$4 sm:$0xff]   ;;  %v7040_v21 = vrot.slane %v6899_v61, 5  ;;  %v7167_v36 = vld [vmem:[#allocation2 + $0xc0] sm:$0xf]  ;;  %v6679_v63 = vrot.slane %v6677_v10, 5  ;;  %10401 = vmatmul.mubr.bf16.gmra.mxu1 %v13472_v46 }
 0x3ca   : > { %v13481_v5 = vld [vmem:[#allocation3 + $0x244] ss:$36 sps:$4 sm:$0xff]   ;;  %v6674_v12 = vor.u32 %v6673_v1, %v6669_v14  ;;  %v7043_v43 = vrot.slane %v6900_v28, 5  ;;  %7199 = vst [vmem:[#allocation3 + $0x444] sm:$0xf] %v7167_v36  ;;  %10577 = vmatprep.mubr.bf16.mxu0 %v13486_v18  ;;  %v6665_v31 = vrot.slane %v6664_v58, 4 }
 0x3cb   : > { %v7041_v59 = vsel %vm14035_vm11, %v11672_v44, %v7040_v21  ;;  %v7042_v29 = vrot.slane %v7040_v21, 4  ;;  %v6682_v35 = vshrl.u32 %v6402_v42, 16  ;;  %v6901_v54 = vld [vmem:[#allocation2 + $0x90] sm:$0xe]  ;;  %v6902_v19 = vld [vmem:[#allocation2 + $0x94] sm:$0xf]  ;;  %10408 = vmatprep.mubr.bf16.mxu1 %v13481_v5 }
 0x3cc   : > { %v7168_v7 = vld [vmem:[#allocation2 + $0xc4] sm:$0xf]  ;;  %v6675_v27 = vrot.slane %v6674_v12, 4  ;;  %7127 = vst [vmem:[#allocation3 + $0x320] sm:$0xf] %v7041_v59  ;;  %v6685_v2 = vshll.u32 %v6402_v42, 16  ;;  %v6670_v4 = vsel %vm14044_vm12, %v6665_v31, %v6669_v14 }
 0x3cd   : > { %v6691_v37 = vshll.u32 %v6403_v17, 16  ;;  %v6695_v26 = vshrl.u32 %v6403_v17, 16  ;;  %v6903_v38 = vld [vmem:[#allocation2 + $0x98] sm:$0x1]  ;;  %7200 = vst [vmem:[#allocation3 + $0x468] sm:$0xf] %v7168_v7  ;;  %v7044_v49 = vsel %vm14035_vm11, %v7042_v29, %v7043_v43 }
 0x3ce   : > { %v6684_v53 = vrot.slane %v6682_v35, 4  ;;  %v6701_v56 = vshll.u32 %v6404_v0, 16  ;;  %v6335_v52 = vld [vmem:[#allocation2 + $0xb4] sm:$0xf]  ;;  %v6336_v24 = vld [vmem:[#allocation2 + $0xb8] sm:$0xf]  ;;  %v6680_v62 = vsel %vm14044_vm12, %v6675_v27, %v6679_v63 }
 0x3cf   : > { %6853 = vst [vmem:[#allocation3 + $0x2d4] sm:$0xf] %v6670_v4  ;;  %7128 = vst [vmem:[#allocation3 + $0x344] sm:$0xf] %v7044_v49  ;;  %v6687_v41 = vrot.slane %v6685_v2, 5  ;;  %v6693_v60 = vrot.slane %v6691_v37, 5  ;;  %v12485_v4 = vpop.f32.mrf.mxu1 }
 0x3d0   : > { %v6405_v51 = vld [vmem:[#allocation2 + $0x90] sm:$0xf]  ;;  %v6406_v34 = vld [vmem:[#allocation2 + $0x94] sm:$0xf]  ;;  %6367 = vst [vmem:[#allocation3 + $0x438] sm:$0xf] %v6335_v52 }
 0x3d1   : > { %6368 = vst [vmem:[#allocation3 + $0x45c] sm:$0xf] %v6336_v24  ;;  %v13484_v6 = vld [vmem:[#allocation3 + $0x290] ss:$36 sps:$4 sm:$0xff]   ;;  %6854 = vst [vmem:[#allocation3 + $0x2f8] sm:$0xf] %v6680_v62  ;;  %v6688_v55 = vor.u32 %v6687_v41, %v6684_v53 }
 0x3d2   : > { %v6697_v48 = vrot.slane %v6695_v26, 4  ;;  %v6407_v50 = vld [vmem:[#allocation2 + $0x98] sm:$0x1]  ;;  %v6703_v40 = vrot.slane %v6701_v56, 5  ;;  %v11673_v30 = vrot.slane %v6901_v54, 9  ;;  %v7047_v20 = vrot.slane %v6902_v19, 5  ;;  %10578 = vmatmul.mubr.bf16.gmra.mxu0 %v13484_v6 }
 0x3d3   : > { %v13479_v33 = vld [vmem:[#allocation3 + $0x240] ss:$36 sps:$4 sm:$0xff]   ;;  %v7050_v57 = vrot.slane %v6903_v38, 5  ;;  %v6706_v8 = vshrl.u32 %v6405_v51, 16  ;;  %v6709_v13 = vshll.u32 %v6405_v51, 16  ;;  %v6689_v16 = vrot.slane %v6688_v55, 4 }
 0x3d4   : > { %v13494_v9 = vld [vmem:[#allocation3 + $0x2dc] ss:$36 sps:$4 sm:$0xff]   ;;  %v6698_v61 = vor.u32 %v6697_v48, %v6693_v60  ;;  %v6904_v39 = vld [vmem:[#allocation2 + $0x9c] sm:$0xe]  ;;  %v13490_v28 = vld [vmem:[#allocation3 + $0x28c] ss:$36 sps:$4 sm:$0xff]   ;;  %v7048_v3 = vsel %vm14035_vm11, %v11673_v30, %v7047_v20  ;;  %10409 = vmatmul.mubr.bf16.gmra.mxu1 %v13479_v33 }
 0x3d5   : > { %v7049_v47 = vrot.slane %v7047_v20, 4  ;;  %v6715_v10 = vshll.u32 %v6406_v34, 16  ;;  %v6905_v42 = vld [vmem:[#allocation2 + $0xa0] sm:$0xf]  ;;  %v6906_v25 = vld [vmem:[#allocation2 + $0xa4] sm:$0x1]  ;;  %10585 = vmatprep.mubr.bf16.mxu0 %v13494_v9  ;;  %v6694_v46 = vsel %vm14044_vm12, %v6689_v16, %v6693_v60  ;;  %10416 = vmatprep.mubr.bf16.mxu1 %v13490_v28 }
 0x3d6   : > { %v6699_v32 = vrot.slane %v6698_v61, 4  ;;  %7129 = vst [vmem:[#allocation3 + $0x368] sm:$0xf] %v7048_v3  ;;  %v6708_v45 = vrot.slane %v6706_v8, 4  ;;  %v6711_v14 = vrot.slane %v6709_v13, 5  ;;  %v6719_v17 = vshrl.u32 %v6406_v34, 16  ;;  %v12486_v8 = vpop.f32.mrf.mxu1 }
 0x3d7   : > { %v7051_v15 = vsel %vm14035_vm11, %v7049_v47, %v7050_v57  ;;  %v6717_v11 = vrot.slane %v6715_v10, 5  ;;  %v6725_v1 = vshll.u32 %v6407_v50, 16  ;;  %v6408_v0 = vld [vmem:[#allocation2 + $0x9c] sm:$0xf]  ;;  %v7969_v18 = vld [vmem:[#allocation2 + $0x18] sm:$0xf]  ;;  %v16022_v16 = vadd.f32 %v12486_v8, %v12485_v4 }
 0x3d8   : > { %v6704_v58 = vsel %vm14044_vm12, %v6699_v32, %v6703_v40  ;;  %6855 = vst [vmem:[#allocation3 + $0x31c] sm:$0xf] %v6694_v46  ;;  %7130 = vst [vmem:[#allocation3 + $0x38c] sm:$0xf] %v7051_v15  ;;  %v6712_v44 = vor.u32 %v6711_v14, %v6708_v45  ;;  %v6721_v21 = vrot.slane %v6719_v17, 4  ;;  %v11674_v12 = vrot.slane %v6904_v39, 9 }
 0x3d9   : > { %v6409_v36 = vld [vmem:[#allocation2 + $0xa0] sm:$0xf]  ;;  %8001 = vst [vmem:[#allocation3 + $0x18] sm:$0xf] %v7969_v18  ;;  %6856 = vst [vmem:[#allocation3 + $0x340] sm:$0xf] %v6704_v58 }
 0x3da   : > { %v6727_v5 = vrot.slane %v6725_v1, 5  ;;  %v6410_v63 = vld [vmem:[#allocation2 + $0xa4] sm:$0x1]  ;;  %v13492_v43 = vld [vmem:[#allocation3 + $0x2d8] ss:$36 sps:$4 sm:$0xff]   ;;  %v6713_v31 = vrot.slane %v6712_v44, 4  ;;  %v6722_v59 = vor.u32 %v6721_v21, %v6717_v11 }
 0x3db   : > { %v7054_v29 = vrot.slane %v6905_v42, 5  ;;  %v7057_v35 = vrot.slane %v6906_v25, 5  ;;  %v6907_v54 = vld [vmem:[#allocation2 + $0xa8] sm:$0xe]  ;;  %v6908_v19 = vld [vmem:[#allocation2 + $0xac] sm:$0xf]  ;;  %10586 = vmatmul.mubr.bf16.gmra.mxu0 %v13492_v43 }
 0x3dc   : > { %v6730_v7 = vshrl.u32 %v6408_v0, 16  ;;  %v6733_v27 = vshll.u32 %v6408_v0, 16  ;;  %v6739_v2 = vshll.u32 %v6409_v36, 16  ;;  %v6743_v37 = vshrl.u32 %v6409_v36, 16  ;;  %v6909_v26 = vld [vmem:[#allocation2 + $0xb0] sm:$0x1] }
 0x3dd   : > { %v7970_v38 = vld [vmem:[#allocation2 + $0x1c] sm:$0xf]  ;;  %v13488_v49 = vld [vmem:[#allocation3 + $0x288] ss:$36 sps:$4 sm:$0xff]   ;;  %v6718_v56 = vsel %vm14044_vm12, %v6713_v31, %v6717_v11  ;;  %v6723_v52 = vrot.slane %v6722_v59, 4  ;;  %v7055_v24 = vsel %vm14035_vm11, %v11674_v12, %v7054_v29  ;;  %v7056_v62 = vrot.slane %v7054_v29, 4 }
 0x3de   : > { %v13502_v53 = vld [vmem:[#allocation3 + $0x324] ss:$36 sps:$4 sm:$0xff]   ;;  %8002 = vst [vmem:[#allocation3 + $0x3c] sm:$0xf] %v7970_v38  ;;  %6857 = vst [vmem:[#allocation3 + $0x364] sm:$0xf] %v6718_v56  ;;  %10417 = vmatmul.mubr.bf16.gmra.mxu1 %v13488_v49 }
 0x3df   : > { %7131 = vst [vmem:[#allocation3 + $0x3b0] sm:$0xf] %v7055_v24  ;;  %v6732_v41 = vrot.slane %v6730_v7, 4  ;;  %v6735_v51 = vrot.slane %v6733_v27, 5  ;;  %v6741_v34 = vrot.slane %v6739_v2, 5  ;;  %v6745_v6 = vrot.slane %v6743_v37, 4  ;;  %10593 = vmatprep.mubr.bf16.mxu0 %v13502_v53 }
 0x3e0   : > { %v6411_v60 = vld [vmem:[#allocation2 + $0xa8] sm:$0xf]  ;;  %v13497_v48 = vld [vmem:[#allocation3 + $0x2d4] ss:$36 sps:$4 sm:$0xff]   ;;  %v6728_v50 = vsel %vm14044_vm12, %v6723_v52, %v6727_v5  ;;  %v7058_v33 = vsel %vm14035_vm11, %v7056_v62, %v7057_v35  ;;  %v6749_v55 = vshll.u32 %v6410_v63, 16  ;;  %v11675_v9 = vrot.slane %v6907_v54, 9 }
 0x3e1   : > { %v6412_v40 = vld [vmem:[#allocation2 + $0xac] sm:$0xf]  ;;  %6858 = vst [vmem:[#allocation3 + $0x388] sm:$0xf] %v6728_v50  ;;  %7132 = vst [vmem:[#allocation3 + $0x3d4] sm:$0xf] %v7058_v33  ;;  %v6736_v30 = vor.u32 %v6735_v51, %v6732_v41  ;;  %v6746_v20 = vor.u32 %v6745_v6, %v6741_v34  ;;  %10424 = vmatprep.mubr.bf16.mxu1 %v13497_v48 }
 0x3e2   : > { %v7061_v61 = vrot.slane %v6908_v19, 5  ;;  %v6413_v57 = vld [vmem:[#allocation2 + $0xb0] sm:$0x1]  ;;  %v6751_v13 = vrot.slane %v6749_v55, 5  ;;  %v7064_v39 = vrot.slane %v6909_v26, 5  ;;  %v6754_v32 = vshrl.u32 %v6411_v60, 16 }
 0x3e3   : > { %v6910_v28 = vld [vmem:[#allocation2 + $0xb4] sm:$0xe]  ;;  %v6737_v3 = vrot.slane %v6736_v30, 4  ;;  %v6747_v47 = vrot.slane %v6746_v20, 4  ;;  %v6911_v25 = vld [vmem:[#allocation2 + $0xb8] sm:$0xf] }
 0x3e4   : > { %v7062_v10 = vsel %vm14035_vm11, %v11675_v9, %v7061_v61  ;;  %v7063_v42 = vrot.slane %v7061_v61, 4  ;;  %v6757_v45 = vshll.u32 %v6411_v60, 16  ;;  %v6763_v14 = vshll.u32 %v6412_v40, 16  ;;  %v6912_v46 = vld [vmem:[#allocation2 + $0xbc] sm:$0x1] }
 0x3e5   : > { %7133 = vst [vmem:[#allocation3 + $0x3f8] sm:$0xf] %v7062_v10  ;;  %v6767_v17 = vshrl.u32 %v6412_v40, 16  ;;  %v6414_v15 = vld [vmem:[#allocation2 + $0xb4] sm:$0xf]  ;;  %v6742_v0 = vsel %vm14044_vm12, %v6737_v3, %v6741_v34  ;;  %v6752_v18 = vsel %vm14044_vm12, %v6747_v47, %v6751_v13  ;;  %v6773_v44 = vshll.u32 %v6413_v57, 16 }
 0x3e6   : > { %v13500_v11 = vld [vmem:[#allocation3 + $0x320] ss:$36 sps:$4 sm:$0xff]   ;;  %v13510_v1 = vld [vmem:[#allocation3 + $0x36c] ss:$36 sps:$4 sm:$0xff]   ;;  %v7065_v58 = vsel %vm14035_vm11, %v7063_v42, %v7064_v39  ;;  %6859 = vst [vmem:[#allocation3 + $0x3ac] sm:$0xf] %v6742_v0 }
 0x3e7   : > { %6860 = vst [vmem:[#allocation3 + $0x3d0] sm:$0xf] %v6752_v18  ;;  %7134 = vst [vmem:[#allocation3 + $0x41c] sm:$0xf] %v7065_v58  ;;  %v6756_v21 = vrot.slane %v6754_v32, 4  ;;  %v6759_v36 = vrot.slane %v6757_v45, 5  ;;  %10594 = vmatmul.mubr.bf16.gmra.mxu0 %v13500_v11 }
 0x3e8   : > { %v6765_v5 = vrot.slane %v6763_v14, 5  ;;  %v6769_v12 = vrot.slane %v6767_v17, 4  ;;  %v13495_v63 = vld [vmem:[#allocation3 + $0x2d0] ss:$36 sps:$4 sm:$0xff]   ;;  %v11676_v43 = vrot.slane %v6910_v28, 9  ;;  %v7068_v31 = vrot.slane %v6911_v25, 5  ;;  %10601 = vmatprep.mubr.bf16.mxu0 %v13510_v1 }
 0x3e9   : > { %v6415_v59 = vld [vmem:[#allocation2 + $0xb8] sm:$0xf]  ;;  %v6760_v35 = vor.u32 %v6759_v36, %v6756_v21  ;;  %v6416_v19 = vld [vmem:[#allocation2 + $0xbc] sm:$0x1]  ;;  %v6778_v7 = vshrl.u32 %v6414_v15, 16  ;;  %10425 = vmatmul.mubr.bf16.gmra.mxu1 %v13495_v63  ;;  %v6775_v27 = vrot.slane %v6773_v44, 5 }
 0x3ea   : > { %v13506_v29 = vld [vmem:[#allocation3 + $0x31c] ss:$36 sps:$4 sm:$0xff]   ;;  %v6770_v54 = vor.u32 %v6769_v12, %v6765_v5  ;;  %v7069_v2 = vsel %vm14035_vm11, %v11676_v43, %v7068_v31  ;;  %v7070_v37 = vrot.slane %v7068_v31, 4  ;;  %v7071_v26 = vrot.slane %v6912_v46, 5  ;;  %v8034_v52 = vld [vmem:[#allocation2 + $0x1c] sm:$0xf] }
 0x3eb   : > { %v8033_v38 = vld [vmem:[#allocation2 + $0x18] sm:$0xf]  ;;  %10432 = vmatprep.mubr.bf16.mxu1 %v13506_v29  ;;  %v6761_v4 = vrot.slane %v6760_v35, 4  ;;  %7135 = vst [vmem:[#allocation3 + $0x440] sm:$0xf] %v7069_v2  ;;  %v6780_v53 = vrot.slane %v6778_v7, 4 }
 0x3ec   : > { %v6771_v49 = vrot.slane %v6770_v54, 4  ;;  %v6781_v56 = vshll.u32 %v6414_v15, 16  ;;  %v7072_v24 = vsel %vm14035_vm11, %v7070_v37, %v7071_v26  ;;  %v6787_v62 = vshll.u32 %v6415_v59, 16  ;;  %v8035_v34 = vld [vmem:[#allocation2 + $0x20] sm:$0x1] }
 0x3ed   : > { %v6791_v41 = vshrl.u32 %v6415_v59, 16  ;;  %v6797_v51 = vshll.u32 %v6416_v19, 16  ;;  %v7971_v6 = vld [vmem:[#allocation2 + $0x24] sm:$0xf]  ;;  %v6766_v60 = vsel %vm14044_vm12, %v6761_v4, %v6765_v5  ;;  %7136 = vst [vmem:[#allocation3 + $0x464] sm:$0xf] %v7072_v24 }
 0x3ee   : > { %v6776_v48 = vsel %vm14044_vm12, %v6771_v49, %v6775_v27  ;;  %v6783_v50 = vrot.slane %v6781_v56, 5  ;;  %v8082_v33 = vshrl.u32 %v8033_v38, 16  ;;  %v7201_v55 = vld [vmem:[#allocation2 + $0xc] sm:$0xf]  ;;  %v7972_v40 = vld [vmem:[#allocation2 + $0x28] sm:$0xf] }
 0x3ef   : > { %8003 = vst [vmem:[#allocation3 + $0x60] sm:$0xf] %v7971_v6  ;;  %v13508_v30 = vld [vmem:[#allocation3 + $0x368] ss:$36 sps:$4 sm:$0xff]   ;;  %6861 = vst [vmem:[#allocation3 + $0x3f4] sm:$0xf] %v6766_v60 }
 0x3f0   : > { %6862 = vst [vmem:[#allocation3 + $0x418] sm:$0xf] %v6776_v48  ;;  %v6789_v20 = vrot.slane %v6787_v62, 5  ;;  %v6793_v9 = vrot.slane %v6791_v41, 4  ;;  %8004 = vst [vmem:[#allocation3 + $0x84] sm:$0xf] %v7972_v40  ;;  %v6784_v8 = vor.u32 %v6783_v50, %v6780_v53  ;;  %10602 = vmatmul.mubr.bf16.gmra.mxu0 %v13508_v30 }
 0x3f1   : > { %v13504_v61 = vld [vmem:[#allocation3 + $0x318] ss:$36 sps:$4 sm:$0xff]   ;;  %v6799_v13 = vrot.slane %v6797_v51, 5  ;;  %v8084_v28 = vrot.slane %v8082_v33, 4  ;;  %v8085_v3 = vshll.u32 %v8033_v38, 16  ;;  %v8091_v47 = vshll.u32 %v8034_v52, 16 }
 0x3f2   : > { %v13518_v57 = vld [vmem:[#allocation3 + $0x3b4] ss:$36 sps:$4 sm:$0xff]   ;;  %v6794_v39 = vor.u32 %v6793_v9, %v6789_v20  ;;  %v13513_v42 = vld [vmem:[#allocation3 + $0x364] ss:$36 sps:$4 sm:$0xff]   ;;  %v6785_v25 = vrot.slane %v6784_v8, 4  ;;  %v8095_v32 = vshrl.u32 %v8034_v52, 16  ;;  %10433 = vmatmul.mubr.bf16.gmra.mxu1 %v13504_v61 }
 0x3f3   : > { %v7202_v10 = vld [vmem:[#allocation2 + $0x10] sm:$0xf]  ;;  %10609 = vmatprep.mubr.bf16.mxu0 %v13518_v57  ;;  %v8101_v45 = vshll.u32 %v8035_v34, 16  ;;  %v7203_v14 = vld [vmem:[#allocation2 + $0x14] sm:$0x1]  ;;  %v7250_v17 = vshrl.u32 %v7201_v55, 16  ;;  %10440 = vmatprep.mubr.bf16.mxu1 %v13513_v42 }
 0x3f4   : > { %v6795_v46 = vrot.slane %v6794_v39, 4  ;;  %v8087_v15 = vrot.slane %v8085_v3, 5  ;;  %v8093_v11 = vrot.slane %v8091_v47, 5  ;;  %v7253_v1 = vshll.u32 %v7201_v55, 16  ;;  %v7697_v44 = vld [vmem:[#allocation2 + $0xc] sm:$0xe] }
 0x3f5   : > { %v6790_v0 = vsel %vm14044_vm12, %v6785_v25, %v6789_v20  ;;  %v8097_v18 = vrot.slane %v8095_v32, 4  ;;  %v7252_v58 = vrot.slane %v7250_v17, 4  ;;  %v7698_v21 = vld [vmem:[#allocation2 + $0x10] sm:$0xf]  ;;  %v13516_v36 = vld [vmem:[#allocation3 + $0x3b0] ss:$36 sps:$4 sm:$0xff]  }
 0x3f6   : > { %v6800_v5 = vsel %vm14044_vm12, %v6795_v46, %v6799_v13  ;;  %6863 = vst [vmem:[#allocation3 + $0x43c] sm:$0xf] %v6790_v0  ;;  %v8088_v12 = vor.u32 %v8087_v15, %v8084_v28  ;;  %v7255_v63 = vrot.slane %v7253_v1, 5  ;;  %v7699_v43 = vld [vmem:[#allocation2 + $0x14] sm:$0x1]  ;;  %v8103_v59 = vrot.slane %v8101_v45, 5 }
 0x3f7   : > { %6864 = vst [vmem:[#allocation3 + $0x460] sm:$0xf] %v6800_v5  ;;  %v8098_v31 = vor.u32 %v8097_v18, %v8093_v11  ;;  %v7259_v29 = vshll.u32 %v7202_v10, 16  ;;  %v7263_v35 = vshrl.u32 %v7202_v10, 16  ;;  %v8036_v54 = vld [vmem:[#allocation2 + $0x24] sm:$0xf] }
 0x3f8   : > { %v13526_v19 = vld [vmem:[#allocation3 + $0x3fc] ss:$36 sps:$4 sm:$0xff]   ;;  %v8089_v7 = vrot.slane %v8088_v12, 4  ;;  %v7256_v27 = vor.u32 %v7255_v63, %v7252_v58  ;;  %v7269_v2 = vshll.u32 %v7203_v14, 16  ;;  %v11677_v37 = vrot.slane %v7697_v44, 9  ;;  %10610 = vmatmul.mubr.bf16.gmra.mxu0 %v13516_v36 }
 0x3f9   : > { %v8099_v26 = vrot.slane %v8098_v31, 4  ;;  %v7261_v38 = vrot.slane %v7259_v29, 5  ;;  %v7265_v4 = vrot.slane %v7263_v35, 4  ;;  %v7795_v49 = vrot.slane %v7698_v21, 5  ;;  %v8037_v53 = vld [vmem:[#allocation2 + $0x28] sm:$0xf]  ;;  %10617 = vmatprep.mubr.bf16.mxu0 %v13526_v19 }
 0x3fa   : > { %v13511_v56 = vld [vmem:[#allocation3 + $0x360] ss:$36 sps:$4 sm:$0xff]   ;;  %v8094_v52 = vsel %vm14044_vm12, %v8089_v7, %v8093_v11  ;;  %v7257_v24 = vrot.slane %v7256_v27, 4  ;;  %v7798_v62 = vrot.slane %v7699_v43, 5  ;;  %v13522_v41 = vld [vmem:[#allocation3 + $0x3ac] ss:$36 sps:$4 sm:$0xff]  }
 0x3fb   : > { %v8104_v51 = vsel %vm14044_vm12, %v8099_v26, %v8103_v59  ;;  %8497 = vst [vmem:[#allocation3 + $0x1c] sm:$0xf] %v8094_v52  ;;  %v7266_v34 = vor.u32 %v7265_v4, %v7261_v38  ;;  %v7796_v6 = vsel %vm14035_vm11, %v11677_v37, %v7795_v49  ;;  %v7797_v60 = vrot.slane %v7795_v49, 4  ;;  %v8038_v48 = vld [vmem:[#allocation2 + $0x2c] sm:$0x1]  ;;  %10441 = vmatmul.mubr.bf16.gmra.mxu1 %v13511_v56 }
 0x3fc   : > { %8498 = vst [vmem:[#allocation3 + $0x40] sm:$0xf] %v8104_v51  ;;  %v7262_v50 = vsel %vm14044_vm12, %v7257_v24, %v7261_v38  ;;  %7937 = vst [vmem:[#allocation3 + $0x14] sm:$0xf] %v7796_v6  ;;  %v8106_v33 = vshrl.u32 %v8036_v54, 16  ;;  %v8109_v55 = vshll.u32 %v8036_v54, 16  ;;  %10448 = vmatprep.mubr.bf16.mxu1 %v13522_v41 }
 0x3fd   : > { %v8115_v40 = vshll.u32 %v8037_v53, 16  ;;  %v7204_v30 = vld [vmem:[#allocation2 + $0x18] sm:$0xf]  ;;  %v7267_v20 = vrot.slane %v7266_v34, 4  ;;  %v7271_v9 = vrot.slane %v7269_v2, 5  ;;  %v7799_v61 = vsel %vm14035_vm11, %v7797_v60, %v7798_v62 }
 0x3fe   : > { %7665 = vst [vmem:[#allocation3 + $0x10] sm:$0xf] %v7262_v50  ;;  %v8119_v57 = vshrl.u32 %v8037_v53, 16  ;;  %v7205_v8 = vld [vmem:[#allocation2 + $0x1c] sm:$0xf]  ;;  %v8108_v39 = vrot.slane %v8106_v33, 4 }
 0x3ff   : > { %v13524_v13 = vld [vmem:[#allocation3 + $0x3f8] ss:$36 sps:$4 sm:$0xff]   ;;  %7938 = vst [vmem:[#allocation3 + $0x38] sm:$0xf] %v7799_v61  ;;  %v7206_v28 = vld [vmem:[#allocation2 + $0x20] sm:$0x1]  ;;  %v7272_v47 = vsel %vm14044_vm12, %v7267_v20, %v7271_v9 }
 0x400   : > { %v13535_v3 = vld [vmem:[#allocation3 + $0x444] ss:$36 sps:$4 sm:$0xff]   ;;  %v8111_v10 = vrot.slane %v8109_v55, 5  ;;  %v8117_v42 = vrot.slane %v8115_v40, 5  ;;  %v8121_v25 = vrot.slane %v8119_v57, 4  ;;  %v8125_v14 = vshll.u32 %v8038_v48, 16  ;;  %10618 = vmatmul.mubr.bf16.gmra.mxu0 %v13524_v13 }
 0x401   : > { %v7973_v32 = vld [vmem:[#allocation2 + $0x30] sm:$0xf]  ;;  %v13520_v45 = vld [vmem:[#allocation3 + $0x3a8] ss:$36 sps:$4 sm:$0xff]   ;;  %7666 = vst [vmem:[#allocation3 + $0x34] sm:$0xf] %v7272_v47  ;;  %10625 = vmatprep.mubr.bf16.mxu0 %v13535_v3 }
 0x402   : > { %v7274_v17 = vshrl.u32 %v7204_v30, 16  ;;  %v7277_v46 = vshll.u32 %v7204_v30, 16  ;;  %v7283_v15 = vshll.u32 %v7205_v8, 16  ;;  %v7974_v11 = vld [vmem:[#allocation2 + $0x34] sm:$0xf]  ;;  %v8112_v1 = vor.u32 %v8111_v10, %v8108_v39 }
 0x403   : > { %8005 = vst [vmem:[#allocation3 + $0xa8] sm:$0xf] %v7973_v32  ;;  %v8122_v0 = vor.u32 %v8121_v25, %v8117_v42  ;;  %v7287_v18 = vshrl.u32 %v7205_v8, 16  ;;  %v7700_v58 = vld [vmem:[#allocation2 + $0x18] sm:$0xe]  ;;  %v7293_v31 = vshll.u32 %v7206_v28, 16  ;;  %10449 = vmatmul.mubr.bf16.gmra.mxu1 %v13520_v45 }
 0x404   : > { %v7701_v44 = vld [vmem:[#allocation2 + $0x1c] sm:$0xf]  ;;  %8006 = vst [vmem:[#allocation3 + $0xcc] sm:$0xf] %v7974_v11  ;;  %v7276_v21 = vrot.slane %v7274_v17, 4  ;;  %v7279_v36 = vrot.slane %v7277_v46, 5 }
 0x405   : > { %v7285_v5 = vrot.slane %v7283_v15, 5  ;;  %v8039_v12 = vld [vmem:[#allocation2 + $0x30] sm:$0xf]  ;;  %v8113_v43 = vrot.slane %v8112_v1, 4  ;;  %v8123_v59 = vrot.slane %v8122_v0, 4  ;;  %v8127_v29 = vrot.slane %v8125_v14, 5 }
 0x406   : > { %v13529_v63 = vld [vmem:[#allocation3 + $0x3f4] ss:$36 sps:$4 sm:$0xff]   ;;  %v7280_v35 = vor.u32 %v7279_v36, %v7276_v21  ;;  %v7289_v54 = vrot.slane %v7287_v18, 4  ;;  %v7702_v19 = vld [vmem:[#allocation2 + $0x20] sm:$0x1]  ;;  %v11678_v27 = vrot.slane %v7700_v58, 9 }
 0x407   : > { %10456 = vmatprep.mubr.bf16.mxu1 %v13529_v63  ;;  %v8118_v7 = vsel %vm14044_vm12, %v8113_v43, %v8117_v42  ;;  %v7802_v2 = vrot.slane %v7701_v44, 5  ;;  %v8130_v37 = vshrl.u32 %v8039_v12, 16  ;;  %v13533_v26 = vld [vmem:[#allocation3 + $0x440] ss:$36 sps:$4 sm:$0xff]   ;;  %v8128_v38 = vsel %vm14044_vm12, %v8123_v59, %v8127_v29  ;;  %v8040_v53 = vld [vmem:[#allocation2 + $0x34] sm:$0xf] }
 0x408   : > { %8499 = vst [vmem:[#allocation3 + $0x64] sm:$0xf] %v8118_v7  ;;  %v7281_v4 = vrot.slane %v7280_v35, 4  ;;  %v7290_v49 = vor.u32 %v7289_v54, %v7285_v5  ;;  %v8041_v56 = vld [vmem:[#allocation2 + $0x38] sm:$0x1]  ;;  %v8133_v52 = vshll.u32 %v8039_v12, 16  ;;  %10626 = vmatmul.mubr.bf16.gmra.mxu0 %v13533_v26 }
 0x409   : > { %v13548_v24 = vld [vmem:[#allocation3 + $0x1c] ss:$36 sps:$4 sm:$0xff]   ;;  %8500 = vst [vmem:[#allocation3 + $0x88] sm:$0xf] %v8128_v38  ;;  %v7295_v62 = vrot.slane %v7293_v31, 5  ;;  %v7803_v41 = vsel %vm14035_vm11, %v11678_v27, %v7802_v2  ;;  %v7804_v51 = vrot.slane %v7802_v2, 4 }
 0x40a   : > { %v7805_v34 = vrot.slane %v7702_v19, 5  ;;  %v7207_v6 = vld [vmem:[#allocation2 + $0x24] sm:$0xf]  ;;  %v13527_v60 = vld [vmem:[#allocation3 + $0x3f0] ss:$36 sps:$4 sm:$0xff]   ;;  %v7286_v48 = vsel %vm14044_vm12, %v7281_v4, %v7285_v5  ;;  %v7291_v50 = vrot.slane %v7290_v49, 4  ;;  %10827 = vmatprep.mubr.bf16.mxu0 %v13548_v24 }
 0x40b   : > { %7939 = vst [vmem:[#allocation3 + $0x5c] sm:$0xf] %v7803_v41  ;;  %v8132_v33 = vrot.slane %v8130_v37, 4  ;;  %v8135_v55 = vrot.slane %v8133_v52, 5  ;;  %v7208_v40 = vld [vmem:[#allocation2 + $0x28] sm:$0xf]  ;;  %10457 = vmatmul.mubr.bf16.gmra.mxu1 %v13527_v60 }
 0x40c   : > { %v13540_v30 = vld [vmem:[#allocation3 + $0x43c] ss:$36 sps:$4 sm:$0xff]   ;;  %7667 = vst [vmem:[#allocation3 + $0x58] sm:$0xf] %v7286_v48  ;;  %v7806_v20 = vsel %vm14035_vm11, %v7804_v51, %v7805_v34  ;;  %v8139_v9 = vshll.u32 %v8040_v53, 16  ;;  %v8143_v61 = vshrl.u32 %v8040_v53, 16  ;;  %v7296_v13 = vsel %vm14044_vm12, %v7291_v50, %v7295_v62 }
 0x40d   : > { %v8149_v57 = vshll.u32 %v8041_v56, 16  ;;  %v7209_v8 = vld [vmem:[#allocation2 + $0x2c] sm:$0x1]  ;;  %7940 = vst [vmem:[#allocation3 + $0x80] sm:$0xf] %v7806_v20  ;;  %v8136_v39 = vor.u32 %v8135_v55, %v8132_v33  ;;  %v7298_v28 = vshrl.u32 %v7207_v6, 16  ;;  %10464 = vmatprep.mubr.bf16.mxu1 %v13540_v30 }
 0x40e   : > { %v7301_v3 = vshll.u32 %v7207_v6, 16  ;;  %v7703_v47 = vld [vmem:[#allocation2 + $0x24] sm:$0xe]  ;;  %v7704_v10 = vld [vmem:[#allocation2 + $0x28] sm:$0xf]  ;;  %v8141_v25 = vrot.slane %v8139_v9, 5 }
 0x40f   : > { %v7975_v42 = vld [vmem:[#allocation2 + $0x3c] sm:$0xf]  ;;  %7668 = vst [vmem:[#allocation3 + $0x7c] sm:$0xf] %v7296_v13  ;;  %v8145_v32 = vrot.slane %v8143_v61, 4  ;;  %v7307_v45 = vshll.u32 %v7208_v40, 16 }
 0x410   : > { %v7976_v14 = vld [vmem:[#allocation2 + $0x40] sm:$0xf]  ;;  %8007 = vst [vmem:[#allocation3 + $0xf0] sm:$0xf] %v7975_v42  ;;  %v8137_v17 = vrot.slane %v8136_v39, 4  ;;  %v7300_v46 = vrot.slane %v7298_v28, 4 }
 0x411   : > { %v7303_v15 = vrot.slane %v7301_v3, 5  ;;  %v7311_v11 = vshrl.u32 %v7208_v40, 16  ;;  %v7705_v1 = vld [vmem:[#allocation2 + $0x2c] sm:$0x1]  ;;  %8008 = vst [vmem:[#allocation3 + $0x114] sm:$0xf] %v7976_v14  ;;  %v8146_v0 = vor.u32 %v8145_v32, %v8141_v25 }
 0x412   : > { %v8151_v18 = vrot.slane %v8149_v57, 5  ;;  %v7309_v58 = vrot.slane %v7307_v45, 5  ;;  %v8042_v44 = vld [vmem:[#allocation2 + $0x3c] sm:$0xf]  ;;  %v8142_v21 = vsel %vm14044_vm12, %v8137_v17, %v8141_v25  ;;  %v7317_v12 = vshll.u32 %v7209_v8, 16 }
 0x413   : > { %v7304_v36 = vor.u32 %v7303_v15, %v7300_v46  ;;  %v7313_v5 = vrot.slane %v7311_v11, 4  ;;  %v8043_v63 = vld [vmem:[#allocation2 + $0x40] sm:$0xf]  ;;  %v13546_v43 = vld [vmem:[#allocation3 + $0x18] ss:$36 sps:$4 sm:$0xff]   ;;  %v8147_v31 = vrot.slane %v8146_v0, 4 }
 0x414   : > { %8501 = vst [vmem:[#allocation3 + $0xac] sm:$0xf] %v8142_v21  ;;  %v11679_v59 = vrot.slane %v7703_v47, 9  ;;  %v7809_v29 = vrot.slane %v7704_v10, 5  ;;  %v7812_v35 = vrot.slane %v7705_v1, 5  ;;  %v8154_v2 = vshrl.u32 %v8042_v44, 16  ;;  %10828 = vmatmul.mubr.bf16.vlgmr.msra.gmra.mxu0 %v13546_v43 }
 0x415   : > { %v13538_v54 = vld [vmem:[#allocation3 + $0x438] ss:$36 sps:$4 sm:$0xff]   ;;  %v13556_v19 = vld [vmem:[#allocation3 + $0x64] ss:$36 sps:$4 sm:$0xff]   ;;  %v7305_v7 = vrot.slane %v7304_v36, 4  ;;  %v7314_v27 = vor.u32 %v7313_v5, %v7309_v58  ;;  %v8157_v37 = vshll.u32 %v8042_v44, 16  ;;  %v8152_v38 = vsel %vm14044_vm12, %v8147_v31, %v8151_v18 }
 0x416   : > { %v13551_v26 = vld [vmem:[#allocation3 + $0x14] ss:$36 sps:$4 sm:$0xff]   ;;  %v7810_v4 = vsel %vm14035_vm11, %v11679_v59, %v7809_v29  ;;  %v7811_v49 = vrot.slane %v7809_v29, 4  ;;  %v8044_v53 = vld [vmem:[#allocation2 + $0x44] sm:$0x1]  ;;  %v8163_v56 = vshll.u32 %v8043_v63, 16  ;;  %10835 = vmatprep.mubr.bf16.mxu0 %v13556_v19  ;;  %10465 = vmatmul.mubr.bf16.gmra.mxu1 %v13538_v54 }
 0x417   : > { %v7210_v52 = vld [vmem:[#allocation2 + $0x30] sm:$0xf]  ;;  %8502 = vst [vmem:[#allocation3 + $0xd0] sm:$0xf] %v8152_v38  ;;  %v7310_v24 = vsel %vm14044_vm12, %v7305_v7, %v7309_v58  ;;  %v7315_v62 = vrot.slane %v7314_v27, 4  ;;  %v7319_v41 = vrot.slane %v7317_v12, 5  ;;  %10666 = vmatprep.mubr.bf16.mxu1 %v13551_v26 }
 0x418   : > { %7941 = vst [vmem:[#allocation3 + $0xa4] sm:$0xf] %v7810_v4  ;;  %v7211_v51 = vld [vmem:[#allocation2 + $0x34] sm:$0xf]  ;;  %7669 = vst [vmem:[#allocation3 + $0xa0] sm:$0xf] %v7310_v24  ;;  %v7813_v34 = vsel %vm14035_vm11, %v7811_v49, %v7812_v35 }
 0x419   : > { %v8156_v6 = vrot.slane %v8154_v2, 4  ;;  %v8159_v60 = vrot.slane %v8157_v37, 5  ;;  %v8165_v48 = vrot.slane %v8163_v56, 5  ;;  %v7212_v50 = vld [vmem:[#allocation2 + $0x38] sm:$0x1]  ;;  %v7320_v33 = vsel %vm14044_vm12, %v7315_v62, %v7319_v41  ;;  %v13570_v15 = vld [vmem:[#allocation9 + $0x230] sm:$0xff]  }
 0x41a   : > { %7942 = vst [vmem:[#allocation3 + $0xc8] sm:$0xf] %v7813_v34  ;;  %v8167_v55 = vshrl.u32 %v8043_v63, 16  ;;  %v8173_v40 = vshll.u32 %v8044_v53, 16  ;;  %v7322_v30 = vshrl.u32 %v7210_v52, 16  ;;  %v7325_v61 = vshll.u32 %v7210_v52, 16 }
 0x41b   : > { %v7706_v20 = vld [vmem:[#allocation2 + $0x30] sm:$0xe]  ;;  %7670 = vst [vmem:[#allocation3 + $0xc4] sm:$0xf] %v7320_v33  ;;  %v8160_v9 = vor.u32 %v8159_v60, %v8156_v6  ;;  %v7331_v57 = vshll.u32 %v7211_v51, 16  ;;  %v7335_v8 = vshrl.u32 %v7211_v51, 16 }
 0x41c   : > { %v7707_v13 = vld [vmem:[#allocation2 + $0x34] sm:$0xf]  ;;  %v8169_v39 = vrot.slane %v8167_v55, 4  ;;  %v7324_v28 = vrot.slane %v7322_v30, 4  ;;  %v7341_v3 = vshll.u32 %v7212_v50, 16  ;;  %v7327_v42 = vrot.slane %v7325_v61, 5 }
 0x41d   : > { %v7708_v47 = vld [vmem:[#allocation2 + $0x38] sm:$0x1]  ;;  %v8161_v10 = vrot.slane %v8160_v9, 4  ;;  %v7333_v25 = vrot.slane %v7331_v57, 5  ;;  %v7337_v32 = vrot.slane %v7335_v8, 4  ;;  %v11680_v11 = vrot.slane %v7706_v20, 9 }
 0x41e   : > { %v7977_v45 = vld [vmem:[#allocation2 + $0x48] sm:$0xf]  ;;  %v13554_v17 = vld [vmem:[#allocation3 + $0x60] ss:$36 sps:$4 sm:$0xff]   ;;  %v8170_v46 = vor.u32 %v8169_v39, %v8165_v48  ;;  %v7816_v1 = vrot.slane %v7707_v13, 5  ;;  %v8175_v21 = vrot.slane %v8173_v40, 5  ;;  %v7328_v36 = vor.u32 %v7327_v42, %v7324_v28 }
 0x41f   : > { %v13549_v14 = vld [vmem:[#allocation3 + $0x10] ss:$36 sps:$4 sm:$0xff]   ;;  %8009 = vst [vmem:[#allocation3 + $0x138] sm:$0xf] %v7977_v45  ;;  %v13560_v18 = vld [vmem:[#allocation3 + $0x5c] ss:$36 sps:$4 sm:$0xff]   ;;  %v8166_v44 = vsel %vm14044_vm12, %v8161_v10, %v8165_v48  ;;  %v7338_v5 = vor.u32 %v7337_v32, %v7333_v25  ;;  %10836 = vmatmul.mubr.bf16.gmra.mxu0 %v13554_v17 }
 0x420   : > { %v7978_v0 = vld [vmem:[#allocation2 + $0x4c] sm:$0xf]  ;;  %v13563_v58 = vld [vmem:[#allocation3 + $0xac] ss:$36 sps:$4 sm:$0xff]   ;;  %v8171_v12 = vrot.slane %v8170_v46, 4  ;;  %v7817_v63 = vsel %vm14035_vm11, %v11680_v11, %v7816_v1  ;;  %v7818_v43 = vrot.slane %v7816_v1, 4  ;;  %10667 = vmatmul.mubr.bf16.vlgmr.msra.gmra.mxu1 %v13549_v14 }
 0x421   : > { %8010 = vst [vmem:[#allocation3 + $0x15c] sm:$0xf] %v7978_v0  ;;  %8503 = vst [vmem:[#allocation3 + $0xf4] sm:$0xf] %v8166_v44  ;;  %v7819_v31 = vrot.slane %v7708_v47, 5  ;;  %10843 = vmatprep.mubr.bf16.mxu0 %v13563_v58  ;;  %v7329_v29 = vrot.slane %v7328_v36, 4  ;;  %10674 = vmatprep.mubr.bf16.mxu1 %v13560_v18 }
 0x422   : > { %v8045_v59 = vld [vmem:[#allocation2 + $0x48] sm:$0xf]  ;;  %v7339_v35 = vrot.slane %v7338_v5, 4  ;;  %v7343_v54 = vrot.slane %v7341_v3, 5  ;;  %7943 = vst [vmem:[#allocation3 + $0xec] sm:$0xf] %v7817_v63  ;;  %v8176_v7 = vsel %vm14044_vm12, %v8171_v12, %v8175_v21 }
 0x423   : > { %v8046_v19 = vld [vmem:[#allocation2 + $0x4c] sm:$0xf]  ;;  %v7820_v27 = vsel %vm14035_vm11, %v7818_v43, %v7819_v31  ;;  %v8047_v2 = vld [vmem:[#allocation2 + $0x50] sm:$0x1]  ;;  %v8178_v37 = vshrl.u32 %v8045_v59, 16  ;;  %v7334_v38 = vsel %vm14044_vm12, %v7329_v29, %v7333_v25  ;;  %v8181_v49 = vshll.u32 %v8045_v59, 16 }
 0x424   : > { %v13669_v26 = vld [vmem:[#allocation9 + $0x238] sm:$0xff]   ;;  %8504 = vst [vmem:[#allocation3 + $0x118] sm:$0xf] %v8176_v7  ;;  %v7344_v4 = vsel %vm14044_vm12, %v7339_v35, %v7343_v54  ;;  %7944 = vst [vmem:[#allocation3 + $0x110] sm:$0xf] %v7820_v27  ;;  %v8187_v53 = vshll.u32 %v8046_v19, 16 }
 0x425   : > { %12990 = vmatpush3.bf16.msra.mxu1 %v13669_v26  ;;  %v7213_v56 = vld [vmem:[#allocation2 + $0x3c] sm:$0xf]  ;;  %v7214_v52 = vld [vmem:[#allocation2 + $0x40] sm:$0xf]  ;;  %7671 = vst [vmem:[#allocation3 + $0xe8] sm:$0xf] %v7334_v38 }
 0x426   : > { %v13561_v24 = vld [vmem:[#allocation3 + $0xa8] ss:$36 sps:$4 sm:$0xff]   ;;  %12991 = vmatprep.subr.bf16.mxu1 %v13570_v15  ;;  %7672 = vst [vmem:[#allocation3 + $0x10c] sm:$0xf] %v7344_v4  ;;  %v8180_v62 = vrot.slane %v8178_v37, 4  ;;  %v8191_v41 = vshrl.u32 %v8046_v19, 16 }
 0x427   : > { %v7215_v51 = vld [vmem:[#allocation2 + $0x44] sm:$0x1]  ;;  %v7346_v34 = vshrl.u32 %v7213_v56, 16  ;;  %v8183_v60 = vrot.slane %v8181_v49, 5  ;;  %v8189_v48 = vrot.slane %v8187_v53, 5  ;;  %v7349_v50 = vshll.u32 %v7213_v56, 16  ;;  %10844 = vmatmul.mubr.bf16.gmra.mxu0 %v13561_v24 }
 0x428   : > { %v13583_v6 = vld [vmem:[#allocation9 + $0x228] sm:$0xff]   ;;  %v7355_v33 = vshll.u32 %v7214_v52, 16  ;;  %v7709_v55 = vld [vmem:[#allocation2 + $0x3c] sm:$0xe]  ;;  %v13558_v40 = vld [vmem:[#allocation3 + $0x58] ss:$36 sps:$4 sm:$0xff]  }
 0x429   : > { %v8193_v30 = vrot.slane %v8191_v41, 4  ;;  %v8197_v20 = vshll.u32 %v8047_v2, 16  ;;  %v7348_v9 = vrot.slane %v7346_v34, 4  ;;  %v7359_v61 = vshrl.u32 %v7214_v52, 16  ;;  %v7710_v57 = vld [vmem:[#allocation2 + $0x40] sm:$0xf]  ;;  %12992 = vmatpush3.bf16.msra.mxu1 %v13570_v15  ;;  %v12597_v41 = vpop.f32.mrf.mxu0 }
 0x42a   : > { %v8184_v8 = vor.u32 %v8183_v60, %v8180_v62  ;;  %v7351_v13 = vrot.slane %v7349_v50, 5  ;;  %v7357_v39 = vrot.slane %v7355_v33, 5  ;;  %v7365_v28 = vshll.u32 %v7215_v51, 16  ;;  %v7711_v3 = vld [vmem:[#allocation2 + $0x44] sm:$0x1]  ;;  %12993 = vmatprep.subr.bf16.mxu1 %v13583_v6  ;;  %v13596_v45 = vld [vmem:[#allocation9 + $0x220] sm:$0xff]   ;;  %10675 = vmatmul.mubr.bf16.gmra.mxu1 %v13558_v40 }
 0x42b   : > { %v8194_v47 = vor.u32 %v8193_v30, %v8189_v48  ;;  %v7361_v10 = vrot.slane %v7359_v61, 4  ;;  %v11681_v42 = vrot.slane %v7709_v55, 9  ;;  %v7823_v25 = vrot.slane %v7710_v57, 5  ;;  %v7979_v32 = vld [vmem:[#allocation2 + $0x54] sm:$0xf]  ;;  %v13622_v53 = vld [vmem:[#allocation9 + $0x210] sm:$0xff]  }
 0x42c   : > { %v13566_v14 = vld [vmem:[#allocation3 + $0xa4] ss:$36 sps:$4 sm:$0xff]   ;;  %v8185_v17 = vrot.slane %v8184_v8, 4  ;;  %v7352_v46 = vor.u32 %v7351_v13, %v7348_v9  ;;  %v7980_v11 = vld [vmem:[#allocation2 + $0x58] sm:$0xf]  ;;  %v8199_v0 = vrot.slane %v8197_v20, 5  ;;  %v12598_v20 = vpop.f32.mrf.mxu0 }
 0x42d   : > { %8011 = vst [vmem:[#allocation3 + $0x180] sm:$0xf] %v7979_v32  ;;  %v13569_v15 = vld [vmem:[#allocation3 + $0xf4] ss:$36 sps:$4 sm:$0xff]   ;;  %v8195_v1 = vrot.slane %v8194_v47, 4  ;;  %v7362_v18 = vor.u32 %v7361_v10, %v7357_v39  ;;  %v7824_v58 = vsel %vm14035_vm11, %v11681_v42, %v7823_v25  ;;  %10682 = vmatprep.mubr.bf16.mxu1 %v13566_v14  ;;  %v7825_v36 = vrot.slane %v7823_v25, 4  ;;  %12994 = vmatpush3.bf16.msra.mxu1 %v13583_v6 }
 0x42e   : > { %8012 = vst [vmem:[#allocation3 + $0x1a4] sm:$0xf] %v7980_v11  ;;  %v8190_v44 = vsel %vm14044_vm12, %v8185_v17, %v8189_v48  ;;  %v7353_v21 = vrot.slane %v7352_v46, 4  ;;  %v7826_v5 = vrot.slane %v7711_v3, 5  ;;  %7945 = vst [vmem:[#allocation3 + $0x134] sm:$0xf] %v7824_v58  ;;  %10851 = vmatprep.mubr.bf16.mxu0 %v13569_v15  ;;  %12995 = vmatprep.subr.bf16.mxu1 %v13596_v45 }
 0x42f   : > { %v13609_v12 = vld [vmem:[#allocation9 + $0x218] sm:$0xff]   ;;  %v13567_v63 = vld [vmem:[#allocation3 + $0xf0] ss:$36 sps:$4 sm:$0xff]   ;;  %v8200_v43 = vsel %vm14044_vm12, %v8195_v1, %v8199_v0  ;;  %8505 = vst [vmem:[#allocation3 + $0x13c] sm:$0xf] %v8190_v44  ;;  %v7363_v31 = vrot.slane %v7362_v18, 4 }
 0x430   : > { %v7367_v59 = vrot.slane %v7365_v28, 5  ;;  %v8048_v29 = vld [vmem:[#allocation2 + $0x54] sm:$0xf]  ;;  %8506 = vst [vmem:[#allocation3 + $0x160] sm:$0xf] %v8200_v43  ;;  %v7358_v35 = vsel %vm14044_vm12, %v7353_v21, %v7357_v39  ;;  %v7827_v54 = vsel %vm14035_vm11, %v7825_v36, %v7826_v5  ;;  %10852 = vmatmul.mubr.bf16.gmra.mxu0 %v13567_v63  ;;  %v13635_v10 = vld [vmem:[#allocation9 + $0x208] sm:$0xff]  }
 0x431   : > { %v8049_v19 = vld [vmem:[#allocation2 + $0x58] sm:$0xf]  ;;  %v8050_v7 = vld [vmem:[#allocation2 + $0x5c] sm:$0x1]  ;;  %v8202_v27 = vshrl.u32 %v8048_v29, 16  ;;  %v8205_v2 = vshll.u32 %v8048_v29, 16  ;;  %12996 = vmatpush3.bf16.msra.mxu1 %v13596_v45  ;;  %v16104_v45 = vadd.f32 %v12598_v20, %v12597_v41 }
 0x432   : > { %v7368_v37 = vsel %vm14044_vm12, %v7363_v31, %v7367_v59  ;;  %7673 = vst [vmem:[#allocation3 + $0x130] sm:$0xf] %v7358_v35  ;;  %7946 = vst [vmem:[#allocation3 + $0x158] sm:$0xf] %v7827_v54  ;;  %v8211_v26 = vshll.u32 %v8049_v19, 16  ;;  %v8215_v38 = vshrl.u32 %v8049_v19, 16  ;;  %12997 = vmatprep.subr.bf16.mxu1 %v13609_v12 }
 0x433   : > { %v8221_v4 = vshll.u32 %v8050_v7, 16  ;;  %v7216_v49 = vld [vmem:[#allocation2 + $0x48] sm:$0xf]  ;;  %7674 = vst [vmem:[#allocation3 + $0x154] sm:$0xf] %v7368_v37  ;;  %v8204_v56 = vrot.slane %v8202_v27, 4 }
 0x434   : > { %v8207_v52 = vrot.slane %v8205_v2, 5  ;;  %v7217_v24 = vld [vmem:[#allocation2 + $0x4c] sm:$0xf]  ;;  %v7218_v62 = vld [vmem:[#allocation2 + $0x50] sm:$0x1]  ;;  %v8213_v34 = vrot.slane %v8211_v26, 5 }
 0x435   : > { %v13564_v51 = vld [vmem:[#allocation3 + $0xa0] ss:$36 sps:$4 sm:$0xff]   ;;  %v8217_v6 = vrot.slane %v8215_v38, 4  ;;  %v8223_v60 = vrot.slane %v8221_v4, 5  ;;  %v7370_v48 = vshrl.u32 %v7216_v49, 16  ;;  %v7373_v55 = vshll.u32 %v7216_v49, 16  ;;  %12998 = vmatpush3.bf16.msra.mxu1 %v13609_v12 }
 0x436   : > { %v13573_v50 = vld [vmem:[#allocation3 + $0xec] ss:$36 sps:$4 sm:$0xff]   ;;  %v8208_v33 = vor.u32 %v8207_v52, %v8204_v56  ;;  %v7379_v40 = vshll.u32 %v7217_v24, 16  ;;  %v7383_v30 = vshrl.u32 %v7217_v24, 16  ;;  %10683 = vmatmul.mubr.bf16.gmra.mxu1 %v13564_v51  ;;  %v7389_v57 = vshll.u32 %v7218_v62, 16  ;;  %12999 = vmatprep.subr.bf16.mxu1 %v13622_v53  ;;  %v13645_v21 = vld [vmem:[#allocation9 + $0x200] sm:$0xff]  }
 0x437   : > { %v8218_v9 = vor.u32 %v8217_v6, %v8213_v34  ;;  %v7372_v61 = vrot.slane %v7370_v48, 4  ;;  %v7712_v8 = vld [vmem:[#allocation2 + $0x48] sm:$0xe]  ;;  %v7713_v13 = vld [vmem:[#allocation2 + $0x4c] sm:$0xf]  ;;  %10690 = vmatprep.mubr.bf16.mxu1 %v13573_v50  ;;  %v7375_v28 = vrot.slane %v7373_v55, 5 }
 0x438   : > { %v8209_v39 = vrot.slane %v8208_v33, 4  ;;  %v7381_v3 = vrot.slane %v7379_v40, 5  ;;  %v7385_v47 = vrot.slane %v7383_v30, 4  ;;  %v13576_v42 = vld [vmem:[#allocation3 + $0x13c] ss:$36 sps:$4 sm:$0xff]   ;;  %v11682_v58 = vrot.slane %v7712_v8, 9 }
 0x439   : > { %v8219_v25 = vrot.slane %v8218_v9, 4  ;;  %v7714_v32 = vld [vmem:[#allocation2 + $0x50] sm:$0x1]  ;;  %v7376_v17 = vor.u32 %v7375_v28, %v7372_v61  ;;  %v7981_v11 = vld [vmem:[#allocation2 + $0x60] sm:$0xf]  ;;  %10859 = vmatprep.mubr.bf16.mxu0 %v13576_v42  ;;  %v7830_v44 = vrot.slane %v7713_v13, 5  ;;  %13000 = vmatpush3.bf16.msra.mxu1 %v13622_v53 }
 0x43a   : > { %v8214_v14 = vsel %vm14044_vm12, %v8209_v39, %v8213_v34  ;;  %v7386_v46 = vor.u32 %v7385_v47, %v7381_v3  ;;  %v7982_v15 = vld [vmem:[#allocation2 + $0x64] sm:$0xf]  ;;  %v13574_v0 = vld [vmem:[#allocation3 + $0x138] ss:$36 sps:$4 sm:$0xff]   ;;  %8013 = vst [vmem:[#allocation3 + $0x1c8] sm:$0xf] %v7981_v11  ;;  %13001 = vmatprep.subr.bf16.mxu1 %v13635_v10 }
 0x43b   : > { %v13571_v1 = vld [vmem:[#allocation3 + $0xe8] ss:$36 sps:$4 sm:$0xff]   ;;  %v8224_v18 = vsel %vm14044_vm12, %v8219_v25, %v8223_v60  ;;  %8507 = vst [vmem:[#allocation3 + $0x184] sm:$0xf] %v8214_v14  ;;  %8014 = vst [vmem:[#allocation3 + $0x1ec] sm:$0xf] %v7982_v15  ;;  %10860 = vmatmul.mubr.bf16.gmra.mxu0 %v13574_v0  ;;  %v7831_v59 = vsel %vm14035_vm11, %v11682_v58, %v7830_v44 }
 0x43c   : > { %v13579_v36 = vld [vmem:[#allocation3 + $0x134] ss:$36 sps:$4 sm:$0xff]   ;;  %8508 = vst [vmem:[#allocation3 + $0x1a8] sm:$0xf] %v8224_v18  ;;  %v7377_v5 = vrot.slane %v7376_v17, 4  ;;  %v7387_v12 = vrot.slane %v7386_v46, 4 }
 0x43d   : > { %v7391_v63 = vrot.slane %v7389_v57, 5  ;;  %v7833_v43 = vrot.slane %v7714_v32, 5  ;;  %v8051_v31 = vld [vmem:[#allocation2 + $0x60] sm:$0xf]  ;;  %v7832_v29 = vrot.slane %v7830_v44, 4  ;;  %13002 = vmatpush3.bf16.msra.mxu1 %v13635_v10 }
 0x43e   : > { %v8052_v35 = vld [vmem:[#allocation2 + $0x64] sm:$0xf]  ;;  %v8053_v54 = vld [vmem:[#allocation2 + $0x68] sm:$0x1]  ;;  %v8226_v19 = vshrl.u32 %v8051_v31, 16  ;;  %v7382_v7 = vsel %vm14044_vm12, %v7377_v5, %v7381_v3  ;;  %v8229_v2 = vshll.u32 %v8051_v31, 16  ;;  %10691 = vmatmul.mubr.bf16.gmra.mxu1 %v13571_v1  ;;  %13003 = vmatprep.subr.bf16.mxu1 %v13645_v21 }
 0x43f   : > { %v7392_v27 = vsel %vm14044_vm12, %v7387_v12, %v7391_v63  ;;  %7947 = vst [vmem:[#allocation3 + $0x17c] sm:$0xf] %v7831_v59  ;;  %v8235_v37 = vshll.u32 %v8052_v35, 16  ;;  %v7219_v26 = vld [vmem:[#allocation2 + $0x54] sm:$0xf]  ;;  %v7834_v4 = vsel %vm14035_vm11, %v7832_v29, %v7833_v43  ;;  %v8239_v53 = vshrl.u32 %v8052_v35, 16  ;;  %10698 = vmatprep.mubr.bf16.mxu1 %v13579_v36 }
 0x440   : > { %v7220_v38 = vld [vmem:[#allocation2 + $0x58] sm:$0xf]  ;;  %7675 = vst [vmem:[#allocation3 + $0x178] sm:$0xf] %v7382_v7  ;;  %7676 = vst [vmem:[#allocation3 + $0x19c] sm:$0xf] %v7392_v27 }
 0x441   : > { %v8228_v49 = vrot.slane %v8226_v19, 4  ;;  %v8245_v56 = vshll.u32 %v8053_v54, 16  ;;  %v7221_v52 = vld [vmem:[#allocation2 + $0x5c] sm:$0x1]  ;;  %7948 = vst [vmem:[#allocation3 + $0x1a0] sm:$0xf] %v7834_v4  ;;  %13004 = vmatpush3.bf16.msra.mxu1 %v13645_v21 }
 0x442   : > { %v8231_v24 = vrot.slane %v8229_v2, 5  ;;  %v8237_v62 = vrot.slane %v8235_v37, 5  ;;  %v7394_v41 = vshrl.u32 %v7219_v26, 16  ;;  %v7397_v51 = vshll.u32 %v7219_v26, 16  ;;  %v7715_v50 = vld [vmem:[#allocation2 + $0x54] sm:$0xe] }
 0x443   : > { %v8241_v34 = vrot.slane %v8239_v53, 4  ;;  %v8247_v6 = vrot.slane %v8245_v56, 5  ;;  %v7403_v60 = vshll.u32 %v7220_v38, 16  ;;  %v7407_v48 = vshrl.u32 %v7220_v38, 16  ;;  %v7716_v20 = vld [vmem:[#allocation2 + $0x58] sm:$0xf] }
 0x444   : > { %v8232_v33 = vor.u32 %v8231_v24, %v8228_v49  ;;  %v7396_v55 = vrot.slane %v7394_v41, 4  ;;  %v7399_v40 = vrot.slane %v7397_v51, 5  ;;  %v7413_v30 = vshll.u32 %v7221_v52, 16  ;;  %v13577_v9 = vld [vmem:[#allocation3 + $0x130] ss:$36 sps:$4 sm:$0xff]  }
 0x445   : > { %v13582_v61 = vld [vmem:[#allocation3 + $0x184] ss:$36 sps:$4 sm:$0xff]   ;;  %v8242_v57 = vor.u32 %v8241_v34, %v8237_v62  ;;  %v7405_v8 = vrot.slane %v7403_v60, 5  ;;  %v7409_v47 = vrot.slane %v7407_v48, 4  ;;  %v7983_v10 = vld [vmem:[#allocation2 + $0x6c] sm:$0xf] }
 0x446   : > { %v7717_v13 = vld [vmem:[#allocation2 + $0x5c] sm:$0x1]  ;;  %v8233_v28 = vrot.slane %v8232_v33, 4  ;;  %v7400_v3 = vor.u32 %v7399_v40, %v7396_v55  ;;  %10867 = vmatprep.mubr.bf16.mxu0 %v13582_v61  ;;  %v7415_v25 = vrot.slane %v7413_v30, 5  ;;  %v11683_v32 = vrot.slane %v7715_v50, 9  ;;  %10699 = vmatmul.mubr.bf16.gmra.mxu1 %v13577_v9  ;;  %v16130_v33 = vpop.f32.mrf.mxu0 }
 0x447   : > { %v13580_v39 = vld [vmem:[#allocation3 + $0x180] ss:$36 sps:$4 sm:$0xff]   ;;  %v8243_v42 = vrot.slane %v8242_v57, 4  ;;  %v7837_v14 = vrot.slane %v7716_v20, 5  ;;  %v7984_v17 = vld [vmem:[#allocation2 + $0x70] sm:$0xf]  ;;  %v7410_v15 = vor.u32 %v7409_v47, %v7405_v8 }
 0x448   : > { %8015 = vst [vmem:[#allocation3 + $0x210] sm:$0xf] %v7983_v10  ;;  %10868 = vmatmul.mubr.bf16.gmra.mxu0 %v13580_v39  ;;  %v8238_v46 = vsel %vm14044_vm12, %v8233_v28, %v8237_v62  ;;  %v7401_v11 = vrot.slane %v7400_v3, 4  ;;  %8016 = vst [vmem:[#allocation3 + $0x234] sm:$0xf] %v7984_v17  ;;  %v7840_v36 = vrot.slane %v7717_v13, 5 }
 0x449   : > { %v8054_v1 = vld [vmem:[#allocation2 + $0x6c] sm:$0xf]  ;;  %v8055_v0 = vld [vmem:[#allocation2 + $0x70] sm:$0xf]  ;;  %v13586_v18 = vld [vmem:[#allocation3 + $0x17c] ss:$36 sps:$4 sm:$0xff]   ;;  %v8248_v58 = vsel %vm14044_vm12, %v8243_v42, %v8247_v6  ;;  %v7838_v44 = vsel %vm14035_vm11, %v11683_v32, %v7837_v14 }
 0x44a   : > { %8509 = vst [vmem:[#allocation3 + $0x1cc] sm:$0xf] %v8238_v46  ;;  %v7839_v21 = vrot.slane %v7837_v14, 4  ;;  %8510 = vst [vmem:[#allocation3 + $0x1f0] sm:$0xf] %v8248_v58  ;;  %v7406_v5 = vsel %vm14044_vm12, %v7401_v11, %v7405_v8  ;;  %v7411_v12 = vrot.slane %v7410_v15, 4  ;;  %10706 = vmatprep.mubr.bf16.mxu1 %v13586_v18  ;;  %v16136_v14 = vpop.f32.mrf.mxu0 }
 0x44b   : > { %7949 = vst [vmem:[#allocation3 + $0x1c4] sm:$0xf] %v7838_v44  ;;  %v8056_v63 = vld [vmem:[#allocation2 + $0x74] sm:$0x1]  ;;  %v8250_v43 = vshrl.u32 %v8054_v1, 16  ;;  %v8253_v31 = vshll.u32 %v8054_v1, 16  ;;  %v12488_v1 = vpop.f32.mrf.mxu1 }
 0x44c   : > { %7677 = vst [vmem:[#allocation3 + $0x1c0] sm:$0xf] %v7406_v5  ;;  %v7841_v59 = vsel %vm14035_vm11, %v7839_v21, %v7840_v36  ;;  %v8259_v29 = vshll.u32 %v8055_v0, 16  ;;  %v8263_v35 = vshrl.u32 %v8055_v0, 16  ;;  %v8269_v54 = vshll.u32 %v8056_v63, 16 }
 0x44d   : > { %v7222_v19 = vld [vmem:[#allocation2 + $0x60] sm:$0xf]  ;;  %v7416_v7 = vsel %vm14044_vm12, %v7411_v12, %v7415_v25  ;;  %7950 = vst [vmem:[#allocation3 + $0x1e8] sm:$0xf] %v7841_v59  ;;  %v8252_v27 = vrot.slane %v8250_v43, 4  ;;  %v8255_v2 = vrot.slane %v8253_v31, 5 }
 0x44e   : > { %v7223_v37 = vld [vmem:[#allocation2 + $0x64] sm:$0xf]  ;;  %v7224_v26 = vld [vmem:[#allocation2 + $0x68] sm:$0x1]  ;;  %v13584_v38 = vld [vmem:[#allocation3 + $0x178] ss:$36 sps:$4 sm:$0xff]  }
 0x44f   : > { %7678 = vst [vmem:[#allocation3 + $0x1e4] sm:$0xf] %v7416_v7  ;;  %v8261_v4 = vrot.slane %v8259_v29, 5  ;;  %v8265_v49 = vrot.slane %v8263_v35, 4  ;;  %v8271_v53 = vrot.slane %v8269_v54, 5  ;;  %v7418_v56 = vshrl.u32 %v7222_v19, 16  ;;  %10707 = vmatmul.mubr.bf16.gmra.mxu1 %v13584_v38 }
 0x450   : > { %v8256_v52 = vor.u32 %v8255_v2, %v8252_v27  ;;  %v7421_v24 = vshll.u32 %v7222_v19, 16  ;;  %v7427_v62 = vshll.u32 %v7223_v37, 16  ;;  %v7431_v41 = vshrl.u32 %v7223_v37, 16  ;;  %v7718_v51 = vld [vmem:[#allocation2 + $0x60] sm:$0xe]  ;;  %v12603_v27 = vpop.f32.mrf.mxu0 }
 0x451   : > { %v8266_v34 = vor.u32 %v8265_v49, %v8261_v4  ;;  %v7420_v6 = vrot.slane %v7418_v56, 4  ;;  %v7437_v60 = vshll.u32 %v7224_v26, 16  ;;  %v7719_v48 = vld [vmem:[#allocation2 + $0x64] sm:$0xf]  ;;  %v7720_v50 = vld [vmem:[#allocation2 + $0x68] sm:$0x1]  ;;  %v12489_v49 = vpop.f32.mrf.mxu1 }
 0x452   : > { %v8257_v55 = vrot.slane %v8256_v52, 4  ;;  %v7423_v40 = vrot.slane %v7421_v24, 5  ;;  %v7429_v30 = vrot.slane %v7427_v62, 5  ;;  %v7433_v20 = vrot.slane %v7431_v41, 4  ;;  %v13587_v9 = vld [vmem:[#allocation3 + $0x1c8] ss:$36 sps:$4 sm:$0xff]   ;;  %v12604_v41 = vpop.f32.mrf.mxu0 }
 0x453   : > { %v13589_v61 = vld [vmem:[#allocation3 + $0x1cc] ss:$36 sps:$4 sm:$0xff]   ;;  %v8267_v57 = vrot.slane %v8266_v34, 4  ;;  %v7985_v28 = vld [vmem:[#allocation2 + $0x78] sm:$0xf]  ;;  %v11684_v10 = vrot.slane %v7718_v51, 9 }
 0x454   : > { %v8262_v8 = vsel %vm14044_vm12, %v8257_v55, %v8261_v4  ;;  %v7424_v13 = vor.u32 %v7423_v40, %v7420_v6  ;;  %v7434_v39 = vor.u32 %v7433_v20, %v7429_v30  ;;  %v7986_v3 = vld [vmem:[#allocation2 + $0x7c] sm:$0xf]  ;;  %10875 = vmatprep.mubr.bf16.mxu0 %v13589_v61  ;;  %v7844_v42 = vrot.slane %v7719_v48, 5  ;;  %8017 = vst [vmem:[#allocation3 + $0x258] sm:$0xf] %v7985_v28 }
 0x455   : > { %v8272_v47 = vsel %vm14044_vm12, %v8267_v57, %v8271_v53  ;;  %8511 = vst [vmem:[#allocation3 + $0x214] sm:$0xf] %v8262_v8  ;;  %8018 = vst [vmem:[#allocation3 + $0x27c] sm:$0xf] %v7986_v3  ;;  %v8057_v25 = vld [vmem:[#allocation2 + $0x78] sm:$0xf]  ;;  %10876 = vmatmul.mubr.bf16.gmra.mxu0 %v13587_v9  ;;  %v16146_v20 = vadd.f32 %v12604_v41, %v12603_v27  ;;  %v12606_v9 = vpop.f32.mrf.mxu0 }
 0x456   : > { %v8058_v32 = vld [vmem:[#allocation2 + $0x7c] sm:$0xf]  ;;  %8512 = vst [vmem:[#allocation3 + $0x238] sm:$0xf] %v8272_v47  ;;  %v7425_v46 = vrot.slane %v7424_v13, 4  ;;  %v7439_v11 = vrot.slane %v7437_v60, 5  ;;  %v7845_v58 = vsel %vm14035_vm11, %v11684_v10, %v7844_v42 }
 0x457   : > { %v13592_v17 = vld [vmem:[#allocation3 + $0x1c4] ss:$36 sps:$4 sm:$0xff]   ;;  %v7847_v15 = vrot.slane %v7720_v50, 5  ;;  %v7435_v18 = vrot.slane %v7434_v39, 4  ;;  %v7846_v44 = vrot.slane %v7844_v42, 4  ;;  %v8274_v36 = vshrl.u32 %v8057_v25, 16 }
 0x458   : > { %v13590_v0 = vld [vmem:[#allocation3 + $0x1c0] ss:$36 sps:$4 sm:$0xff]   ;;  %v8059_v21 = vld [vmem:[#allocation2 + $0x80] sm:$0x1]  ;;  %10714 = vmatprep.mubr.bf16.mxu1 %v13592_v17  ;;  %v7430_v5 = vsel %vm14044_vm12, %v7425_v46, %v7429_v30  ;;  %7951 = vst [vmem:[#allocation3 + $0x20c] sm:$0xf] %v7845_v58  ;;  %v12490_v30 = vadd.f32 %v12489_v49, %v12488_v1 }
 0x459   : > { %v8277_v12 = vshll.u32 %v8057_v25, 16  ;;  %v8283_v63 = vshll.u32 %v8058_v32, 16  ;;  %v8287_v43 = vshrl.u32 %v8058_v32, 16  ;;  %v7225_v31 = vld [vmem:[#allocation2 + $0x6c] sm:$0xf]  ;;  %v7440_v59 = vsel %vm14044_vm12, %v7435_v18, %v7439_v11  ;;  %10715 = vmatmul.mubr.bf16.gmra.mxu1 %v13590_v0  ;;  %v12607_v25 = vpop.f32.mrf.mxu0 }
 0x45a   : > { %7679 = vst [vmem:[#allocation3 + $0x208] sm:$0xf] %v7430_v5  ;;  %v7848_v29 = vsel %vm14035_vm11, %v7846_v44, %v7847_v15  ;;  %v8276_v35 = vrot.slane %v8274_v36, 4  ;;  %v8293_v54 = vshll.u32 %v8059_v21, 16  ;;  %v7226_v19 = vld [vmem:[#allocation2 + $0x70] sm:$0xf]  ;;  %v12602_v36 = vadd.f32 %v16136_v14, %v16130_v33  ;;  %v16163_v5 = vpop.f32.mrf.mxu1 }
 0x45b   : > { %v7227_v7 = vld [vmem:[#allocation2 + $0x74] sm:$0x1]  ;;  %7680 = vst [vmem:[#allocation3 + $0x22c] sm:$0xf] %v7440_v59  ;;  %7952 = vst [vmem:[#allocation3 + $0x230] sm:$0xf] %v7848_v29  ;;  %v16166_v29 = vadd.f32 %v12607_v25, %v12606_v9 }
 0x45c   : > { %v8279_v2 = vrot.slane %v8277_v12, 5  ;;  %v8285_v37 = vrot.slane %v8283_v63, 5  ;;  %v8289_v26 = vrot.slane %v8287_v43, 4  ;;  %v7442_v38 = vshrl.u32 %v7225_v31, 16  ;;  %v7721_v4 = vld [vmem:[#allocation2 + $0x6c] sm:$0xe]  ;;  %v12492_v33 = vpop.f32.mrf.mxu1 }
 0x45d   : > { %v8295_v53 = vrot.slane %v8293_v54, 5  ;;  %v7445_v56 = vshll.u32 %v7225_v31, 16  ;;  %v7451_v52 = vshll.u32 %v7226_v19, 16  ;;  %v7455_v24 = vshrl.u32 %v7226_v19, 16  ;;  %v7722_v62 = vld [vmem:[#allocation2 + $0x70] sm:$0xf] }
 0x45e   : > { %v8280_v51 = vor.u32 %v8279_v2, %v8276_v35  ;;  %v8290_v34 = vor.u32 %v8289_v26, %v8285_v37  ;;  %v7444_v6 = vrot.slane %v7442_v38, 4  ;;  %v7461_v60 = vshll.u32 %v7227_v7, 16  ;;  %v7723_v48 = vld [vmem:[#allocation2 + $0x74] sm:$0x1]  ;;  %v13593_v50 = vld [vmem:[#allocation3 + $0x210] ss:$36 sps:$4 sm:$0xff]  }
 0x45f   : > { %v13595_v55 = vld [vmem:[#allocation3 + $0x214] ss:$36 sps:$4 sm:$0xff]   ;;  %v7447_v40 = vrot.slane %v7445_v56, 5  ;;  %v7453_v8 = vrot.slane %v7451_v52, 5  ;;  %v7457_v13 = vrot.slane %v7455_v24, 4  ;;  %v11685_v47 = vrot.slane %v7721_v4, 9  ;;  %v12494_v24 = vpop.f32.mrf.mxu1 }
 0x460   : > { %v8281_v61 = vrot.slane %v8280_v51, 4  ;;  %v8291_v57 = vrot.slane %v8290_v34, 4  ;;  %v16151_v39 = vld [vmem:[%s17036_s4] ss:$0 sm:$0xff]  ;;  %10883 = vmatprep.mubr.bf16.mxu0 %v13595_v55  ;;  %v7463_v3 = vrot.slane %v7461_v60, 5  ;;  %v7851_v10 = vrot.slane %v7722_v62, 5  ;;  %v12609_v62 = vpop.f32.mrf.mxu0 }
 0x461   : > { %v7448_v28 = vor.u32 %v7447_v40, %v7444_v6  ;;  %v7987_v42 = vld [vmem:[#allocation2 + $0x84] sm:$0xf]  ;;  %10884 = vmatmul.mubr.bf16.gmra.mxu0 %v13593_v50  ;;  %v7458_v46 = vor.u32 %v7457_v13, %v7453_v8  ;;  %v7854_v11 = vrot.slane %v7723_v48, 5  ;;  %v7988_v15 = vld [vmem:[#allocation2 + $0x88] sm:$0xf]  ;;  %v10347_v21 = vadd.f32 %v16022_v16, %v16151_v39 }
 0x462   : > { %v8286_v32 = vsel %vm14044_vm12, %v8281_v61, %v8285_v37  ;;  %v8296_v17 = vsel %vm14044_vm12, %v8291_v57, %v8295_v53  ;;  %8019 = vst [vmem:[#allocation3 + $0x2a0] sm:$0xf] %v7987_v42  ;;  %v8060_v1 = vld [vmem:[#allocation2 + $0x84] sm:$0xf]  ;;  %v7852_v44 = vsel %vm14035_vm11, %v11685_v47, %v7851_v10  ;;  %8020 = vst [vmem:[#allocation3 + $0x2c4] sm:$0xf] %v7988_v15  ;;  %v12495_v42 = vpop.f32.mrf.mxu1  ;;  %v12610_v25 = vpop.f32.mrf.mxu0 }
 0x463   : > { %v13597_v0 = vld [vmem:[#allocation3 + $0x208] ss:$36 sps:$4 sm:$0xff]   ;;  %8513 = vst [vmem:[#allocation3 + $0x25c] sm:$0xf] %v8286_v32  ;;  %8514 = vst [vmem:[#allocation3 + $0x280] sm:$0xf] %v8296_v17  ;;  %v10350_v59 = vadd.f32 %v12490_v30, %v16151_v39  ;;  %v16175_v56 = vadd.f32 %v16104_v45, %v10347_v21  ;;  %v12493_v21 = vadd.f32 %v12492_v33, %v16163_v5 }
 0x464   : > { %v13599_v18 = vld [vmem:[#allocation3 + $0x20c] ss:$36 sps:$4 sm:$0xff]   ;;  %v7449_v58 = vrot.slane %v7448_v28, 4  ;;  %v7459_v12 = vrot.slane %v7458_v46, 4  ;;  %v7853_v63 = vrot.slane %v7851_v10, 4  ;;  %v8298_v16 = vshrl.u32 %v8060_v1, 16  ;;  %v12612_v33 = vpop.f32.mrf.mxu0 }
 0x465   : > { %7953 = vst [vmem:[#allocation3 + $0x254] sm:$0xf] %v7852_v44  ;;  %v8061_v43 = vld [vmem:[#allocation2 + $0x88] sm:$0xf]  ;;  %v8062_v31 = vld [vmem:[#allocation2 + $0x8c] sm:$0x1]  ;;  %10722 = vmatprep.mubr.bf16.mxu1 %v13599_v18  ;;  %v16177_v13 = vadd.f32 %v12602_v36, %v10350_v59  ;;  %v12496_v59 = vadd.f32 %v12495_v42, %v12494_v24  ;;  %v16187_v5 = vadd.f32 %v12493_v21, %v16151_v39 }
 0x466   : > { %v7454_v35 = vsel %vm14044_vm12, %v7449_v58, %v7453_v8  ;;  %v8301_v54 = vshll.u32 %v8060_v1, 16  ;;  %v8307_v19 = vshll.u32 %v8061_v43, 16  ;;  %v7228_v7 = vld [vmem:[#allocation2 + $0x78] sm:$0xf]  ;;  %10723 = vmatmul.mubr.bf16.gmra.mxu1 %v13597_v0  ;;  %v7464_v14 = vsel %vm14044_vm12, %v7459_v12, %v7463_v3  ;;  %v7229_v26 = vld [vmem:[#allocation2 + $0x7c] sm:$0xf] }
 0x467   : > { %7681 = vst [vmem:[#allocation3 + $0x250] sm:$0xf] %v7454_v35  ;;  %v7855_v27 = vsel %vm14035_vm11, %v7853_v63, %v7854_v11  ;;  %v8311_v2 = vshrl.u32 %v8061_v43, 16  ;;  %v8317_v37 = vshll.u32 %v8062_v31, 16  ;;  %v7230_v38 = vld [vmem:[#allocation2 + $0x80] sm:$0x1] }
 0x468   : > { %7682 = vst [vmem:[#allocation3 + $0x274] sm:$0xf] %v7464_v14  ;;  %7954 = vst [vmem:[#allocation3 + $0x278] sm:$0xf] %v7855_v27  ;;  %v8300_v4 = vrot.slane %v8298_v16, 4  ;;  %v8303_v49 = vrot.slane %v8301_v54, 5 }
 0x469   : > { %v8309_v53 = vrot.slane %v8307_v19, 5  ;;  %v7724_v52 = vld [vmem:[#allocation2 + $0x78] sm:$0xe]  ;;  %v8313_v41 = vrot.slane %v8311_v2, 4  ;;  %v8319_v51 = vrot.slane %v8317_v37, 5  ;;  %v7466_v34 = vshrl.u32 %v7228_v7, 16 }
 0x46a   : > { %v7469_v6 = vshll.u32 %v7228_v7, 16  ;;  %v7725_v60 = vld [vmem:[#allocation2 + $0x7c] sm:$0xf]  ;;  %v8304_v48 = vor.u32 %v8303_v49, %v8300_v4  ;;  %v7475_v50 = vshll.u32 %v7229_v26, 16  ;;  %v7479_v55 = vshrl.u32 %v7229_v26, 16 }
 0x46b   : > { %v7485_v40 = vshll.u32 %v7230_v38, 16  ;;  %v7726_v30 = vld [vmem:[#allocation2 + $0x80] sm:$0x1]  ;;  %v13600_v9 = vld [vmem:[#allocation3 + $0x258] ss:$36 sps:$4 sm:$0xff]   ;;  %v8314_v61 = vor.u32 %v8313_v41, %v8309_v53  ;;  %v7468_v57 = vrot.slane %v7466_v34, 4  ;;  %v16189_v7 = vadd.f32 %v12610_v25, %v12609_v62  ;;  %v12497_v38 = vpop.f32.mrf.mxu1 }
 0x46c   : > { %v7471_v8 = vrot.slane %v7469_v6, 5  ;;  %v13602_v45 = vld [vmem:[#allocation3 + $0x25c] ss:$36 sps:$4 sm:$0xff]   ;;  %v8305_v28 = vrot.slane %v8304_v48, 4  ;;  %v7477_v3 = vrot.slane %v7475_v50, 5  ;;  %v7481_v47 = vrot.slane %v7479_v55, 4 }
 0x46d   : > { %v7487_v10 = vrot.slane %v7485_v40, 5  ;;  %v8315_v32 = vrot.slane %v8314_v61, 4  ;;  %v11686_v46 = vrot.slane %v7724_v52, 9  ;;  %v7858_v11 = vrot.slane %v7725_v60, 5  ;;  %v7989_v15 = vld [vmem:[#allocation2 + $0x90] sm:$0xf]  ;;  %10891 = vmatprep.mubr.bf16.mxu0 %v13602_v45  ;;  %v12498_v48 = vpop.f32.mrf.mxu1  ;;  %v12613_v61 = vpop.f32.mrf.mxu0 }
 0x46e   : > { %v7472_v17 = vor.u32 %v7471_v8, %v7468_v57  ;;  %v8310_v1 = vsel %vm14044_vm12, %v8305_v28, %v8309_v53  ;;  %v7482_v0 = vor.u32 %v7481_v47, %v7477_v3  ;;  %v7861_v18 = vrot.slane %v7726_v30, 5  ;;  %v7990_v58 = vld [vmem:[#allocation2 + $0x94] sm:$0xf]  ;;  %8021 = vst [vmem:[#allocation3 + $0x2e8] sm:$0xf] %v7989_v15  ;;  %10892 = vmatmul.mubr.bf16.gmra.mxu0 %v13600_v9 }
 0x46f   : > { %v8063_v44 = vld [vmem:[#allocation2 + $0x90] sm:$0xf]  ;;  %v13603_v36 = vld [vmem:[#allocation3 + $0x250] ss:$36 sps:$4 sm:$0xff]   ;;  %v8320_v63 = vsel %vm14044_vm12, %v8315_v32, %v8319_v51  ;;  %8515 = vst [vmem:[#allocation3 + $0x2a4] sm:$0xf] %v8310_v1  ;;  %v7859_v31 = vsel %vm14035_vm11, %v11686_v46, %v7858_v11  ;;  %v12500_v47 = vpop.f32.mrf.mxu1  ;;  %v16198_v1 = vadd.f32 %v12496_v59, %v16151_v39 }
 0x470   : > { %v13605_v12 = vld [vmem:[#allocation3 + $0x254] ss:$36 sps:$4 sm:$0xff]   ;;  %v7473_v43 = vrot.slane %v7472_v17, 4  ;;  %8022 = vst [vmem:[#allocation3 + $0x30c] sm:$0xf] %v7990_v58  ;;  %v7483_v35 = vrot.slane %v7482_v0, 4  ;;  %v12499_v0 = vadd.f32 %v12498_v48, %v12497_v38 }
 0x471   : > { %8516 = vst [vmem:[#allocation3 + $0x2c8] sm:$0xf] %v8320_v63  ;;  %v7860_v16 = vrot.slane %v7858_v11, 4  ;;  %7955 = vst [vmem:[#allocation3 + $0x29c] sm:$0xf] %v7859_v31  ;;  %10730 = vmatprep.mubr.bf16.mxu1 %v13605_v12  ;;  %v8322_v27 = vshrl.u32 %v8063_v44, 16  ;;  %v12501_v58 = vpop.f32.mrf.mxu1 }
 0x472   : > { %v8064_v54 = vld [vmem:[#allocation2 + $0x94] sm:$0xf]  ;;  %v8065_v19 = vld [vmem:[#allocation2 + $0x98] sm:$0x1]  ;;  %v7478_v14 = vsel %vm14044_vm12, %v7473_v43, %v7477_v3  ;;  %v8325_v2 = vshll.u32 %v8063_v44, 16  ;;  %10731 = vmatmul.mubr.bf16.gmra.mxu1 %v13603_v36  ;;  %v7488_v4 = vsel %vm14044_vm12, %v7483_v35, %v7487_v10  ;;  %v12615_v43 = vpop.f32.mrf.mxu0 }
 0x473   : > { %v8331_v37 = vshll.u32 %v8064_v54, 16  ;;  %v7231_v26 = vld [vmem:[#allocation2 + $0x84] sm:$0xf]  ;;  %7683 = vst [vmem:[#allocation3 + $0x298] sm:$0xf] %v7478_v14  ;;  %v7862_v49 = vsel %vm14035_vm11, %v7860_v16, %v7861_v18  ;;  %v8335_v53 = vshrl.u32 %v8064_v54, 16  ;;  %v16200_v18 = vadd.f32 %v12613_v61, %v12612_v33 }
 0x474   : > { %v8341_v52 = vshll.u32 %v8065_v19, 16  ;;  %v7232_v24 = vld [vmem:[#allocation2 + $0x88] sm:$0xf]  ;;  %v7233_v62 = vld [vmem:[#allocation2 + $0x8c] sm:$0x1]  ;;  %v8324_v41 = vrot.slane %v8322_v27, 4  ;;  %v16205_v54 = vadd.f32 %v12499_v0, %v16151_v39 }
 0x475   : > { %7684 = vst [vmem:[#allocation3 + $0x2bc] sm:$0xf] %v7488_v4  ;;  %7956 = vst [vmem:[#allocation3 + $0x2c0] sm:$0xf] %v7862_v49  ;;  %v8327_v51 = vrot.slane %v8325_v2, 5  ;;  %v8333_v34 = vrot.slane %v8331_v37, 5  ;;  %v12502_v37 = vadd.f32 %v12501_v58, %v12500_v47 }
 0x476   : > { %v7490_v6 = vshrl.u32 %v7231_v26, 16  ;;  %v7727_v60 = vld [vmem:[#allocation2 + $0x84] sm:$0xe]  ;;  %v8337_v50 = vrot.slane %v8335_v53, 4  ;;  %v8343_v55 = vrot.slane %v8341_v52, 5  ;;  %v7493_v40 = vshll.u32 %v7231_v26, 16  ;;  %v12616_v26 = vpop.f32.mrf.mxu0 }
 0x477   : > { %v7499_v30 = vshll.u32 %v7232_v24, 16  ;;  %v7728_v9 = vld [vmem:[#allocation2 + $0x88] sm:$0xf]  ;;  %v8328_v57 = vor.u32 %v8327_v51, %v8324_v41  ;;  %v7503_v45 = vshrl.u32 %v7232_v24, 16  ;;  %v7509_v28 = vshll.u32 %v7233_v62, 16 }
 0x478   : > { %v7492_v8 = vrot.slane %v7490_v6, 4  ;;  %v7729_v3 = vld [vmem:[#allocation2 + $0x8c] sm:$0x1]  ;;  %v8338_v10 = vor.u32 %v8337_v50, %v8333_v34  ;;  %v7495_v42 = vrot.slane %v7493_v40, 5  ;;  %v11687_v32 = vrot.slane %v7727_v60, 9  ;;  %v12618_v60 = vpop.f32.mrf.mxu0 }
 0x479   : > { %v7501_v25 = vrot.slane %v7499_v30, 5  ;;  %v7991_v17 = vld [vmem:[#allocation2 + $0x9c] sm:$0xf]  ;;  %v8329_v15 = vrot.slane %v8328_v57, 4  ;;  %v7505_v36 = vrot.slane %v7503_v45, 4  ;;  %v7511_v12 = vrot.slane %v7509_v28, 5 }
 0x47a   : > { %v13606_v46 = vld [vmem:[#allocation3 + $0x2a0] ss:$36 sps:$4 sm:$0xff]   ;;  %8023 = vst [vmem:[#allocation3 + $0x330] sm:$0xf] %v7991_v17  ;;  %v8339_v44 = vrot.slane %v8338_v10, 4  ;;  %v7496_v21 = vor.u32 %v7495_v42, %v7492_v8  ;;  %v7865_v35 = vrot.slane %v7728_v9, 5  ;;  %v16211_v24 = vadd.f32 %v12616_v26, %v12615_v43 }
 0x47b   : > { %v13608_v11 = vld [vmem:[#allocation3 + $0x2a4] ss:$36 sps:$4 sm:$0xff]   ;;  %v8334_v31 = vsel %vm14044_vm12, %v8329_v15, %v8333_v34  ;;  %v7868_v16 = vrot.slane %v7729_v3, 5  ;;  %v7506_v2 = vor.u32 %v7505_v36, %v7501_v25  ;;  %v8068_v53 = vld [vmem:[#allocation2 + $0xa4] sm:$0x1] }
 0x47c   : > { %v7992_v63 = vld [vmem:[#allocation2 + $0xa0] sm:$0xf]  ;;  %10899 = vmatprep.mubr.bf16.mxu0 %v13608_v11  ;;  %v8066_v59 = vld [vmem:[#allocation2 + $0x9c] sm:$0xf]  ;;  %v13610_v19 = vld [vmem:[#allocation3 + $0x298] ss:$36 sps:$4 sm:$0xff]   ;;  %v8344_v14 = vsel %vm14044_vm12, %v8339_v44, %v8343_v55  ;;  %v7866_v38 = vsel %vm14035_vm11, %v11687_v32, %v7865_v35 }
 0x47d   : > { %8024 = vst [vmem:[#allocation3 + $0x354] sm:$0xf] %v7992_v63  ;;  %v13612_v33 = vld [vmem:[#allocation3 + $0x29c] ss:$36 sps:$4 sm:$0xff]   ;;  %10900 = vmatmul.mubr.bf16.gmra.mxu0 %v13606_v46  ;;  %8517 = vst [vmem:[#allocation3 + $0x2ec] sm:$0xf] %v8334_v31  ;;  %v10366_v31 = vadd.f32 %v12502_v37, %v16151_v39 }
 0x47e   : > { %v7497_v27 = vrot.slane %v7496_v21, 4  ;;  %8518 = vst [vmem:[#allocation3 + $0x310] sm:$0xf] %v8344_v14  ;;  %v7867_v4 = vrot.slane %v7865_v35, 4  ;;  %v8067_v49 = vld [vmem:[#allocation2 + $0xa0] sm:$0xf]  ;;  %10738 = vmatprep.mubr.bf16.mxu1 %v13612_v33  ;;  %v12503_v35 = vpop.f32.mrf.mxu1 }
 0x47f   : > { %v8346_v52 = vshrl.u32 %v8066_v59, 16  ;;  %v7507_v41 = vrot.slane %v7506_v2, 4  ;;  %7957 = vst [vmem:[#allocation3 + $0x2e4] sm:$0xf] %v7866_v38  ;;  %v8349_v51 = vshll.u32 %v8066_v59, 16  ;;  %v8355_v34 = vshll.u32 %v8067_v49, 16  ;;  %10739 = vmatmul.mubr.bf16.gmra.mxu1 %v13610_v19 }
 0x480   : > { %v7502_v62 = vsel %vm14044_vm12, %v7497_v27, %v7501_v25  ;;  %v7234_v6 = vld [vmem:[#allocation2 + $0x90] sm:$0xf]  ;;  %v7869_v48 = vsel %vm14035_vm11, %v7867_v4, %v7868_v16  ;;  %v8359_v55 = vshrl.u32 %v8067_v49, 16  ;;  %v8365_v40 = vshll.u32 %v8068_v53, 16  ;;  %v7235_v30 = vld [vmem:[#allocation2 + $0x94] sm:$0xf]  ;;  %v12619_v25 = vpop.f32.mrf.mxu0  ;;  %v12504_v37 = vpop.f32.mrf.mxu1 }
 0x481   : > { %7685 = vst [vmem:[#allocation3 + $0x2e0] sm:$0xf] %v7502_v62  ;;  %v8348_v50 = vrot.slane %v8346_v52, 4  ;;  %v7512_v9 = vsel %vm14044_vm12, %v7507_v41, %v7511_v12  ;;  %7958 = vst [vmem:[#allocation3 + $0x308] sm:$0xf] %v7869_v48  ;;  %v8351_v61 = vrot.slane %v8349_v51, 5  ;;  %v16220_v16 = vadd.f32 %v12619_v25, %v12618_v60 }
 0x482   : > { %v8357_v57 = vrot.slane %v8355_v34, 5  ;;  %v7236_v8 = vld [vmem:[#allocation2 + $0x98] sm:$0x1]  ;;  %v7514_v45 = vshrl.u32 %v7234_v6, 16  ;;  %7686 = vst [vmem:[#allocation3 + $0x304] sm:$0xf] %v7512_v9  ;;  %v16224_v59 = vadd.f32 %v16146_v20, %v16187_v5  ;;  %v16228_v53 = vpop.f32.mrf.mxu0  ;;  %v16232_v20 = vadd.f32 %v16166_v29, %v16198_v1  ;;  %v12506_v29 = vpop.f32.mrf.mxu1 }
 0x483   : > { %v8361_v28 = vrot.slane %v8359_v55, 4  ;;  %v8367_v3 = vrot.slane %v8365_v40, 5  ;;  %v7517_v47 = vshll.u32 %v7234_v6, 16  ;;  %v7523_v10 = vshll.u32 %v7235_v30, 16  ;;  %v7730_v42 = vld [vmem:[#allocation2 + $0x90] sm:$0xe] }
 0x484   : > { %v8352_v32 = vor.u32 %v8351_v61, %v8348_v50  ;;  %v7516_v17 = vrot.slane %v7514_v45, 4  ;;  %v7527_v46 = vshrl.u32 %v7235_v30, 16  ;;  %v7533_v11 = vshll.u32 %v7236_v8, 16  ;;  %v7731_v15 = vld [vmem:[#allocation2 + $0x94] sm:$0xf]  ;;  %v12622_v1 = vpop.f32.mrf.mxu0 }
 0x485   : > { %v8362_v0 = vor.u32 %v8361_v28, %v8357_v57  ;;  %v7519_v58 = vrot.slane %v7517_v47, 5  ;;  %v7525_v44 = vrot.slane %v7523_v10, 5  ;;  %v7732_v21 = vld [vmem:[#allocation2 + $0x98] sm:$0x1]  ;;  %v11688_v36 = vrot.slane %v7730_v42, 9 }
 0x486   : > { %v13613_v12 = vld [vmem:[#allocation3 + $0x2e8] ss:$36 sps:$4 sm:$0xff]   ;;  %v8353_v43 = vrot.slane %v8352_v32, 4  ;;  %v7529_v14 = vrot.slane %v7527_v46, 4  ;;  %v7535_v27 = vrot.slane %v7533_v11, 5  ;;  %v7872_v38 = vrot.slane %v7731_v15, 5  ;;  %v12624_v47 = vpop.f32.mrf.mxu0 }
 0x487   : > { %v13615_v63 = vld [vmem:[#allocation3 + $0x2ec] ss:$36 sps:$4 sm:$0xff]   ;;  %v8363_v19 = vrot.slane %v8362_v0, 4  ;;  %v7520_v33 = vor.u32 %v7519_v58, %v7516_v17  ;;  %v7875_v4 = vrot.slane %v7732_v21, 5  ;;  %v7994_v49 = vld [vmem:[#allocation2 + $0xac] sm:$0xf]  ;;  %v12505_v34 = vadd.f32 %v12504_v37, %v12503_v35 }
 0x488   : > { %v7993_v2 = vld [vmem:[#allocation2 + $0xa8] sm:$0xf]  ;;  %10907 = vmatprep.mubr.bf16.mxu0 %v13615_v63  ;;  %v8358_v26 = vsel %vm14044_vm12, %v8353_v43, %v8357_v57  ;;  %v7530_v62 = vor.u32 %v7529_v14, %v7525_v44  ;;  %8026 = vst [vmem:[#allocation3 + $0x39c] sm:$0xf] %v7994_v49  ;;  %v8070_v51 = vld [vmem:[#allocation2 + $0xac] sm:$0xf]  ;;  %v7873_v48 = vsel %vm14035_vm11, %v11688_v36, %v7872_v38  ;;  %v12625_v21 = vpop.f32.mrf.mxu0 }
 0x489   : > { %8025 = vst [vmem:[#allocation3 + $0x378] sm:$0xf] %v7993_v2  ;;  %10908 = vmatmul.mubr.bf16.gmra.mxu0 %v13613_v12  ;;  %v8368_v5 = vsel %vm14044_vm12, %v8363_v19, %v8367_v3  ;;  %8519 = vst [vmem:[#allocation3 + $0x334] sm:$0xf] %v8358_v26  ;;  %v7521_v52 = vrot.slane %v7520_v33, 4  ;;  %v7874_v50 = vrot.slane %v7872_v38, 4  ;;  %v16240_v55 = vadd.f32 %v16189_v7, %v16205_v54 }
 0x48a   : > { %v8069_v41 = vld [vmem:[#allocation2 + $0xa8] sm:$0xf]  ;;  %v13616_v6 = vld [vmem:[#allocation3 + $0x2e0] ss:$36 sps:$4 sm:$0xff]   ;;  %8520 = vst [vmem:[#allocation3 + $0x358] sm:$0xf] %v8368_v5  ;;  %v16243_v40 = vadd.f32 %v16200_v18, %v10366_v31  ;;  %v16252_v17 = vadd.f32 %v12505_v34, %v16151_v39  ;;  %v12627_v2 = vpop.f32.mrf.mxu0  ;;  %v16255_v37 = vadd.f32 %v12622_v1, %v16228_v53  ;;  %v16257_v5 = vadd.f32 %v12625_v21, %v12624_v47 }
 0x48b   : > { %v13618_v60 = vld [vmem:[#allocation3 + $0x2e4] ss:$36 sps:$4 sm:$0xff]   ;;  %v7526_v30 = vsel %vm14044_vm12, %v7521_v52, %v7525_v44  ;;  %v7531_v9 = vrot.slane %v7530_v62, 4  ;;  %7959 = vst [vmem:[#allocation3 + $0x32c] sm:$0xf] %v7873_v48  ;;  %v8370_v57 = vshrl.u32 %v8069_v41, 16  ;;  %v7876_v45 = vsel %vm14035_vm11, %v7874_v50, %v7875_v4  ;;  %v12507_v44 = vpop.f32.mrf.mxu1 }
 0x48c   : > { %v8071_v61 = vld [vmem:[#allocation2 + $0xb0] sm:$0x1]  ;;  %v8373_v8 = vshll.u32 %v8069_v41, 16  ;;  %10746 = vmatprep.mubr.bf16.mxu1 %v13618_v60  ;;  %7687 = vst [vmem:[#allocation3 + $0x328] sm:$0xf] %v7526_v30  ;;  %v8379_v28 = vshll.u32 %v8070_v51, 16  ;;  %v12508_v49 = vadd.f32 %v12507_v44, %v12506_v29  ;;  %v12628_v60 = vpop.f32.mrf.mxu0 }
 0x48d   : > { %v8383_v3 = vshrl.u32 %v8070_v51, 16  ;;  %v8389_v7 = vshll.u32 %v8071_v61, 16  ;;  %v7237_v54 = vld [vmem:[#allocation2 + $0x9c] sm:$0xf]  ;;  %10747 = vmatmul.mubr.bf16.gmra.mxu1 %v13616_v6  ;;  %v7536_v18 = vsel %vm14044_vm12, %v7531_v9, %v7535_v27  ;;  %7960 = vst [vmem:[#allocation3 + $0x350] sm:$0xf] %v7876_v45  ;;  %v12509_v34 = vpop.f32.mrf.mxu1 }
 0x48e   : > { %v8372_v10 = vrot.slane %v8370_v57, 4  ;;  %v8375_v42 = vrot.slane %v8373_v8, 5  ;;  %v7238_v25 = vld [vmem:[#allocation2 + $0xa0] sm:$0xf]  ;;  %v7239_v32 = vld [vmem:[#allocation2 + $0xa4] sm:$0x1]  ;;  %v16264_v57 = vadd.f32 %v12508_v49, %v16151_v39 }
 0x48f   : > { %7688 = vst [vmem:[#allocation3 + $0x34c] sm:$0xf] %v7536_v18  ;;  %v8381_v46 = vrot.slane %v8379_v28, 5  ;;  %v8385_v11 = vrot.slane %v8383_v3, 4  ;;  %v8391_v15 = vrot.slane %v8389_v7, 5  ;;  %v7538_v0 = vshrl.u32 %v7237_v54, 16  ;;  %v12510_v3 = vpop.f32.mrf.mxu1  ;;  %v12630_v7 = vpop.f32.mrf.mxu0 }
 0x490   : > { %v7733_v58 = vld [vmem:[#allocation2 + $0x9c] sm:$0xe]  ;;  %v8376_v36 = vor.u32 %v8375_v42, %v8372_v10  ;;  %v7541_v12 = vshll.u32 %v7237_v54, 16  ;;  %v7547_v63 = vshll.u32 %v7238_v25, 16  ;;  %v7551_v43 = vshrl.u32 %v7238_v25, 16 }
 0x491   : > { %v7734_v31 = vld [vmem:[#allocation2 + $0xa0] sm:$0xf]  ;;  %v8386_v35 = vor.u32 %v8385_v11, %v8381_v46  ;;  %v7540_v19 = vrot.slane %v7538_v0, 4  ;;  %v7557_v33 = vshll.u32 %v7239_v32, 16  ;;  %v7735_v14 = vld [vmem:[#allocation2 + $0xa4] sm:$0x1]  ;;  %v12511_v42 = vadd.f32 %v12510_v3, %v12509_v34  ;;  %v12631_v44 = vpop.f32.mrf.mxu0 }
 0x492   : > { %v11689_v27 = vrot.slane %v7733_v58, 9  ;;  %v13619_v26 = vld [vmem:[#allocation3 + $0x330] ss:$36 sps:$4 sm:$0xff]   ;;  %v8377_v4 = vrot.slane %v8376_v36, 4  ;;  %v7543_v62 = vrot.slane %v7541_v12, 5  ;;  %v7549_v41 = vrot.slane %v7547_v63, 5  ;;  %v12512_v58 = vpop.f32.mrf.mxu1 }
 0x493   : > { %v13621_v38 = vld [vmem:[#allocation3 + $0x334] ss:$36 sps:$4 sm:$0xff]   ;;  %v8387_v52 = vrot.slane %v8386_v35, 4  ;;  %v7553_v51 = vrot.slane %v7551_v43, 4  ;;  %v7995_v6 = vld [vmem:[#allocation2 + $0xb4] sm:$0xf]  ;;  %v16268_v25 = vadd.f32 %v12628_v60, %v12627_v2 }
 0x494   : > { %10915 = vmatprep.mubr.bf16.mxu0 %v13621_v38  ;;  %v8382_v48 = vsel %vm14044_vm12, %v8377_v4, %v8381_v46  ;;  %v7559_v50 = vrot.slane %v7557_v33, 5  ;;  %v7879_v30 = vrot.slane %v7734_v31, 5  ;;  %v7882_v9 = vrot.slane %v7735_v14, 5  ;;  %v7996_v29 = vld [vmem:[#allocation2 + $0xb8] sm:$0xf]  ;;  %v12513_v2 = vpop.f32.mrf.mxu1 }
 0x495   : > { %8027 = vst [vmem:[#allocation3 + $0x3c0] sm:$0xf] %v7995_v6  ;;  %10916 = vmatmul.mubr.bf16.gmra.mxu0 %v13619_v26  ;;  %v8392_v53 = vsel %vm14044_vm12, %v8387_v52, %v8391_v15  ;;  %8521 = vst [vmem:[#allocation3 + $0x37c] sm:$0xf] %v8382_v48  ;;  %v7544_v1 = vor.u32 %v7543_v62, %v7540_v19  ;;  %v7554_v61 = vor.u32 %v7553_v51, %v7549_v41  ;;  %v8072_v8 = vld [vmem:[#allocation2 + $0xb4] sm:$0xf]  ;;  %v16276_v26 = vpop.f32.mrf.mxu0 }
 0x496   : > { %8028 = vst [vmem:[#allocation3 + $0x3e4] sm:$0xf] %v7996_v29  ;;  %v8073_v45 = vld [vmem:[#allocation2 + $0xb8] sm:$0xf]  ;;  %v8074_v28 = vld [vmem:[#allocation2 + $0xbc] sm:$0x1]  ;;  %v7880_v18 = vsel %vm14035_vm11, %v11689_v27, %v7879_v30  ;;  %v12515_v48 = vpop.f32.mrf.mxu1  ;;  %v12514_v3 = vadd.f32 %v12513_v2, %v12512_v58 }
 0x497   : > { %v13623_v54 = vld [vmem:[#allocation3 + $0x328] ss:$36 sps:$4 sm:$0xff]   ;;  %8522 = vst [vmem:[#allocation3 + $0x3a0] sm:$0xf] %v8392_v53  ;;  %v7881_v10 = vrot.slane %v7879_v30, 4  ;;  %v7545_v32 = vrot.slane %v7544_v1, 4 }
 0x498   : > { %v13625_v47 = vld [vmem:[#allocation3 + $0x32c] ss:$36 sps:$4 sm:$0xff]   ;;  %v7555_v46 = vrot.slane %v7554_v61, 4  ;;  %7961 = vst [vmem:[#allocation3 + $0x374] sm:$0xf] %v7880_v18  ;;  %v8394_v11 = vshrl.u32 %v8072_v8, 16 }
 0x499   : > { %v8397_v15 = vshll.u32 %v8072_v8, 16  ;;  %v7240_v0 = vld [vmem:[#allocation2 + $0xa8] sm:$0xf]  ;;  %10754 = vmatprep.mubr.bf16.mxu1 %v13625_v47  ;;  %v7883_v21 = vsel %vm14035_vm11, %v7881_v10, %v7882_v9  ;;  %v8403_v36 = vshll.u32 %v8073_v45, 16  ;;  %v8407_v12 = vshrl.u32 %v8073_v45, 16 }
 0x49a   : > { %v8413_v63 = vshll.u32 %v8074_v28, 16  ;;  %v7241_v43 = vld [vmem:[#allocation2 + $0xac] sm:$0xf]  ;;  %10755 = vmatmul.mubr.bf16.gmra.mxu1 %v13623_v54  ;;  %v7550_v31 = vsel %vm14044_vm12, %v7545_v32, %v7549_v41  ;;  %v7560_v35 = vsel %vm14044_vm12, %v7555_v46, %v7559_v50  ;;  %7962 = vst [vmem:[#allocation3 + $0x398] sm:$0xf] %v7883_v21  ;;  %v8396_v19 = vrot.slane %v8394_v11, 4  ;;  %v16278_v50 = vpop.f32.mrf.mxu0  ;;  %v12516_v54 = vpop.f32.mrf.mxu1 }
 0x49b   : > { %v8399_v33 = vrot.slane %v8397_v15, 5  ;;  %v7242_v14 = vld [vmem:[#allocation2 + $0xb0] sm:$0x1]  ;;  %v7736_v27 = vld [vmem:[#allocation2 + $0xa8] sm:$0xe]  ;;  %v8405_v38 = vrot.slane %v8403_v36, 5  ;;  %v16281_v28 = vadd.f32 %v12511_v42, %v16151_v39  ;;  %v16283_v47 = vadd.f32 %v12631_v44, %v12630_v7 }
 0x49c   : > { %7689 = vst [vmem:[#allocation3 + $0x370] sm:$0xf] %v7550_v31  ;;  %7690 = vst [vmem:[#allocation3 + $0x394] sm:$0xf] %v7560_v35  ;;  %v8409_v4 = vrot.slane %v8407_v12, 4  ;;  %v8415_v49 = vrot.slane %v8413_v63, 5  ;;  %v16285_v18 = vpop.f32.mrf.mxu0  ;;  %v16289_v12 = vpop.f32.mrf.mxu1  ;;  %v16296_v31 = vadd.f32 %v12514_v3, %v16151_v39 }
 0x49d   : > { %v7562_v52 = vshrl.u32 %v7240_v0, 16  ;;  %v7737_v62 = vld [vmem:[#allocation2 + $0xac] sm:$0xf]  ;;  %v8400_v51 = vor.u32 %v8399_v33, %v8396_v19  ;;  %v7565_v41 = vshll.u32 %v7240_v0, 16  ;;  %v7571_v34 = vshll.u32 %v7241_v43, 16 }
 0x49e   : > { %v7575_v6 = vshrl.u32 %v7241_v43, 16  ;;  %v7738_v60 = vld [vmem:[#allocation2 + $0xb0] sm:$0x1]  ;;  %v8410_v30 = vor.u32 %v8409_v4, %v8405_v38  ;;  %v7581_v29 = vshll.u32 %v7242_v14, 16  ;;  %v11690_v53 = vrot.slane %v7736_v27, 9  ;;  %v16291_v7 = vpop.f32.mrf.mxu0 }
 0x49f   : > { %v7564_v9 = vrot.slane %v7562_v52, 4  ;;  %v7997_v1 = vld [vmem:[#allocation2 + $0xc0] sm:$0xf]  ;;  %v13626_v61 = vld [vmem:[#allocation3 + $0x378] ss:$36 sps:$4 sm:$0xff]   ;;  %v8401_v45 = vrot.slane %v8400_v51, 4  ;;  %v12517_v4 = vadd.f32 %v12516_v54, %v12515_v48  ;;  %v12519_v52 = vpop.f32.mrf.mxu1 }
 0x4a0   : > { %v13628_v8 = vld [vmem:[#allocation3 + $0x37c] ss:$36 sps:$4 sm:$0xff]   ;;  %8029 = vst [vmem:[#allocation3 + $0x408] sm:$0xf] %v7997_v1  ;;  %v8411_v10 = vrot.slane %v8410_v30, 4  ;;  %v7567_v32 = vrot.slane %v7565_v41, 5 }
 0x4a1   : > { %v7573_v46 = vrot.slane %v7571_v34, 5  ;;  %v7577_v11 = vrot.slane %v7575_v6, 4  ;;  %v7998_v15 = vld [vmem:[#allocation2 + $0xc4] sm:$0xf]  ;;  %10923 = vmatprep.mubr.bf16.mxu0 %v13628_v8  ;;  %v8406_v0 = vsel %vm14044_vm12, %v8401_v45, %v8405_v38  ;;  %v7583_v21 = vrot.slane %v7581_v29, 5 }
 0x4a2   : > { %v7886_v36 = vrot.slane %v7737_v62, 5  ;;  %v7889_v42 = vrot.slane %v7738_v60, 5  ;;  %8030 = vst [vmem:[#allocation3 + $0x42c] sm:$0xf] %v7998_v15  ;;  %v8075_v58 = vld [vmem:[#allocation2 + $0xc0] sm:$0xf]  ;;  %10924 = vmatmul.mubr.bf16.gmra.mxu0 %v13626_v61  ;;  %v8416_v44 = vsel %vm14044_vm12, %v8411_v10, %v8415_v49  ;;  %v7568_v63 = vor.u32 %v7567_v32, %v7564_v9  ;;  %v16300_v62 = vpop.f32.mrf.mxu0 }
 0x4a3   : > { %8523 = vst [vmem:[#allocation3 + $0x3c4] sm:$0xf] %v8406_v0  ;;  %v7578_v43 = vor.u32 %v7577_v11, %v7573_v46  ;;  %v8076_v35 = vld [vmem:[#allocation2 + $0xc4] sm:$0xf]  ;;  %v8077_v19 = vld [vmem:[#allocation2 + $0xc8] sm:$0x1] }
 0x4a4   : > { %v7243_v33 = vld [vmem:[#allocation2 + $0xb4] sm:$0xf]  ;;  %v13629_v14 = vld [vmem:[#allocation3 + $0x370] ss:$36 sps:$4 sm:$0xff]   ;;  %8524 = vst [vmem:[#allocation3 + $0x3e8] sm:$0xf] %v8416_v44  ;;  %v7887_v27 = vsel %vm14035_vm11, %v11690_v53, %v7886_v36  ;;  %v16304_v53 = vpop.f32.mrf.mxu1  ;;  %v16306_v61 = vpop.f32.mrf.mxu0 }
 0x4a5   : > { %v7888_v2 = vrot.slane %v7886_v36, 4  ;;  %v8418_v38 = vshrl.u32 %v8075_v58, 16  ;;  %v13631_v49 = vld [vmem:[#allocation3 + $0x374] ss:$36 sps:$4 sm:$0xff]   ;;  %v7569_v51 = vrot.slane %v7568_v63, 4  ;;  %v7579_v41 = vrot.slane %v7578_v43, 4 }
 0x4a6   : > { %7963 = vst [vmem:[#allocation3 + $0x3bc] sm:$0xf] %v7887_v27  ;;  %v8421_v34 = vshll.u32 %v8075_v58, 16  ;;  %v8427_v6 = vshll.u32 %v8076_v35, 16  ;;  %v8431_v9 = vshrl.u32 %v8076_v35, 16  ;;  %v8437_v29 = vshll.u32 %v8077_v19, 16  ;;  %10762 = vmatprep.mubr.bf16.mxu1 %v13631_v49  ;;  %v16312_v58 = vpop.f32.mrf.mxu0 }
 0x4a7   : > { %v7890_v60 = vsel %vm14035_vm11, %v7888_v2, %v7889_v42  ;;  %v8420_v30 = vrot.slane %v8418_v38, 4  ;;  %v7244_v1 = vld [vmem:[#allocation2 + $0xb8] sm:$0xf]  ;;  %v7574_v48 = vsel %vm14044_vm12, %v7569_v51, %v7573_v46  ;;  %v7584_v8 = vsel %vm14044_vm12, %v7579_v41, %v7583_v21  ;;  %v7245_v54 = vld [vmem:[#allocation2 + $0xbc] sm:$0x1]  ;;  %10763 = vmatmul.mubr.bf16.gmra.mxu1 %v13629_v14  ;;  %v12522_v42 = vpop.f32.mrf.mxu1 }
 0x4a8   : > { %7964 = vst [vmem:[#allocation3 + $0x3e0] sm:$0xf] %v7890_v60  ;;  %v8423_v45 = vrot.slane %v8421_v34, 5  ;;  %v8429_v3 = vrot.slane %v8427_v6, 5  ;;  %v7739_v10 = vld [vmem:[#allocation2 + $0xb4] sm:$0xe]  ;;  %v16316_v49 = vpop.f32.mrf.mxu0  ;;  %v16319_v34 = vadd.f32 %v12517_v4, %v16151_v39  ;;  %v12520_v6 = vadd.f32 %v12519_v52, %v16289_v12 }
 0x4a9   : > { %7691 = vst [vmem:[#allocation3 + $0x3b8] sm:$0xf] %v7574_v48  ;;  %7692 = vst [vmem:[#allocation3 + $0x3dc] sm:$0xf] %v7584_v8  ;;  %v8433_v32 = vrot.slane %v8431_v9, 4  ;;  %v8439_v11 = vrot.slane %v8437_v29, 5  ;;  %v16314_v38 = vpop.f32.mrf.mxu1  ;;  %v16324_v60 = vadd.f32 %v16278_v50, %v16276_v26 }
 0x4aa   : > { %v7586_v15 = vshrl.u32 %v7243_v33, 16  ;;  %v7589_v0 = vshll.u32 %v7243_v33, 16  ;;  %v7740_v36 = vld [vmem:[#allocation2 + $0xb8] sm:$0xf]  ;;  %v8424_v46 = vor.u32 %v8423_v45, %v8420_v30  ;;  %v7595_v44 = vshll.u32 %v7244_v1, 16  ;;  %v16326_v45 = vpop.f32.mrf.mxu0 }
 0x4ab   : > { %v7599_v63 = vshrl.u32 %v7244_v1, 16  ;;  %v7605_v21 = vshll.u32 %v7245_v54, 16  ;;  %v7741_v43 = vld [vmem:[#allocation2 + $0xbc] sm:$0x1]  ;;  %v8434_v35 = vor.u32 %v8433_v32, %v8429_v3  ;;  %v11691_v2 = vrot.slane %v7739_v10, 9  ;;  %v12525_v8 = vpop.f32.mrf.mxu1 }
 0x4ac   : > { %v7588_v19 = vrot.slane %v7586_v15, 4  ;;  %v7591_v27 = vrot.slane %v7589_v0, 5  ;;  %v7246_v14 = vld [vmem:[#allocation2 + $0xc0] sm:$0xf]  ;;  %v13632_v51 = vld [vmem:[#allocation3 + $0x3c0] ss:$36 sps:$4 sm:$0xff]  }
 0x4ad   : > { %v13634_v33 = vld [vmem:[#allocation3 + $0x3c4] ss:$36 sps:$4 sm:$0xff]   ;;  %v8425_v41 = vrot.slane %v8424_v46, 4  ;;  %v8435_v30 = vrot.slane %v8434_v35, 4  ;;  %v7597_v29 = vrot.slane %v7595_v44, 5  ;;  %v7601_v1 = vrot.slane %v7599_v63, 4  ;;  %v16340_v46 = vpop.f32.mrf.mxu0 }
 0x4ae   : > { %v7592_v9 = vor.u32 %v7591_v27, %v7588_v19  ;;  %v7247_v48 = vld [vmem:[#allocation2 + $0xc4] sm:$0xf]  ;;  %10931 = vmatprep.mubr.bf16.mxu0 %v13634_v33  ;;  %v7607_v39 = vrot.slane %v7605_v21, 5  ;;  %v7893_v4 = vrot.slane %v7740_v36, 5  ;;  %v7896_v10 = vrot.slane %v7741_v43, 5  ;;  %v12527_v36 = vpop.f32.mrf.mxu1 }
 0x4af   : > { %v8430_v54 = vsel %vm14044_vm12, %v8425_v41, %v8429_v3  ;;  %v7248_v12 = vld [vmem:[#allocation2 + $0xc8] sm:$0x1]  ;;  %10932 = vmatmul.mubr.bf16.gmra.mxu0 %v13632_v51  ;;  %v8440_v26 = vsel %vm14044_vm12, %v8435_v30, %v8439_v11  ;;  %v7602_v52 = vor.u32 %v7601_v1, %v7597_v29  ;;  %v16335_v32 = vld [vmem:[%s17036_s4] ss:$0 sm:$0xff]  ;;  %v7742_v3 = vld [vmem:[#allocation2 + $0xc0] sm:$0xe]  ;;  %v12523_v43 = vadd.f32 %v12522_v42, %v16304_v53 }
 0x4b0   : > { %8525 = vst [vmem:[#allocation3 + $0x40c] sm:$0xf] %v8430_v54  ;;  %v7593_v50 = vrot.slane %v7592_v9, 4  ;;  %v16338_v15 = vadd.f32 %v16335_v32, %v12520_v6  ;;  %v7743_v0 = vld [vmem:[#allocation2 + $0xc4] sm:$0xf]  ;;  %v7894_v11 = vsel %vm14035_vm11, %v11691_v2, %v7893_v4  ;;  %v7895_v63 = vrot.slane %v7893_v4, 4  ;;  %v12528_v41 = vpop.f32.mrf.mxu1  ;;  %v16347_v6 = vpop.f32.mrf.mxu0 }
 0x4b1   : > { %v13636_v44 = vld [vmem:[#allocation3 + $0x3b8] ss:$36 sps:$4 sm:$0xff]   ;;  %8526 = vst [vmem:[#allocation3 + $0x430] sm:$0xf] %v8440_v26  ;;  %v7610_v21 = vshrl.u32 %v7246_v14, 16  ;;  %v7603_v27 = vrot.slane %v7602_v52, 4  ;;  %v16398_v22 = vadd.f32 %v16340_v46, %v16326_v45 }
 0x4b2   : > { %v13638_v35 = vld [vmem:[#allocation3 + $0x3bc] ss:$36 sps:$4 sm:$0xff]   ;;  %v7598_v19 = vsel %vm14044_vm12, %v7593_v50, %v7597_v29  ;;  %7965 = vst [vmem:[#allocation3 + $0x404] sm:$0xf] %v7894_v11  ;;  %v7613_v51 = vshll.u32 %v7246_v14, 16  ;;  %v7619_v33 = vshll.u32 %v7247_v48, 16  ;;  %v7897_v30 = vsel %vm14035_vm11, %v7895_v63, %v7896_v10  ;;  %v12530_v4 = vpop.f32.mrf.mxu1  ;;  %v16353_v26 = vpop.f32.mrf.mxu0 }
 0x4b3   : > { %7693 = vst [vmem:[#allocation3 + $0x400] sm:$0xf] %v7598_v19  ;;  %v7612_v2 = vrot.slane %v7610_v21, 4  ;;  %v7623_v9 = vshrl.u32 %v7247_v48, 16  ;;  %v7629_v1 = vshll.u32 %v7248_v12, 16  ;;  %10770 = vmatprep.mubr.bf16.mxu1 %v13638_v35  ;;  %v7608_v53 = vsel %vm14044_vm12, %v7603_v27, %v7607_v39 }
 0x4b4   : > { %v7744_v54 = vld [vmem:[#allocation2 + $0xc8] sm:$0x1]  ;;  %7966 = vst [vmem:[#allocation3 + $0x428] sm:$0xf] %v7897_v30  ;;  %v7615_v42 = vrot.slane %v7613_v51, 5  ;;  %v7621_v29 = vrot.slane %v7619_v33, 5  ;;  %10771 = vmatmul.mubr.bf16.gmra.mxu1 %v13636_v44  ;;  %v16356_v12 = vadd.f32 %v16335_v32, %v12523_v43  ;;  %v16360_v39 = vadd.f32 %v16291_v7, %v16285_v18  ;;  %v12531_v44 = vpop.f32.mrf.mxu1  ;;  %v16363_v27 = vpop.f32.mrf.mxu0 }
 0x4b5   : > { %v11692_v14 = vrot.slane %v7742_v3, 9  ;;  %7694 = vst [vmem:[#allocation3 + $0x424] sm:$0xf] %v7608_v53  ;;  %v7625_v50 = vrot.slane %v7623_v9, 4  ;;  %v7631_v52 = vrot.slane %v7629_v1, 5  ;;  %v7900_v10 = vrot.slane %v7743_v0, 5 }
 0x4b6   : > { %v7903_v11 = vrot.slane %v7744_v54, 5  ;;  %v7616_v48 = vor.u32 %v7615_v42, %v7612_v2  ;;  %v12526_v63 = vadd.f32 %v12525_v8, %v16314_v38  ;;  %v13651_v3 = vld [vmem:[#allocation3 + $0x454] ss:$36 sps:$4 sm:$0xff]   ;;  %v8529_v21 = vld [vmem:[#allocation2 + $0x18] sm:$0xe]  ;;  %v16369_v43 = vadd.f32 %v16306_v61, %v16300_v62  ;;  %v12533_v54 = vpop.f32.mrf.mxu1  ;;  %v16378_v53 = vpop.f32.mrf.mxu0 }
 0x4b7   : > { %v8530_v35 = vld [vmem:[#allocation2 + $0x1c] sm:$0xf]  ;;  %v8531_v19 = vld [vmem:[#allocation2 + $0x20] sm:$0x1]  ;;  %v7626_v51 = vor.u32 %v7625_v50, %v7621_v29  ;;  %v7901_v0 = vsel %vm14035_vm11, %v11692_v14, %v7900_v10  ;;  %v7902_v33 = vrot.slane %v7900_v10, 4  ;;  %v12529_v9 = vadd.f32 %v12528_v41, %v12527_v36 }
 0x4b8   : > { %v8532_v18 = vld [vmem:[#allocation2 + $0x24] sm:$0xe]  ;;  %v8533_v7 = vld [vmem:[#allocation2 + $0x28] sm:$0xf]  ;;  %v7617_v8 = vrot.slane %v7616_v48, 4  ;;  %v16372_v2 = vadd.f32 %v16335_v32, %v12526_v63  ;;  %v16376_v1 = vadd.f32 %v16316_v49, %v16312_v58  ;;  %v11693_v61 = vrot.slane %v8529_v21, 9  ;;  %v12534_v63 = vpop.f32.mrf.mxu1 }
 0x4b9   : > { %v13639_v30 = vld [vmem:[#allocation3 + $0x408] ss:$36 sps:$4 sm:$0xff]   ;;  %7967 = vst [vmem:[#allocation3 + $0x44c] sm:$0xf] %v7901_v0  ;;  %v7627_v42 = vrot.slane %v7626_v51, 4  ;;  %v7904_v62 = vsel %vm14035_vm11, %v7902_v33, %v7903_v11  ;;  %v8627_v14 = vrot.slane %v8530_v35, 5  ;;  %v16385_v41 = vadd.f32 %v16335_v32, %v12529_v9  ;;  %v16387_v51 = vpop.f32.mrf.mxu0 }
 0x4ba   : > { %v13641_v38 = vld [vmem:[#allocation3 + $0x40c] ss:$36 sps:$4 sm:$0xff]   ;;  %v8534_v50 = vld [vmem:[#allocation2 + $0x2c] sm:$0x1]  ;;  %v7622_v10 = vsel %vm14044_vm12, %v7617_v8, %v7621_v29  ;;  %7968 = vst [vmem:[#allocation3 + $0x470] sm:$0xf] %v7904_v62  ;;  %v12532_v58 = vadd.f32 %v12531_v44, %v12530_v4 }
 0x4bb   : > { %10939 = vmatprep.mubr.bf16.mxu0 %v13641_v38  ;;  %v8630_v36 = vrot.slane %v8531_v19, 5  ;;  %v8535_v49 = vld [vmem:[#allocation2 + $0x30] sm:$0xe]  ;;  %v8536_v48 = vld [vmem:[#allocation2 + $0x34] sm:$0xf]  ;;  %v7632_v11 = vsel %vm14044_vm12, %v7627_v42, %v7631_v52  ;;  %v8628_v21 = vsel %vm14035_vm11, %v11693_v61, %v8627_v14  ;;  %v8629_v29 = vrot.slane %v8627_v14, 4  ;;  %v12655_v8 = vpop.f32.mrf.mxu0 }
 0x4bc   : > { %10940 = vmatmul.mubr.bf16.gmra.mxu0 %v13639_v30  ;;  %7695 = vst [vmem:[#allocation3 + $0x448] sm:$0xf] %v7622_v10  ;;  %v11694_v35 = vrot.slane %v8532_v18, 9  ;;  %v8537_v19 = vld [vmem:[#allocation2 + $0x38] sm:$0x1]  ;;  %v16394_v4 = vadd.f32 %v16335_v32, %v12532_v58  ;;  %v8634_v44 = vrot.slane %v8533_v7, 5  ;;  %v12535_v52 = vadd.f32 %v12534_v63, %v12533_v54  ;;  %v12536_v30 = vpop.f32.mrf.mxu1 }
 0x4bd   : > { %v8538_v0 = vld [vmem:[#allocation2 + $0x3c] sm:$0xe]  ;;  %7696 = vst [vmem:[#allocation3 + $0x46c] sm:$0xf] %v7632_v11  ;;  %10947 = vmatprep.mubr.bf16.mxu0 %v13651_v3  ;;  %8769 = vst [vmem:[#allocation3 + $0x20] sm:$0xf] %v8628_v21  ;;  %v8631_v18 = vsel %vm14035_vm11, %v8629_v29, %v8630_v36  ;;  %v12657_v63 = vpop.f32.mrf.mxu0 }
 0x4be   : > { %v13642_v33 = vld [vmem:[#allocation3 + $0x400] ss:$36 sps:$4 sm:$0xff]   ;;  %v13649_v9 = vld [vmem:[#allocation3 + $0x450] ss:$36 sps:$4 sm:$0xff]   ;;  %v8637_v42 = vrot.slane %v8534_v50, 5  ;;  %v11695_v62 = vrot.slane %v8535_v49, 9  ;;  %v8635_v7 = vsel %vm14035_vm11, %v11694_v35, %v8634_v44  ;;  %v16405_v45 = vadd.f32 %v16335_v32, %v12535_v52  ;;  %v12537_v46 = vpop.f32.mrf.mxu1 }
 0x4bf   : > { %v13644_v38 = vld [vmem:[#allocation3 + $0x404] ss:$36 sps:$4 sm:$0xff]   ;;  %v8641_v61 = vrot.slane %v8536_v48, 5  ;;  %8770 = vst [vmem:[#allocation3 + $0x44] sm:$0xf] %v8631_v18  ;;  %v8636_v14 = vrot.slane %v8634_v44, 4  ;;  %v16411_v49 = vadd.f32 %v16353_v26, %v16347_v6  ;;  %v12538_v48 = vadd.f32 %v12537_v46, %v12536_v30  ;;  %v12658_v52 = vpop.f32.mrf.mxu0 }
 0x4c0   : > { %v8539_v3 = vld [vmem:[#allocation2 + $0x40] sm:$0xf]  ;;  %10778 = vmatprep.mubr.bf16.mxu1 %v13644_v38  ;;  %v8644_v10 = vrot.slane %v8537_v19, 5  ;;  %v8540_v54 = vld [vmem:[#allocation2 + $0x44] sm:$0x1]  ;;  %v12539_v35 = vpop.f32.mrf.mxu1  ;;  %v11696_v19 = vrot.slane %v8538_v0, 9  ;;  %v16422_v26 = vadd.f32 %v16378_v53, %v16363_v27  ;;  %v16427_v27 = vadd.f32 %v12655_v8, %v16387_v51 }
 0x4c1   : > { %v8541_v58 = vld [vmem:[#allocation2 + $0x48] sm:$0xe]  ;;  %10779 = vmatmul.mubr.bf16.gmra.mxu1 %v13642_v33  ;;  %8771 = vst [vmem:[#allocation3 + $0x68] sm:$0xf] %v8635_v7  ;;  %v8642_v50 = vsel %vm14035_vm11, %v11695_v62, %v8641_v61  ;;  %v8643_v36 = vrot.slane %v8641_v61, 4  ;;  %v8638_v29 = vsel %vm14035_vm11, %v8636_v14, %v8637_v42  ;;  %v8648_v38 = vrot.slane %v8539_v3, 5 }
 0x4c2   : > { %v8542_v11 = vld [vmem:[#allocation2 + $0x4c] sm:$0xf]  ;;  %v8543_v21 = vld [vmem:[#allocation2 + $0x50] sm:$0x1]  ;;  %8773 = vst [vmem:[#allocation3 + $0xb0] sm:$0xf] %v8642_v50  ;;  %v16418_v6 = vadd.f32 %v16335_v32, %v12538_v48  ;;  %v12540_v14 = vpop.f32.mrf.mxu1 }
 0x4c3   : > { %v8651_v33 = vrot.slane %v8540_v54, 5  ;;  %v8544_v44 = vld [vmem:[#allocation2 + $0x54] sm:$0xe]  ;;  %8772 = vst [vmem:[#allocation3 + $0x8c] sm:$0xf] %v8638_v29  ;;  %v8645_v18 = vsel %vm14035_vm11, %v8643_v36, %v8644_v10  ;;  %v11697_v30 = vrot.slane %v8541_v58, 9  ;;  %v8649_v0 = vsel %vm14035_vm11, %v11696_v19, %v8648_v38  ;;  %v12660_v10 = vpop.f32.mrf.mxu0 }
 0x4c4   : > { %v8545_v42 = vld [vmem:[#allocation2 + $0x58] sm:$0xf]  ;;  %v8546_v62 = vld [vmem:[#allocation2 + $0x5c] sm:$0x1]  ;;  %8774 = vst [vmem:[#allocation3 + $0xd4] sm:$0xf] %v8645_v18  ;;  %10948 = vmatmul.mubr.bf16.gmra.mxu0 %v13649_v9  ;;  %v12541_v36 = vadd.f32 %v12540_v14, %v12539_v35  ;;  %v16429_v58 = vadd.f32 %v12658_v52, %v12657_v63  ;;  %v12542_v29 = vpop.f32.mrf.mxu1 }
 0x4c5   : > { %v8650_v61 = vrot.slane %v8648_v38, 4  ;;  %v8655_v3 = vrot.slane %v8542_v11, 5  ;;  %v8658_v7 = vrot.slane %v8543_v21, 5  ;;  %v8547_v46 = vld [vmem:[#allocation2 + $0x60] sm:$0xe]  ;;  %v11698_v53 = vrot.slane %v8544_v44, 9  ;;  %v12661_v18 = vpop.f32.mrf.mxu0 }
 0x4c6   : > { %v13646_v54 = vld [vmem:[#allocation3 + $0x448] ss:$36 sps:$4 sm:$0xff]   ;;  %8775 = vst [vmem:[#allocation3 + $0xf8] sm:$0xf] %v8649_v0  ;;  %v8662_v19 = vrot.slane %v8545_v42, 5  ;;  %v16436_v51 = vadd.f32 %v16335_v32, %v12541_v36  ;;  %v8665_v8 = vrot.slane %v8546_v62, 5  ;;  %v16438_v35 = vadd.f32 %v12661_v18, %v12660_v10  ;;  %v12543_v44 = vpop.f32.mrf.mxu1 }
 0x4c7   : > { %v13648_v50 = vld [vmem:[#allocation3 + $0x44c] ss:$36 sps:$4 sm:$0xff]   ;;  %v8652_v48 = vsel %vm14035_vm11, %v8650_v61, %v8651_v33  ;;  %v8656_v11 = vsel %vm14035_vm11, %v11697_v30, %v8655_v3  ;;  %v8657_v21 = vrot.slane %v8655_v3, 4  ;;  %v13652_v9 = vld [vmem:[#allocation3 + $0x20] ss:$36 sps:$4 sm:$0xff]   ;;  %v11699_v63 = vrot.slane %v8547_v46, 9  ;;  %v12663_v61 = vpop.f32.mrf.mxu0 }
 0x4c8   : > { %v8548_v38 = vld [vmem:[#allocation2 + $0x64] sm:$0xf]  ;;  %10786 = vmatprep.mubr.bf16.mxu1 %v13648_v50  ;;  %8776 = vst [vmem:[#allocation3 + $0x11c] sm:$0xf] %v8652_v48  ;;  %8777 = vst [vmem:[#allocation3 + $0x140] sm:$0xf] %v8656_v11  ;;  %v8663_v52 = vsel %vm14035_vm11, %v11698_v53, %v8662_v19  ;;  %v12544_v3 = vadd.f32 %v12543_v44, %v12542_v29  ;;  %v16446_v46 = vadd.f32 %v16211_v24, %v16252_v17  ;;  %v12545_v10 = vpop.f32.mrf.mxu1 }
 0x4c9   : > { %v8659_v33 = vsel %vm14035_vm11, %v8657_v21, %v8658_v7  ;;  %v8664_v30 = vrot.slane %v8662_v19, 4  ;;  %v8549_v42 = vld [vmem:[#allocation2 + $0x68] sm:$0x1]  ;;  %v8669_v0 = vrot.slane %v8548_v38, 5  ;;  %10787 = vmatmul.mubr.bf16.gmra.mxu1 %v13646_v54  ;;  %8779 = vst [vmem:[#allocation3 + $0x188] sm:$0xf] %v8663_v52  ;;  %v16450_v7 = vadd.f32 %v16220_v16, %v16264_v57  ;;  %v12664_v48 = vpop.f32.mrf.mxu0 }
 0x4ca   : > { %8778 = vst [vmem:[#allocation3 + $0x164] sm:$0xf] %v8659_v33  ;;  %v8672_v14 = vrot.slane %v8549_v42, 5  ;;  %v8550_v62 = vld [vmem:[#allocation2 + $0x6c] sm:$0xe]  ;;  %13005 = vmatprep.mubr.bf16.mxu1 %v13652_v9  ;;  %v10422_v11 = vadd.f32 %v16335_v32, %v12544_v3  ;;  %v16457_v17 = vadd.f32 %v12664_v48, %v12663_v61  ;;  %v16461_v16 = vadd.f32 %v16255_v37, %v16281_v28  ;;  %v12546_v29 = vpop.f32.mrf.mxu1 }
 0x4cb   : > { %v8666_v50 = vsel %vm14035_vm11, %v8664_v30, %v8665_v8  ;;  %v8670_v54 = vsel %vm14035_vm11, %v11699_v63, %v8669_v0  ;;  %v8671_v36 = vrot.slane %v8669_v0, 4  ;;  %v11700_v53 = vrot.slane %v8550_v62, 9  ;;  %v8551_v24 = vld [vmem:[#allocation2 + $0x70] sm:$0xf]  ;;  %v8552_v19 = vld [vmem:[#allocation2 + $0x74] sm:$0x1]  ;;  %v12666_v18 = vpop.f32.mrf.mxu0 }
 0x4cc   : > { %8780 = vst [vmem:[#allocation3 + $0x1ac] sm:$0xf] %v8666_v50  ;;  %8781 = vst [vmem:[#allocation3 + $0x1d0] sm:$0xf] %v8670_v54  ;;  %v16465_v57 = vadd.f32 %v16257_v5, %v16296_v31  ;;  %v8676_v38 = vrot.slane %v8551_v24, 5  ;;  %v16471_v9 = vadd.f32 %v16268_v25, %v16319_v34  ;;  %v16475_v8 = vadd.f32 %v16283_v47, %v16338_v15  ;;  %v12548_v44 = vpop.f32.mrf.mxu1 }
 0x4cd   : > { %v8673_v21 = vsel %vm14035_vm11, %v8671_v36, %v8672_v14  ;;  %v12547_v37 = vadd.f32 %v12546_v29, %v12545_v10  ;;  %v8553_v28 = vld [vmem:[#allocation2 + $0x78] sm:$0xe]  ;;  %v8554_v5 = vld [vmem:[#allocation2 + $0x7c] sm:$0xf]  ;;  %v16479_v31 = vadd.f32 %v16324_v60, %v16356_v12  ;;  %v16483_v63 = vadd.f32 %v16360_v39, %v16372_v2  ;;  %v13653_v33 = vld [vmem:[#allocation3 + $0x68] ss:$36 sps:$4 sm:$0xff]   ;;  %v12667_v34 = vpop.f32.mrf.mxu0 }
 0x4ce   : > { %8782 = vst [vmem:[#allocation3 + $0x1f4] sm:$0xf] %v8673_v21  ;;  %v8677_v25 = vsel %vm14035_vm11, %v11700_v53, %v8676_v38  ;;  %v16489_v47 = vadd.f32 %v16369_v43, %v16385_v41  ;;  %v16493_v15 = vadd.f32 %v16376_v1, %v16394_v4  ;;  %v16497_v60 = vadd.f32 %v16398_v22, %v16405_v45  ;;  %v13654_v12 = vld [vmem:[#allocation3 + $0xb0] ss:$36 sps:$4 sm:$0xff]   ;;  %v12549_v42 = vpop.f32.mrf.mxu1  ;;  %v8555_v0 = vld [vmem:[#allocation2 + $0x80] sm:$0x1] }
 0x4cf   : > { %v8678_v39 = vrot.slane %v8676_v38, 4  ;;  %v8679_v2 = vrot.slane %v8552_v19, 5  ;;  %8783 = vst [vmem:[#allocation3 + $0x218] sm:$0xf] %v8677_v25  ;;  %v11701_v52 = vrot.slane %v8553_v28, 9  ;;  %v8683_v30 = vrot.slane %v8554_v5, 5  ;;  %v12669_v43 = vpop.f32.mrf.mxu0 }
 0x4d0   : > { %v16499_v61 = vadd.f32 %v12667_v34, %v12666_v18  ;;  %v16503_v41 = vadd.f32 %v16411_v49, %v16418_v6  ;;  %v16507_v1 = vadd.f32 %v16422_v26, %v16436_v51  ;;  %v16510_v4 = vadd.f32 %v16427_v27, %v10422_v11  ;;  %v8556_v62 = vld [vmem:[#allocation2 + $0x84] sm:$0xe]  ;;  %v8557_v10 = vld [vmem:[#allocation2 + $0x88] sm:$0xf]  ;;  %v12551_v6 = vpop.f32.mrf.mxu1  ;;  %v8558_v51 = vld [vmem:[#allocation2 + $0x8c] sm:$0x1] }
 0x4d1   : > { %13006 = vmatmul.mubr.bf16.vlgmr.msra.gmra.mxu1 %v13653_v33  ;;  %v12550_v22 = vadd.f32 %v12549_v42, %v12548_v44  ;;  %v8680_v45 = vsel %vm14035_vm11, %v8678_v39, %v8679_v2  ;;  %v8684_v3 = vsel %vm14035_vm11, %v11701_v52, %v8683_v30  ;;  %v8685_v14 = vrot.slane %v8683_v30, 4  ;;  %v12670_v26 = vpop.f32.mrf.mxu0  ;;  %v13655_v24 = vld [vmem:[#allocation3 + $0xf8] ss:$36 sps:$4 sm:$0xff]   ;;  %v13656_v28 = vld [vmem:[#allocation3 + $0x140] ss:$36 sps:$4 sm:$0xff]  }
 0x4d2   : > { %13009 = vmatprep.mubr.bf16.mxu1 %v13654_v12  ;;  %v10427_v49 = vadd.f32 %v16335_v32, %v12547_v37  ;;  %8784 = vst [vmem:[#allocation3 + $0x23c] sm:$0xf] %v8680_v45  ;;  %8785 = vst [vmem:[#allocation3 + $0x260] sm:$0xf] %v8684_v3  ;;  %v8686_v27 = vrot.slane %v8555_v0, 5  ;;  %v11702_v50 = vrot.slane %v8556_v62, 9  ;;  %v12552_v36 = vpop.f32.mrf.mxu1  ;;  %v16517_v48 = vadd.f32 %v12670_v26, %v12669_v43 }
 0x4d3   : > { %v8690_v54 = vrot.slane %v8557_v10, 5  ;;  %v8693_v53 = vrot.slane %v8558_v51, 5  ;;  %v12672_v11 = vpop.f32.mrf.mxu0  ;;  %v12553_v29 = vadd.f32 %v12552_v36, %v12551_v6  ;;  %v8559_v18 = vld [vmem:[#allocation2 + $0x90] sm:$0xe]  ;;  %v8560_v37 = vld [vmem:[#allocation2 + $0x94] sm:$0xf]  ;;  %v10430_v39 = vadd.f32 %v16335_v32, %v12550_v22 }
 0x4d4   : > { %v8687_v21 = vsel %vm14035_vm11, %v8685_v14, %v8686_v27  ;;  %v12554_v5 = vpop.f32.mrf.mxu1  ;;  %v8561_v33 = vld [vmem:[#allocation2 + $0x98] sm:$0x1]  ;;  %v11703_v44 = vrot.slane %v8559_v18, 9  ;;  %v8697_v25 = vrot.slane %v8560_v37, 5  ;;  %v16524_v12 = vadd.f32 %v16429_v58, %v10427_v49  ;;  %v8562_v42 = vld [vmem:[#allocation2 + $0x9c] sm:$0xe] }
 0x4d5   : > { %v8691_v19 = vsel %vm14035_vm11, %v11702_v50, %v8690_v54  ;;  %v8692_v38 = vrot.slane %v8690_v54, 4  ;;  %8786 = vst [vmem:[#allocation3 + $0x284] sm:$0xf] %v8687_v21  ;;  %v12673_v34 = vpop.f32.mrf.mxu0  ;;  %v8700_v52 = vrot.slane %v8561_v33, 5  ;;  %v8563_v0 = vld [vmem:[#allocation2 + $0xa0] sm:$0xf] }
 0x4d6   : > { %8787 = vst [vmem:[#allocation3 + $0x2a8] sm:$0xf] %v8691_v19  ;;  %v16529_v30 = vadd.f32 %v12673_v34, %v12672_v11  ;;  %v12555_v43 = vpop.f32.mrf.mxu1  ;;  %v8698_v45 = vsel %vm14035_vm11, %v11703_v44, %v8697_v25  ;;  %v8699_v3 = vrot.slane %v8697_v25, 4  ;;  %v8564_v62 = vld [vmem:[#allocation2 + $0xa4] sm:$0x1]  ;;  %v11704_v58 = vrot.slane %v8562_v42, 9 }
 0x4d7   : > { %v8694_v2 = vsel %vm14035_vm11, %v8692_v38, %v8693_v53  ;;  %v12675_v14 = vpop.f32.mrf.mxu0  ;;  %v8704_v10 = vrot.slane %v8563_v0, 5  ;;  %v12556_v22 = vadd.f32 %v12555_v43, %v12554_v5  ;;  %8789 = vst [vmem:[#allocation3 + $0x2f0] sm:$0xf] %v8698_v45  ;;  %v8707_v51 = vrot.slane %v8564_v62, 5  ;;  %v8565_v54 = vld [vmem:[#allocation2 + $0xa8] sm:$0xe] }
 0x4d8   : > { %8788 = vst [vmem:[#allocation3 + $0x2cc] sm:$0xf] %v8694_v2  ;;  %v12557_v49 = vpop.f32.mrf.mxu1  ;;  %v8701_v6 = vsel %vm14035_vm11, %v8699_v3, %v8700_v52  ;;  %v8566_v36 = vld [vmem:[#allocation2 + $0xac] sm:$0xf]  ;;  %v8567_v11 = vld [vmem:[#allocation2 + $0xb0] sm:$0x1]  ;;  %v16542_v5 = vadd.f32 %v16438_v35, %v10430_v39  ;;  %v10435_v44 = vadd.f32 %v16335_v32, %v12553_v29 }
 0x4d9   : > { %13010 = vmatmul.mubr.bf16.gmra.mxu1 %v13655_v24  ;;  %v8705_v26 = vsel %vm14035_vm11, %v11704_v58, %v8704_v10  ;;  %v8706_v27 = vrot.slane %v8704_v10, 4  ;;  %v12676_v50 = vpop.f32.mrf.mxu0  ;;  %8790 = vst [vmem:[#allocation3 + $0x314] sm:$0xf] %v8701_v6  ;;  %v11705_v24 = vrot.slane %v8565_v54, 9  ;;  %v8711_v21 = vrot.slane %v8566_v36, 5 }
 0x4da   : > { %13013 = vmatprep.mubr.bf16.mxu1 %v13656_v28  ;;  %8791 = vst [vmem:[#allocation3 + $0x338] sm:$0xf] %v8705_v26  ;;  %v16537_v53 = vadd.f32 %v12676_v50, %v12675_v14  ;;  %v8568_v19 = vld [vmem:[#allocation2 + $0xb4] sm:$0xe]  ;;  %v12558_v38 = vpop.f32.mrf.mxu1  ;;  %v8569_v28 = vld [vmem:[#allocation2 + $0xb8] sm:$0xf]  ;;  %v10438_v35 = vadd.f32 %v16335_v32, %v12556_v22  ;;  %v16555_v36 = vadd.f32 %v16457_v17, %v10435_v44 }
 0x4db   : > { %v8708_v18 = vsel %vm14035_vm11, %v8706_v27, %v8707_v51  ;;  %v12678_v37 = vpop.f32.mrf.mxu0  ;;  %v13657_v33 = vld [vmem:[#allocation3 + $0x188] ss:$36 sps:$4 sm:$0xff]   ;;  %v12559_v25 = vadd.f32 %v12558_v38, %v12557_v49  ;;  %v8712_v34 = vsel %vm14035_vm11, %v11705_v24, %v8711_v21  ;;  %v8570_v2 = vld [vmem:[#allocation2 + $0xbc] sm:$0x1]  ;;  %v8713_v42 = vrot.slane %v8711_v21, 4 }
 0x4dc   : > { %8792 = vst [vmem:[#allocation3 + $0x35c] sm:$0xf] %v8708_v18  ;;  %v12560_v52 = vpop.f32.mrf.mxu1  ;;  %v8714_v0 = vrot.slane %v8567_v11, 5  ;;  %8793 = vst [vmem:[#allocation3 + $0x380] sm:$0xf] %v8712_v34  ;;  %v11706_v45 = vrot.slane %v8568_v19, 9  ;;  %v16566_v44 = vadd.f32 %v16499_v61, %v10438_v35 }
 0x4dd   : > { %v12679_v43 = vpop.f32.mrf.mxu0  ;;  %v8718_v3 = vrot.slane %v8569_v28, 5  ;;  %v8571_v14 = vld [vmem:[#allocation2 + $0xc0] sm:$0xe]  ;;  %v13658_v62 = vld [vmem:[#allocation3 + $0x1d0] ss:$36 sps:$4 sm:$0xff]   ;;  %v8721_v27 = vrot.slane %v8570_v2, 5 }
 0x4de   : > { %v16548_v39 = vadd.f32 %v12679_v43, %v12678_v37  ;;  %v8572_v29 = vld [vmem:[#allocation2 + $0xc4] sm:$0xf]  ;;  %v12561_v58 = vpop.f32.mrf.mxu1  ;;  %v8715_v10 = vsel %vm14035_vm11, %v8713_v42, %v8714_v0  ;;  %v8573_v51 = vld [vmem:[#allocation2 + $0xc8] sm:$0x1]  ;;  %v11707_v54 = vrot.slane %v8571_v14, 9 }
 0x4df   : > { %v12681_v49 = vpop.f32.mrf.mxu0  ;;  %v8719_v6 = vsel %vm14035_vm11, %v11706_v45, %v8718_v3  ;;  %v8720_v26 = vrot.slane %v8718_v3, 4  ;;  %v12562_v50 = vadd.f32 %v12561_v58, %v12560_v52  ;;  %8794 = vst [vmem:[#allocation3 + $0x3a4] sm:$0xf] %v8715_v10  ;;  %v8725_v22 = vrot.slane %v8572_v29, 5  ;;  %v13659_v42 = vld [vmem:[#allocation3 + $0x218] ss:$36 sps:$4 sm:$0xff]  }
 0x4e0   : > { %8795 = vst [vmem:[#allocation3 + $0x3c8] sm:$0xf] %v8719_v6  ;;  %v12563_v11 = vpop.f32.mrf.mxu1  ;;  %v8728_v37 = vrot.slane %v8573_v51, 5  ;;  %v13660_v43 = vld [vmem:[#allocation3 + $0x260] ss:$36 sps:$4 sm:$0xff]   ;;  %v10443_v45 = vadd.f32 %v16335_v32, %v12559_v25 }
 0x4e1   : > { %13014 = vmatmul.mubr.bf16.gmra.mxu1 %v13657_v33  ;;  %v8722_v24 = vsel %vm14035_vm11, %v8720_v26, %v8721_v27  ;;  %v12682_v21 = vpop.f32.mrf.mxu0  ;;  %v8726_v38 = vsel %vm14035_vm11, %v11707_v54, %v8725_v22  ;;  %v8727_v18 = vrot.slane %v8725_v22, 4  ;;  %v13661_v25 = vld [vmem:[#allocation3 + $0x2a8] ss:$36 sps:$4 sm:$0xff]   ;;  %v13662_v54 = vld [vmem:[#allocation3 + $0x2f0] ss:$36 sps:$4 sm:$0xff]  }
 0x4e2   : > { %13017 = vmatprep.mubr.bf16.mxu1 %v13658_v62  ;;  %8796 = vst [vmem:[#allocation3 + $0x3ec] sm:$0xf] %v8722_v24  ;;  %v16559_v19 = vadd.f32 %v12682_v21, %v12681_v49  ;;  %v12564_v28 = vpop.f32.mrf.mxu1  ;;  %8797 = vst [vmem:[#allocation3 + $0x410] sm:$0xf] %v8726_v38  ;;  %v16574_v10 = vadd.f32 %v16517_v48, %v10443_v45  ;;  %v10446_v49 = vadd.f32 %v16335_v32, %v12562_v50 }
 0x4e3   : > { %v12684_v33 = vpop.f32.mrf.mxu0  ;;  %v12565_v34 = vadd.f32 %v12564_v28, %v12563_v11  ;;  %v8729_v17 = vsel %vm14035_vm11, %v8727_v18, %v8728_v37 }
 0x4e4   : > { %v12566_v2 = vpop.f32.mrf.mxu1  ;;  %8798 = vst [vmem:[#allocation3 + $0x434] sm:$0xf] %v8729_v17  ;;  %v16580_v21 = vadd.f32 %v16529_v30, %v10446_v49 }
 0x4e5   : > { %v12685_v52 = vpop.f32.mrf.mxu0  ;;  %v10451_v18 = vadd.f32 %v16335_v32, %v12565_v34 }
 0x4e6   : > { %v16568_v0 = vadd.f32 %v12685_v52, %v12684_v33  ;;  %v12567_v3 = vpop.f32.mrf.mxu1  ;;  %v13663_v52 = vld [vmem:[#allocation3 + $0x338] ss:$36 sps:$4 sm:$0xff]   ;;  %v13664_v30 = vld [vmem:[#allocation3 + $0x380] ss:$36 sps:$4 sm:$0xff]  }
 0x4e7   : > { %v12687_v14 = vpop.f32.mrf.mxu0  ;;  %v12568_v62 = vadd.f32 %v12567_v3, %v12566_v2 }
 0x4e8   : > { %v12569_v29 = vpop.f32.mrf.mxu1 }
 0x4e9   : > { %13018 = vmatmul.mubr.bf16.gmra.mxu1 %v13659_v42  ;;  %v12688_v23 = vpop.f32.mrf.mxu0  ;;  %v10454_v45 = vadd.f32 %v16335_v32, %v12568_v62 }
 0x4ea   : > { %13021 = vmatprep.mubr.bf16.mxu1 %v13660_v43  ;;  %v16571_v58 = vadd.f32 %v12688_v23, %v12687_v14  ;;  %v12570_v61 = vpop.f32.mrf.mxu1  ;;  %v16588_v43 = vadd.f32 %v16537_v53, %v10451_v18 }
 0x4eb   : > { %v12690_v35 = vpop.f32.mrf.mxu0  ;;  %v12571_v6 = vadd.f32 %v12570_v61, %v12569_v29  ;;  %v16598_v49 = vadd.f32 %v16548_v39, %v10454_v45 }
 0x4ec   : > { %v12572_v26 = vpop.f32.mrf.mxu1 }
 0x4ed   : > { %v12691_v27 = vpop.f32.mrf.mxu0  ;;  %v10459_v53 = vadd.f32 %v16335_v32, %v12571_v6 }
 0x4ee   : > { %v16577_v51 = vadd.f32 %v12691_v27, %v12690_v35  ;;  %v12573_v22 = vpop.f32.mrf.mxu1 }
 0x4ef   : > { %v12821_v11 = vpop.f32.mrf.mxu0  ;;  %v12574_v24 = vadd.f32 %v12573_v22, %v12572_v26  ;;  %v13666_v22 = vld [vmem:[#allocation3 + $0x410] ss:$36 sps:$4 sm:$0xff]   ;;  %v16607_v18 = vadd.f32 %v16559_v19, %v10459_v53 }
 0x4f0   : > { %v12575_v38 = vpop.f32.mrf.mxu1 }
 0x4f1   : > { %13022 = vmatmul.mubr.bf16.gmra.mxu1 %v13661_v25  ;;  %v12822_v48 = vpop.f32.mrf.mxu0  ;;  %v13665_v25 = vld [vmem:[#allocation3 + $0x3c8] ss:$36 sps:$4 sm:$0xff]   ;;  %v10462_v39 = vadd.f32 %v16335_v32, %v12574_v24 }
 0x4f2   : > { %13025 = vmatprep.mubr.bf16.mxu1 %v13662_v54  ;;  %v16583_v50 = vadd.f32 %v12822_v48, %v12821_v11  ;;  %v12576_v37 = vpop.f32.mrf.mxu1 }
 0x4f3   : > { %v12824_v28 = vpop.f32.mrf.mxu0  ;;  %v12577_v33 = vadd.f32 %v12576_v37, %v12575_v38  ;;  %v16619_v19 = vadd.f32 %v16568_v0, %v10462_v39 }
 0x4f4   : > { %v12578_v17 = vpop.f32.mrf.mxu1 }
 0x4f5   : > { %v12825_v2 = vpop.f32.mrf.mxu0 }
 0x4f6   : > { %v16585_v42 = vadd.f32 %v12825_v2, %v12824_v28  ;;  %v12579_v3 = vpop.f32.mrf.mxu1 }
 0x4f7   : > { %v16591_v14 = vpop.f32.mrf.mxu0  ;;  %v12580_v34 = vadd.f32 %v12579_v3, %v12578_v17 }
 0x4f8   : > { %v12709_v29 = vpop.f32.mrf.mxu1 }
 0x4f9   : > { %13026 = vmatmul.mubr.bf16.gmra.mxu1 %v13663_v52  ;;  %v16593_v23 = vpop.f32.mrf.mxu0  ;;  %v10470_v53 = vadd.f32 %v16335_v32, %v12580_v34 }
 0x4fa   : > { %13029 = vmatprep.mubr.bf16.mxu1 %v13664_v30  ;;  %v12710_v61 = vpop.f32.mrf.mxu1  ;;  %v10467_v30 = vadd.f32 %v16335_v32, %v12577_v33 }
 0x4fb   : > { %v16595_v35 = vpop.f32.mrf.mxu0  ;;  %v12711_v26 = vadd.f32 %v12710_v61, %v12709_v29  ;;  %v16640_v39 = vadd.f32 %v16577_v51, %v10470_v53 }
 0x4fc   : > { %v12712_v27 = vpop.f32.mrf.mxu1  ;;  %v16630_v33 = vadd.f32 %v16571_v58, %v10467_v30 }
 0x4fd   : > { %v16601_v62 = vpop.f32.mrf.mxu0  ;;  %v10669_v54 = vadd.f32 %v12711_v26, %v16175_v56  ;;  %v13667_v56 = vld [vmem:[#allocation3 + $0x458] ss:$36 sps:$4 sm:$0xff]   ;;  %17189 = vst [vmem:[#allocation20_spill] sm:$0xff] %v16640_v39 }
 0x4fe   : > { %v12713_v11 = vpop.f32.mrf.mxu1  ;;  %17188 = vst [vmem:[#allocation30_spill] sm:$0xff] %v16630_v33 }
 0x4ff   : > { %v16604_v38 = vpop.f32.mrf.mxu0  ;;  %v12714_v48 = vadd.f32 %v12713_v11, %v12712_v27  ;;  %v16660_v53 = vadd.f32 %v16583_v50, %v10669_v54 }
 0x500   : > { %v12715_v6 = vpop.f32.mrf.mxu1 }
 0x501   : > { %13030 = vmatmul.mubr.bf16.gmra.mxu1 %v13665_v25  ;;  %v16610_v37 = vpop.f32.mrf.mxu0  ;;  %v10672_v28 = vadd.f32 %v12714_v48, %v16177_v13 }
 0x502   : > { %13033 = vmatprep.mubr.bf16.mxu1 %v13666_v22  ;;  %v12716_v17 = vpop.f32.mrf.mxu1 }
 0x503   : > { %v16613_v2 = vpop.f32.mrf.mxu0  ;;  %v12717_v52 = vadd.f32 %v12716_v17, %v12715_v6 }
 0x504   : > { %v12718_v45 = vpop.f32.mrf.mxu1 }
 0x505   : > { %v16616_v3 = vpop.f32.mrf.mxu0  ;;  %v16622_v24 = vadd.f32 %v12717_v52, %v16224_v59 }
 0x506   : > { %v12719_v29 = vpop.f32.mrf.mxu1 }
 0x507   : > { %v16624_v61 = vpop.f32.mrf.mxu0  ;;  %v12720_v13 = vadd.f32 %v12719_v29, %v12718_v45 }
 0x508   : > { %v12721_v26 = vpop.f32.mrf.mxu1 }
 0x509   : > { %13034 = vmatmul.mubr.bf16.gmra.mxu1 %v13667_v56  ;;  %v16627_v27 = vpop.f32.mrf.mxu0  ;;  %v16633_v25 = vadd.f32 %v12720_v13, %v16232_v20 }
 0x50a   : > { %v12722_v0 = vpop.f32.mrf.mxu1 }
 0x50b   : > { %v16635_v22 = vpop.f32.mrf.mxu0  ;;  %v12723_v59 = vadd.f32 %v12722_v0, %v12721_v26 }
 0x50c   : > { %v12724_v11 = vpop.f32.mrf.mxu1 }
 0x50d   : > { %v16637_v48 = vpop.f32.mrf.mxu0  ;;  %v16643_v32 = vadd.f32 %v12723_v59, %v16240_v55 }
 0x50e   : > { %v12725_v34 = vpop.f32.mrf.mxu1 }
 0x50f   : > { %v16645_v6 = vpop.f32.mrf.mxu0  ;;  %v12726_v58 = vadd.f32 %v12725_v34, %v12724_v11  ;;  %v16668_v34 = vadd.f32 %v16585_v42, %v10672_v28 }
 0x510   : > { %v12727_v17 = vpop.f32.mrf.mxu1 }
 0x511   : > { %v16647_v20 = vpop.f32.mrf.mxu0  ;;  %v16650_v56 = vadd.f32 %v12726_v58, %v16243_v40 }
 0x512   : > { %v12728_v52 = vpop.f32.mrf.mxu1 }
 0x513   : > { %v16652_v30 = vpop.f32.mrf.mxu0  ;;  %v12729_v45 = vadd.f32 %v12728_v52, %v12727_v17 }
 0x514   : > { %v12730_v29 = vpop.f32.mrf.mxu1 }
 0x515   : > { %v16654_v51 = vpop.f32.mrf.mxu0  ;;  %v16657_v55 = vadd.f32 %v12729_v45, %v16446_v46 }
 0x516   : > { %v12731_v13 = vpop.f32.mrf.mxu1 }
 0x517   : > { %v12732_v26 = vadd.f32 %v12731_v13, %v12730_v29  ;;  %v16662_v59 = vpop.f32.mrf.mxu0 }
 0x518   : > { %v12733_v0 = vpop.f32.mrf.mxu1 }
 0x519   : > { %v16665_v40 = vadd.f32 %v12732_v26, %v16450_v7  ;;  %v16670_v52 = vpop.f32.mrf.mxu0 }
 0x51a   : > { %v12734_v11 = vpop.f32.mrf.mxu1 }
 0x51b   : > { %v12735_v58 = vadd.f32 %v12734_v11, %v12733_v0  ;;  %v16675_v29 = vpop.f32.mrf.mxu0 }
 0x51c   : > { %v12736_v17 = vpop.f32.mrf.mxu1 }
 0x51d   : > { %v16673_v46 = vadd.f32 %v12735_v58, %v16461_v16  ;;  %v16680_v42 = vpop.f32.mrf.mxu0 }
 0x51e   : > { %v12737_v50 = vpop.f32.mrf.mxu1 }
 0x51f   : > { %v12738_v54 = vadd.f32 %v12737_v50, %v12736_v17  ;;  %v16685_v16 = vpop.f32.mrf.mxu0 }
 0x520   : > { %v12739_v45 = vpop.f32.mrf.mxu1  ;;  %17191 = vst [vmem:[#allocation21_spill] sm:$0xff] %v16685_v16 }
 0x521   : > { %v16678_v13 = vadd.f32 %v12738_v54, %v16465_v57  ;;  %v16690_v57 = vpop.f32.mrf.mxu0 }
 0x522   : > { %v12740_v7 = vpop.f32.mrf.mxu1  ;;  %17192 = vst [vmem:[#allocation22_spill] sm:$0xff] %v16690_v57 }
 0x523   : > { %17190 = vst [vmem:[#allocation32_spill] sm:$0xff] %v16678_v13  ;;  %v12741_v26 = vadd.f32 %v12740_v7, %v12739_v45 }
 0x524   : > { %v12742_v39 = vpop.f32.mrf.mxu1 }
 0x525   : > { %v16683_v28 = vadd.f32 %v12741_v26, %v16471_v9  ;;  %v16695_v9 = vpop.f32.mrf.mxu0 }
 0x526   : > { %v12743_v0 = vpop.f32.mrf.mxu1  ;;  %17193 = vst [vmem:[#allocation36_spill] sm:$0xff] %v16695_v9 }
 0x527   : > { %v12744_v11 = vadd.f32 %v12743_v0, %v12742_v39  ;;  %v16700_v16 = vpop.f32.mrf.mxu0 }
 0x528   : > { %v12745_v58 = vpop.f32.mrf.mxu1  ;;  %17195 = vst [vmem:[#allocation19_spill] sm:$0xff] %v16700_v16 }
 0x529   : > { %v16688_v17 = vadd.f32 %v12744_v11, %v16475_v8  ;;  %v16705_v57 = vpop.f32.mrf.mxu0 }
 0x52a   : > { %v12746_v50 = vpop.f32.mrf.mxu1 }
 0x52b   : > { %v12747_v33 = vadd.f32 %v12746_v50, %v12745_v58 }
 0x52c   : > { %v12748_v54 = vpop.f32.mrf.mxu1 }
 0x52d   : > { %v16693_v45 = vadd.f32 %v12747_v33, %v16479_v31 }
 0x52e   : > { %v12749_v7 = vpop.f32.mrf.mxu1 }
 0x52f   : > { %v12750_v13 = vadd.f32 %v12749_v7, %v12748_v54  ;;  %v16710_v54 = vpop.f32.mrf.mxu0 }
 0x530   : > { %v12751_v26 = vpop.f32.mrf.mxu1 }
 0x531   : > { %v16698_v39 = vadd.f32 %v12750_v13, %v16483_v63 }
 0x532   : > { %v12752_v0 = vpop.f32.mrf.mxu1 }
 0x533   : > { %17194 = vst [vmem:[#allocation37_spill] sm:$0xff] %v16698_v39  ;;  %v12753_v8 = vadd.f32 %v12752_v0, %v12751_v26  ;;  %v16712_v39 = vpop.f32.mrf.mxu0 }
 0x534   : > { %v12754_v11 = vpop.f32.mrf.mxu1 }
 0x535   : > { %v16703_v58 = vadd.f32 %v12753_v8, %v16489_v47  ;;  %v16717_v8 = vpop.f32.mrf.mxu0 }
 0x536   : > { %v12755_v50 = vpop.f32.mrf.mxu1 }
 0x537   : > { %v12756_v31 = vadd.f32 %v12755_v50, %v12754_v11  ;;  %v16722_v50 = vpop.f32.mrf.mxu0 }
 0x538   : > { %v12757_v63 = vpop.f32.mrf.mxu1  ;;  %17199 = vst [vmem:[#allocation26_spill] sm:$0xff] %v16722_v50 }
 0x539   : > { %v16708_v33 = vadd.f32 %v12756_v31, %v16493_v15 }
 0x53a   : > { %v12758_v13 = vpop.f32.mrf.mxu1 }
 0x53b   : > { %17196 = vst [vmem:[#allocation23_spill] sm:$0xff] %v16708_v33  ;;  %v12759_v7 = vadd.f32 %v12758_v13, %v12757_v63  ;;  %v16724_v63 = vpop.f32.mrf.mxu0 }
 0x53c   : > { %v12760_v16 = vpop.f32.mrf.mxu1 }
 0x53d   : > { %v16715_v26 = vadd.f32 %v12759_v7, %v16497_v60 }
 0x53e   : > { %v12761_v47 = vpop.f32.mrf.mxu1 }
 0x53f   : > { %17197 = vst [vmem:[#allocation24_spill] sm:$0xff] %v16715_v26  ;;  %v12762_v0 = vadd.f32 %v12761_v47, %v12760_v16  ;;  %v16729_v26 = vpop.f32.mrf.mxu0 }
 0x540   : > { %v12763_v15 = vpop.f32.mrf.mxu1  ;;  %17201 = vst [vmem:[#allocation40_spill] sm:$0xff] %v16729_v26 }
 0x541   : > { %v16720_v11 = vadd.f32 %v12762_v0, %v16503_v41  ;;  %v16734_v47 = vpop.f32.mrf.mxu0 }
 0x542   : > { %v12764_v31 = vpop.f32.mrf.mxu1  ;;  %17203 = vst [vmem:[#allocation28_spill] sm:$0xff] %v16734_v47 }
 0x543   : > { %17198 = vst [vmem:[#allocation25_spill] sm:$0xff] %v16720_v11  ;;  %v12765_v33 = vadd.f32 %v12764_v31, %v12763_v15  ;;  %v16736_v15 = vpop.f32.mrf.mxu0 }
 0x544   : > { %v12766_v9 = vpop.f32.mrf.mxu1 }
 0x545   : > { %v16727_v13 = vadd.f32 %v12765_v33, %v16507_v1 }
 0x546   : > { %v12767_v60 = vpop.f32.mrf.mxu1 }
 0x547   : > { %17200 = vst [vmem:[#allocation27_spill] sm:$0xff] %v16727_v13  ;;  %v12768_v7 = vadd.f32 %v12767_v60, %v12766_v9  ;;  %v16741_v13 = vpop.f32.mrf.mxu0 }
 0x549   : > { %v16732_v16 = vadd.f32 %v12768_v7, %v16510_v4  ;;  %v16746_v60 = vpop.f32.mrf.mxu0 }
 0x54b   : > { %17202 = vst [vmem:[#allocation29_spill] sm:$0xff] %v16732_v16 }
 0x54d   : > { %v12769_v41 = vpop.f32.mrf.mxu1 }
 0x54f   : > { %v12770_v0 = vpop.f32.mrf.mxu1 }
 0x550   : > { %v12771_v11 = vadd.f32 %v12770_v0, %v12769_v41  ;;  %v16751_v0 = vpop.f32.mrf.mxu0 }
 0x551   : > { %v12772_v50 = vpop.f32.mrf.mxu1 }
 0x552   : > { %v16739_v31 = vadd.f32 %v12771_v11, %v16524_v12 }
 0x553   : > { %v12773_v1 = vpop.f32.mrf.mxu1 }
 0x554   : > { %17204 = vst [vmem:[#allocation42_spill] sm:$0xff] %v16739_v31  ;;  %v12774_v33 = vadd.f32 %v12773_v1, %v12772_v50  ;;  %v16756_v1 = vpop.f32.mrf.mxu0 }
 0x556   : > { %v16744_v9 = vadd.f32 %v12774_v33, %v16542_v5  ;;  %v16758_v33 = vpop.f32.mrf.mxu0 }
 0x557   : > { %17208 = vst [vmem:[#allocation47_spill] sm:$0xff] %v16758_v33 }
 0x558   : > { %17205 = vst [vmem:[#allocation44_spill] sm:$0xff] %v16744_v9 }
 0x55a   : > { %v12775_v4 = vpop.f32.mrf.mxu1 }
 0x55c   : > { %v12776_v7 = vpop.f32.mrf.mxu1 }
 0x55d   : > { %v12777_v16 = vadd.f32 %v12776_v7, %v12775_v4 }
 0x55e   : > { %v12778_v47 = vpop.f32.mrf.mxu1 }
 0x55f   : > { %v16749_v41 = vadd.f32 %v12777_v16, %v16555_v36  ;;  %v16763_v36 = vpop.f32.mrf.mxu0 }
 0x560   : > { %v12779_v12 = vpop.f32.mrf.mxu1 }
 0x561   : > { %17206 = vst [vmem:[#allocation31_spill] sm:$0xff] %v16749_v41  ;;  %v12780_v11 = vadd.f32 %v12779_v12, %v12778_v47 }
 0x563   : > { %v16754_v50 = vadd.f32 %v12780_v11, %v16566_v44  ;;  %v16768_v44 = vpop.f32.mrf.mxu0 }
 0x564   : > { %17211 = vst [vmem:[#allocation48_spill] sm:$0xff] %v16768_v44 }
 0x565   : > { %17207 = vst [vmem:[#allocation33_spill] sm:$0xff] %v16754_v50  ;;  %v16770_v50 = vpop.f32.mrf.mxu0 }
 0x567   : > { %v12781_v5 = vpop.f32.mrf.mxu1 }
 0x569   : > { %v12782_v9 = vpop.f32.mrf.mxu1 }
 0x56a   : > { %v12783_v31 = vadd.f32 %v12782_v9, %v12781_v5 }
 0x56b   : > { %v12784_v26 = vpop.f32.mrf.mxu1 }
 0x56c   : > { %v16761_v4 = vadd.f32 %v12783_v31, %v16574_v10  ;;  %v16775_v31 = vpop.f32.mrf.mxu0 }
 0x56d   : > { %v12785_v16 = vpop.f32.mrf.mxu1 }
 0x56e   : > { %17209 = vst [vmem:[#allocation34_spill] sm:$0xff] %v16761_v4  ;;  %v12786_v7 = vadd.f32 %v12785_v16, %v12784_v26  ;;  %v16780_v16 = vpop.f32.mrf.mxu0 }
 0x570   : > { %v16766_v47 = vadd.f32 %v12786_v7, %v16580_v21  ;;  %v16782_v44 = vpop.f32.mrf.mxu0 }
 0x572   : > { %17210 = vst [vmem:[#allocation35_spill] sm:$0xff] %v16766_v47 }
 0x574   : > { %v12787_v12 = vpop.f32.mrf.mxu1 }
 0x576   : > { %v12788_v11 = vpop.f32.mrf.mxu1 }
 0x577   : > { %v12789_v41 = vadd.f32 %v12788_v11, %v12787_v12 }
 0x578   : > { %v12790_v33 = vpop.f32.mrf.mxu1 }
 0x579   : > { %v16773_v9 = vadd.f32 %v12789_v41, %v16588_v43 }
 0x57a   : > { %v12791_v10 = vpop.f32.mrf.mxu1 }
 0x57b   : > { %17212 = vst [vmem:[#allocation51_spill] sm:$0xff] %v16773_v9  ;;  %v12792_v5 = vadd.f32 %v12791_v10, %v12790_v33  ;;  %v16789_v33 = vpop.f32.mrf.mxu0 }
 0x57d   : > { %v16778_v26 = vadd.f32 %v12792_v5, %v16598_v49 }
 0x57f   : > { %17213 = vst [vmem:[#allocation38_spill] sm:$0xff] %v16778_v26 }
 0x581   : > { %v12793_v21 = vpop.f32.mrf.mxu1 }
 0x583   : > { %v12794_v7 = vpop.f32.mrf.mxu1 }
 0x584   : > { %v12795_v47 = vadd.f32 %v12794_v7, %v12793_v21  ;;  %v12829_v21 = vadd.f32 %v16593_v23, %v16591_v14  ;;  %v9107_v7 = vld [vmem:[%s13995_s30 + $0x10] sm:$0xff] }
 0x585   : > { %v12796_v4 = vpop.f32.mrf.mxu1 }
 0x586   : > { %v16785_v12 = vadd.f32 %v12795_v47, %v16607_v18  ;;  %v16800_v18 = vpop.f32.mrf.mxu0 }
 0x587   : > { %v12797_v43 = vpop.f32.mrf.mxu1 }
 0x588   : > { %17214 = vst [vmem:[#allocation39_spill] sm:$0xff] %v16785_v12  ;;  %v12798_v41 = vadd.f32 %v12797_v43, %v12796_v4  ;;  %v10838_v4 = vadd.f32 %v12829_v21, %v16622_v24  ;;  %v9105_v12 = vld [vmem:[%s13995_s30] sm:$0xff]  ;;  %v12841_v24 = vadd.f32 %v16627_v27, %v16624_v61 }
 0x589   : > { %v16787_v11 = vpop.f32.mrf.mxu1 }
 0x58a   : > { %v16792_v49 = vadd.f32 %v12798_v41, %v16619_v19  ;;  %v12832_v19 = vadd.f32 %v16601_v62, %v16595_v35  ;;  %v16808_v41 = vpop.f32.mrf.mxu0 }
 0x58b   : > { %v16794_v10 = vpop.f32.mrf.mxu1  ;;  %17218 = vst [vmem:[#allocation46_spill] sm:$0xff] %v16808_v41 }
 0x58c   : > { %17215 = vst [vmem:[#allocation41_spill] sm:$0xff] %v16792_v49  ;;  %v10841_v23 = vadd.f32 %v12832_v19, %v16633_v25  ;;  %v16816_v21 = vpop.f32.mrf.mxu0 }
 0x58d   : > { %v16796_v5 = vpop.f32.mrf.mxu1 }
 0x58e   : > { %17216 = vst [vmem:[#allocation43_spill] sm:$0xff] %v16796_v5 }
 0x58f   : > { %v16802_v47 = vpop.f32.mrf.mxu1 }
 0x590   : > { %17217 = vst [vmem:[#allocation45_spill] sm:$0xff] %v16802_v47  ;;  %v9108_v47 = vld [vmem:[%s13995_s30 + $0x18] sm:$0xff] }
 0x591   : > { %v13007_v43 = vpop.f32.mrf.mxu1 }
 0x592   : > { %v10999_v49 = vadd.f32 %v13007_v43, %v10838_v4  ;;  %v12835_v4 = vadd.f32 %v16610_v37, %v16604_v38  ;;  %v9106_v43 = vld [vmem:[%s13995_s30 + $0x8] sm:$0xff]  ;;  %v9111_v38 = vld [vmem:[%s13995_s30 + $0x30] sm:$0xff] }
 0x593   : > { %v10990_v5 = vpop.f32.mrf.mxu1 }
 0x594   : > { %v11119_v26 = vadd.f32 %v10999_v49, %v9107_v7  ;;  %v10991_v14 = vadd.f32 %v10990_v5, %v16660_v53  ;;  %v10854_v53 = vadd.f32 %v12841_v24, %v16657_v55  ;;  %v10846_v19 = vadd.f32 %v12835_v4, %v16643_v32  ;;  %v9112_v24 = vld [vmem:[%s13995_s30 + $0x38] sm:$0xff] }
 0x595   : > { %v13008_v9 = vpop.f32.mrf.mxu1 }
 0x596   : > { %v11151_v35 = vmax.f32 %v11119_v26, 0.0  ;;  %v11117_v62 = vadd.f32 %v10991_v14, %v9105_v12  ;;  %v11002_v41 = vadd.f32 %v13008_v9, %v10841_v23  ;;  %v12844_v9 = vadd.f32 %v16637_v48, %v16635_v22  ;;  %v16831_v26 = vpop.f32.mrf.mxu0 }
 0x597   : > { %v10993_v49 = vpop.f32.mrf.mxu1  ;;  %v12853_v23 = vadd.f32 %v16670_v52, %v16662_v59 }
 0x598   : > { %11183 = vst [vmem:[%s16823_s7 + $0x10] sm:$0xff] %v11151_v35  ;;  %v11149_v25 = vmax.f32 %v11117_v62, 0.0  ;;  %v11120_v61 = vadd.f32 %v11002_v41, %v9108_v47  ;;  %v10994_v27 = vadd.f32 %v10993_v49, %v16668_v34  ;;  %v12838_v34 = vadd.f32 %v16616_v3, %v16613_v2  ;;  %v9109_v47 = vld [vmem:[%s13995_s30 + $0x20] sm:$0xff]  ;;  %v16843_v32 = vpop.f32.mrf.mxu0  ;;  %v9110_v49 = vld [vmem:[%s13995_s30 + $0x28] sm:$0xff] }
 0x599   : > { %v13011_v37 = vpop.f32.mrf.mxu1  ;;  %v10857_v14 = vadd.f32 %v12844_v9, %v16665_v40 }
 0x59a   : > { %11181 = vst [vmem:[%s16823_s7] sm:$0xff] %v11149_v25  ;;  %v11152_v12 = vmax.f32 %v11120_v61, 0.0  ;;  %v11118_v5 = vadd.f32 %v10994_v27, %v9106_v43  ;;  %v11015_v7 = vadd.f32 %v13011_v37, %v10854_v53  ;;  %v10849_v4 = vadd.f32 %v12838_v34, %v16650_v56  ;;  %v9115_v53 = vld [vmem:[%s13995_s30 + $0x50] sm:$0xff]  ;;  %v16855_v56 = vpop.f32.mrf.mxu0  ;;  %v9116_v34 = vld [vmem:[%s13995_s30 + $0x58] sm:$0xff] }
 0x59b   : > { %v11006_v55 = vpop.f32.mrf.mxu1  ;;  %v12847_v43 = vadd.f32 %v16647_v20, %v16645_v6  ;;  %v10870_v61 = vadd.f32 %v12853_v23, %v16683_v28  ;;  %v12856_v27 = vadd.f32 %v16680_v42, %v16675_v29  ;;  %v17221_v23 = vld [vmem:[#allocation22_spill] sm:$0xff] }
 0x59c   : > { %11184 = vst [vmem:[%s16823_s7 + $0x18] sm:$0xff] %v11152_v12  ;;  %v11150_v22 = vmax.f32 %v11118_v5, 0.0  ;;  %v11123_v48 = vadd.f32 %v11015_v7, %v9111_v38  ;;  %v11007_v41 = vadd.f32 %v11006_v55, %v10846_v19  ;;  %v12850_v12 = vadd.f32 %v16654_v51, %v16652_v30  ;;  %v9113_v5 = vld [vmem:[%s13995_s30 + $0x40] sm:$0xff]  ;;  %v17219_v55 = vld [vmem:[#allocation32_spill] sm:$0xff] }
 0x59d   : > { %v13012_v35 = vpop.f32.mrf.mxu1  ;;  %v10862_v37 = vadd.f32 %v12847_v43, %v16673_v46  ;;  %v10873_v19 = vadd.f32 %v12856_v27, %v16688_v17  ;;  %v12865_v46 = vadd.f32 %v16710_v54, %v16705_v57  ;;  %v9119_v54 = vld [vmem:[%s13995_s30 + $0x70] sm:$0xff]  ;;  %v17223_v27 = vld [vmem:[#allocation19_spill] sm:$0xff] }
 0x59e   : > { %11182 = vst [vmem:[%s16823_s7 + $0x8] sm:$0xff] %v11150_v22  ;;  %v11155_v2 = vmax.f32 %v11123_v48, 0.0  ;;  %v11121_v3 = vadd.f32 %v11007_v41, %v9109_v47  ;;  %v11018_v62 = vadd.f32 %v13012_v35, %v10857_v14  ;;  %v10865_v22 = vadd.f32 %v12850_v12, %v17219_v55  ;;  %v16868_v48 = vpop.f32.mrf.mxu0  ;;  %v17220_v14 = vld [vmem:[#allocation21_spill] sm:$0xff]  ;;  %v9114_v35 = vld [vmem:[%s13995_s30 + $0x48] sm:$0xff] }
 0x59f   : > { %v11009_v40 = vpop.f32.mrf.mxu1  ;;  %v10886_v57 = vadd.f32 %v12865_v46, %v16703_v58  ;;  %v17225_v12 = vld [vmem:[#allocation37_spill] sm:$0xff]  ;;  %v9118_v55 = vld [vmem:[%s13995_s30 + $0x68] sm:$0xff] }
 0x5a0   : > { %11187 = vst [vmem:[%s16823_s7 + $0x30] sm:$0xff] %v11155_v2  ;;  %v11153_v59 = vmax.f32 %v11121_v3, 0.0  ;;  %v11124_v52 = vadd.f32 %v11018_v62, %v9112_v24  ;;  %v11010_v25 = vadd.f32 %v11009_v40, %v10849_v4  ;;  %v12859_v24 = vadd.f32 %v17221_v23, %v17220_v14  ;;  %v16880_v40 = vpop.f32.mrf.mxu0  ;;  %v17228_v23 = vld [vmem:[#allocation24_spill] sm:$0xff] }
 0x5a1   : > { %v13015_v9 = vpop.f32.mrf.mxu1 }
 0x5a2   : > { %11185 = vst [vmem:[%s16823_s7 + $0x20] sm:$0xff] %v11153_v59  ;;  %v11156_v6 = vmax.f32 %v11124_v52, 0.0  ;;  %v11122_v20 = vadd.f32 %v11010_v25, %v9110_v49  ;;  %v11031_v38 = vadd.f32 %v13015_v9, %v10870_v61  ;;  %v10878_v43 = vadd.f32 %v12859_v24, %v16693_v45  ;;  %v17222_v61 = vld [vmem:[#allocation36_spill] sm:$0xff]  ;;  %v9117_v9 = vld [vmem:[%s13995_s30 + $0x60] sm:$0xff] }
 0x5a3   : > { %v11022_v28 = vpop.f32.mrf.mxu1  ;;  %v12868_v49 = vadd.f32 %v16717_v8, %v16712_v39  ;;  %v9120_v8 = vld [vmem:[%s13995_s30 + $0x78] sm:$0xff] }
 0x5a4   : > { %11188 = vst [vmem:[%s16823_s7 + $0x38] sm:$0xff] %v11156_v6  ;;  %v11154_v29 = vmax.f32 %v11122_v20, 0.0  ;;  %v11127_v42 = vadd.f32 %v11031_v38, %v9115_v53  ;;  %v11023_v7 = vadd.f32 %v11022_v28, %v10862_v37  ;;  %v12862_v53 = vadd.f32 %v17223_v27, %v17222_v61  ;;  %v17224_v38 = vld [vmem:[#allocation23_spill] sm:$0xff]  ;;  %v17232_v27 = vld [vmem:[#allocation25_spill] sm:$0xff] }
 0x5a5   : > { %v13016_v47 = vpop.f32.mrf.mxu1  ;;  %v10889_v39 = vadd.f32 %v12868_v49, %v17224_v38  ;;  %v12877_v28 = vadd.f32 %v16741_v13, %v16736_v15  ;;  %v9123_v15 = vld [vmem:[%s13995_s30 + $0x90] sm:$0xff]  ;;  %v17233_v38 = vld [vmem:[#allocation47_spill] sm:$0xff] }
 0x5a6   : > { %11186 = vst [vmem:[%s16823_s7 + $0x28] sm:$0xff] %v11154_v29  ;;  %v11159_v30 = vmax.f32 %v11127_v42, 0.0  ;;  %v11125_v51 = vadd.f32 %v11023_v7, %v9113_v5  ;;  %v11034_v41 = vadd.f32 %v13016_v47, %v10873_v19  ;;  %v10881_v5 = vadd.f32 %v12862_v53, %v17225_v12  ;;  %v16892_v29 = vpop.f32.mrf.mxu0 }
 0x5a7   : > { %v11025_v17 = vpop.f32.mrf.mxu1 }
 0x5a8   : > { %11191 = vst [vmem:[%s16823_s7 + $0x50] sm:$0xff] %v11159_v30  ;;  %v11157_v2 = vmax.f32 %v11125_v51, 0.0  ;;  %v11128_v3 = vadd.f32 %v11034_v41, %v9116_v34  ;;  %v11026_v62 = vadd.f32 %v11025_v17, %v10865_v22  ;;  %v17226_v34 = vld [vmem:[#allocation26_spill] sm:$0xff]  ;;  %v17227_v41 = vld [vmem:[#allocation27_spill] sm:$0xff]  ;;  %v16904_v17 = vpop.f32.mrf.mxu0 }
 0x5a9   : > { %v13019_v4 = vpop.f32.mrf.mxu1  ;;  %v12871_v47 = vadd.f32 %v16724_v63, %v17226_v34  ;;  %v10902_v13 = vadd.f32 %v12877_v28, %v17227_v41  ;;  %v17235_v34 = vld [vmem:[#allocation42_spill] sm:$0xff] }
 0x5aa   : > { %11189 = vst [vmem:[%s16823_s7 + $0x40] sm:$0xff] %v11157_v2  ;;  %v11160_v59 = vmax.f32 %v11128_v3, 0.0  ;;  %v11126_v52 = vadd.f32 %v11026_v62, %v9114_v35  ;;  %v11047_v25 = vadd.f32 %v13019_v4, %v10886_v57  ;;  %v12880_v35 = vadd.f32 %v16751_v0, %v16746_v60  ;;  %v17229_v62 = vld [vmem:[#allocation40_spill] sm:$0xff]  ;;  %v9121_v4 = vld [vmem:[%s13995_s30 + $0x80] sm:$0xff]  ;;  %v9124_v0 = vld [vmem:[%s13995_s30 + $0x98] sm:$0xff] }
 0x5ab   : > { %v11038_v58 = vpop.f32.mrf.mxu1  ;;  %v10894_v24 = vadd.f32 %v12871_v47, %v17228_v23  ;;  %v17230_v57 = vld [vmem:[#allocation28_spill] sm:$0xff]  ;;  %v9125_v41 = vld [vmem:[%s13995_s30 + $0xa0] sm:$0xff] }
 0x5ac   : > { %11192 = vst [vmem:[%s16823_s7 + $0x58] sm:$0xff] %v11160_v59  ;;  %v11158_v6 = vmax.f32 %v11126_v52, 0.0  ;;  %v11131_v45 = vadd.f32 %v11047_v25, %v9119_v54  ;;  %v11039_v20 = vadd.f32 %v11038_v58, %v10878_v43  ;;  %v12874_v54 = vadd.f32 %v17230_v57, %v17229_v62  ;;  %v17231_v25 = vld [vmem:[#allocation29_spill] sm:$0xff]  ;;  %v16916_v58 = vpop.f32.mrf.mxu0 }
 0x5ad   : > { %v13020_v37 = vpop.f32.mrf.mxu1  ;;  %v10905_v60 = vadd.f32 %v12880_v35, %v17231_v25  ;;  %v17237_v35 = vld [vmem:[#allocation33_spill] sm:$0xff]  ;;  %v12901_v62 = vadd.f32 %v16843_v32, %v16831_v26  ;;  %v17239_v32 = vld [vmem:[#allocation51_spill] sm:$0xff] }
 0x5ae   : > { %11190 = vst [vmem:[%s16823_s7 + $0x48] sm:$0xff] %v11158_v6  ;;  %v11163_v42 = vmax.f32 %v11131_v45, 0.0  ;;  %v11129_v7 = vadd.f32 %v11039_v20, %v9117_v9  ;;  %v11050_v19 = vadd.f32 %v13020_v37, %v10889_v39  ;;  %v10897_v53 = vadd.f32 %v12874_v54, %v17232_v27  ;;  %v12911_v12 = vpop.f32.mrf.mxu0  ;;  %v9131_v27 = vld [vmem:[%s13995_s30 + $0xd0] sm:$0xff] }
 0x5af   : > { %v11041_v22 = vpop.f32.mrf.mxu1  ;;  %v12889_v9 = vadd.f32 %v16775_v31, %v16770_v50  ;;  %v12883_v39 = vadd.f32 %v17233_v38, %v16756_v1  ;;  %v17234_v50 = vld [vmem:[#allocation31_spill] sm:$0xff] }
 0x5b0   : > { %11195 = vst [vmem:[%s16823_s7 + $0x70] sm:$0xff] %v11163_v42  ;;  %v11161_v46 = vmax.f32 %v11129_v7, 0.0  ;;  %v11132_v30 = vadd.f32 %v11050_v19, %v9120_v8  ;;  %v11042_v51 = vadd.f32 %v11041_v22, %v10881_v5  ;;  %v9122_v8 = vld [vmem:[%s13995_s30 + $0x88] sm:$0xff]  ;;  %v9127_v7 = vld [vmem:[%s13995_s30 + $0xb0] sm:$0xff] }
 0x5b1   : > { %v13023_v14 = vpop.f32.mrf.mxu1  ;;  %v10918_v31 = vadd.f32 %v12889_v9, %v17234_v50  ;;  %v10910_v47 = vadd.f32 %v12883_v39, %v17235_v34  ;;  %v9132_v34 = vld [vmem:[%s13995_s30 + $0xd8] sm:$0xff] }
 0x5b2   : > { %11193 = vst [vmem:[%s16823_s7 + $0x60] sm:$0xff] %v11161_v46  ;;  %v11164_v63 = vmax.f32 %v11132_v30, 0.0  ;;  %v11130_v2 = vadd.f32 %v11042_v51, %v9118_v55  ;;  %v11063_v3 = vadd.f32 %v13023_v14, %v10902_v13  ;;  %v12892_v55 = vadd.f32 %v16782_v44, %v16780_v16  ;;  %v17236_v30 = vld [vmem:[#allocation48_spill] sm:$0xff]  ;;  %v9128_v44 = vld [vmem:[%s13995_s30 + $0xb8] sm:$0xff] }
 0x5b3   : > { %v11054_v43 = vpop.f32.mrf.mxu1  ;;  %v12886_v51 = vadd.f32 %v17236_v30, %v16763_v36 }
 0x5b4   : > { %11196 = vst [vmem:[%s16823_s7 + $0x78] sm:$0xff] %v11164_v63  ;;  %v11162_v49 = vmax.f32 %v11130_v2, 0.0  ;;  %v11135_v59 = vadd.f32 %v11063_v3, %v9123_v15  ;;  %v11055_v52 = vadd.f32 %v11054_v43, %v10894_v24  ;;  %v12912_v15 = vpop.f32.mrf.mxu0  ;;  %v10921_v63 = vadd.f32 %v12892_v55, %v17237_v35  ;;  %v17238_v2 = vld [vmem:[#allocation44_spill] sm:$0xff] }
 0x5b5   : > { %v13024_v61 = vpop.f32.mrf.mxu1  ;;  %v10913_v3 = vadd.f32 %v12886_v51, %v17238_v2  ;;  %v12801_v43 = vadd.f32 %v16794_v10, %v16787_v11  ;;  %v12913_v39 = vadd.f32 %v12912_v15, %v12911_v12  ;;  %v9130_v51 = vld [vmem:[%s13995_s30 + $0xc8] sm:$0xff]  ;;  %v17247_v15 = vld [vmem:[#allocation20_spill] sm:$0xff] }
 0x5b6   : > { %11194 = vst [vmem:[%s16823_s7 + $0x68] sm:$0xff] %v11162_v49  ;;  %v11167_v6 = vmax.f32 %v11135_v59, 0.0  ;;  %v11133_v45 = vadd.f32 %v11055_v52, %v9121_v4  ;;  %v11066_v20 = vadd.f32 %v13024_v61, %v10905_v60  ;;  %v12895_v4 = vadd.f32 %v16800_v18, %v16789_v33  ;;  %v9126_v49 = vld [vmem:[%s13995_s30 + $0xa8] sm:$0xff]  ;;  %v12914_v52 = vpop.f32.mrf.mxu0  ;;  %v17240_v18 = vld [vmem:[#allocation34_spill] sm:$0xff] }
 0x5b7   : > { %v11057_v37 = vpop.f32.mrf.mxu1  ;;  %v12904_v61 = vadd.f32 %v16868_v48, %v16855_v56  ;;  %v17243_v56 = vld [vmem:[#allocation38_spill] sm:$0xff] }
 0x5b8   : > { %11199 = vst [vmem:[%s16823_s7 + $0x90] sm:$0xff] %v11167_v6  ;;  %v11165_v5 = vmax.f32 %v11133_v45, 0.0  ;;  %v11136_v28 = vadd.f32 %v11066_v20, %v9124_v0  ;;  %v11058_v42 = vadd.f32 %v11057_v37, %v10897_v53  ;;  %v10934_v0 = vadd.f32 %v12901_v62, %v17239_v32  ;;  %v17241_v6 = vld [vmem:[#allocation46_spill] sm:$0xff]  ;;  %v12915_v50 = vpop.f32.mrf.mxu0  ;;  %v17249_v32 = vld [vmem:[#allocation41_spill] sm:$0xff] }
 0x5b9   : > { %v13027_v19 = vpop.f32.mrf.mxu1  ;;  %v10926_v9 = vadd.f32 %v12895_v4, %v17240_v18  ;;  %v12898_v45 = vadd.f32 %v16816_v21, %v17241_v6  ;;  %v17242_v20 = vld [vmem:[#allocation30_spill] sm:$0xff]  ;;  %v10937_v48 = vadd.f32 %v12904_v61, %v17243_v56  ;;  %v12916_v30 = vadd.f32 %v12915_v50, %v12914_v52 }
 0x5ba   : > { %11197 = vst [vmem:[%s16823_s7 + $0x80] sm:$0xff] %v11165_v5  ;;  %v11168_v1 = vmax.f32 %v11136_v28, 0.0  ;;  %v11134_v22 = vadd.f32 %v11058_v42, %v9122_v8  ;;  %v11079_v46 = vadd.f32 %v13027_v19, %v10918_v31  ;;  %v10789_v38 = vadd.f32 %v12801_v43, %v17242_v20  ;;  %v9129_v8 = vld [vmem:[%s13995_s30 + $0xc0] sm:$0xff]  ;;  %v17244_v5 = vld [vmem:[#allocation43_spill] sm:$0xff]  ;;  %v17245_v28 = vld [vmem:[#allocation45_spill] sm:$0xff] }
 0x5bb   : > { %v11070_v13 = vpop.f32.mrf.mxu1  ;;  %v12804_v42 = vadd.f32 %v17245_v28, %v17244_v5  ;;  %v12910_v62 = vadd.f32 %v16916_v58, %v16904_v17  ;;  %v9134_v58 = vld [vmem:[%s13995_s30 + $0xe8] sm:$0xff] }
 0x5bc   : > { %11200 = vst [vmem:[%s16823_s7 + $0x98] sm:$0xff] %v11168_v1  ;;  %v11166_v14 = vmax.f32 %v11134_v22, 0.0  ;;  %v11139_v23 = vadd.f32 %v11079_v46, %v9127_v7  ;;  %v11071_v24 = vadd.f32 %v11070_v13, %v10910_v47  ;;  %v17246_v1 = vld [vmem:[#allocation35_spill] sm:$0xff]  ;;  %v12907_v46 = vadd.f32 %v16892_v29, %v16880_v40 }
 0x5bd   : > { %v13028_v16 = vpop.f32.mrf.mxu1  ;;  %v10929_v22 = vadd.f32 %v12898_v45, %v17246_v1  ;;  %v10950_v13 = vadd.f32 %v12913_v39, %v10789_v38  ;;  %v17248_v29 = vld [vmem:[#allocation39_spill] sm:$0xff]  ;;  %v10945_v17 = vadd.f32 %v12910_v62, %v17249_v32 }
 0x5be   : > { %11198 = vst [vmem:[%s16823_s7 + $0x88] sm:$0xff] %v11166_v14  ;;  %v11171_v36 = vmax.f32 %v11139_v23, 0.0  ;;  %v11137_v57 = vadd.f32 %v11071_v24, %v9125_v41  ;;  %v11082_v54 = vadd.f32 %v13028_v16, %v10921_v63  ;;  %v10792_v14 = vadd.f32 %v12804_v42, %v17247_v15  ;;  %v9135_v63 = vld [vmem:[%s13995_s30 + $0xf0] sm:$0xff] }
 0x5bf   : > { %v11073_v59 = vpop.f32.mrf.mxu1 }
 0x5c0   : > { %11203 = vst [vmem:[%s16823_s7 + $0xb0] sm:$0xff] %v11171_v36  ;;  %v11169_v25 = vmax.f32 %v11137_v57, 0.0  ;;  %v11140_v60 = vadd.f32 %v11082_v54, %v9128_v44  ;;  %v11074_v26 = vadd.f32 %v11073_v59, %v10913_v3  ;;  %v10942_v3 = vadd.f32 %v12907_v46, %v17248_v29  ;;  %v9133_v36 = vld [vmem:[%s13995_s30 + $0xe0] sm:$0xff]  ;;  %v9136_v59 = vld [vmem:[%s13995_s30 + $0xf8] sm:$0xff]  ;;  %s11214_s30 = scalar_lea.sflag [#allocation6], %s13989_s16 }
 0x5c1   : > { %v13031_v53 = vpop.f32.mrf.mxu1 }
 0x5c2   : > { %11201 = vst [vmem:[%s16823_s7 + $0xa0] sm:$0xff] %v11169_v25  ;;  %v11172_v33 = vmax.f32 %v11140_v60, 0.0  ;;  %v11138_v11 = vadd.f32 %v11074_v26, %v9126_v49  ;;  %v11095_v10 = vadd.f32 %v13031_v53, %v10934_v0  ;;  %v10953_v49 = vadd.f32 %v12916_v30, %v10792_v14 }
 0x5c3   : > { %v11086_v37 = vpop.f32.mrf.mxu1 }
 0x5c4   : > { %11204 = vst [vmem:[%s16823_s7 + $0xb8] sm:$0xff] %v11172_v33  ;;  %v11170_v31 = vmax.f32 %v11138_v11, 0.0  ;;  %v11143_v7 = vadd.f32 %v11095_v10, %v9131_v27  ;;  %v11087_v19 = vadd.f32 %v11086_v37, %v10926_v9 }
 0x5c5   : > { %v13032_v47 = vpop.f32.mrf.mxu1 }
 0x5c6   : > { %11202 = vst [vmem:[%s16823_s7 + $0xa8] sm:$0xff] %v11170_v31  ;;  %v11175_v21 = vmax.f32 %v11143_v7, 0.0  ;;  %v11141_v12 = vadd.f32 %v11087_v19, %v9129_v8  ;;  %v11098_v55 = vadd.f32 %v13032_v47, %v10937_v48 }
 0x5c7   : > { %v11089_v41 = vpop.f32.mrf.mxu1 }
 0x5c8   : > { %11207 = vst [vmem:[%s16823_s7 + $0xd0] sm:$0xff] %v11175_v21  ;;  %v11173_v23 = vmax.f32 %v11141_v12, 0.0  ;;  %v11144_v24 = vadd.f32 %v11098_v55, %v9132_v34  ;;  %v11090_v35 = vadd.f32 %v11089_v41, %v10929_v22 }
 0x5c9   : > { %v13035_v44 = vpop.f32.mrf.mxu1 }
 0x5ca   : > { %11205 = vst [vmem:[%s16823_s7 + $0xc0] sm:$0xff] %v11173_v23  ;;  %v11176_v16 = vmax.f32 %v11144_v24, 0.0  ;;  %v11142_v2 = vadd.f32 %v11090_v35, %v9130_v51  ;;  %v11111_v40 = vadd.f32 %v13035_v44, %v10950_v13 }
 0x5cb   : > { %v11102_v57 = vpop.f32.mrf.mxu1 }
 0x5cc   : > { %11208 = vst [vmem:[%s16823_s7 + $0xd8] sm:$0xff] %v11176_v16  ;;  %v11174_v54 = vmax.f32 %v11142_v2, 0.0  ;;  %v11147_v4 = vadd.f32 %v11111_v40, %v9135_v63  ;;  %v11103_v43 = vadd.f32 %v11102_v57, %v10942_v3 }
 0x5cd   : > { %v13036_v52 = vpop.f32.mrf.mxu1 }
 0x5ce   : > { %11206 = vst [vmem:[%s16823_s7 + $0xc8] sm:$0xff] %v11174_v54  ;;  %v11179_v25 = vmax.f32 %v11147_v4, 0.0  ;;  %v11145_v60 = vadd.f32 %v11103_v43, %v9133_v36  ;;  %v11114_v26 = vadd.f32 %v13036_v52, %v10953_v49 }
 0x5cf   : > { %v11105_v0 = vpop.f32.mrf.mxu1 }
 0x5d0   : > { %11211 = vst [vmem:[%s16823_s7 + $0xf0] sm:$0xff] %v11179_v25  ;;  %v11177_v61 = vmax.f32 %v11145_v60, 0.0  ;;  %v11148_v27 = vadd.f32 %v11114_v26, %v9136_v59  ;;  %v11106_v53 = vadd.f32 %v11105_v0, %v10945_v17 }
 0x5d2   : > { %11209 = vst [vmem:[%s16823_s7 + $0xe0] sm:$0xff] %v11177_v61  ;;  %v11180_v33 = vmax.f32 %v11148_v27, 0.0  ;;  %v11146_v11 = vadd.f32 %v11106_v53, %v9134_v58 }
 0x5d4   : > { %11212 = vst [vmem:[%s16823_s7 + $0xf8] sm:$0xff] %v11180_v33  ;;  %v11178_v10 = vmax.f32 %v11146_v11, 0.0 }
 0x5d6   : > { %11210 = vst [vmem:[%s16823_s7 + $0xe8] sm:$0xff] %v11178_v10 }
 0x5d7   : > { %13764 = shalt.err (!%p13761_p9)
}
 0x5d8   : > { %s13765_s10 = scalar_lea.hbm %s16985_s29, 4096  ;;  %s13769_s28 = scalar_lea.hbm %s17037_s5, 8192 }
 0x5d9   : > { %p13766_p13 = scmp.ne.s32.totalorder %s16985_s29, %s13765_s10  ;;  %p13770_p4 = scmp.lt.s32.totalorder %s16985_s29, %s17037_s5 }
 0x5da   : > { %p13771_p8 = scmp.lt.s32.totalorder %s13769_s28, %s13765_s10 }
 0x5db   : > { %p13767_p5 = pnand %p13766_p13, %p17250_p10 }
 0x5dc   : > { %p13772_p3 = por %p13771_p8, %p13770_p4 }
 0x5dd   : > { %p13768_p0 = pneg %p13767_p5 }
 0x5df   : > { %p13773_p11 = pnand %p13772_p3, %p13768_p0 }
 0x5e1   : > { %13776 = shalt.err (!%p13773_p11)
}
 0x5e2   : > { %s13830_s9 = smov 128   ;;  %s13831_s14 = smov 8  }
 0x5e3   : > { %13047 = dma.vmem_to_hbm [thread:$0]  (%p17250_p10), %s16987_s13, 4096, %s16985_s29, %s11214_s30, %s13830_s9, %s13830_s9, %s13831_s14  }
 0x5e4 PF: > { %s11242_s17 = sand.u32 1, %s13807_s18   ;;  %p17251_p1 = scmp.ne.s32.totalorder %s17055_s25, 0 }
 0x5e5   : > { %p17252_p2 = scmp.ge.s32.totalorder %s13819_s21, 2  ;;  %s11243_s24 = scalar_lea.sflag [#allocation6], %s11242_s17 }
 0x5e7   : > { %p13061_p6 = pnand %p17252_p2, %p17251_p1 }
 0x5e9   : > { %p13062_p12 = pneg %p13061_p6 }
 0x5eb   : > { %13802 = dma.done.wait (%p13062_p12), %s11243_s24, 4096  }
 0x5ec   : > { %13804 = vsyncadd (%p13062_p12), %s11243_s24, 4294963200  ;;  %p19_p7 = scmp.ge.s32.totalorder %s13934_s15, 4   ;;  %s17253_s18 = smov %s13811_s19 }
 0x5ed   : > { %s17254_s19 = smov %s13815_s20  ;;  %s17255_s20 = smov %s13950_s27 }
 0x5ee   : > { %s17256_s21 = smov %s13934_s15  ;;  %21 = sbr.rel (!%p19_p7) target bundleno = 6 (0x6), region = 96 }
 0x5f3   :  { %11248 = vsyncpa [#allocation5], 1 }
 0x5f4   :  { %11250 = vsyncpa [#allocation5 + $0x1], 1 }
 0x5f5   :  { %11251 = vsyncpa [#allocation8], 1 }
 0x5f6   :  { %11252 = vsyncpa [#allocation6], 1 }
 0x5f7   :  { %11254 = vsyncpa [#allocation6 + $0x1], 1 }

</bundles_post_ra>
